<compile_context>
chip_gen: v7x
topology: tpu7x:2x2x1
jax: 0.10.0
libtpu: 0.0.40
codegen_flags: <defaults>
</compile_context>

<pallas_src>
import functools

import jax
import jax.numpy as jnp
from jax.experimental import pallas as pl
from jax.experimental.pallas import tpu as pltpu

LATENT_DIM = 20
FC_PAD_N = 128          # FC output lanes padded 2*latent_dim=40 -> 128 (sliced in wrapper)
CONV1_CIN_PAD = 4       # conv1 input channels padded 3 -> 4  (GEMM K: 27 -> 36)


# ----------------------------------------------------------------------------
# Pallas kernel: fused  out = act(A @ B + bias)  on the MXU, f32 accumulation.
# Conv layers:   A = packed weights (Cout, 9*Cin),  B = im2col patches^T (9*Cin, M)
# Fused FC head: A = flattened activations (B, 4096), B = packed weights (4096, 128)
# ----------------------------------------------------------------------------
def _gemm_bias_act_kernel(a_ref, b_ref, bias_ref, o_ref, *, apply_relu):
    acc = jnp.dot(a_ref[...], b_ref[...], preferred_element_type=jnp.float32)
    acc = acc + bias_ref[...]                  # bias kept in f32
    if apply_relu:
        acc = jnp.maximum(acc, 0.0)
    o_ref[...] = acc.astype(o_ref.dtype)


def _pick_tile_n(n):
    """Tile size along the streamed (lane) dimension N.

    The last block dim must be a multiple of 128 or the full dim.  For the
    large conv GEMMs keep >=2 blocks so both TensorCores get work on v7x; for
    small N use one full block (per-grid-step overhead dominates otherwise)."""
    if n < 2048 or n % 256 != 0:
        return n
    tn = n // 2
    while tn > 4096 and tn % 256 == 0:
        tn //= 2
    return tn


def matmul_bias_act(a, b, bias, *, apply_relu, out_dtype):
    """(Ma, K) @ (K, N) + bias -> (Ma, N), tiled along N only (lane-dense IO)."""
    ma, k = a.shape
    k2, n = b.shape
    assert k == k2
    tn = _pick_tile_n(n)
    kernel = functools.partial(_gemm_bias_act_kernel, apply_relu=apply_relu)
    return pl.pallas_call(
        kernel,
        out_shape=jax.ShapeDtypeStruct((ma, n), out_dtype),
        grid=(n // tn,),
        in_specs=[
            pl.BlockSpec((ma, k), lambda i: (0, 0)),       # resident across the grid
            pl.BlockSpec((k, tn), lambda i: (0, i)),
            pl.BlockSpec(bias.shape, lambda i: (0, 0)),
        ],
        out_specs=pl.BlockSpec((ma, tn), lambda i: (0, i)),
        compiler_params=pltpu.CompilerParams(dimension_semantics=("parallel",)),
    )(a, b, bias)


# ----------------------------------------------------------------------------
# Conv layer: PyTorch Conv2d(Cin, Cout, 3, stride=2, padding=1) + ReLU in a
# channels-first-of-batch (C, B, H, W) layout.  The im2col (pad + 9 strided
# slices + stack) is cheap XLA glue; the GEMM runs in the Pallas kernel.
# ----------------------------------------------------------------------------
def conv3x3_s2_relu(x_cbhw, w_packed, b_col):
    cin, bsz, h, w = x_cbhw.shape
    ho, wo = h // 2, w // 2
    xp = jnp.pad(x_cbhw, ((0, 0), (0, 0), (1, 1), (1, 1)))
    taps = [xp[:, :, kh:kh + 2 * ho:2, kw:kw + 2 * wo:2]          # (Cin, B, Ho, Wo)
            for kh in range(3) for kw in range(3)]
    patches_t = jnp.stack(taps, axis=0).reshape(9 * cin, bsz * ho * wo)
    cout = w_packed.shape[0]
    out_t = matmul_bias_act(w_packed, patches_t, b_col,
                            apply_relu=True, out_dtype=jnp.bfloat16)
    return out_t.reshape(cout, bsz, ho, wo)


# ----------------------------------------------------------------------------
# Parameters: synthetic PyTorch-layout params (for the reference), plus a
# one-time repack into kernel-friendly layout (no runtime transposes).
# ----------------------------------------------------------------------------
def init_params(key):
    chans = [3, 16, 32, 64, 128, 256]
    params = {"conv": []}
    keys = jax.random.split(key, 2 * (len(chans) - 1) + 4)
    ki = 0
    for cin, cout in zip(chans[:-1], chans[1:]):
        std = (2.0 / (cin * 9)) ** 0.5
        w = jax.random.normal(keys[ki], (cout, cin, 3, 3), jnp.float32) * std
        b = jax.random.normal(keys[ki + 1], (cout,), jnp.float32) * 0.01
        params["conv"].append((w, b))
        ki += 2
    fan_in = 256 * 4 * 4
    std = (1.0 / fan_in) ** 0.5
    params["fc_mu"] = (
        jax.random.normal(keys[ki], (LATENT_DIM, fan_in), jnp.float32) * std,
        jax.random.normal(keys[ki + 1], (LATENT_DIM,), jnp.float32) * 0.01,
    )
    params["fc_logvar"] = (
        jax.random.normal(keys[ki + 2], (LATENT_DIM, fan_in), jnp.float32) * std,
        jax.random.normal(keys[ki + 3], (LATENT_DIM,), jnp.float32) * 0.01,
    )
    return params


def pack_params(params, compute_dtype=jnp.bfloat16):
    """One-time repack:
    * conv:  (Cout, Cin, 3, 3) -> (Cout, 9*Cin), tap-major / channel-minor,
             conv1's Cin zero-padded 3 -> 4 (K = 36).  bias -> (Cout, 1) f32.
    * fc:    mu / logvar weights permuted to the kernel's NHWC-flatten row
             order ((h*4 + w)*256 + c), concatenated and zero-padded to 128
             output columns; biases likewise -> (1, 128) f32.
    """
    packed = {"conv": []}
    for li, (w, b) in enumerate(params["conv"]):
        cout, cin = w.shape[0], w.shape[1]
        if li == 0:
            w = jnp.pad(w, ((0, 0), (0, CONV1_CIN_PAD - cin), (0, 0), (0, 0)))
            cin = CONV1_CIN_PAD
        w_mat = jnp.transpose(w, (0, 2, 3, 1)).reshape(cout, 9 * cin)
        packed["conv"].append((w_mat.astype(compute_dtype),
                               b.reshape(cout, 1).astype(jnp.float32)))

    def fc_perm(w):      # (latent, 4096) in NCHW order -> (4096, latent) in NHWC-flatten order
        return jnp.transpose(w.reshape(LATENT_DIM, 256, 4, 4),
                             (2, 3, 1, 0)).reshape(-1, LATENT_DIM)

    (w_mu, b_mu), (w_lv, b_lv) = params["fc_mu"], params["fc_logvar"]
    w_fc = jnp.concatenate([fc_perm(w_mu), fc_perm(w_lv)], axis=1)      # (4096, 40)
    w_fc = jnp.pad(w_fc, ((0, 0), (0, FC_PAD_N - 2 * LATENT_DIM)))
    b_fc = jnp.pad(jnp.concatenate([b_mu, b_lv]), (0, FC_PAD_N - 2 * LATENT_DIM))
    packed["fc"] = (w_fc.astype(compute_dtype),
                    b_fc.reshape(1, FC_PAD_N).astype(jnp.float32))
    return packed


# ----------------------------------------------------------------------------
# Forward pass (Pallas-backed): 5 conv GEMMs + 1 fused FC GEMM.
# ----------------------------------------------------------------------------
def vae_encoder_forward(x_nchw, packed):
    bsz = x_nchw.shape[0]
    # NCHW -> (C, B, H, W) once, pad channels 3 -> 4, cast MXU operands to bf16.
    x = jnp.transpose(x_nchw, (1, 0, 2, 3))
    x = jnp.pad(x, ((0, CONV1_CIN_PAD - x.shape[0]), (0, 0), (0, 0), (0, 0)))
    x = x.astype(jnp.bfloat16)
    for w_mat, b_col in packed["conv"]:
        x = conv3x3_s2_relu(x, w_mat, b_col)              # (Cout, B, H/2, W/2)

    # (256, B, 4, 4) -> (B, 4096) with element order (h*4+w)*256 + c, matching
    # the pre-permuted FC weight rows (tiny (256, B*16) transpose only).
    x_flat = jnp.transpose(x.reshape(x.shape[0], -1)).reshape(bsz, -1)

    w_fc, b_fc = packed["fc"]
    out = matmul_bias_act(x_flat, w_fc, b_fc, apply_relu=False, out_dtype=jnp.float32)
    return out[:, :LATENT_DIM], out[:, LATENT_DIM:2 * LATENT_DIM]


# ----------------------------------------------------------------------------
# Pure-JAX reference.  cast_dtype=None       -> exact f32 module semantics.
#                      cast_dtype=bfloat16   -> same bf16-operand / f32-accumulate
#                                               quantization as the kernels.
# ----------------------------------------------------------------------------
def vae_encoder_reference(x_nchw, params, cast_dtype=None):
    c = (lambda t: t.astype(cast_dtype)) if cast_dtype is not None else (lambda t: t)
    x = jnp.transpose(x_nchw, (0, 2, 3, 1))                      # NHWC
    for w, b in params["conv"]:
        y = jax.lax.conv_general_dilated(
            c(x), c(jnp.transpose(w, (2, 3, 1, 0))),
            window_strides=(2, 2), padding=((1, 1), (1, 1)),
            dimension_numbers=("NHWC", "HWIO", "NHWC"),
            preferred_element_type=jnp.float32)
        x = jax.nn.relu(y + b)
    bsz = x.shape[0]
    x_flat = jnp.transpose(x, (0, 3, 1, 2)).reshape(bsz, -1)     # PyTorch NCHW flatten
    (w_mu, b_mu), (w_lv, b_lv) = params["fc_mu"], params["fc_logvar"]
    mu = jnp.dot(c(x_flat), c(w_mu.T), preferred_element_type=jnp.float32) + b_mu
    logvar = jnp.dot(c(x_flat), c(w_lv.T), preferred_element_type=jnp.float32) + b_lv
    return mu, logvar


if __name__ == "__main__":
    key = jax.random.PRNGKey(0)
    k_param, k_x = jax.random.split(key)
    params = init_params(k_param)        # PyTorch-layout params (used by references)
    packed = pack_params(params)         # one-time kernel-layout repack

    # 5 stride-2 convs take 128 -> 4, matching the 256*4*4 flatten in the module.
    x = jax.random.normal(k_x, (2, 3, 128, 128), jnp.float32)

    mu, logvar = jax.jit(vae_encoder_forward)(x, packed)
    jax.block_until_ready((mu, logvar))
    assert mu.shape == (2, LATENT_DIM) and logvar.shape == (2, LATENT_DIM)

    # Tight check: reference with the same bf16-operand quantization as the kernels.
    ref_bf16 = jax.jit(functools.partial(vae_encoder_reference, cast_dtype=jnp.bfloat16))
    mu_q, lv_q = ref_bf16(x, params)
    assert jnp.allclose(mu, mu_q, rtol=1e-2, atol=1e-2)
    assert jnp.allclose(logvar, lv_q, rtol=1e-2, atol=1e-2)

    # Loose check against the exact f32 module semantics (remaining difference
    # is purely the bf16 rounding of the MXU operands).
    mu_f, lv_f = jax.jit(vae_encoder_reference)(x, params)
    assert jnp.allclose(mu, mu_f, rtol=5e-2, atol=5e-2)
    assert jnp.allclose(logvar, lv_f, rtol=5e-2, atol=5e-2)

    print("KERNEL_OK")
</pallas_src>

<mosaic_0001>
module attributes {stable_mosaic.version = 11 : i64} {
  func.func @_gemm_bias_act_kernel(%arg0: i32, %arg1: memref<16x36xbf16, #tpu.memory_space<vmem>>, %arg2: memref<36x4096xbf16, #tpu.memory_space<vmem>>, %arg3: memref<16x1xf32, #tpu.memory_space<vmem>>, %arg4: memref<16x4096xbf16, #tpu.memory_space<vmem>>) attributes {dimension_semantics = [#tpu.dimension_semantics<parallel>], iteration_bounds = array<i64: 2>, scalar_prefetch = 0 : i64, scratch_operands = 0 : i64, tpu.core_type = #tpu.core_type<tc>, window_params = [{pipeline_mode = #tpu.pipeline_mode<synchronous>, transform_indices = @transform_0, window_bounds = array<i64: 16, 36>}, {transform_indices = @transform_1, window_bounds = array<i64: 36, 4096>}, {pipeline_mode = #tpu.pipeline_mode<synchronous>, transform_indices = @transform_2, window_bounds = array<i64: 16, 1>}, {transform_indices = @transform_3, window_bounds = array<i64: 16, 4096>}]} {
    %c0 = arith.constant 0 : index
    %c0_0 = arith.constant 0 : index
    %0 = vector.load %arg1[%c0, %c0_0] : memref<16x36xbf16, #tpu.memory_space<vmem>>, vector<16x36xbf16>
    %c0_1 = arith.constant 0 : index
    %c0_2 = arith.constant 0 : index
    %1 = vector.load %arg2[%c0_1, %c0_2] : memref<36x4096xbf16, #tpu.memory_space<vmem>>, vector<36x4096xbf16>
    %cst = arith.constant dense<0.000000e+00> : vector<16x4096xf32>
    %2 = tpu.matmul %0, %1, %cst {dimension_numbers = #tpu.dot_dimension_numbers<[1], [0], [0], [1], [0, 0, 1, 1], [], []>} : vector<16x36xbf16>, vector<36x4096xbf16>, vector<16x4096xf32> -> vector<16x4096xf32>
    %c0_3 = arith.constant 0 : index
    %c0_4 = arith.constant 0 : index
    %3 = vector.load %arg3[%c0_3, %c0_4] : memref<16x1xf32, #tpu.memory_space<vmem>>, vector<16x1xf32>
    %4 = vector.broadcast %3 : vector<16x1xf32> to vector<16x4096xf32>
    %5 = arith.addf %2, %4 : vector<16x4096xf32>
    %cst_5 = arith.constant 0.000000e+00 : f32
    %6 = vector.broadcast %cst_5 : f32 to vector<16x4096xf32>
    %7 = arith.maximumf %5, %6 : vector<16x4096xf32>
    %8 = arith.truncf %7 : vector<16x4096xf32> to vector<16x4096xbf16>
    %c0_6 = arith.constant 0 : index
    %c0_7 = arith.constant 0 : index
    %9 = vector.load %arg4[%c0_6, %c0_7] : memref<16x4096xbf16, #tpu.memory_space<vmem>>, vector<16x4096xbf16>
    tpu.vector_store %arg4[%c0_6, %c0_7], %8 {strides = array<i32>} : memref<16x4096xbf16, #tpu.memory_space<vmem>>, vector<16x4096xbf16>,
    return
  }
  func.func @transform_0(%arg0: i32) -> (i32, i32) {
    %c0_i32 = arith.constant 0 : i32
    %c0_i32_0 = arith.constant 0 : i32
    %c0_i32_1 = arith.constant 0 : i32
    return %c0_i32, %c0_i32_0 : i32, i32
  }
  func.func @transform_1(%arg0: i32) -> (i32, i32) {
    %c0_i32 = arith.constant 0 : i32
    %c0_i32_0 = arith.constant 0 : i32
    return %c0_i32, %arg0 : i32, i32
  }
  func.func @transform_2(%arg0: i32) -> (i32, i32) {
    %c0_i32 = arith.constant 0 : i32
    %c0_i32_0 = arith.constant 0 : i32
    %c0_i32_1 = arith.constant 0 : i32
    return %c0_i32, %c0_i32_0 : i32, i32
  }
  func.func @transform_3(%arg0: i32) -> (i32, i32) {
    %c0_i32 = arith.constant 0 : i32
    %c0_i32_0 = arith.constant 0 : i32
    return %c0_i32, %arg0 : i32, i32
  }
}

module attributes {stable_mosaic.version = 11 : i64} {
  func.func @_gemm_bias_act_kernel(%arg0: i32, %arg1: memref<32x144xbf16, #tpu.memory_space<vmem>>, %arg2: memref<144x1024xbf16, #tpu.memory_space<vmem>>, %arg3: memref<32x1xf32, #tpu.memory_space<vmem>>, %arg4: memref<32x1024xbf16, #tpu.memory_space<vmem>>) attributes {dimension_semantics = [#tpu.dimension_semantics<parallel>], iteration_bounds = array<i64: 2>, scalar_prefetch = 0 : i64, scratch_operands = 0 : i64, tpu.core_type = #tpu.core_type<tc>, window_params = [{pipeline_mode = #tpu.pipeline_mode<synchronous>, transform_indices = @transform_0, window_bounds = array<i64: 32, 144>}, {transform_indices = @transform_1, window_bounds = array<i64: 144, 1024>}, {pipeline_mode = #tpu.pipeline_mode<synchronous>, transform_indices = @transform_2, window_bounds = array<i64: 32, 1>}, {transform_indices = @transform_3, window_bounds = array<i64: 32, 1024>}]} {
    %c0 = arith.constant 0 : index
    %c0_0 = arith.constant 0 : index
    %0 = vector.load %arg1[%c0, %c0_0] : memref<32x144xbf16, #tpu.memory_space<vmem>>, vector<32x144xbf16>
    %c0_1 = arith.constant 0 : index
    %c0_2 = arith.constant 0 : index
    %1 = vector.load %arg2[%c0_1, %c0_2] : memref<144x1024xbf16, #tpu.memory_space<vmem>>, vector<144x1024xbf16>
    %cst = arith.constant dense<0.000000e+00> : vector<32x1024xf32>
    %2 = tpu.matmul %0, %1, %cst {dimension_numbers = #tpu.dot_dimension_numbers<[1], [0], [0], [1], [0, 0, 1, 1], [], []>} : vector<32x144xbf16>, vector<144x1024xbf16>, vector<32x1024xf32> -> vector<32x1024xf32>
    %c0_3 = arith.constant 0 : index
    %c0_4 = arith.constant 0 : index
    %3 = vector.load %arg3[%c0_3, %c0_4] : memref<32x1xf32, #tpu.memory_space<vmem>>, vector<32x1xf32>
    %4 = vector.broadcast %3 : vector<32x1xf32> to vector<32x1024xf32>
    %5 = arith.addf %2, %4 : vector<32x1024xf32>
    %cst_5 = arith.constant 0.000000e+00 : f32
    %6 = vector.broadcast %cst_5 : f32 to vector<32x1024xf32>
    %7 = arith.maximumf %5, %6 : vector<32x1024xf32>
    %8 = arith.truncf %7 : vector<32x1024xf32> to vector<32x1024xbf16>
    %c0_6 = arith.constant 0 : index
    %c0_7 = arith.constant 0 : index
    %9 = vector.load %arg4[%c0_6, %c0_7] : memref<32x1024xbf16, #tpu.memory_space<vmem>>, vector<32x1024xbf16>
    tpu.vector_store %arg4[%c0_6, %c0_7], %8 {strides = array<i32>} : memref<32x1024xbf16, #tpu.memory_space<vmem>>, vector<32x1024xbf16>,
    return
  }
  func.func @transform_0(%arg0: i32) -> (i32, i32) {
    %c0_i32 = arith.constant 0 : i32
    %c0_i32_0 = arith.constant 0 : i32
    %c0_i32_1 = arith.constant 0 : i32
    return %c0_i32, %c0_i32_0 : i32, i32
  }
  func.func @transform_1(%arg0: i32) -> (i32, i32) {
    %c0_i32 = arith.constant 0 : i32
    %c0_i32_0 = arith.constant 0 : i32
    return %c0_i32, %arg0 : i32, i32
  }
  func.func @transform_2(%arg0: i32) -> (i32, i32) {
    %c0_i32 = arith.constant 0 : i32
    %c0_i32_0 = arith.constant 0 : i32
    %c0_i32_1 = arith.constant 0 : i32
    return %c0_i32, %c0_i32_0 : i32, i32
  }
  func.func @transform_3(%arg0: i32) -> (i32, i32) {
    %c0_i32 = arith.constant 0 : i32
    %c0_i32_0 = arith.constant 0 : i32
    return %c0_i32, %arg0 : i32, i32
  }
}

module attributes {stable_mosaic.version = 11 : i64} {
  func.func @_gemm_bias_act_kernel(%arg0: i32, %arg1: memref<64x288xbf16, #tpu.memory_space<vmem>>, %arg2: memref<288x512xbf16, #tpu.memory_space<vmem>>, %arg3: memref<64x1xf32, #tpu.memory_space<vmem>>, %arg4: memref<64x512xbf16, #tpu.memory_space<vmem>>) attributes {dimension_semantics = [#tpu.dimension_semantics<parallel>], iteration_bounds = array<i64: 1>, scalar_prefetch = 0 : i64, scratch_operands = 0 : i64, tpu.core_type = #tpu.core_type<tc>, window_params = [{pipeline_mode = #tpu.pipeline_mode<synchronous>, transform_indices = @transform_0, window_bounds = array<i64: 64, 288>}, {transform_indices = @transform_1, window_bounds = array<i64: 288, 512>}, {pipeline_mode = #tpu.pipeline_mode<synchronous>, transform_indices = @transform_2, window_bounds = array<i64: 64, 1>}, {transform_indices = @transform_3, window_bounds = array<i64: 64, 512>}]} {
    %c0 = arith.constant 0 : index
    %c0_0 = arith.constant 0 : index
    %0 = vector.load %arg1[%c0, %c0_0] : memref<64x288xbf16, #tpu.memory_space<vmem>>, vector<64x288xbf16>
    %c0_1 = arith.constant 0 : index
    %c0_2 = arith.constant 0 : index
    %1 = vector.load %arg2[%c0_1, %c0_2] : memref<288x512xbf16, #tpu.memory_space<vmem>>, vector<288x512xbf16>
    %cst = arith.constant dense<0.000000e+00> : vector<64x512xf32>
    %2 = tpu.matmul %0, %1, %cst {dimension_numbers = #tpu.dot_dimension_numbers<[1], [0], [0], [1], [0, 0, 1, 1], [], []>} : vector<64x288xbf16>, vector<288x512xbf16>, vector<64x512xf32> -> vector<64x512xf32>
    %c0_3 = arith.constant 0 : index
    %c0_4 = arith.constant 0 : index
    %3 = vector.load %arg3[%c0_3, %c0_4] : memref<64x1xf32, #tpu.memory_space<vmem>>, vector<64x1xf32>
    %4 = vector.broadcast %3 : vector<64x1xf32> to vector<64x512xf32>
    %5 = arith.addf %2, %4 : vector<64x512xf32>
    %cst_5 = arith.constant 0.000000e+00 : f32
    %6 = vector.broadcast %cst_5 : f32 to vector<64x512xf32>
    %7 = arith.maximumf %5, %6 : vector<64x512xf32>
    %8 = arith.truncf %7 : vector<64x512xf32> to vector<64x512xbf16>
    %c0_6 = arith.constant 0 : index
    %c0_7 = arith.constant 0 : index
    %9 = vector.load %arg4[%c0_6, %c0_7] : memref<64x512xbf16, #tpu.memory_space<vmem>>, vector<64x512xbf16>
    tpu.vector_store %arg4[%c0_6, %c0_7], %8 {strides = array<i32>} : memref<64x512xbf16, #tpu.memory_space<vmem>>, vector<64x512xbf16>,
    return
  }
  func.func @transform_0(%arg0: i32) -> (i32, i32) {
    %c0_i32 = arith.constant 0 : i32
    %c0_i32_0 = arith.constant 0 : i32
    %c0_i32_1 = arith.constant 0 : i32
    return %c0_i32, %c0_i32_0 : i32, i32
  }
  func.func @transform_1(%arg0: i32) -> (i32, i32) {
    %c0_i32 = arith.constant 0 : i32
    %c0_i32_0 = arith.constant 0 : i32
    return %c0_i32, %arg0 : i32, i32
  }
  func.func @transform_2(%arg0: i32) -> (i32, i32) {
    %c0_i32 = arith.constant 0 : i32
    %c0_i32_0 = arith.constant 0 : i32
    %c0_i32_1 = arith.constant 0 : i32
    return %c0_i32, %c0_i32_0 : i32, i32
  }
  func.func @transform_3(%arg0: i32) -> (i32, i32) {
    %c0_i32 = arith.constant 0 : i32
    %c0_i32_0 = arith.constant 0 : i32
    return %c0_i32, %arg0 : i32, i32
  }
}

module attributes {stable_mosaic.version = 11 : i64} {
  func.func @_gemm_bias_act_kernel(%arg0: i32, %arg1: memref<128x576xbf16, #tpu.memory_space<vmem>>, %arg2: memref<576x128xbf16, #tpu.memory_space<vmem>>, %arg3: memref<128x1xf32, #tpu.memory_space<vmem>>, %arg4: memref<128x128xbf16, #tpu.memory_space<vmem>>) attributes {dimension_semantics = [#tpu.dimension_semantics<parallel>], iteration_bounds = array<i64: 1>, scalar_prefetch = 0 : i64, scratch_operands = 0 : i64, tpu.core_type = #tpu.core_type<tc>, window_params = [{pipeline_mode = #tpu.pipeline_mode<synchronous>, transform_indices = @transform_0, window_bounds = array<i64: 128, 576>}, {transform_indices = @transform_1, window_bounds = array<i64: 576, 128>}, {pipeline_mode = #tpu.pipeline_mode<synchronous>, transform_indices = @transform_2, window_bounds = array<i64: 128, 1>}, {transform_indices = @transform_3, window_bounds = array<i64: 128, 128>}]} {
    %c0 = arith.constant 0 : index
    %c0_0 = arith.constant 0 : index
    %0 = vector.load %arg1[%c0, %c0_0] : memref<128x576xbf16, #tpu.memory_space<vmem>>, vector<128x576xbf16>
    %c0_1 = arith.constant 0 : index
    %c0_2 = arith.constant 0 : index
    %1 = vector.load %arg2[%c0_1, %c0_2] : memref<576x128xbf16, #tpu.memory_space<vmem>>, vector<576x128xbf16>
    %cst = arith.constant dense<0.000000e+00> : vector<128x128xf32>
    %2 = tpu.matmul %0, %1, %cst {dimension_numbers = #tpu.dot_dimension_numbers<[1], [0], [0], [1], [0, 0, 1, 1], [], []>} : vector<128x576xbf16>, vector<576x128xbf16>, vector<128x128xf32> -> vector<128x128xf32>
    %c0_3 = arith.constant 0 : index
    %c0_4 = arith.constant 0 : index
    %3 = vector.load %arg3[%c0_3, %c0_4] : memref<128x1xf32, #tpu.memory_space<vmem>>, vector<128x1xf32>
    %4 = vector.broadcast %3 : vector<128x1xf32> to vector<128x128xf32>
    %5 = arith.addf %2, %4 : vector<128x128xf32>
    %cst_5 = arith.constant 0.000000e+00 : f32
    %6 = vector.broadcast %cst_5 : f32 to vector<128x128xf32>
    %7 = arith.maximumf %5, %6 : vector<128x128xf32>
    %8 = arith.truncf %7 : vector<128x128xf32> to vector<128x128xbf16>
    %c0_6 = arith.constant 0 : index
    %c0_7 = arith.constant 0 : index
    %9 = vector.load %arg4[%c0_6, %c0_7] : memref<128x128xbf16, #tpu.memory_space<vmem>>, vector<128x128xbf16>
    tpu.vector_store %arg4[%c0_6, %c0_7], %8 {strides = array<i32>} : memref<128x128xbf16, #tpu.memory_space<vmem>>, vector<128x128xbf16>,
    return
  }
  func.func @transform_0(%arg0: i32) -> (i32, i32) {
    %c0_i32 = arith.constant 0 : i32
    %c0_i32_0 = arith.constant 0 : i32
    %c0_i32_1 = arith.constant 0 : i32
    return %c0_i32, %c0_i32_0 : i32, i32
  }
  func.func @transform_1(%arg0: i32) -> (i32, i32) {
    %c0_i32 = arith.constant 0 : i32
    %c0_i32_0 = arith.constant 0 : i32
    return %c0_i32, %arg0 : i32, i32
  }
  func.func @transform_2(%arg0: i32) -> (i32, i32) {
    %c0_i32 = arith.constant 0 : i32
    %c0_i32_0 = arith.constant 0 : i32
    %c0_i32_1 = arith.constant 0 : i32
    return %c0_i32, %c0_i32_0 : i32, i32
  }
  func.func @transform_3(%arg0: i32) -> (i32, i32) {
    %c0_i32 = arith.constant 0 : i32
    %c0_i32_0 = arith.constant 0 : i32
    return %c0_i32, %arg0 : i32, i32
  }
}

module attributes {stable_mosaic.version = 11 : i64} {
  func.func @_gemm_bias_act_kernel(%arg0: i32, %arg1: memref<256x1152xbf16, #tpu.memory_space<vmem>>, %arg2: memref<1152x32xbf16, #tpu.memory_space<vmem>>, %arg3: memref<256x1xf32, #tpu.memory_space<vmem>>, %arg4: memref<256x32xbf16, #tpu.memory_space<vmem>>) attributes {dimension_semantics = [#tpu.dimension_semantics<parallel>], iteration_bounds = array<i64: 1>, scalar_prefetch = 0 : i64, scratch_operands = 0 : i64, tpu.core_type = #tpu.core_type<tc>, window_params = [{pipeline_mode = #tpu.pipeline_mode<synchronous>, transform_indices = @transform_0, window_bounds = array<i64: 256, 1152>}, {transform_indices = @transform_1, window_bounds = array<i64: 1152, 32>}, {pipeline_mode = #tpu.pipeline_mode<synchronous>, transform_indices = @transform_2, window_bounds = array<i64: 256, 1>}, {transform_indices = @transform_3, window_bounds = array<i64: 256, 32>}]} {
    %c0 = arith.constant 0 : index
    %c0_0 = arith.constant 0 : index
    %0 = vector.load %arg1[%c0, %c0_0] : memref<256x1152xbf16, #tpu.memory_space<vmem>>, vector<256x1152xbf16>
    %c0_1 = arith.constant 0 : index
    %c0_2 = arith.constant 0 : index
    %1 = vector.load %arg2[%c0_1, %c0_2] : memref<1152x32xbf16, #tpu.memory_space<vmem>>, vector<1152x32xbf16>
    %cst = arith.constant dense<0.000000e+00> : vector<256x32xf32>
    %2 = tpu.matmul %0, %1, %cst {dimension_numbers = #tpu.dot_dimension_numbers<[1], [0], [0], [1], [0, 0, 1, 1], [], []>} : vector<256x1152xbf16>, vector<1152x32xbf16>, vector<256x32xf32> -> vector<256x32xf32>
    %c0_3 = arith.constant 0 : index
    %c0_4 = arith.constant 0 : index
    %3 = vector.load %arg3[%c0_3, %c0_4] : memref<256x1xf32, #tpu.memory_space<vmem>>, vector<256x1xf32>
    %4 = vector.broadcast %3 : vector<256x1xf32> to vector<256x32xf32>
    %5 = arith.addf %2, %4 : vector<256x32xf32>
    %cst_5 = arith.constant 0.000000e+00 : f32
    %6 = vector.broadcast %cst_5 : f32 to vector<256x32xf32>
    %7 = arith.maximumf %5, %6 : vector<256x32xf32>
    %8 = arith.truncf %7 : vector<256x32xf32> to vector<256x32xbf16>
    %c0_6 = arith.constant 0 : index
    %c0_7 = arith.constant 0 : index
    %9 = vector.load %arg4[%c0_6, %c0_7] : memref<256x32xbf16, #tpu.memory_space<vmem>>, vector<256x32xbf16>
    tpu.vector_store %arg4[%c0_6, %c0_7], %8 {strides = array<i32>} : memref<256x32xbf16, #tpu.memory_space<vmem>>, vector<256x32xbf16>,
    return
  }
  func.func @transform_0(%arg0: i32) -> (i32, i32) {
    %c0_i32 = arith.constant 0 : i32
    %c0_i32_0 = arith.constant 0 : i32
    %c0_i32_1 = arith.constant 0 : i32
    return %c0_i32, %c0_i32_0 : i32, i32
  }
  func.func @transform_1(%arg0: i32) -> (i32, i32) {
    %c0_i32 = arith.constant 0 : i32
    %c0_i32_0 = arith.constant 0 : i32
    return %c0_i32, %arg0 : i32, i32
  }
  func.func @transform_2(%arg0: i32) -> (i32, i32) {
    %c0_i32 = arith.constant 0 : i32
    %c0_i32_0 = arith.constant 0 : i32
    %c0_i32_1 = arith.constant 0 : i32
    return %c0_i32, %c0_i32_0 : i32, i32
  }
  func.func @transform_3(%arg0: i32) -> (i32, i32) {
    %c0_i32 = arith.constant 0 : i32
    %c0_i32_0 = arith.constant 0 : i32
    return %c0_i32, %arg0 : i32, i32
  }
}

module attributes {stable_mosaic.version = 11 : i64} {
  func.func @_gemm_bias_act_kernel(%arg0: i32, %arg1: memref<2x4096xbf16, #tpu.memory_space<vmem>>, %arg2: memref<4096x128xbf16, #tpu.memory_space<vmem>>, %arg3: memref<1x128xf32, #tpu.memory_space<vmem>>, %arg4: memref<2x128xf32, #tpu.memory_space<vmem>>) attributes {dimension_semantics = [#tpu.dimension_semantics<parallel>], iteration_bounds = array<i64: 1>, scalar_prefetch = 0 : i64, scratch_operands = 0 : i64, tpu.core_type = #tpu.core_type<tc>, window_params = [{pipeline_mode = #tpu.pipeline_mode<synchronous>, transform_indices = @transform_0, window_bounds = array<i64: 2, 4096>}, {transform_indices = @transform_1, window_bounds = array<i64: 4096, 128>}, {pipeline_mode = #tpu.pipeline_mode<synchronous>, transform_indices = @transform_2, window_bounds = array<i64: 1, 128>}, {transform_indices = @transform_3, window_bounds = array<i64: 2, 128>}]} {
    %c0 = arith.constant 0 : index
    %c0_0 = arith.constant 0 : index
    %0 = vector.load %arg1[%c0, %c0_0] : memref<2x4096xbf16, #tpu.memory_space<vmem>>, vector<2x4096xbf16>
    %c0_1 = arith.constant 0 : index
    %c0_2 = arith.constant 0 : index
    %1 = vector.load %arg2[%c0_1, %c0_2] : memref<4096x128xbf16, #tpu.memory_space<vmem>>, vector<4096x128xbf16>
    %cst = arith.constant dense<0.000000e+00> : vector<2x128xf32>
    %2 = tpu.matmul %0, %1, %cst {dimension_numbers = #tpu.dot_dimension_numbers<[1], [0], [0], [1], [0, 0, 1, 1], [], []>} : vector<2x4096xbf16>, vector<4096x128xbf16>, vector<2x128xf32> -> vector<2x128xf32>
    %c0_3 = arith.constant 0 : index
    %c0_4 = arith.constant 0 : index
    %3 = vector.load %arg3[%c0_3, %c0_4] : memref<1x128xf32, #tpu.memory_space<vmem>>, vector<1x128xf32>
    %4 = vector.broadcast %3 : vector<1x128xf32> to vector<2x128xf32>
    %5 = arith.addf %2, %4 : vector<2x128xf32>
    %c0_5 = arith.constant 0 : index
    %c0_6 = arith.constant 0 : index
    %6 = vector.load %arg4[%c0_5, %c0_6] : memref<2x128xf32, #tpu.memory_space<vmem>>, vector<2x128xf32>
    tpu.vector_store %arg4[%c0_5, %c0_6], %5 {strides = array<i32>} : memref<2x128xf32, #tpu.memory_space<vmem>>, vector<2x128xf32>,
    return
  }
  func.func @transform_0(%arg0: i32) -> (i32, i32) {
    %c0_i32 = arith.constant 0 : i32
    %c0_i32_0 = arith.constant 0 : i32
    %c0_i32_1 = arith.constant 0 : i32
    return %c0_i32, %c0_i32_0 : i32, i32
  }
  func.func @transform_1(%arg0: i32) -> (i32, i32) {
    %c0_i32 = arith.constant 0 : i32
    %c0_i32_0 = arith.constant 0 : i32
    return %c0_i32, %arg0 : i32, i32
  }
  func.func @transform_2(%arg0: i32) -> (i32, i32) {
    %c0_i32 = arith.constant 0 : i32
    %c0_i32_0 = arith.constant 0 : i32
    %c0_i32_1 = arith.constant 0 : i32
    return %c0_i32, %c0_i32_0 : i32, i32
  }
  func.func @transform_3(%arg0: i32) -> (i32, i32) {
    %c0_i32 = arith.constant 0 : i32
    %c0_i32_0 = arith.constant 0 : i32
    return %c0_i32, %arg0 : i32, i32
  }
}

</mosaic_0001>

<bundles_post_ra>
// kernel: vae_encoder_forward.6
= control target key start
LH: loop header
LB: loop body
LE: loop exit
PB: predicated region body
PF: predicated region fallthrough
CT: control target
= control target key end

     0   :  { %s2381_s12 = smov 0   ;;  %s2383_s13 = smov 0   ;;  %s2951_s0 = inlined_call_operand.vmem [shape: bf16[16,36], index: 0, kind: input, shape index: {}]   ;;  %s2952_s1 = inlined_call_operand.vmem [shape: bf16[36,8192], index: 1, kind: input, shape index: {}]   ;;  %s2953_s2 = inlined_call_operand.vmem [shape: f32[16,1], index: 2, kind: input, shape index: {}]   ;;  %s2954_s3 = inlined_call_operand.vmem [shape: bf16[16,8192], index: 3, kind: output, shape index: {}]  }
   0x1   :  { %s2385_s14 = smov 0  }
   0x2 LB: > { %s2067_s15 = sadd.s32 4294967295, %s2358_s14   ;;  %s2398_s16 = sadd.s32 1, %s2358_s14   ;;  %s2358_s14 = sphi %s2385_s14, %s2958_s14   ;;  %s2354_s13 = sphi %s2383_s13, %s2957_s13   ;;  %s2350_s12 = sphi %s2381_s12, %s2956_s12  }
   0x3   : > { %s38_s17 = ssub.s32 %s2358_s14, %s2398_s16  ;;  %s41_s18 = sadd.s32 1, %s2354_s13 }
   0x4   : > { %p39_p0 = scmp.eq.s32.totalorder %s38_s17, 0  ;;  %p48_p1 = scmp.ne.s32.totalorder %s2354_s13, %s2350_s12 }
   0x5   : > { %p49_p2 = scmp.eq.s32.totalorder %s2358_s14, 0  ;;  %p99_p3 = scmp.eq.s32.totalorder %s2067_s15, 1 }
   0x6   : > { %s2409_s19 = scalar_select %p39_p0, %s2354_s13, %s41_s18  }
   0x7   : > { %p50_p4 = por %p49_p2, %p48_p1  ;;  %p2411_p5 = por %p99_p3, %p48_p1 }
   0x8   : > { %p2070_p6 = scmp.ge.s32.totalorder %s2358_s14, 2 }
   0xa   : > { %127 = sbr.rel (%p2070_p6) target bundleno = 62 (0x3e), region = 24 }
  0x11   : > { %130 = sbr.rel (!%p50_p4) target bundleno = 62 (0x3e), region = 28  ;;  %s132_s21 = sand.u32 (%p50_p4), 1, %s2354_s13  }
  0x12   : > { %s2241_s22 = sshll.u32 (%p50_p4), %s2358_s14, 7  ;;  %s2275_s23 = smul.u32 (%p50_p4), 640, %s132_s21 }
  0x13   : > { %s2421_s26 = scalar_lea.vmem (%p50_p4), %s2952_s1, %s2241_s22 }
  0x14   : > { %v150_v0 = vld [vmem:[%s2421_s26] sm:$0xff] (%p50_p4)  ;;  %v152_v1 = vld [vmem:[%s2421_s26 + $0x8] sm:$0xff] (%p50_p4)  ;;  %v154_v2 = vld [vmem:[%s2421_s26 + $0x10] sm:$0xff] (%p50_p4)  ;;  %s2429_s27 = scalar_lea.vmem (%p50_p4), [#allocation2], %s2275_s23 }
  0x15   : > { %v156_v3 = vld [vmem:[%s2421_s26 + $0x18] sm:$0xff] (%p50_p4)  ;;  %v158_v4 = vld [vmem:[%s2421_s26 + $0x20] sm:$0xff] (%p50_p4)  ;;  %v160_v5 = vld [vmem:[%s2421_s26 + $0x28] sm:$0xff] (%p50_p4)  ;;  %151 = vst [vmem:[%s2429_s27] sm:$0xff] (%p50_p4), %v150_v0 }
  0x16   : > { %153 = vst [vmem:[%s2429_s27 + $0x8] sm:$0xff] (%p50_p4), %v152_v1  ;;  %155 = vst [vmem:[%s2429_s27 + $0x10] sm:$0xff] (%p50_p4), %v154_v2  ;;  %v162_v6 = vld [vmem:[%s2421_s26 + $0x30] sm:$0xff] (%p50_p4)  ;;  %v164_v7 = vld [vmem:[%s2421_s26 + $0x38] sm:$0xff] (%p50_p4) }
  0x17   : > { %157 = vst [vmem:[%s2429_s27 + $0x18] sm:$0xff] (%p50_p4), %v156_v3  ;;  %159 = vst [vmem:[%s2429_s27 + $0x20] sm:$0xff] (%p50_p4), %v158_v4  ;;  %v166_v8 = vld [vmem:[%s2421_s26 + $0x40] sm:$0xff] (%p50_p4)  ;;  %v168_v9 = vld [vmem:[%s2421_s26 + $0x48] sm:$0xff] (%p50_p4) }
  0x18   : > { %161 = vst [vmem:[%s2429_s27 + $0x28] sm:$0xff] %v160_v5  ;;  %163 = vst [vmem:[%s2429_s27 + $0x30] sm:$0xff] %v162_v6  ;;  %v170_v10 = vld [vmem:[%s2421_s26 + $0x50] sm:$0xff]  ;;  %v172_v11 = vld [vmem:[%s2421_s26 + $0x58] sm:$0xff] }
  0x19   : > { %165 = vst [vmem:[%s2429_s27 + $0x38] sm:$0xff] %v164_v7  ;;  %167 = vst [vmem:[%s2429_s27 + $0x40] sm:$0xff] %v166_v8  ;;  %v174_v12 = vld [vmem:[%s2421_s26 + $0x60] sm:$0xff]  ;;  %v176_v13 = vld [vmem:[%s2421_s26 + $0x68] sm:$0xff] }
  0x1a   : > { %169 = vst [vmem:[%s2429_s27 + $0x48] sm:$0xff] %v168_v9  ;;  %171 = vst [vmem:[%s2429_s27 + $0x50] sm:$0xff] %v170_v10  ;;  %v178_v14 = vld [vmem:[%s2421_s26 + $0x70] sm:$0xff]  ;;  %v180_v15 = vld [vmem:[%s2421_s26 + $0x78] sm:$0xff] }
  0x1b   : > { %173 = vst [vmem:[%s2429_s27 + $0x58] sm:$0xff] %v172_v11  ;;  %175 = vst [vmem:[%s2429_s27 + $0x60] sm:$0xff] %v174_v12  ;;  %v182_v16 = vld [vmem:[%s2421_s26 + $0x100] sm:$0xff]  ;;  %v184_v17 = vld [vmem:[%s2421_s26 + $0x108] sm:$0xff] }
  0x1c   : > { %177 = vst [vmem:[%s2429_s27 + $0x68] sm:$0xff] %v176_v13  ;;  %179 = vst [vmem:[%s2429_s27 + $0x70] sm:$0xff] %v178_v14  ;;  %v186_v18 = vld [vmem:[%s2421_s26 + $0x110] sm:$0xff]  ;;  %v188_v19 = vld [vmem:[%s2421_s26 + $0x118] sm:$0xff] }
  0x1d   : > { %181 = vst [vmem:[%s2429_s27 + $0x78] sm:$0xff] %v180_v15  ;;  %183 = vst [vmem:[%s2429_s27 + $0x80] sm:$0xff] %v182_v16  ;;  %v190_v20 = vld [vmem:[%s2421_s26 + $0x120] sm:$0xff]  ;;  %v192_v21 = vld [vmem:[%s2421_s26 + $0x128] sm:$0xff] }
  0x1e   : > { %185 = vst [vmem:[%s2429_s27 + $0x88] sm:$0xff] %v184_v17  ;;  %187 = vst [vmem:[%s2429_s27 + $0x90] sm:$0xff] %v186_v18  ;;  %v194_v22 = vld [vmem:[%s2421_s26 + $0x130] sm:$0xff]  ;;  %v196_v23 = vld [vmem:[%s2421_s26 + $0x138] sm:$0xff] }
  0x1f   : > { %189 = vst [vmem:[%s2429_s27 + $0x98] sm:$0xff] %v188_v19  ;;  %191 = vst [vmem:[%s2429_s27 + $0xa0] sm:$0xff] %v190_v20  ;;  %v198_v24 = vld [vmem:[%s2421_s26 + $0x140] sm:$0xff]  ;;  %v200_v25 = vld [vmem:[%s2421_s26 + $0x148] sm:$0xff] }
  0x20   : > { %193 = vst [vmem:[%s2429_s27 + $0xa8] sm:$0xff] %v192_v21  ;;  %195 = vst [vmem:[%s2429_s27 + $0xb0] sm:$0xff] %v194_v22  ;;  %v202_v26 = vld [vmem:[%s2421_s26 + $0x150] sm:$0xff]  ;;  %v204_v27 = vld [vmem:[%s2421_s26 + $0x158] sm:$0xff] }
  0x21   : > { %197 = vst [vmem:[%s2429_s27 + $0xb8] sm:$0xff] %v196_v23  ;;  %199 = vst [vmem:[%s2429_s27 + $0xc0] sm:$0xff] %v198_v24  ;;  %v206_v28 = vld [vmem:[%s2421_s26 + $0x160] sm:$0xff]  ;;  %v208_v29 = vld [vmem:[%s2421_s26 + $0x168] sm:$0xff] }
  0x22   : > { %201 = vst [vmem:[%s2429_s27 + $0xc8] sm:$0xff] %v200_v25  ;;  %203 = vst [vmem:[%s2429_s27 + $0xd0] sm:$0xff] %v202_v26  ;;  %v210_v30 = vld [vmem:[%s2421_s26 + $0x170] sm:$0xff]  ;;  %v212_v31 = vld [vmem:[%s2421_s26 + $0x178] sm:$0xff] }
  0x23   : > { %205 = vst [vmem:[%s2429_s27 + $0xd8] sm:$0xff] %v204_v27  ;;  %207 = vst [vmem:[%s2429_s27 + $0xe0] sm:$0xff] %v206_v28  ;;  %v214_v32 = vld [vmem:[%s2421_s26 + $0x200] sm:$0xff]  ;;  %v216_v33 = vld [vmem:[%s2421_s26 + $0x208] sm:$0xff] }
  0x24   : > { %209 = vst [vmem:[%s2429_s27 + $0xe8] sm:$0xff] %v208_v29  ;;  %211 = vst [vmem:[%s2429_s27 + $0xf0] sm:$0xff] %v210_v30  ;;  %v218_v34 = vld [vmem:[%s2421_s26 + $0x210] sm:$0xff]  ;;  %v220_v35 = vld [vmem:[%s2421_s26 + $0x218] sm:$0xff] }
  0x25   : > { %213 = vst [vmem:[%s2429_s27 + $0xf8] sm:$0xff] %v212_v31  ;;  %215 = vst [vmem:[%s2429_s27 + $0x100] sm:$0xff] %v214_v32  ;;  %v222_v36 = vld [vmem:[%s2421_s26 + $0x220] sm:$0xff]  ;;  %v224_v37 = vld [vmem:[%s2421_s26 + $0x228] sm:$0xff] }
  0x26   : > { %217 = vst [vmem:[%s2429_s27 + $0x108] sm:$0xff] %v216_v33  ;;  %219 = vst [vmem:[%s2429_s27 + $0x110] sm:$0xff] %v218_v34  ;;  %v226_v38 = vld [vmem:[%s2421_s26 + $0x230] sm:$0xff]  ;;  %v228_v39 = vld [vmem:[%s2421_s26 + $0x238] sm:$0xff] }
  0x27   : > { %221 = vst [vmem:[%s2429_s27 + $0x118] sm:$0xff] %v220_v35  ;;  %223 = vst [vmem:[%s2429_s27 + $0x120] sm:$0xff] %v222_v36  ;;  %v230_v40 = vld [vmem:[%s2421_s26 + $0x240] sm:$0xff]  ;;  %v232_v41 = vld [vmem:[%s2421_s26 + $0x248] sm:$0xff] }
  0x28   : > { %225 = vst [vmem:[%s2429_s27 + $0x128] sm:$0xff] %v224_v37  ;;  %227 = vst [vmem:[%s2429_s27 + $0x130] sm:$0xff] %v226_v38  ;;  %v234_v42 = vld [vmem:[%s2421_s26 + $0x250] sm:$0xff]  ;;  %v236_v43 = vld [vmem:[%s2421_s26 + $0x258] sm:$0xff] }
  0x29   : > { %229 = vst [vmem:[%s2429_s27 + $0x138] sm:$0xff] %v228_v39  ;;  %231 = vst [vmem:[%s2429_s27 + $0x140] sm:$0xff] %v230_v40  ;;  %v238_v44 = vld [vmem:[%s2421_s26 + $0x260] sm:$0xff]  ;;  %v240_v45 = vld [vmem:[%s2421_s26 + $0x268] sm:$0xff] }
  0x2a   : > { %233 = vst [vmem:[%s2429_s27 + $0x148] sm:$0xff] %v232_v41  ;;  %235 = vst [vmem:[%s2429_s27 + $0x150] sm:$0xff] %v234_v42  ;;  %v242_v46 = vld [vmem:[%s2421_s26 + $0x270] sm:$0xff]  ;;  %v244_v47 = vld [vmem:[%s2421_s26 + $0x278] sm:$0xff] }
  0x2b   : > { %237 = vst [vmem:[%s2429_s27 + $0x158] sm:$0xff] %v236_v43  ;;  %239 = vst [vmem:[%s2429_s27 + $0x160] sm:$0xff] %v238_v44  ;;  %v246_v48 = vld [vmem:[%s2421_s26 + $0x300] sm:$0xff]  ;;  %v248_v49 = vld [vmem:[%s2421_s26 + $0x308] sm:$0xff] }
  0x2c   : > { %241 = vst [vmem:[%s2429_s27 + $0x168] sm:$0xff] %v240_v45  ;;  %243 = vst [vmem:[%s2429_s27 + $0x170] sm:$0xff] %v242_v46  ;;  %v250_v50 = vld [vmem:[%s2421_s26 + $0x310] sm:$0xff]  ;;  %v252_v51 = vld [vmem:[%s2421_s26 + $0x318] sm:$0xff] }
  0x2d   : > { %245 = vst [vmem:[%s2429_s27 + $0x178] sm:$0xff] %v244_v47  ;;  %247 = vst [vmem:[%s2429_s27 + $0x180] sm:$0xff] %v246_v48  ;;  %v254_v52 = vld [vmem:[%s2421_s26 + $0x320] sm:$0xff]  ;;  %v256_v53 = vld [vmem:[%s2421_s26 + $0x328] sm:$0xff] }
  0x2e   : > { %249 = vst [vmem:[%s2429_s27 + $0x188] sm:$0xff] %v248_v49  ;;  %251 = vst [vmem:[%s2429_s27 + $0x190] sm:$0xff] %v250_v50  ;;  %v258_v54 = vld [vmem:[%s2421_s26 + $0x330] sm:$0xff]  ;;  %v260_v55 = vld [vmem:[%s2421_s26 + $0x338] sm:$0xff] }
  0x2f   : > { %253 = vst [vmem:[%s2429_s27 + $0x198] sm:$0xff] %v252_v51  ;;  %255 = vst [vmem:[%s2429_s27 + $0x1a0] sm:$0xff] %v254_v52  ;;  %v262_v56 = vld [vmem:[%s2421_s26 + $0x340] sm:$0xff]  ;;  %v264_v57 = vld [vmem:[%s2421_s26 + $0x348] sm:$0xff] }
  0x30   : > { %257 = vst [vmem:[%s2429_s27 + $0x1a8] sm:$0xff] %v256_v53  ;;  %259 = vst [vmem:[%s2429_s27 + $0x1b0] sm:$0xff] %v258_v54  ;;  %v266_v58 = vld [vmem:[%s2421_s26 + $0x350] sm:$0xff]  ;;  %v268_v59 = vld [vmem:[%s2421_s26 + $0x358] sm:$0xff] }
  0x31   : > { %261 = vst [vmem:[%s2429_s27 + $0x1b8] sm:$0xff] %v260_v55  ;;  %263 = vst [vmem:[%s2429_s27 + $0x1c0] sm:$0xff] %v262_v56  ;;  %v270_v60 = vld [vmem:[%s2421_s26 + $0x360] sm:$0xff]  ;;  %v272_v61 = vld [vmem:[%s2421_s26 + $0x368] sm:$0xff] }
  0x32   : > { %265 = vst [vmem:[%s2429_s27 + $0x1c8] sm:$0xff] %v264_v57  ;;  %267 = vst [vmem:[%s2429_s27 + $0x1d0] sm:$0xff] %v266_v58  ;;  %v274_v62 = vld [vmem:[%s2421_s26 + $0x370] sm:$0xff]  ;;  %v276_v63 = vld [vmem:[%s2421_s26 + $0x378] sm:$0xff] }
  0x33   : > { %269 = vst [vmem:[%s2429_s27 + $0x1d8] sm:$0xff] %v268_v59  ;;  %271 = vst [vmem:[%s2429_s27 + $0x1e0] sm:$0xff] %v270_v60  ;;  %v278_v0 = vld [vmem:[%s2421_s26 + $0x400] sm:$0xff]  ;;  %v280_v1 = vld [vmem:[%s2421_s26 + $0x408] sm:$0xff] }
  0x34   : > { %273 = vst [vmem:[%s2429_s27 + $0x1e8] sm:$0xff] %v272_v61  ;;  %275 = vst [vmem:[%s2429_s27 + $0x1f0] sm:$0xff] %v274_v62  ;;  %v282_v2 = vld [vmem:[%s2421_s26 + $0x410] sm:$0xff]  ;;  %v284_v3 = vld [vmem:[%s2421_s26 + $0x418] sm:$0xff] }
  0x35   : > { %277 = vst [vmem:[%s2429_s27 + $0x1f8] sm:$0xff] %v276_v63  ;;  %279 = vst [vmem:[%s2429_s27 + $0x200] sm:$0xff] %v278_v0  ;;  %v286_v4 = vld [vmem:[%s2421_s26 + $0x420] sm:$0xff]  ;;  %v288_v5 = vld [vmem:[%s2421_s26 + $0x428] sm:$0xff] }
  0x36   : > { %281 = vst [vmem:[%s2429_s27 + $0x208] sm:$0xff] %v280_v1  ;;  %283 = vst [vmem:[%s2429_s27 + $0x210] sm:$0xff] %v282_v2  ;;  %v290_v6 = vld [vmem:[%s2421_s26 + $0x430] sm:$0xff]  ;;  %v292_v7 = vld [vmem:[%s2421_s26 + $0x438] sm:$0xff] }
  0x37   : > { %285 = vst [vmem:[%s2429_s27 + $0x218] sm:$0xff] %v284_v3  ;;  %287 = vst [vmem:[%s2429_s27 + $0x220] sm:$0xff] %v286_v4  ;;  %v294_v8 = vld [vmem:[%s2421_s26 + $0x440] sm:$0xff]  ;;  %v296_v9 = vld [vmem:[%s2421_s26 + $0x448] sm:$0xff] }
  0x38   : > { %289 = vst [vmem:[%s2429_s27 + $0x228] sm:$0xff] %v288_v5  ;;  %291 = vst [vmem:[%s2429_s27 + $0x230] sm:$0xff] %v290_v6  ;;  %v298_v10 = vld [vmem:[%s2421_s26 + $0x450] sm:$0xff]  ;;  %v300_v11 = vld [vmem:[%s2421_s26 + $0x458] sm:$0xff] }
  0x39   : > { %293 = vst [vmem:[%s2429_s27 + $0x238] sm:$0xff] %v292_v7  ;;  %295 = vst [vmem:[%s2429_s27 + $0x240] sm:$0xff] %v294_v8  ;;  %v302_v12 = vld [vmem:[%s2421_s26 + $0x460] sm:$0xff]  ;;  %v304_v13 = vld [vmem:[%s2421_s26 + $0x468] sm:$0xff] }
  0x3a   : > { %297 = vst [vmem:[%s2429_s27 + $0x248] sm:$0xff] %v296_v9  ;;  %299 = vst [vmem:[%s2429_s27 + $0x250] sm:$0xff] %v298_v10  ;;  %v306_v14 = vld [vmem:[%s2421_s26 + $0x470] sm:$0xff]  ;;  %v308_v15 = vld [vmem:[%s2421_s26 + $0x478] sm:$0xff] }
  0x3b   : > { %301 = vst [vmem:[%s2429_s27 + $0x258] sm:$0xff] %v300_v11  ;;  %303 = vst [vmem:[%s2429_s27 + $0x260] sm:$0xff] %v302_v12 }
  0x3c   : > { %305 = vst [vmem:[%s2429_s27 + $0x268] sm:$0xff] %v304_v13  ;;  %307 = vst [vmem:[%s2429_s27 + $0x270] sm:$0xff] %v306_v14 }
  0x3d   : > { %309 = vst [vmem:[%s2429_s27 + $0x278] sm:$0xff] %v308_v15 }
  0x3e PF: > { %p2073_p7 = scmp.ge.s32.totalorder %s2358_s14, 1  ;;  %p314_p8 = scmp.lt.s32.totalorder %s2358_s14, 3 }
  0x40   : > { %p315_p9 = pnand %p2073_p7, %p314_p8 }
  0x41   : > { %s321_s28 = sand.u32 (!%p315_p9), 1, %s2350_s12   ;;  %v2360_v16 = vmov (!%p315_p9), 0   ;;  %v428_v17 = vld [vmem:[%s2953_s2] sm:$0xff] (!%p315_p9)  ;;  %v429_v34 = vld [vmem:[%s2953_s2 + $0x8] sm:$0xff] (!%p315_p9)  ;;  %vm849_vm0 = vcmask (!%p315_p9), 1041408   ;;  %vm845_vm1 = vcmask (!%p315_p9), 293888  }
  0x42   : > { %318 = sbr.rel (%p315_p9) target bundleno = 400 (0x190), region = 51  ;;  %978 = vmatprep.mubr.bf16.mxu0 (!%p315_p9), %v2360_v16  ;;  %1021 = vmatprep.mubr.bf16.mxu1 (!%p315_p9), %v2360_v16  ;;  %v2624_v51 = vld [vmem:[%s2951_s0] sm:$0xff] (!%p315_p9)   ;;  %s2074_s10 = sshll.u32 (!%p315_p9), %s321_s28, 8 }
  0x43   : > { %s2276_s29 = smul.u32 (!%p315_p9), 640, %s321_s28  ;;  %2302 = vset.pattern.permute.xlu0 (!%p315_p9), %v2360_v16  ;;  %s2778_s11 = scalar_lea.vmem (!%p315_p9), [#allocation3], %s2074_s10 }
  0x44   : > { %432 = vperm.xlu0 (!%p315_p9), %2302, %v428_v17  }
  0x45   : > { %s2596_s5 = scalar_lea.vmem (!%p315_p9), [#allocation2], %s2276_s29 }
  0x46   : > { %v348_v18 = vld [vmem:[%s2596_s5] sm:$0xff] (!%p315_p9)  ;;  %v349_v20 = vld [vmem:[%s2596_s5 + $0x8] sm:$0xff] (!%p315_p9)  ;;  %v350_v41 = vld [vmem:[%s2596_s5 + $0x10] sm:$0xff] (!%p315_p9) }
  0x47   : > { %v364_v19 = vld [vmem:[%s2596_s5 + $0x80] sm:$0xff] (!%p315_p9)  ;;  %v365_v22 = vld [vmem:[%s2596_s5 + $0x88] sm:$0xff] (!%p315_p9)  ;;  %v366_v42 = vld [vmem:[%s2596_s5 + $0x90] sm:$0xff] (!%p315_p9) }
  0x48   : > { %v2077_v21 = vcombine.high (!%p315_p9), %v348_v18, %v364_v19  ;;  %v2076_v23 = vcombine.low (!%p315_p9), %v348_v18, %v364_v19  ;;  %v380_v24 = vld [vmem:[%s2596_s5 + $0x100] sm:$0xff] (!%p315_p9)  ;;  %v2079_v26 = vcombine.high (!%p315_p9), %v349_v20, %v365_v22  ;;  %v2078_v27 = vcombine.low (!%p315_p9), %v349_v20, %v365_v22  ;;  %v381_v29 = vld [vmem:[%s2596_s5 + $0x108] sm:$0xff] (!%p315_p9)  ;;  %437 = vperm.xlu0 (!%p315_p9), %2302, %v429_v34   ;;  %v351_v43 = vld [vmem:[%s2596_s5 + $0x18] sm:$0xff] (!%p315_p9) }
  0x49   : > { %v396_v25 = vld [vmem:[%s2596_s5 + $0x180] sm:$0xff]  ;;  %v397_v30 = vld [vmem:[%s2596_s5 + $0x188] sm:$0xff]  ;;  %v367_v44 = vld [vmem:[%s2596_s5 + $0x98] sm:$0xff]  ;;  %v2081_v46 = vcombine.high %v350_v41, %v366_v42  ;;  %v2080_v54 = vcombine.low %v350_v41, %v366_v42  ;;  %s2274_s12 = sshll.u32 (%p2411_p5), %s2067_s15, 7 }
  0x4a   : > { %v2109_v28 = vcombine.high %v380_v24, %v396_v25  ;;  %v412_v31 = vld [vmem:[%s2596_s5 + $0x200] sm:$0x33]  ;;  %946 = vmatprep.subr.bf16.mxu0 %v2077_v21  ;;  %v2111_v32 = vcombine.high %v381_v29, %v397_v30  ;;  %v413_v33 = vld [vmem:[%s2596_s5 + $0x208] sm:$0x33]  ;;  %989 = vmatprep.subr.bf16.mxu1 %v2079_v26  ;;  %v2108_v35 = vcombine.low %v380_v24, %v396_v25  ;;  %v382_v49 = vld [vmem:[%s2596_s5 + $0x110] sm:$0xff]  ;;  %s2878_s20 = scalar_lea.vmem (%p2411_p5), %s2954_s3, %s2274_s12 }
  0x4b   : > { %947 = vmatpush1.bf16.msra.mxu0 %v2076_v23  ;;  %990 = vmatpush1.bf16.msra.mxu1 %v2078_v27  ;;  %v2110_v36 = vcombine.low %v381_v29, %v397_v30  ;;  %v2141_v37 = vcombine.high %v412_v31, %v412_v31  ;;  %v2140_v38 = vcombine.low %v412_v31, %v412_v31  ;;  %v398_v50 = vld [vmem:[%s2596_s5 + $0x190] sm:$0xff]  ;;  %v383_v52 = vld [vmem:[%s2596_s5 + $0x118] sm:$0xff]  ;;  %v352_v2 = vld [vmem:[%s2596_s5 + $0x20] sm:$0xff] }
  0x4c   : > { %948 = vmatprep.subr.bf16.mxu0 %v2109_v28  ;;  %991 = vmatprep.subr.bf16.mxu1 %v2111_v32  ;;  %v2143_v39 = vcombine.high %v413_v33, %v413_v33  ;;  %v2142_v40 = vcombine.low %v413_v33, %v413_v33  ;;  %v2083_v48 = vcombine.high %v351_v43, %v367_v44  ;;  %v399_v53 = vld [vmem:[%s2596_s5 + $0x198] sm:$0xff]  ;;  %v414_v58 = vld [vmem:[%s2596_s5 + $0x210] sm:$0x33]  ;;  %v368_v3 = vld [vmem:[%s2596_s5 + $0xa0] sm:$0xff] }
  0x4d   : > { %v851_v45 = vsel %vm849_vm0, %v2140_v38, 0  ;;  %v2082_v55 = vcombine.low %v351_v43, %v367_v44  ;;  %v2113_v56 = vcombine.high %v382_v49, %v398_v50  ;;  %v2115_v57 = vcombine.high %v383_v52, %v399_v53  ;;  %v415_v59 = vld [vmem:[%s2596_s5 + $0x218] sm:$0x33]  ;;  %v353_v4 = vld [vmem:[%s2596_s5 + $0x28] sm:$0xff]  ;;  %v384_v10 = vld [vmem:[%s2596_s5 + $0x120] sm:$0xff] }
  0x4e   : > { %v857_v47 = vsel %vm849_vm0, %v2142_v40, 0  ;;  %v2112_v60 = vcombine.low %v382_v49, %v398_v50  ;;  %v2114_v61 = vcombine.low %v383_v52, %v399_v53  ;;  %v2145_v62 = vcombine.high %v414_v58, %v414_v58  ;;  %v369_v5 = vld [vmem:[%s2596_s5 + $0xa8] sm:$0xff]  ;;  %v400_v11 = vld [vmem:[%s2596_s5 + $0x1a0] sm:$0xff]  ;;  %v354_v27 = vld [vmem:[%s2596_s5 + $0x30] sm:$0xff] }
  0x4f   : > { %949 = vmatpush1.bf16.msra.mxu0 %v2108_v35  ;;  %992 = vmatpush1.bf16.msra.mxu1 %v2110_v36  ;;  %v2144_v63 = vcombine.low %v414_v58, %v414_v58  ;;  %v2147_v0 = vcombine.high %v415_v59, %v415_v59  ;;  %v2146_v1 = vcombine.low %v415_v59, %v415_v59  ;;  %v385_v12 = vld [vmem:[%s2596_s5 + $0x128] sm:$0xff]  ;;  %v416_v19 = vld [vmem:[%s2596_s5 + $0x220] sm:$0x33]  ;;  %v370_v28 = vld [vmem:[%s2596_s5 + $0xb0] sm:$0xff] }
  0x50   : > { %2172 = vmatprep.subr.msk.bf16.mxu0 %vm849_vm0, %v2141_v37  ;;  %2174 = vmatprep.subr.msk.bf16.mxu1 %vm849_vm0, %v2143_v39  ;;  %v2085_v7 = vcombine.high %v352_v2, %v368_v3  ;;  %v2087_v9 = vcombine.high %v353_v4, %v369_v5  ;;  %v401_v13 = vld [vmem:[%s2596_s5 + $0x1a8] sm:$0xff]  ;;  %v2084_v14 = vcombine.low %v352_v2, %v368_v3  ;;  %v355_v29 = vld [vmem:[%s2596_s5 + $0x38] sm:$0xff]  ;;  %v386_v35 = vld [vmem:[%s2596_s5 + $0x130] sm:$0xff] }
  0x51   : > { %v863_v6 = vsel %vm849_vm0, %v2144_v63, 0  ;;  %v869_v8 = vsel %vm849_vm0, %v2146_v1, 0  ;;  %v2086_v15 = vcombine.low %v353_v4, %v369_v5  ;;  %v2117_v17 = vcombine.high %v384_v10, %v400_v11  ;;  %v417_v20 = vld [vmem:[%s2596_s5 + $0x228] sm:$0x33]  ;;  %v371_v30 = vld [vmem:[%s2596_s5 + $0xb8] sm:$0xff]  ;;  %v402_v36 = vld [vmem:[%s2596_s5 + $0x1b0] sm:$0xff] }
  0x52   : > { %v2119_v18 = vcombine.high %v385_v12, %v401_v13  ;;  %v2116_v21 = vcombine.low %v384_v10, %v400_v11  ;;  %v2118_v22 = vcombine.low %v385_v12, %v401_v13  ;;  %v2149_v23 = vcombine.high %v416_v19, %v416_v19  ;;  %v387_v37 = vld [vmem:[%s2596_s5 + $0x138] sm:$0xff]  ;;  %v418_v43 = vld [vmem:[%s2596_s5 + $0x230] sm:$0x33]  ;;  %v356_v52 = vld [vmem:[%s2596_s5 + $0x40] sm:$0xff] }
  0x53   : > { %951 = vmatpush1.bf16.msra.mxu0 %v851_v45  ;;  %994 = vmatpush1.bf16.msra.mxu1 %v857_v47  ;;  %v2148_v24 = vcombine.low %v416_v19, %v416_v19  ;;  %v2151_v25 = vcombine.high %v417_v20, %v417_v20  ;;  %v2150_v26 = vcombine.low %v417_v20, %v417_v20  ;;  %v403_v38 = vld [vmem:[%s2596_s5 + $0x1b8] sm:$0xff]  ;;  %v372_v53 = vld [vmem:[%s2596_s5 + $0xc0] sm:$0xff]  ;;  %v405_v63 = vld [vmem:[%s2596_s5 + $0x1c8] sm:$0xff] }
  0x54   : > { %1032 = vmatprep.subr.bf16.mxu0 %v2081_v46  ;;  %1075 = vmatprep.subr.bf16.mxu1 %v2083_v48  ;;  %v2089_v32 = vcombine.high %v354_v27, %v370_v28  ;;  %v2091_v34 = vcombine.high %v355_v29, %v371_v30  ;;  %v2088_v39 = vcombine.low %v354_v27, %v370_v28  ;;  %v419_v44 = vld [vmem:[%s2596_s5 + $0x238] sm:$0x33]  ;;  %v420_v4 = vld [vmem:[%s2596_s5 + $0x240] sm:$0x33]  ;;  %v421_v5 = vld [vmem:[%s2596_s5 + $0x248] sm:$0x33] }
  0x55   : > { %v875_v31 = vsel %vm849_vm0, %v2148_v24, 0  ;;  %v881_v33 = vsel %vm849_vm0, %v2150_v26, 0  ;;  %v2090_v40 = vcombine.low %v355_v29, %v371_v30  ;;  %v2121_v41 = vcombine.high %v386_v35, %v402_v36  ;;  %v358_v12 = vld [vmem:[%s2596_s5 + $0x50] sm:$0xff]  ;;  %v407_v24 = vld [vmem:[%s2596_s5 + $0x1d8] sm:$0xff] }
  0x56   : > { %2173 = vmatmul.mubr.msk.bf16.vlgmr.msra.gmra.mrb[0].mxu0 %vm845_vm1, %v2624_v51  ;;  %2175 = vmatmul.mubr.msk.bf16.vlgmr.msra.gmra.mrb[0].mxu1 %vm845_vm1, %v2624_v51  ;;  %v2123_v42 = vcombine.high %v387_v37, %v403_v38  ;;  %v2120_v45 = vcombine.low %v386_v35, %v402_v36  ;;  %v2122_v46 = vcombine.low %v387_v37, %v403_v38  ;;  %v374_v13 = vld [vmem:[%s2596_s5 + $0xd0] sm:$0xff]  ;;  %v423_v30 = vld [vmem:[%s2596_s5 + $0x258] sm:$0x33]  ;;  %v360_v37 = vld [vmem:[%s2596_s5 + $0x60] sm:$0xff] }
  0x57   : > { %1033 = vmatpush1.bf16.msra.mxu0 %v2080_v54  ;;  %1076 = vmatpush1.bf16.msra.mxu1 %v2082_v55  ;;  %v2153_v47 = vcombine.high %v418_v43, %v418_v43  ;;  %v2152_v48 = vcombine.low %v418_v43, %v418_v43  ;;  %v2155_v49 = vcombine.high %v419_v44, %v419_v44  ;;  %v357_v54 = vld [vmem:[%s2596_s5 + $0x48] sm:$0xff]  ;;  %v422_v29 = vld [vmem:[%s2596_s5 + $0x250] sm:$0x33]  ;;  %v376_v38 = vld [vmem:[%s2596_s5 + $0xe0] sm:$0xff] }
  0x58   : > { %1034 = vmatprep.subr.bf16.mxu0 %v2113_v56  ;;  %1077 = vmatprep.subr.bf16.mxu1 %v2115_v57  ;;  %v2154_v50 = vcombine.low %v419_v44, %v419_v44  ;;  %v373_v55 = vld [vmem:[%s2596_s5 + $0xc8] sm:$0xff]  ;;  %v2093_v57 = vcombine.high %v356_v52, %v372_v53  ;;  %v2159_v10 = vcombine.high %v421_v5, %v421_v5 }
  0x59   : > { %1064 = vmatprep.mubr.bf16.mxu0 %v2360_v16  ;;  %1107 = vmatprep.mubr.bf16.mxu1 %v2360_v16  ;;  %v887_v56 = vsel %vm849_vm0, %v2152_v48, 0  ;;  %v2095_v59 = vcombine.high %v357_v54, %v373_v55  ;;  %v2094_v1 = vcombine.low %v357_v54, %v373_v55  ;;  %v2158_v11 = vcombine.low %v421_v5, %v421_v5  ;;  %v409_v48 = vld [vmem:[%s2596_s5 + $0x1e8] sm:$0xff]  ;;  %v424_v54 = vld [vmem:[%s2596_s5 + $0x260] sm:$0x33] }
  0x5a   : > { %v893_v58 = vsel %vm849_vm0, %v2154_v50, 0  ;;  %v2163_v35 = vcombine.high %v423_v30, %v423_v30  ;;  %v2162_v36 = vcombine.low %v423_v30, %v423_v30  ;;  %v425_v55 = vld [vmem:[%s2596_s5 + $0x268] sm:$0x33] }
  0x5b   : > { %1035 = vmatpush1.bf16.msra.mxu0 %v2112_v60  ;;  %1078 = vmatpush1.bf16.msra.mxu1 %v2114_v61  ;;  %v388_v60 = vld [vmem:[%s2596_s5 + $0x140] sm:$0xff]  ;;  %v905_v19 = vsel %vm849_vm0, %v2158_v11, 0 }
  0x5c   : > { %2176 = vmatprep.subr.msk.bf16.mxu0 %vm849_vm0, %v2145_v62  ;;  %2178 = vmatprep.subr.msk.bf16.mxu1 %vm849_vm0, %v2147_v0  ;;  %v404_v61 = vld [vmem:[%s2596_s5 + $0x1c0] sm:$0xff]  ;;  %v389_v62 = vld [vmem:[%s2596_s5 + $0x148] sm:$0xff]  ;;  %v2092_v0 = vcombine.low %v356_v52, %v372_v53  ;;  %v917_v43 = vsel %vm849_vm0, %v2162_v36, 0 }
  0x5d   : > { %v2125_v2 = vcombine.high %v388_v60, %v404_v61  ;;  %v2127_v3 = vcombine.high %v389_v62, %v405_v63 }
  0x5f   : > { %1037 = vmatpush1.bf16.msra.mxu0 %v863_v6  ;;  %1080 = vmatpush1.bf16.msra.mxu1 %v869_v8  ;;  %v2124_v6 = vcombine.low %v388_v60, %v404_v61  ;;  %v2157_v8 = vcombine.high %v420_v4, %v420_v4  ;;  %v2167_v60 = vcombine.high %v425_v55, %v425_v55 }
  0x60   : > { %1118 = vmatprep.subr.bf16.mxu0 %v2085_v7  ;;  %1161 = vmatprep.subr.bf16.mxu1 %v2087_v9  ;;  %v2126_v7 = vcombine.low %v389_v62, %v405_v63  ;;  %v2156_v9 = vcombine.low %v420_v4, %v420_v4  ;;  %v2166_v61 = vcombine.low %v425_v55, %v425_v55  ;;  %v362_v62 = vld [vmem:[%s2596_s5 + $0x70] sm:$0xff] }
  0x61   : > { %v378_v63 = vld [vmem:[%s2596_s5 + $0xf0] sm:$0xff] }
  0x62   : > { %2177 = vmatmul.mubr.msk.bf16.vlgmr.msra.gmra.mrb[4].mxu0 %vm845_vm1, %v2624_v51  ;;  %2179 = vmatmul.mubr.msk.bf16.vlgmr.msra.gmra.mrb[4].mxu1 %vm845_vm1, %v2624_v51  ;;  %v929_v4 = vsel %vm849_vm0, %v2166_v61, 0 }
  0x63   : > { %1119 = vmatpush1.bf16.msra.mxu0 %v2084_v14  ;;  %1162 = vmatpush1.bf16.msra.mxu1 %v2086_v15  ;;  %v359_v14 = vld [vmem:[%s2596_s5 + $0x58] sm:$0xff] }
  0x64   : > { %1120 = vmatprep.subr.bf16.mxu0 %v2117_v17  ;;  %1163 = vmatprep.subr.bf16.mxu1 %v2119_v18  ;;  %v375_v15 = vld [vmem:[%s2596_s5 + $0xd8] sm:$0xff]  ;;  %v899_v17 = vsel %vm849_vm0, %v2156_v9, 0  ;;  %v2097_v18 = vcombine.high %v358_v12, %v374_v13 }
  0x65   : > { %1150 = vmatprep.mubr.bf16.mxu0 %v2360_v16  ;;  %1193 = vmatprep.mubr.bf16.mxu1 %v2360_v16  ;;  %v2099_v20 = vcombine.high %v359_v14, %v375_v15  ;;  %v2098_v26 = vcombine.low %v359_v14, %v375_v15  ;;  %v411_v9 = vld [vmem:[%s2596_s5 + $0x1f8] sm:$0xff]  ;;  %v426_v14 = vld [vmem:[%s2596_s5 + $0x270] sm:$0x33] }
  0x66   : > { %v427_v15 = vld [vmem:[%s2596_s5 + $0x278] sm:$0x33] }
  0x67   : > { %1121 = vmatpush1.bf16.msra.mxu0 %v2116_v21  ;;  %1164 = vmatpush1.bf16.msra.mxu1 %v2118_v22  ;;  %v390_v21 = vld [vmem:[%s2596_s5 + $0x150] sm:$0xff] }
  0x68   : > { %2180 = vmatprep.subr.msk.bf16.mxu0 %vm849_vm0, %v2149_v23  ;;  %2182 = vmatprep.subr.msk.bf16.mxu1 %vm849_vm0, %v2151_v25  ;;  %v406_v22 = vld [vmem:[%s2596_s5 + $0x1d0] sm:$0xff]  ;;  %v391_v23 = vld [vmem:[%s2596_s5 + $0x158] sm:$0xff]  ;;  %v2096_v25 = vcombine.low %v358_v12, %v374_v13 }
  0x69   : > { %v2129_v27 = vcombine.high %v390_v21, %v406_v22  ;;  %v2131_v28 = vcombine.high %v391_v23, %v407_v24 }
  0x6b   : > { %1123 = vmatpush1.bf16.msra.mxu0 %v875_v31  ;;  %1166 = vmatpush1.bf16.msra.mxu1 %v881_v33  ;;  %v2128_v31 = vcombine.low %v390_v21, %v406_v22  ;;  %v2161_v33 = vcombine.high %v422_v29, %v422_v29  ;;  %v2171_v21 = vcombine.high %v427_v15, %v427_v15 }
  0x6c   : > { %1204 = vmatprep.subr.bf16.mxu0 %v2089_v32  ;;  %1247 = vmatprep.subr.bf16.mxu1 %v2091_v34  ;;  %v2130_v32 = vcombine.low %v391_v23, %v407_v24  ;;  %v2160_v34 = vcombine.low %v422_v29, %v422_v29  ;;  %v2170_v22 = vcombine.low %v427_v15, %v427_v15 }
  0x6e   : > { %2181 = vmatmul.mubr.msk.bf16.vlgmr.msra.gmra.mrb[8].mxu0 %vm845_vm1, %v2624_v51  ;;  %2183 = vmatmul.mubr.msk.bf16.vlgmr.msra.gmra.mrb[8].mxu1 %vm845_vm1, %v2624_v51  ;;  %v941_v24 = vsel %vm849_vm0, %v2170_v22, 0 }
  0x6f   : > { %1205 = vmatpush1.bf16.msra.mxu0 %v2088_v39  ;;  %1248 = vmatpush1.bf16.msra.mxu1 %v2090_v40  ;;  %v361_v39 = vld [vmem:[%s2596_s5 + $0x68] sm:$0xff] }
  0x70   : > { %1206 = vmatprep.subr.bf16.mxu0 %v2121_v41  ;;  %1249 = vmatprep.subr.bf16.mxu1 %v2123_v42  ;;  %v377_v40 = vld [vmem:[%s2596_s5 + $0xe8] sm:$0xff]  ;;  %v911_v41 = vsel %vm849_vm0, %v2160_v34, 0  ;;  %v2101_v42 = vcombine.high %v360_v37, %v376_v38 }
  0x71   : > { %1236 = vmatprep.mubr.bf16.mxu0 %v2360_v16  ;;  %1279 = vmatprep.mubr.bf16.mxu1 %v2360_v16  ;;  %v2103_v44 = vcombine.high %v361_v39, %v377_v40  ;;  %v2102_v50 = vcombine.low %v361_v39, %v377_v40 }
  0x73   : > { %1207 = vmatpush1.bf16.msra.mxu0 %v2120_v45  ;;  %1250 = vmatpush1.bf16.msra.mxu1 %v2122_v46  ;;  %v392_v45 = vld [vmem:[%s2596_s5 + $0x160] sm:$0xff] }
  0x74   : > { %2184 = vmatprep.subr.msk.bf16.mxu0 %vm849_vm0, %v2153_v47  ;;  %2186 = vmatprep.subr.msk.bf16.mxu1 %vm849_vm0, %v2155_v49  ;;  %v408_v46 = vld [vmem:[%s2596_s5 + $0x1e0] sm:$0xff]  ;;  %v393_v47 = vld [vmem:[%s2596_s5 + $0x168] sm:$0xff]  ;;  %v2100_v49 = vcombine.low %v360_v37, %v376_v38 }
  0x75   : > { %v2133_v52 = vcombine.high %v392_v45, %v408_v46  ;;  %v2135_v53 = vcombine.high %v393_v47, %v409_v48 }
  0x77   : > { %1209 = vmatpush1.bf16.msra.mxu0 %v887_v56  ;;  %1252 = vmatpush1.bf16.msra.mxu1 %v893_v58  ;;  %v2132_v56 = vcombine.low %v392_v45, %v408_v46  ;;  %v2165_v58 = vcombine.high %v424_v54, %v424_v54 }
  0x78   : > { %1290 = vmatprep.subr.bf16.mxu0 %v2093_v57  ;;  %1333 = vmatprep.subr.bf16.mxu1 %v2095_v59  ;;  %v2134_v57 = vcombine.low %v393_v47, %v409_v48  ;;  %v2164_v59 = vcombine.low %v424_v54, %v424_v54 }
  0x7a   : > { %2185 = vmatmul.mubr.msk.bf16.vlgmr.msra.gmra.mrb[12].mxu0 %vm845_vm1, %v2624_v51  ;;  %2187 = vmatmul.mubr.msk.bf16.vlgmr.msra.gmra.mrb[12].mxu1 %vm845_vm1, %v2624_v51 }
  0x7b   : > { %1291 = vmatpush1.bf16.msra.mxu0 %v2092_v0  ;;  %1334 = vmatpush1.bf16.msra.mxu1 %v2094_v1  ;;  %v363_v0 = vld [vmem:[%s2596_s5 + $0x78] sm:$0xff] }
  0x7c   : > { %1292 = vmatprep.subr.bf16.mxu0 %v2125_v2  ;;  %1335 = vmatprep.subr.bf16.mxu1 %v2127_v3  ;;  %v379_v1 = vld [vmem:[%s2596_s5 + $0xf8] sm:$0xff]  ;;  %v923_v2 = vsel %vm849_vm0, %v2164_v59, 0  ;;  %v2105_v3 = vcombine.high %v362_v62, %v378_v63 }
  0x7d   : > { %1322 = vmatprep.mubr.bf16.mxu0 %v2360_v16  ;;  %1365 = vmatprep.mubr.bf16.mxu1 %v2360_v16  ;;  %v2107_v5 = vcombine.high %v363_v0, %v379_v1  ;;  %v2106_v11 = vcombine.low %v363_v0, %v379_v1 }
  0x7f   : > { %1293 = vmatpush1.bf16.msra.mxu0 %v2124_v6  ;;  %1336 = vmatpush1.bf16.msra.mxu1 %v2126_v7  ;;  %v394_v6 = vld [vmem:[%s2596_s5 + $0x170] sm:$0xff] }
  0x80   : > { %2188 = vmatprep.subr.msk.bf16.mxu0 %vm849_vm0, %v2157_v8  ;;  %2190 = vmatprep.subr.msk.bf16.mxu1 %vm849_vm0, %v2159_v10  ;;  %v410_v7 = vld [vmem:[%s2596_s5 + $0x1f0] sm:$0xff]  ;;  %v395_v8 = vld [vmem:[%s2596_s5 + $0x178] sm:$0xff]  ;;  %v2104_v10 = vcombine.low %v362_v62, %v378_v63 }
  0x81   : > { %v2137_v12 = vcombine.high %v394_v6, %v410_v7  ;;  %v2139_v13 = vcombine.high %v395_v8, %v411_v9 }
  0x83   : > { %1295 = vmatpush1.bf16.msra.mxu0 %v899_v17  ;;  %1338 = vmatpush1.bf16.msra.mxu1 %v905_v19  ;;  %v2136_v17 = vcombine.low %v394_v6, %v410_v7  ;;  %v2169_v19 = vcombine.high %v426_v14, %v426_v14 }
  0x84   : > { %1376 = vmatprep.subr.bf16.mxu0 %v2097_v18  ;;  %1419 = vmatprep.subr.bf16.mxu1 %v2099_v20  ;;  %v2138_v18 = vcombine.low %v395_v8, %v411_v9  ;;  %v2168_v20 = vcombine.low %v426_v14, %v426_v14 }
  0x86   : > { %2189 = vmatmul.mubr.msk.bf16.vlgmr.msra.gmra.mrb[16].mxu0 %vm845_vm1, %v2624_v51  ;;  %2191 = vmatmul.mubr.msk.bf16.vlgmr.msra.gmra.mrb[16].mxu1 %vm845_vm1, %v2624_v51  ;;  %v935_v23 = vsel %vm849_vm0, %v2168_v20, 0 }
  0x87   : > { %1377 = vmatpush1.bf16.msra.mxu0 %v2096_v25  ;;  %1420 = vmatpush1.bf16.msra.mxu1 %v2098_v26 }
  0x88   : > { %1378 = vmatprep.subr.bf16.mxu0 %v2129_v27  ;;  %1421 = vmatprep.subr.bf16.mxu1 %v2131_v28 }
  0x89   : > { %1408 = vmatprep.mubr.bf16.mxu0 %v2360_v16  ;;  %1451 = vmatprep.mubr.bf16.mxu1 %v2360_v16 }
  0x8b   : > { %1379 = vmatpush1.bf16.msra.mxu0 %v2128_v31  ;;  %1422 = vmatpush1.bf16.msra.mxu1 %v2130_v32 }
  0x8c   : > { %2192 = vmatprep.subr.msk.bf16.mxu0 %vm849_vm0, %v2161_v33  ;;  %2194 = vmatprep.subr.msk.bf16.mxu1 %vm849_vm0, %v2163_v35 }
  0x8f   : > { %1381 = vmatpush1.bf16.msra.mxu0 %v911_v41  ;;  %1424 = vmatpush1.bf16.msra.mxu1 %v917_v43 }
  0x90   : > { %1462 = vmatprep.subr.bf16.mxu0 %v2101_v42  ;;  %1505 = vmatprep.subr.bf16.mxu1 %v2103_v44 }
  0x92   : > { %2193 = vmatmul.mubr.msk.bf16.vlgmr.msra.gmra.mrb[20].mxu0 %vm845_vm1, %v2624_v51  ;;  %2195 = vmatmul.mubr.msk.bf16.vlgmr.msra.gmra.mrb[20].mxu1 %vm845_vm1, %v2624_v51 }
  0x93   : > { %1463 = vmatpush1.bf16.msra.mxu0 %v2100_v49  ;;  %1506 = vmatpush1.bf16.msra.mxu1 %v2102_v50 }
  0x94   : > { %1464 = vmatprep.subr.bf16.mxu0 %v2133_v52  ;;  %1507 = vmatprep.subr.bf16.mxu1 %v2135_v53 }
  0x95   : > { %1494 = vmatprep.mubr.bf16.mxu0 %v2360_v16  ;;  %1537 = vmatprep.mubr.bf16.mxu1 %v2360_v16 }
  0x97   : > { %1465 = vmatpush1.bf16.msra.mxu0 %v2132_v56  ;;  %1508 = vmatpush1.bf16.msra.mxu1 %v2134_v57 }
  0x98   : > { %2196 = vmatprep.subr.msk.bf16.mxu0 %vm849_vm0, %v2165_v58  ;;  %2198 = vmatprep.subr.msk.bf16.mxu1 %vm849_vm0, %v2167_v60 }
  0x9b   : > { %1467 = vmatpush1.bf16.msra.mxu0 %v923_v2  ;;  %1510 = vmatpush1.bf16.msra.mxu1 %v929_v4 }
  0x9c   : > { %1548 = vmatprep.subr.bf16.mxu0 %v2105_v3  ;;  %1591 = vmatprep.subr.bf16.mxu1 %v2107_v5 }
  0x9e   : > { %2197 = vmatmul.mubr.msk.bf16.vlgmr.msra.gmra.mrb[24].mxu0 %vm845_vm1, %v2624_v51  ;;  %2199 = vmatmul.mubr.msk.bf16.vlgmr.msra.gmra.mrb[24].mxu1 %vm845_vm1, %v2624_v51 }
  0x9f   : > { %1549 = vmatpush1.bf16.msra.mxu0 %v2104_v10  ;;  %1592 = vmatpush1.bf16.msra.mxu1 %v2106_v11 }
  0xa0   : > { %1550 = vmatprep.subr.bf16.mxu0 %v2137_v12  ;;  %1593 = vmatprep.subr.bf16.mxu1 %v2139_v13 }
  0xa1   : > { %1580 = vmatprep.mubr.bf16.mxu0 %v2360_v16  ;;  %1623 = vmatprep.mubr.bf16.mxu1 %v2360_v16 }
  0xa3   : > { %1551 = vmatpush1.bf16.msra.mxu0 %v2136_v17  ;;  %1594 = vmatpush1.bf16.msra.mxu1 %v2138_v18 }
  0xa4   : > { %2200 = vmatprep.subr.msk.bf16.mxu0 %vm849_vm0, %v2169_v19  ;;  %2202 = vmatprep.subr.msk.bf16.mxu1 %vm849_vm0, %v2171_v21 }
  0xa7   : > { %1553 = vmatpush1.bf16.msra.mxu0 %v935_v23  ;;  %1596 = vmatpush1.bf16.msra.mxu1 %v941_v24 }
  0xaa   : > { %2201 = vmatmul.mubr.msk.bf16.vlgmr.msra.gmra.mrb[28].mxu0 %vm845_vm1, %v2624_v51  ;;  %2203 = vmatmul.mubr.msk.bf16.vlgmr.msra.gmra.mrb[28].mxu1 %vm845_vm1, %v2624_v51 }
  0xc3   : > { %v2764_v16 = vpop.permute.xlu0 %432 }
  0xc7   : > { %v2766_v26 = vpop.permute.xlu0 %437 }
 0x129   : > { %v980_v25 = vpop.f32.mrb[0].mxu0  ;;  %v1023_v28 = vpop.f32.mrb[0].mxu1 }
 0x12a   : > { %v981_v27 = vadd.f32 %v980_v25, %v2764_v16  ;;  %v982_v29 = vpop.f32.mrb[1].mxu0  ;;  %v1024_v30 = vadd.f32 %v1023_v28, %v2764_v16  ;;  %v1025_v32 = vpop.f32.mrb[1].mxu1 }
 0x12b   : > { %v983_v31 = vadd.f32 %v982_v29, %v2764_v16  ;;  %v984_v33 = vpop.f32.mrb[2].mxu0  ;;  %v1026_v51 = vadd.f32 %v1025_v32, %v2764_v16  ;;  %v1027_v36 = vpop.f32.mrb[2].mxu1 }
 0x12c   : > { %v1634_v34 = vmax.f32 %v981_v27, 0.0  ;;  %v985_v35 = vadd.f32 %v984_v33, %v2766_v26  ;;  %v986_v37 = vpop.f32.mrb[3].mxu0  ;;  %v1636_v38 = vmax.f32 %v1024_v30, 0.0  ;;  %v1028_v40 = vadd.f32 %v1027_v36, %v2766_v26  ;;  %v1029_v42 = vpop.f32.mrb[3].mxu1 }
 0x12d   : > { %v1635_v39 = vmax.f32 %v983_v31, 0.0  ;;  %v987_v41 = vadd.f32 %v986_v37, %v2766_v26  ;;  %v1637_v43 = vmax.f32 %v1026_v51, 0.0  ;;  %v1030_v45 = vadd.f32 %v1029_v42, %v2766_v26 }
 0x12e   : > { %v1666_v44 = vmax.f32 %v985_v35, 0.0  ;;  %v1668_v47 = vmax.f32 %v1028_v40, 0.0 }
 0x12f   : > { %v2242_v46 = vpack.c.bf16 %v1635_v39, %v1634_v34  ;;  %v1667_v48 = vmax.f32 %v987_v41, 0.0  ;;  %v2243_v49 = vpack.c.bf16 %v1637_v43, %v1636_v38  ;;  %v1669_v50 = vmax.f32 %v1030_v45, 0.0 }
 0x131   : > { %1890 = vst [vmem:[%s2778_s11] sm:$0xff] %v2242_v46  ;;  %v2258_v52 = vpack.c.bf16 %v1667_v48, %v1666_v44  ;;  %1891 = vst [vmem:[%s2778_s11 + $0x8] sm:$0xff] %v2243_v49  ;;  %v2259_v53 = vpack.c.bf16 %v1669_v50, %v1668_v47 }
 0x133   : > { %1906 = vst [vmem:[%s2778_s11 + $0x80] sm:$0xff] %v2258_v52  ;;  %1907 = vst [vmem:[%s2778_s11 + $0x88] sm:$0xff] %v2259_v53 }
 0x135   : > { %v1066_v54 = vpop.f32.mrb[4].mxu0  ;;  %v1109_v56 = vpop.f32.mrb[4].mxu1 }
 0x136   : > { %v1067_v55 = vadd.f32 %v1066_v54, %v2764_v16  ;;  %v1068_v57 = vpop.f32.mrb[5].mxu0  ;;  %v1110_v58 = vadd.f32 %v1109_v56, %v2764_v16  ;;  %v1111_v60 = vpop.f32.mrb[5].mxu1 }
 0x137   : > { %v1069_v59 = vadd.f32 %v1068_v57, %v2764_v16  ;;  %v1070_v61 = vpop.f32.mrb[6].mxu0  ;;  %v1112_v63 = vadd.f32 %v1111_v60, %v2764_v16  ;;  %v1113_v1 = vpop.f32.mrb[6].mxu1 }
 0x138   : > { %v1638_v62 = vmax.f32 %v1067_v55, 0.0  ;;  %v1071_v0 = vadd.f32 %v1070_v61, %v2766_v26  ;;  %v1072_v2 = vpop.f32.mrb[7].mxu0  ;;  %v1640_v3 = vmax.f32 %v1110_v58, 0.0  ;;  %v1114_v5 = vadd.f32 %v1113_v1, %v2766_v26  ;;  %v1115_v7 = vpop.f32.mrb[7].mxu1 }
 0x139   : > { %v1639_v4 = vmax.f32 %v1069_v59, 0.0  ;;  %v1073_v6 = vadd.f32 %v1072_v2, %v2766_v26  ;;  %v1641_v8 = vmax.f32 %v1112_v63, 0.0  ;;  %v1116_v10 = vadd.f32 %v1115_v7, %v2766_v26 }
 0x13a   : > { %v1670_v9 = vmax.f32 %v1071_v0, 0.0  ;;  %v1672_v12 = vmax.f32 %v1114_v5, 0.0 }
 0x13b   : > { %v2244_v11 = vpack.c.bf16 %v1639_v4, %v1638_v62  ;;  %v1671_v13 = vmax.f32 %v1073_v6, 0.0  ;;  %v2245_v14 = vpack.c.bf16 %v1641_v8, %v1640_v3  ;;  %v1673_v15 = vmax.f32 %v1116_v10, 0.0 }
 0x13d   : > { %1892 = vst [vmem:[%s2778_s11 + $0x10] sm:$0xff] %v2244_v11  ;;  %v2260_v17 = vpack.c.bf16 %v1671_v13, %v1670_v9  ;;  %1893 = vst [vmem:[%s2778_s11 + $0x18] sm:$0xff] %v2245_v14  ;;  %v2261_v18 = vpack.c.bf16 %v1673_v15, %v1672_v12 }
 0x13f   : > { %1908 = vst [vmem:[%s2778_s11 + $0x90] sm:$0xff] %v2260_v17  ;;  %1909 = vst [vmem:[%s2778_s11 + $0x98] sm:$0xff] %v2261_v18 }
 0x141   : > { %v1152_v19 = vpop.f32.mrb[8].mxu0  ;;  %v1195_v21 = vpop.f32.mrb[8].mxu1 }
 0x142   : > { %v1153_v20 = vadd.f32 %v1152_v19, %v2764_v16  ;;  %v1154_v22 = vpop.f32.mrb[9].mxu0  ;;  %v1196_v23 = vadd.f32 %v1195_v21, %v2764_v16  ;;  %v1197_v25 = vpop.f32.mrb[9].mxu1 }
 0x143   : > { %v1155_v24 = vadd.f32 %v1154_v22, %v2764_v16  ;;  %v1156_v27 = vpop.f32.mrb[10].mxu0  ;;  %v1198_v29 = vadd.f32 %v1197_v25, %v2764_v16  ;;  %v1199_v31 = vpop.f32.mrb[10].mxu1 }
 0x144   : > { %v1642_v28 = vmax.f32 %v1153_v20, 0.0  ;;  %v1157_v30 = vadd.f32 %v1156_v27, %v2766_v26  ;;  %v1158_v32 = vpop.f32.mrb[11].mxu0  ;;  %v1644_v33 = vmax.f32 %v1196_v23, 0.0  ;;  %v1200_v51 = vadd.f32 %v1199_v31, %v2766_v26  ;;  %v1201_v36 = vpop.f32.mrb[11].mxu1 }
 0x145   : > { %v1643_v34 = vmax.f32 %v1155_v24, 0.0  ;;  %v1159_v35 = vadd.f32 %v1158_v32, %v2766_v26  ;;  %v1645_v37 = vmax.f32 %v1198_v29, 0.0  ;;  %v1202_v39 = vadd.f32 %v1201_v36, %v2766_v26 }
 0x146   : > { %v1674_v38 = vmax.f32 %v1157_v30, 0.0  ;;  %v1676_v41 = vmax.f32 %v1200_v51, 0.0 }
 0x147   : > { %v2246_v40 = vpack.c.bf16 %v1643_v34, %v1642_v28  ;;  %v1675_v42 = vmax.f32 %v1159_v35, 0.0  ;;  %v2247_v43 = vpack.c.bf16 %v1645_v37, %v1644_v33  ;;  %v1677_v44 = vmax.f32 %v1202_v39, 0.0 }
 0x149   : > { %1894 = vst [vmem:[%s2778_s11 + $0x20] sm:$0xff] %v2246_v40  ;;  %v2262_v45 = vpack.c.bf16 %v1675_v42, %v1674_v38  ;;  %1895 = vst [vmem:[%s2778_s11 + $0x28] sm:$0xff] %v2247_v43  ;;  %v2263_v46 = vpack.c.bf16 %v1677_v44, %v1676_v41 }
 0x14b   : > { %1910 = vst [vmem:[%s2778_s11 + $0xa0] sm:$0xff] %v2262_v45  ;;  %1911 = vst [vmem:[%s2778_s11 + $0xa8] sm:$0xff] %v2263_v46 }
 0x14d   : > { %v1238_v47 = vpop.f32.mrb[12].mxu0  ;;  %v1281_v49 = vpop.f32.mrb[12].mxu1 }
 0x14e   : > { %v1239_v48 = vadd.f32 %v1238_v47, %v2764_v16  ;;  %v1240_v50 = vpop.f32.mrb[13].mxu0  ;;  %v1282_v52 = vadd.f32 %v1281_v49, %v2764_v16  ;;  %v1283_v54 = vpop.f32.mrb[13].mxu1 }
 0x14f   : > { %v1241_v53 = vadd.f32 %v1240_v50, %v2764_v16  ;;  %v1242_v55 = vpop.f32.mrb[14].mxu0  ;;  %v1284_v57 = vadd.f32 %v1283_v54, %v2764_v16  ;;  %v1285_v59 = vpop.f32.mrb[14].mxu1 }
 0x150   : > { %v1646_v56 = vmax.f32 %v1239_v48, 0.0  ;;  %v1243_v58 = vadd.f32 %v1242_v55, %v2766_v26  ;;  %v1244_v60 = vpop.f32.mrb[15].mxu0  ;;  %v1648_v61 = vmax.f32 %v1282_v52, 0.0  ;;  %v1286_v63 = vadd.f32 %v1285_v59, %v2766_v26  ;;  %v1287_v1 = vpop.f32.mrb[15].mxu1 }
 0x151   : > { %v1647_v62 = vmax.f32 %v1241_v53, 0.0  ;;  %v1245_v0 = vadd.f32 %v1244_v60, %v2766_v26  ;;  %v1649_v2 = vmax.f32 %v1284_v57, 0.0  ;;  %v1288_v4 = vadd.f32 %v1287_v1, %v2766_v26 }
 0x152   : > { %v1678_v3 = vmax.f32 %v1243_v58, 0.0  ;;  %v1680_v6 = vmax.f32 %v1286_v63, 0.0 }
 0x153   : > { %v2248_v5 = vpack.c.bf16 %v1647_v62, %v1646_v56  ;;  %v1679_v7 = vmax.f32 %v1245_v0, 0.0  ;;  %v2249_v8 = vpack.c.bf16 %v1649_v2, %v1648_v61  ;;  %v1681_v9 = vmax.f32 %v1288_v4, 0.0 }
 0x155   : > { %1896 = vst [vmem:[%s2778_s11 + $0x30] sm:$0xff] %v2248_v5  ;;  %v2264_v10 = vpack.c.bf16 %v1679_v7, %v1678_v3  ;;  %1897 = vst [vmem:[%s2778_s11 + $0x38] sm:$0xff] %v2249_v8  ;;  %v2265_v11 = vpack.c.bf16 %v1681_v9, %v1680_v6 }
 0x157   : > { %1912 = vst [vmem:[%s2778_s11 + $0xb0] sm:$0xff] %v2264_v10  ;;  %1913 = vst [vmem:[%s2778_s11 + $0xb8] sm:$0xff] %v2265_v11 }
 0x159   : > { %v1324_v12 = vpop.f32.mrb[16].mxu0  ;;  %v1367_v14 = vpop.f32.mrb[16].mxu1 }
 0x15a   : > { %v1325_v13 = vadd.f32 %v1324_v12, %v2764_v16  ;;  %v1326_v15 = vpop.f32.mrb[17].mxu0  ;;  %v1368_v17 = vadd.f32 %v1367_v14, %v2764_v16  ;;  %v1369_v19 = vpop.f32.mrb[17].mxu1 }
 0x15b   : > { %v1327_v18 = vadd.f32 %v1326_v15, %v2764_v16  ;;  %v1328_v20 = vpop.f32.mrb[18].mxu0  ;;  %v1370_v22 = vadd.f32 %v1369_v19, %v2764_v16  ;;  %v1371_v24 = vpop.f32.mrb[18].mxu1 }
 0x15c   : > { %v1650_v21 = vmax.f32 %v1325_v13, 0.0  ;;  %v1329_v23 = vadd.f32 %v1328_v20, %v2766_v26  ;;  %v1330_v25 = vpop.f32.mrb[19].mxu0  ;;  %v1652_v27 = vmax.f32 %v1368_v17, 0.0  ;;  %v1372_v29 = vadd.f32 %v1371_v24, %v2766_v26  ;;  %v1373_v31 = vpop.f32.mrb[19].mxu1 }
 0x15d   : > { %v1651_v28 = vmax.f32 %v1327_v18, 0.0  ;;  %v1331_v30 = vadd.f32 %v1330_v25, %v2766_v26  ;;  %v1653_v32 = vmax.f32 %v1370_v22, 0.0  ;;  %v1374_v34 = vadd.f32 %v1373_v31, %v2766_v26 }
 0x15e   : > { %v1682_v33 = vmax.f32 %v1329_v23, 0.0  ;;  %v1684_v35 = vmax.f32 %v1372_v29, 0.0 }
 0x15f   : > { %v2250_v51 = vpack.c.bf16 %v1651_v28, %v1650_v21  ;;  %v1683_v36 = vmax.f32 %v1331_v30, 0.0  ;;  %v2251_v37 = vpack.c.bf16 %v1653_v32, %v1652_v27  ;;  %v1685_v38 = vmax.f32 %v1374_v34, 0.0 }
 0x161   : > { %1898 = vst [vmem:[%s2778_s11 + $0x40] sm:$0xff] %v2250_v51  ;;  %v2266_v39 = vpack.c.bf16 %v1683_v36, %v1682_v33  ;;  %1899 = vst [vmem:[%s2778_s11 + $0x48] sm:$0xff] %v2251_v37  ;;  %v2267_v40 = vpack.c.bf16 %v1685_v38, %v1684_v35 }
 0x163   : > { %1914 = vst [vmem:[%s2778_s11 + $0xc0] sm:$0xff] %v2266_v39  ;;  %1915 = vst [vmem:[%s2778_s11 + $0xc8] sm:$0xff] %v2267_v40 }
 0x165   : > { %v1410_v41 = vpop.f32.mrb[20].mxu0  ;;  %v1453_v43 = vpop.f32.mrb[20].mxu1 }
 0x166   : > { %v1411_v42 = vadd.f32 %v1410_v41, %v2764_v16  ;;  %v1412_v44 = vpop.f32.mrb[21].mxu0  ;;  %v1454_v45 = vadd.f32 %v1453_v43, %v2764_v16  ;;  %v1455_v47 = vpop.f32.mrb[21].mxu1 }
 0x167   : > { %v1413_v46 = vadd.f32 %v1412_v44, %v2764_v16  ;;  %v1414_v48 = vpop.f32.mrb[22].mxu0  ;;  %v1456_v50 = vadd.f32 %v1455_v47, %v2764_v16  ;;  %v1457_v53 = vpop.f32.mrb[22].mxu1 }
 0x168   : > { %v1654_v49 = vmax.f32 %v1411_v42, 0.0  ;;  %v1415_v52 = vadd.f32 %v1414_v48, %v2766_v26  ;;  %v1416_v54 = vpop.f32.mrb[23].mxu0  ;;  %v1656_v55 = vmax.f32 %v1454_v45, 0.0  ;;  %v1458_v57 = vadd.f32 %v1457_v53, %v2766_v26  ;;  %v1459_v59 = vpop.f32.mrb[23].mxu1 }
 0x169   : > { %v1655_v56 = vmax.f32 %v1413_v46, 0.0  ;;  %v1417_v58 = vadd.f32 %v1416_v54, %v2766_v26  ;;  %v1657_v60 = vmax.f32 %v1456_v50, 0.0  ;;  %v1460_v62 = vadd.f32 %v1459_v59, %v2766_v26 }
 0x16a   : > { %v1686_v61 = vmax.f32 %v1415_v52, 0.0  ;;  %v1688_v0 = vmax.f32 %v1458_v57, 0.0 }
 0x16b   : > { %v2252_v63 = vpack.c.bf16 %v1655_v56, %v1654_v49  ;;  %v1687_v1 = vmax.f32 %v1417_v58, 0.0  ;;  %v2253_v2 = vpack.c.bf16 %v1657_v60, %v1656_v55  ;;  %v1689_v3 = vmax.f32 %v1460_v62, 0.0 }
 0x16d   : > { %1900 = vst [vmem:[%s2778_s11 + $0x50] sm:$0xff] %v2252_v63  ;;  %v2268_v4 = vpack.c.bf16 %v1687_v1, %v1686_v61  ;;  %1901 = vst [vmem:[%s2778_s11 + $0x58] sm:$0xff] %v2253_v2  ;;  %v2269_v5 = vpack.c.bf16 %v1689_v3, %v1688_v0  ;;  %v1946_v63 = vld [vmem:[%s2778_s11 + $0x8] sm:$0xff] (%p2411_p5)  ;;  %v1948_v0 = vld [vmem:[%s2778_s11 + $0x10] sm:$0xff] (%p2411_p5) }
 0x16e   : > { %v1950_v1 = vld [vmem:[%s2778_s11 + $0x18] sm:$0xff] (%p2411_p5)  ;;  %v1952_v2 = vld [vmem:[%s2778_s11 + $0x20] sm:$0xff] (%p2411_p5)  ;;  %v1954_v3 = vld [vmem:[%s2778_s11 + $0x28] sm:$0xff] (%p2411_p5)  ;;  %1947 = vst [vmem:[%s2878_s20 + $0x8] sm:$0xff] (%p2411_p5), %v1946_v63 }
 0x16f   : > { %1916 = vst [vmem:[%s2778_s11 + $0xd0] sm:$0xff] %v2268_v4  ;;  %1917 = vst [vmem:[%s2778_s11 + $0xd8] sm:$0xff] %v2269_v5  ;;  %v1956_v4 = vld [vmem:[%s2778_s11 + $0x30] sm:$0xff] (%p2411_p5)  ;;  %v1958_v5 = vld [vmem:[%s2778_s11 + $0x38] sm:$0xff] (%p2411_p5) }
 0x170   : > { %1949 = vst [vmem:[%s2878_s20 + $0x10] sm:$0xff] (%p2411_p5), %v1948_v0  ;;  %1951 = vst [vmem:[%s2878_s20 + $0x18] sm:$0xff] (%p2411_p5), %v1950_v1 }
 0x171   : > { %v1496_v6 = vpop.f32.mrb[24].mxu0  ;;  %v1539_v8 = vpop.f32.mrb[24].mxu1  ;;  %1953 = vst [vmem:[%s2878_s20 + $0x20] sm:$0xff] (%p2411_p5), %v1952_v2  ;;  %1955 = vst [vmem:[%s2878_s20 + $0x28] sm:$0xff] (%p2411_p5), %v1954_v3 }
 0x172   : > { %v1497_v7 = vadd.f32 %v1496_v6, %v2764_v16  ;;  %v1498_v9 = vpop.f32.mrb[25].mxu0  ;;  %v1540_v10 = vadd.f32 %v1539_v8, %v2764_v16  ;;  %v1541_v12 = vpop.f32.mrb[25].mxu1  ;;  %v1960_v6 = vld [vmem:[%s2778_s11 + $0x40] sm:$0xff] (%p2411_p5)  ;;  %1957 = vst [vmem:[%s2878_s20 + $0x30] sm:$0xff] (%p2411_p5), %v1956_v4  ;;  %1959 = vst [vmem:[%s2878_s20 + $0x38] sm:$0xff] (%p2411_p5), %v1958_v5 }
 0x173   : > { %v1499_v11 = vadd.f32 %v1498_v9, %v2764_v16  ;;  %v1500_v13 = vpop.f32.mrb[26].mxu0  ;;  %v1542_v15 = vadd.f32 %v1541_v12, %v2764_v16  ;;  %v1543_v18 = vpop.f32.mrb[26].mxu1  ;;  %1961 = vst [vmem:[%s2878_s20 + $0x40] sm:$0xff] (%p2411_p5), %v1960_v6 }
 0x174   : > { %v1658_v14 = vmax.f32 %v1497_v7, 0.0  ;;  %v1501_v17 = vadd.f32 %v1500_v13, %v2766_v26  ;;  %v1502_v19 = vpop.f32.mrb[27].mxu0  ;;  %v1660_v20 = vmax.f32 %v1540_v10, 0.0  ;;  %v1544_v22 = vadd.f32 %v1543_v18, %v2766_v26  ;;  %v1545_v24 = vpop.f32.mrb[27].mxu1  ;;  %v1962_v7 = vld [vmem:[%s2778_s11 + $0x48] sm:$0xff] (%p2411_p5)  ;;  %v1964_v8 = vld [vmem:[%s2778_s11 + $0x50] sm:$0xff] (%p2411_p5) }
 0x175   : > { %v1659_v21 = vmax.f32 %v1499_v11, 0.0  ;;  %v1503_v23 = vadd.f32 %v1502_v19, %v2766_v26  ;;  %v1661_v25 = vmax.f32 %v1542_v15, 0.0  ;;  %v1546_v28 = vadd.f32 %v1545_v24, %v2766_v26  ;;  %v1966_v9 = vld [vmem:[%s2778_s11 + $0x58] sm:$0xff] (%p2411_p5)  ;;  %1963 = vst [vmem:[%s2878_s20 + $0x48] sm:$0xff] (%p2411_p5), %v1962_v7  ;;  %1965 = vst [vmem:[%s2878_s20 + $0x50] sm:$0xff] (%p2411_p5), %v1964_v8  ;;  %v1978_v15 = vld [vmem:[%s2778_s11 + $0x88] sm:$0xff] (%p2411_p5) }
 0x176   : > { %v1690_v27 = vmax.f32 %v1501_v17, 0.0  ;;  %v1692_v30 = vmax.f32 %v1544_v22, 0.0  ;;  %1967 = vst [vmem:[%s2878_s20 + $0x58] sm:$0xff] (%p2411_p5), %v1966_v9  ;;  %1979 = vst [vmem:[%s2878_s20 + $0x108] sm:$0xff] (%p2411_p5), %v1978_v15  ;;  %v1980_v17 = vld [vmem:[%s2778_s11 + $0x90] sm:$0xff] (%p2411_p5)  ;;  %v1982_v18 = vld [vmem:[%s2778_s11 + $0x98] sm:$0xff] (%p2411_p5) }
 0x177   : > { %v2254_v29 = vpack.c.bf16 %v1659_v21, %v1658_v14  ;;  %v1691_v31 = vmax.f32 %v1503_v23, 0.0  ;;  %v2255_v32 = vpack.c.bf16 %v1661_v25, %v1660_v20  ;;  %v1693_v33 = vmax.f32 %v1546_v28, 0.0  ;;  %v1976_v14 = vld [vmem:[%s2778_s11 + $0x80] sm:$0xff] (%p2411_p5)  ;;  %1981 = vst [vmem:[%s2878_s20 + $0x110] sm:$0xff] (%p2411_p5), %v1980_v17  ;;  %1983 = vst [vmem:[%s2878_s20 + $0x118] sm:$0xff] (%p2411_p5), %v1982_v18  ;;  %v1986_v20 = vld [vmem:[%s2778_s11 + $0xa8] sm:$0xff] (%p2411_p5) }
 0x178   : > { %1977 = vst [vmem:[%s2878_s20 + $0x100] sm:$0xff] (%p2411_p5), %v1976_v14  ;;  %v1984_v19 = vld [vmem:[%s2778_s11 + $0xa0] sm:$0xff] (%p2411_p5)  ;;  %v1988_v21 = vld [vmem:[%s2778_s11 + $0xb0] sm:$0xff] (%p2411_p5)  ;;  %v1990_v22 = vld [vmem:[%s2778_s11 + $0xb8] sm:$0xff] (%p2411_p5) }
 0x179   : > { %1902 = vst [vmem:[%s2778_s11 + $0x60] sm:$0xff] %v2254_v29  ;;  %v2270_v34 = vpack.c.bf16 %v1691_v31, %v1690_v27  ;;  %1903 = vst [vmem:[%s2778_s11 + $0x68] sm:$0xff] %v2255_v32  ;;  %v2271_v51 = vpack.c.bf16 %v1693_v33, %v1692_v30  ;;  %v1992_v23 = vld [vmem:[%s2778_s11 + $0xc0] sm:$0xff] (%p2411_p5)  ;;  %v1994_v24 = vld [vmem:[%s2778_s11 + $0xc8] sm:$0xff] (%p2411_p5) }
 0x17a   : > { %1985 = vst [vmem:[%s2878_s20 + $0x120] sm:$0xff] (%p2411_p5), %v1984_v19  ;;  %1987 = vst [vmem:[%s2878_s20 + $0x128] sm:$0xff] (%p2411_p5), %v1986_v20  ;;  %v1996_v25 = vld [vmem:[%s2778_s11 + $0xd0] sm:$0xff] (%p2411_p5)  ;;  %v1998_v27 = vld [vmem:[%s2778_s11 + $0xd8] sm:$0xff] (%p2411_p5) }
 0x17b   : > { %1918 = vst [vmem:[%s2778_s11 + $0xe0] sm:$0xff] %v2270_v34  ;;  %1919 = vst [vmem:[%s2778_s11 + $0xe8] sm:$0xff] %v2271_v51 }
 0x17c   : > { %1989 = vst [vmem:[%s2878_s20 + $0x130] sm:$0xff] (%p2411_p5), %v1988_v21  ;;  %1991 = vst [vmem:[%s2878_s20 + $0x138] sm:$0xff] (%p2411_p5), %v1990_v22 }
 0x17d   : > { %v1582_v35 = vpop.f32.mrb[28].mxu0  ;;  %v1625_v37 = vpop.f32.mrb[28].mxu1  ;;  %1993 = vst [vmem:[%s2878_s20 + $0x140] sm:$0xff] (%p2411_p5), %v1992_v23  ;;  %1995 = vst [vmem:[%s2878_s20 + $0x148] sm:$0xff] (%p2411_p5), %v1994_v24 }
 0x17e   : > { %v1583_v36 = vadd.f32 %v1582_v35, %v2764_v16  ;;  %v1584_v38 = vpop.f32.mrb[29].mxu0  ;;  %v1626_v39 = vadd.f32 %v1625_v37, %v2764_v16  ;;  %v1627_v41 = vpop.f32.mrb[29].mxu1  ;;  %1997 = vst [vmem:[%s2878_s20 + $0x150] sm:$0xff] (%p2411_p5), %v1996_v25  ;;  %1999 = vst [vmem:[%s2878_s20 + $0x158] sm:$0xff] (%p2411_p5), %v1998_v27 }
 0x17f   : > { %v1585_v40 = vadd.f32 %v1584_v38, %v2764_v16  ;;  %v1586_v42 = vpop.f32.mrb[30].mxu0  ;;  %v1628_v44 = vadd.f32 %v1627_v41, %v2764_v16  ;;  %v1629_v46 = vpop.f32.mrb[30].mxu1 }
 0x180   : > { %v1662_v43 = vmax.f32 %v1583_v36, 0.0  ;;  %v1587_v45 = vadd.f32 %v1586_v42, %v2766_v26  ;;  %v1588_v47 = vpop.f32.mrb[31].mxu0  ;;  %v1664_v48 = vmax.f32 %v1626_v39, 0.0  ;;  %v1630_v50 = vadd.f32 %v1629_v46, %v2766_v26  ;;  %v1631_v53 = vpop.f32.mrb[31].mxu1  ;;  %v1968_v10 = vld [vmem:[%s2778_s11 + $0x60] sm:$0xff] (%p2411_p5)  ;;  %v1970_v11 = vld [vmem:[%s2778_s11 + $0x68] sm:$0xff] (%p2411_p5) }
 0x181   : > { %v1663_v49 = vmax.f32 %v1585_v40, 0.0  ;;  %v1589_v52 = vadd.f32 %v1588_v47, %v2766_v26  ;;  %v1665_v54 = vmax.f32 %v1628_v44, 0.0  ;;  %v1632_v56 = vadd.f32 %v1631_v53, %v2766_v26  ;;  %1928 = sbr.rel (!%p2411_p5) target bundleno = 400 (0x190), region = 59  ;;  %v1944_v26 = vld [vmem:[%s2778_s11] sm:$0xff] (%p2411_p5)  ;;  %1969 = vst [vmem:[%s2878_s20 + $0x60] sm:$0xff] (%p2411_p5), %v1968_v10  ;;  %1971 = vst [vmem:[%s2878_s20 + $0x68] sm:$0xff] (%p2411_p5), %v1970_v11 }
 0x182   : > { %v1694_v55 = vmax.f32 %v1587_v45, 0.0  ;;  %v1696_v57 = vmax.f32 %v1630_v50, 0.0  ;;  %1945 = vst [vmem:[%s2878_s20] sm:$0xff] (%p2411_p5), %v1944_v26  ;;  %v2000_v28 = vld [vmem:[%s2778_s11 + $0xe0] sm:$0xff] (%p2411_p5)  ;;  %v2002_v29 = vld [vmem:[%s2778_s11 + $0xe8] sm:$0xff] (%p2411_p5) }
 0x183   : > { %v2256_v16 = vpack.c.bf16 %v1663_v49, %v1662_v43  ;;  %v1695_v58 = vmax.f32 %v1589_v52, 0.0  ;;  %v2257_v59 = vpack.c.bf16 %v1665_v54, %v1664_v48  ;;  %v1697_v60 = vmax.f32 %v1632_v56, 0.0  ;;  %2001 = vst [vmem:[%s2878_s20 + $0x160] sm:$0xff] (%p2411_p5), %v2000_v28  ;;  %2003 = vst [vmem:[%s2878_s20 + $0x168] sm:$0xff] (%p2411_p5), %v2002_v29 }
 0x185   : > { %1904 = vst [vmem:[%s2778_s11 + $0x70] sm:$0xff] %v2256_v16  ;;  %v2272_v61 = vpack.c.bf16 %v1695_v58, %v1694_v55  ;;  %1905 = vst [vmem:[%s2778_s11 + $0x78] sm:$0xff] %v2257_v59  ;;  %v2273_v62 = vpack.c.bf16 %v1697_v60, %v1696_v57 }
 0x187   : > { %1920 = vst [vmem:[%s2778_s11 + $0xf0] sm:$0xff] %v2272_v61  ;;  %1921 = vst [vmem:[%s2778_s11 + $0xf8] sm:$0xff] %v2273_v62 }
 0x18c   : > { %v1972_v12 = vld [vmem:[%s2778_s11 + $0x70] sm:$0xff]  ;;  %v1974_v13 = vld [vmem:[%s2778_s11 + $0x78] sm:$0xff] }
 0x18d   : > { %1973 = vst [vmem:[%s2878_s20 + $0x70] sm:$0xff] %v1972_v12  ;;  %1975 = vst [vmem:[%s2878_s20 + $0x78] sm:$0xff] %v1974_v13 }
 0x18e   : > { %v2004_v30 = vld [vmem:[%s2778_s11 + $0xf0] sm:$0xff]  ;;  %v2006_v31 = vld [vmem:[%s2778_s11 + $0xf8] sm:$0xff] }
 0x18f   : > { %2005 = vst [vmem:[%s2878_s20 + $0x170] sm:$0xff] %v2004_v30  ;;  %2007 = vst [vmem:[%s2878_s20 + $0x178] sm:$0xff] %v2006_v31 }
 0x190 PF: > { %p10_p10 = scmp.ge.s32.totalorder %s2398_s16, 4   ;;  %s2956_s12 = smov %s2354_s13 }
 0x191   : > { %s2957_s13 = smov %s2409_s19  ;;  %s2958_s14 = smov %s2398_s16 }
 0x192   :  { %12 = sbr.rel (!%p10_p10) target bundleno = 2 (0x2), region = 113 }

// kernel: vae_encoder_forward.7
= control target key start
LH: loop header
LB: loop body
LE: loop exit
PB: predicated region body
PF: predicated region fallthrough
CT: control target
= control target key end

     0   :  { %s1495_s12 = smov 0   ;;  %s1497_s13 = smov 0   ;;  %s1911_s0 = inlined_call_operand.vmem [shape: bf16[32,144], index: 0, kind: input, shape index: {}]   ;;  %s1912_s1 = inlined_call_operand.vmem [shape: bf16[144,2048], index: 1, kind: input, shape index: {}]   ;;  %s1913_s2 = inlined_call_operand.vmem [shape: f32[32,1], index: 2, kind: input, shape index: {}]   ;;  %s1914_s3 = inlined_call_operand.vmem [shape: bf16[32,2048], index: 3, kind: output, shape index: {}]  }
   0x1   :  { %s1499_s14 = smov 0  }
   0x2 LB: > { %s1284_s15 = sadd.s32 4294967295, %s1472_s14   ;;  %s1512_s16 = sadd.s32 1, %s1472_s14   ;;  %s1472_s14 = sphi %s1499_s14, %s1918_s14   ;;  %s1468_s13 = sphi %s1497_s13, %s1917_s13   ;;  %s1464_s12 = sphi %s1495_s12, %s1916_s12  }
   0x3   : > { %s38_s17 = ssub.s32 %s1472_s14, %s1512_s16  ;;  %s41_s18 = sadd.s32 1, %s1468_s13 }
   0x4   : > { %p39_p0 = scmp.eq.s32.totalorder %s38_s17, 0  ;;  %p48_p1 = scmp.ne.s32.totalorder %s1468_s13, %s1464_s12 }
   0x5   : > { %p49_p2 = scmp.eq.s32.totalorder %s1472_s14, 0  ;;  %p99_p3 = scmp.eq.s32.totalorder %s1284_s15, 1 }
   0x6   : > { %s1523_s19 = scalar_select %p39_p0, %s1468_s13, %s41_s18  }
   0x7   : > { %p50_p4 = por %p49_p2, %p48_p1  ;;  %p1525_p5 = por %p99_p3, %p48_p1 }
   0x8   : > { %p1287_p6 = scmp.ge.s32.totalorder %s1472_s14, 2 }
   0xa   : > { %127 = sbr.rel (%p1287_p6) target bundleno = 58 (0x3a), region = 24 }
  0x11   : > { %130 = sbr.rel (!%p50_p4) target bundleno = 58 (0x3a), region = 28  ;;  %s132_s21 = sand.u32 (%p50_p4), 1, %s1468_s13  }
  0x12   : > { %s1397_s22 = sshll.u32 (%p50_p4), %s1472_s14, 5  ;;  %s1415_s23 = smul.u32 (%p50_p4), 576, %s132_s21 }
  0x13   : > { %s1535_s26 = scalar_lea.vmem (%p50_p4), %s1912_s1, %s1397_s22 }
  0x14   : > { %v150_v0 = vld [vmem:[%s1535_s26] sm:$0xff] (%p50_p4)  ;;  %v152_v1 = vld [vmem:[%s1535_s26 + $0x8] sm:$0xff] (%p50_p4)  ;;  %v154_v2 = vld [vmem:[%s1535_s26 + $0x10] sm:$0xff] (%p50_p4)  ;;  %s1543_s27 = scalar_lea.vmem (%p50_p4), [#allocation2], %s1415_s23 }
  0x15   : > { %v156_v3 = vld [vmem:[%s1535_s26 + $0x18] sm:$0xff] (%p50_p4)  ;;  %v158_v4 = vld [vmem:[%s1535_s26 + $0x40] sm:$0xff] (%p50_p4)  ;;  %v160_v5 = vld [vmem:[%s1535_s26 + $0x48] sm:$0xff] (%p50_p4)  ;;  %151 = vst [vmem:[%s1543_s27] sm:$0xff] (%p50_p4), %v150_v0 }
  0x16   : > { %153 = vst [vmem:[%s1543_s27 + $0x8] sm:$0xff] (%p50_p4), %v152_v1  ;;  %155 = vst [vmem:[%s1543_s27 + $0x10] sm:$0xff] (%p50_p4), %v154_v2  ;;  %v162_v6 = vld [vmem:[%s1535_s26 + $0x50] sm:$0xff] (%p50_p4)  ;;  %v164_v7 = vld [vmem:[%s1535_s26 + $0x58] sm:$0xff] (%p50_p4) }
  0x17   : > { %157 = vst [vmem:[%s1543_s27 + $0x18] sm:$0xff] (%p50_p4), %v156_v3  ;;  %159 = vst [vmem:[%s1543_s27 + $0x20] sm:$0xff] (%p50_p4), %v158_v4  ;;  %v166_v8 = vld [vmem:[%s1535_s26 + $0x80] sm:$0xff] (%p50_p4)  ;;  %v168_v9 = vld [vmem:[%s1535_s26 + $0x88] sm:$0xff] (%p50_p4) }
  0x18   : > { %161 = vst [vmem:[%s1543_s27 + $0x28] sm:$0xff] %v160_v5  ;;  %163 = vst [vmem:[%s1543_s27 + $0x30] sm:$0xff] %v162_v6  ;;  %v170_v10 = vld [vmem:[%s1535_s26 + $0x90] sm:$0xff]  ;;  %v172_v11 = vld [vmem:[%s1535_s26 + $0x98] sm:$0xff] }
  0x19   : > { %165 = vst [vmem:[%s1543_s27 + $0x38] sm:$0xff] %v164_v7  ;;  %167 = vst [vmem:[%s1543_s27 + $0x40] sm:$0xff] %v166_v8  ;;  %v174_v12 = vld [vmem:[%s1535_s26 + $0xc0] sm:$0xff]  ;;  %v176_v13 = vld [vmem:[%s1535_s26 + $0xc8] sm:$0xff] }
  0x1a   : > { %169 = vst [vmem:[%s1543_s27 + $0x48] sm:$0xff] %v168_v9  ;;  %171 = vst [vmem:[%s1543_s27 + $0x50] sm:$0xff] %v170_v10  ;;  %v178_v14 = vld [vmem:[%s1535_s26 + $0xd0] sm:$0xff]  ;;  %v180_v15 = vld [vmem:[%s1535_s26 + $0xd8] sm:$0xff] }
  0x1b   : > { %173 = vst [vmem:[%s1543_s27 + $0x58] sm:$0xff] %v172_v11  ;;  %175 = vst [vmem:[%s1543_s27 + $0x60] sm:$0xff] %v174_v12  ;;  %v182_v16 = vld [vmem:[%s1535_s26 + $0x100] sm:$0xff]  ;;  %v184_v17 = vld [vmem:[%s1535_s26 + $0x108] sm:$0xff] }
  0x1c   : > { %177 = vst [vmem:[%s1543_s27 + $0x68] sm:$0xff] %v176_v13  ;;  %179 = vst [vmem:[%s1543_s27 + $0x70] sm:$0xff] %v178_v14  ;;  %v186_v18 = vld [vmem:[%s1535_s26 + $0x110] sm:$0xff]  ;;  %v188_v19 = vld [vmem:[%s1535_s26 + $0x118] sm:$0xff] }
  0x1d   : > { %181 = vst [vmem:[%s1543_s27 + $0x78] sm:$0xff] %v180_v15  ;;  %183 = vst [vmem:[%s1543_s27 + $0x80] sm:$0xff] %v182_v16  ;;  %v190_v20 = vld [vmem:[%s1535_s26 + $0x140] sm:$0xff]  ;;  %v192_v21 = vld [vmem:[%s1535_s26 + $0x148] sm:$0xff] }
  0x1e   : > { %185 = vst [vmem:[%s1543_s27 + $0x88] sm:$0xff] %v184_v17  ;;  %187 = vst [vmem:[%s1543_s27 + $0x90] sm:$0xff] %v186_v18  ;;  %v194_v22 = vld [vmem:[%s1535_s26 + $0x150] sm:$0xff]  ;;  %v196_v23 = vld [vmem:[%s1535_s26 + $0x158] sm:$0xff] }
  0x1f   : > { %189 = vst [vmem:[%s1543_s27 + $0x98] sm:$0xff] %v188_v19  ;;  %191 = vst [vmem:[%s1543_s27 + $0xa0] sm:$0xff] %v190_v20  ;;  %v198_v24 = vld [vmem:[%s1535_s26 + $0x180] sm:$0xff]  ;;  %v200_v25 = vld [vmem:[%s1535_s26 + $0x188] sm:$0xff] }
  0x20   : > { %193 = vst [vmem:[%s1543_s27 + $0xa8] sm:$0xff] %v192_v21  ;;  %195 = vst [vmem:[%s1543_s27 + $0xb0] sm:$0xff] %v194_v22  ;;  %v202_v26 = vld [vmem:[%s1535_s26 + $0x190] sm:$0xff]  ;;  %v204_v27 = vld [vmem:[%s1535_s26 + $0x198] sm:$0xff] }
  0x21   : > { %197 = vst [vmem:[%s1543_s27 + $0xb8] sm:$0xff] %v196_v23  ;;  %199 = vst [vmem:[%s1543_s27 + $0xc0] sm:$0xff] %v198_v24  ;;  %v206_v28 = vld [vmem:[%s1535_s26 + $0x1c0] sm:$0xff]  ;;  %v208_v29 = vld [vmem:[%s1535_s26 + $0x1c8] sm:$0xff] }
  0x22   : > { %201 = vst [vmem:[%s1543_s27 + $0xc8] sm:$0xff] %v200_v25  ;;  %203 = vst [vmem:[%s1543_s27 + $0xd0] sm:$0xff] %v202_v26  ;;  %v210_v30 = vld [vmem:[%s1535_s26 + $0x1d0] sm:$0xff]  ;;  %v212_v31 = vld [vmem:[%s1535_s26 + $0x1d8] sm:$0xff] }
  0x23   : > { %205 = vst [vmem:[%s1543_s27 + $0xd8] sm:$0xff] %v204_v27  ;;  %207 = vst [vmem:[%s1543_s27 + $0xe0] sm:$0xff] %v206_v28  ;;  %v214_v32 = vld [vmem:[%s1535_s26 + $0x200] sm:$0xff]  ;;  %v216_v33 = vld [vmem:[%s1535_s26 + $0x208] sm:$0xff] }
  0x24   : > { %209 = vst [vmem:[%s1543_s27 + $0xe8] sm:$0xff] %v208_v29  ;;  %211 = vst [vmem:[%s1543_s27 + $0xf0] sm:$0xff] %v210_v30  ;;  %v218_v34 = vld [vmem:[%s1535_s26 + $0x210] sm:$0xff]  ;;  %v220_v35 = vld [vmem:[%s1535_s26 + $0x218] sm:$0xff] }
  0x25   : > { %213 = vst [vmem:[%s1543_s27 + $0xf8] sm:$0xff] %v212_v31  ;;  %215 = vst [vmem:[%s1543_s27 + $0x100] sm:$0xff] %v214_v32  ;;  %v222_v36 = vld [vmem:[%s1535_s26 + $0x240] sm:$0xff]  ;;  %v224_v37 = vld [vmem:[%s1535_s26 + $0x248] sm:$0xff] }
  0x26   : > { %217 = vst [vmem:[%s1543_s27 + $0x108] sm:$0xff] %v216_v33  ;;  %219 = vst [vmem:[%s1543_s27 + $0x110] sm:$0xff] %v218_v34  ;;  %v226_v38 = vld [vmem:[%s1535_s26 + $0x250] sm:$0xff]  ;;  %v228_v39 = vld [vmem:[%s1535_s26 + $0x258] sm:$0xff] }
  0x27   : > { %221 = vst [vmem:[%s1543_s27 + $0x118] sm:$0xff] %v220_v35  ;;  %223 = vst [vmem:[%s1543_s27 + $0x120] sm:$0xff] %v222_v36  ;;  %v230_v40 = vld [vmem:[%s1535_s26 + $0x280] sm:$0xff]  ;;  %v232_v41 = vld [vmem:[%s1535_s26 + $0x288] sm:$0xff] }
  0x28   : > { %225 = vst [vmem:[%s1543_s27 + $0x128] sm:$0xff] %v224_v37  ;;  %227 = vst [vmem:[%s1543_s27 + $0x130] sm:$0xff] %v226_v38  ;;  %v234_v42 = vld [vmem:[%s1535_s26 + $0x290] sm:$0xff]  ;;  %v236_v43 = vld [vmem:[%s1535_s26 + $0x298] sm:$0xff] }
  0x29   : > { %229 = vst [vmem:[%s1543_s27 + $0x138] sm:$0xff] %v228_v39  ;;  %231 = vst [vmem:[%s1543_s27 + $0x140] sm:$0xff] %v230_v40  ;;  %v238_v44 = vld [vmem:[%s1535_s26 + $0x2c0] sm:$0xff]  ;;  %v240_v45 = vld [vmem:[%s1535_s26 + $0x2c8] sm:$0xff] }
  0x2a   : > { %233 = vst [vmem:[%s1543_s27 + $0x148] sm:$0xff] %v232_v41  ;;  %235 = vst [vmem:[%s1543_s27 + $0x150] sm:$0xff] %v234_v42  ;;  %v242_v46 = vld [vmem:[%s1535_s26 + $0x2d0] sm:$0xff]  ;;  %v244_v47 = vld [vmem:[%s1535_s26 + $0x2d8] sm:$0xff] }
  0x2b   : > { %237 = vst [vmem:[%s1543_s27 + $0x158] sm:$0xff] %v236_v43  ;;  %239 = vst [vmem:[%s1543_s27 + $0x160] sm:$0xff] %v238_v44  ;;  %v246_v48 = vld [vmem:[%s1535_s26 + $0x300] sm:$0xff]  ;;  %v248_v49 = vld [vmem:[%s1535_s26 + $0x308] sm:$0xff] }
  0x2c   : > { %241 = vst [vmem:[%s1543_s27 + $0x168] sm:$0xff] %v240_v45  ;;  %243 = vst [vmem:[%s1543_s27 + $0x170] sm:$0xff] %v242_v46  ;;  %v250_v50 = vld [vmem:[%s1535_s26 + $0x310] sm:$0xff]  ;;  %v252_v51 = vld [vmem:[%s1535_s26 + $0x318] sm:$0xff] }
  0x2d   : > { %245 = vst [vmem:[%s1543_s27 + $0x178] sm:$0xff] %v244_v47  ;;  %247 = vst [vmem:[%s1543_s27 + $0x180] sm:$0xff] %v246_v48  ;;  %v254_v52 = vld [vmem:[%s1535_s26 + $0x340] sm:$0xff]  ;;  %v256_v53 = vld [vmem:[%s1535_s26 + $0x348] sm:$0xff] }
  0x2e   : > { %249 = vst [vmem:[%s1543_s27 + $0x188] sm:$0xff] %v248_v49  ;;  %251 = vst [vmem:[%s1543_s27 + $0x190] sm:$0xff] %v250_v50  ;;  %v258_v54 = vld [vmem:[%s1535_s26 + $0x350] sm:$0xff]  ;;  %v260_v55 = vld [vmem:[%s1535_s26 + $0x358] sm:$0xff] }
  0x2f   : > { %253 = vst [vmem:[%s1543_s27 + $0x198] sm:$0xff] %v252_v51  ;;  %255 = vst [vmem:[%s1543_s27 + $0x1a0] sm:$0xff] %v254_v52  ;;  %v262_v56 = vld [vmem:[%s1535_s26 + $0x380] sm:$0xff]  ;;  %v264_v57 = vld [vmem:[%s1535_s26 + $0x388] sm:$0xff] }
  0x30   : > { %257 = vst [vmem:[%s1543_s27 + $0x1a8] sm:$0xff] %v256_v53  ;;  %259 = vst [vmem:[%s1543_s27 + $0x1b0] sm:$0xff] %v258_v54  ;;  %v266_v58 = vld [vmem:[%s1535_s26 + $0x390] sm:$0xff]  ;;  %v268_v59 = vld [vmem:[%s1535_s26 + $0x398] sm:$0xff] }
  0x31   : > { %261 = vst [vmem:[%s1543_s27 + $0x1b8] sm:$0xff] %v260_v55  ;;  %263 = vst [vmem:[%s1543_s27 + $0x1c0] sm:$0xff] %v262_v56  ;;  %v270_v60 = vld [vmem:[%s1535_s26 + $0x3c0] sm:$0xff]  ;;  %v272_v61 = vld [vmem:[%s1535_s26 + $0x3c8] sm:$0xff] }
  0x32   : > { %265 = vst [vmem:[%s1543_s27 + $0x1c8] sm:$0xff] %v264_v57  ;;  %267 = vst [vmem:[%s1543_s27 + $0x1d0] sm:$0xff] %v266_v58  ;;  %v274_v62 = vld [vmem:[%s1535_s26 + $0x3d0] sm:$0xff]  ;;  %v276_v63 = vld [vmem:[%s1535_s26 + $0x3d8] sm:$0xff] }
  0x33   : > { %269 = vst [vmem:[%s1543_s27 + $0x1d8] sm:$0xff] %v268_v59  ;;  %271 = vst [vmem:[%s1543_s27 + $0x1e0] sm:$0xff] %v270_v60  ;;  %v278_v0 = vld [vmem:[%s1535_s26 + $0x400] sm:$0xff]  ;;  %v280_v1 = vld [vmem:[%s1535_s26 + $0x408] sm:$0xff] }
  0x34   : > { %273 = vst [vmem:[%s1543_s27 + $0x1e8] sm:$0xff] %v272_v61  ;;  %275 = vst [vmem:[%s1543_s27 + $0x1f0] sm:$0xff] %v274_v62  ;;  %v282_v2 = vld [vmem:[%s1535_s26 + $0x410] sm:$0xff]  ;;  %v284_v3 = vld [vmem:[%s1535_s26 + $0x418] sm:$0xff] }
  0x35   : > { %277 = vst [vmem:[%s1543_s27 + $0x1f8] sm:$0xff] %v276_v63  ;;  %279 = vst [vmem:[%s1543_s27 + $0x200] sm:$0xff] %v278_v0  ;;  %v286_v4 = vld [vmem:[%s1535_s26 + $0x440] sm:$0xff]  ;;  %v288_v5 = vld [vmem:[%s1535_s26 + $0x448] sm:$0xff] }
  0x36   : > { %281 = vst [vmem:[%s1543_s27 + $0x208] sm:$0xff] %v280_v1  ;;  %283 = vst [vmem:[%s1543_s27 + $0x210] sm:$0xff] %v282_v2  ;;  %v290_v6 = vld [vmem:[%s1535_s26 + $0x450] sm:$0xff]  ;;  %v292_v7 = vld [vmem:[%s1535_s26 + $0x458] sm:$0xff] }
  0x37   : > { %285 = vst [vmem:[%s1543_s27 + $0x218] sm:$0xff] %v284_v3  ;;  %287 = vst [vmem:[%s1543_s27 + $0x220] sm:$0xff] %v286_v4 }
  0x38   : > { %289 = vst [vmem:[%s1543_s27 + $0x228] sm:$0xff] %v288_v5  ;;  %291 = vst [vmem:[%s1543_s27 + $0x230] sm:$0xff] %v290_v6 }
  0x39   : > { %293 = vst [vmem:[%s1543_s27 + $0x238] sm:$0xff] %v292_v7 }
  0x3a PF: > { %p1290_p7 = scmp.ge.s32.totalorder %s1472_s14, 1  ;;  %p298_p8 = scmp.lt.s32.totalorder %s1472_s14, 3 }
  0x3c   : > { %p299_p9 = pnand %p1290_p7, %p298_p8 }
  0x3d   : > { %s305_s28 = sand.u32 (!%p299_p9), 1, %s1464_s12   ;;  %v1689_v8 = vld [vmem:[%s1911_s0 + $0x4] ss:$8 sps:$4 sm:$0xff] (!%p299_p9)   ;;  %vm808_vm0 = vcmask (!%p299_p9), 130048   ;;  %v1474_v10 = vmov (!%p299_p9), 0   ;;  %v408_v11 = vld [vmem:[%s1913_s2 + $0x10] sm:$0xff] (!%p299_p9) }
  0x3e   : > { %302 = sbr.rel (%p299_p9) target bundleno = 380 (0x17c), region = 51  ;;  %1368 = vmatprep.mubr.msk.bf16.mxu0 (!%p299_p9), %vm808_vm0, %v1689_v8  ;;  %1370 = vmatprep.mubr.msk.bf16.mxu1 (!%p299_p9), %vm808_vm0, %v1689_v8  ;;  %v406_v9 = vld [vmem:[%s1913_s2] sm:$0xff] (!%p299_p9)  ;;  %v407_v31 = vld [vmem:[%s1913_s2 + $0x8] sm:$0xff] (!%p299_p9)  ;;  %v409_v32 = vld [vmem:[%s1913_s2 + $0x18] sm:$0xff] (!%p299_p9)  ;;  %s1291_s27 = sshll.u32 (!%p299_p9), %s305_s28, 7 }
  0x3f   : > { %s1416_s4 = smul.u32 (!%p299_p9), 576, %s305_s28  ;;  %1442 = vset.pattern.permute.xlu0 (!%p299_p9), %v1474_v10  ;;  %1443 = vset.pattern.permute.xlu1 (!%p299_p9), %v1474_v10  ;;  %s1834_s12 = scalar_lea.vmem (!%p299_p9), [#allocation3], %s1291_s27 }
  0x40   : > { %412 = vperm.xlu0 (!%p299_p9), %1442, %v406_v9   ;;  %422 = vperm.xlu1 (!%p299_p9), %1443, %v408_v11  }
  0x41   : > { %s1703_s9 = scalar_lea.vmem (!%p299_p9), [#allocation2], %s1416_s4 }
  0x42   : > { %v334_v12 = vld [vmem:[%s1703_s9] sm:$0xff] (!%p299_p9)  ;;  %v335_v14 = vld [vmem:[%s1703_s9 + $0x8] sm:$0xff] (!%p299_p9) }
  0x43   : > { %v338_v13 = vld [vmem:[%s1703_s9 + $0x20] sm:$0xff] (!%p299_p9)  ;;  %v339_v16 = vld [vmem:[%s1703_s9 + $0x28] sm:$0xff] (!%p299_p9) }
  0x44   : > { %v1297_v15 = vcombine.high (!%p299_p9), %v334_v12, %v338_v13  ;;  %v1296_v17 = vcombine.low (!%p299_p9), %v334_v12, %v338_v13  ;;  %v342_v18 = vld [vmem:[%s1703_s9 + $0x40] sm:$0xff] (!%p299_p9)  ;;  %v1299_v20 = vcombine.high (!%p299_p9), %v335_v14, %v339_v16  ;;  %v1298_v21 = vcombine.low (!%p299_p9), %v335_v14, %v339_v16  ;;  %v343_v23 = vld [vmem:[%s1703_s9 + $0x48] sm:$0xff] (!%p299_p9)  ;;  %417 = vperm.xlu0 (!%p299_p9), %1442, %v407_v31  }
  0x45   : > { %v346_v19 = vld [vmem:[%s1703_s9 + $0x60] sm:$0xff]  ;;  %v347_v24 = vld [vmem:[%s1703_s9 + $0x68] sm:$0xff]  ;;  %427 = vperm.xlu1 %1443, %v409_v32   ;;  %v345_v32 = vld [vmem:[%s1703_s9 + $0x58] sm:$0xff]  ;;  %s1414_s28 = sshll.u32 (%p1525_p5), %s1284_s15, 5 }
  0x46   : > { %v1305_v22 = vcombine.high %v342_v18, %v346_v19  ;;  %v350_v25 = vld [vmem:[%s1703_s9 + $0x80] sm:$0xff]  ;;  %815 = vmatprep.subr.bf16.mxu0 %v1297_v15  ;;  %v1307_v26 = vcombine.high %v343_v23, %v347_v24  ;;  %v351_v28 = vld [vmem:[%s1703_s9 + $0x88] sm:$0xff]  ;;  %868 = vmatprep.subr.bf16.mxu1 %v1299_v20  ;;  %v1304_v30 = vcombine.low %v342_v18, %v346_v19  ;;  %s1180_s20 = scalar_lea.vmem (%p1525_p5), %s1914_s3, %s1414_s28 }
  0x47   : > { %v354_v27 = vld [vmem:[%s1703_s9 + $0xa0] sm:$0xff]  ;;  %v355_v29 = vld [vmem:[%s1703_s9 + $0xa8] sm:$0xff]  ;;  %816 = vmatpush1.bf16.msra.mxu0 %v1296_v17  ;;  %869 = vmatpush1.bf16.msra.mxu1 %v1298_v21  ;;  %v1306_v33 = vcombine.low %v343_v23, %v347_v24  ;;  %v336_v21 = vld [vmem:[%s1703_s9 + $0x10] sm:$0xff] }
  0x48   : > { %817 = vmatprep.subr.bf16.mxu0 %v1305_v22  ;;  %v1313_v34 = vcombine.high %v350_v25, %v354_v27  ;;  %870 = vmatprep.subr.bf16.mxu1 %v1307_v26  ;;  %v1315_v35 = vcombine.high %v351_v28, %v355_v29  ;;  %v358_v36 = vld [vmem:[%s1703_s9 + $0xc0] sm:$0xff]  ;;  %v359_v38 = vld [vmem:[%s1703_s9 + $0xc8] sm:$0xff]  ;;  %v1312_v40 = vcombine.low %v350_v25, %v354_v27  ;;  %v340_v22 = vld [vmem:[%s1703_s9 + $0x30] sm:$0xff] }
  0x49   : > { %v362_v37 = vld [vmem:[%s1703_s9 + $0xe0] sm:$0xff]  ;;  %v363_v39 = vld [vmem:[%s1703_s9 + $0xe8] sm:$0xff]  ;;  %v1314_v41 = vcombine.low %v351_v28, %v355_v29  ;;  %v337_v23 = vld [vmem:[%s1703_s9 + $0x18] sm:$0xff]  ;;  %v1301_v27 = vcombine.high %v336_v21, %v340_v22 }
  0x4a   : > { %v1321_v42 = vcombine.high %v358_v36, %v362_v37  ;;  %v1323_v43 = vcombine.high %v359_v38, %v363_v39  ;;  %v366_v44 = vld [vmem:[%s1703_s9 + $0x100] sm:$0xff]  ;;  %v367_v46 = vld [vmem:[%s1703_s9 + $0x108] sm:$0xff]  ;;  %v1320_v48 = vcombine.low %v358_v36, %v362_v37  ;;  %v1322_v49 = vcombine.low %v359_v38, %v363_v39  ;;  %v341_v24 = vld [vmem:[%s1703_s9 + $0x38] sm:$0xff] }
  0x4b   : > { %818 = vmatpush1.bf16.msra.mxu0 %v1304_v30  ;;  %871 = vmatpush1.bf16.msra.mxu1 %v1306_v33  ;;  %v370_v45 = vld [vmem:[%s1703_s9 + $0x120] sm:$0xff]  ;;  %v371_v47 = vld [vmem:[%s1703_s9 + $0x128] sm:$0xff]  ;;  %v1303_v28 = vcombine.high %v337_v23, %v341_v24  ;;  %v344_v29 = vld [vmem:[%s1703_s9 + $0x50] sm:$0xff] }
  0x4c   : > { %819 = vmatprep.subr.bf16.mxu0 %v1313_v34  ;;  %872 = vmatprep.subr.bf16.mxu1 %v1315_v35  ;;  %v1329_v50 = vcombine.high %v366_v44, %v370_v45  ;;  %v1331_v51 = vcombine.high %v367_v46, %v371_v47  ;;  %v374_v52 = vld [vmem:[%s1703_s9 + $0x140] sm:$0xff]  ;;  %v375_v54 = vld [vmem:[%s1703_s9 + $0x148] sm:$0xff]  ;;  %v1328_v56 = vcombine.low %v366_v44, %v370_v45  ;;  %v348_v30 = vld [vmem:[%s1703_s9 + $0x70] sm:$0xff] }
  0x4d   : > { %v378_v53 = vld [vmem:[%s1703_s9 + $0x160] sm:$0xff]  ;;  %v379_v55 = vld [vmem:[%s1703_s9 + $0x168] sm:$0xff]  ;;  %v1330_v57 = vcombine.low %v367_v46, %v371_v47  ;;  %v349_v33 = vld [vmem:[%s1703_s9 + $0x78] sm:$0xff]  ;;  %v1300_v34 = vcombine.low %v336_v21, %v340_v22  ;;  %v1302_v35 = vcombine.low %v337_v23, %v341_v24  ;;  %v1309_v36 = vcombine.high %v344_v29, %v348_v30 }
  0x4e   : > { %v1337_v58 = vcombine.high %v374_v52, %v378_v53  ;;  %v1339_v59 = vcombine.high %v375_v54, %v379_v55  ;;  %v382_v60 = vld [vmem:[%s1703_s9 + $0x180] sm:$0xff]  ;;  %v383_v62 = vld [vmem:[%s1703_s9 + $0x188] sm:$0xff]  ;;  %v1336_v0 = vcombine.low %v374_v52, %v378_v53  ;;  %v1338_v1 = vcombine.low %v375_v54, %v379_v55  ;;  %v352_v38 = vld [vmem:[%s1703_s9 + $0x90] sm:$0xff] }
  0x4f   : > { %820 = vmatpush1.bf16.msra.mxu0 %v1312_v40  ;;  %873 = vmatpush1.bf16.msra.mxu1 %v1314_v41  ;;  %v386_v61 = vld [vmem:[%s1703_s9 + $0x1a0] sm:$0xff]  ;;  %v387_v63 = vld [vmem:[%s1703_s9 + $0x1a8] sm:$0xff]  ;;  %v1311_v37 = vcombine.high %v345_v32, %v349_v33  ;;  %v356_v39 = vld [vmem:[%s1703_s9 + $0xb0] sm:$0xff]  ;;  %v1310_v44 = vcombine.low %v345_v32, %v349_v33 }
  0x50   : > { %821 = vmatprep.subr.bf16.mxu0 %v1321_v42  ;;  %874 = vmatprep.subr.bf16.mxu1 %v1323_v43  ;;  %v1345_v2 = vcombine.high %v382_v60, %v386_v61  ;;  %v1347_v3 = vcombine.high %v383_v62, %v387_v63  ;;  %v390_v4 = vld [vmem:[%s1703_s9 + $0x1c0] sm:$0xff]  ;;  %v391_v6 = vld [vmem:[%s1703_s9 + $0x1c8] sm:$0xff]  ;;  %v1344_v9 = vcombine.low %v382_v60, %v386_v61  ;;  %v1765_v40 = vld [vmem:[%s1911_s0 + $0x14] ss:$8 sps:$4 sm:$0xff]  }
  0x51   : > { %v394_v5 = vld [vmem:[%s1703_s9 + $0x1e0] sm:$0xff]  ;;  %v395_v7 = vld [vmem:[%s1703_s9 + $0x1e8] sm:$0xff]  ;;  %v1346_v10 = vcombine.low %v383_v62, %v387_v63  ;;  %v353_v41 = vld [vmem:[%s1703_s9 + $0x98] sm:$0xff]  ;;  %v1308_v43 = vcombine.low %v344_v29, %v348_v30  ;;  %v1317_v45 = vcombine.high %v352_v38, %v356_v39  ;;  %v1316_v52 = vcombine.low %v352_v38, %v356_v39 }
  0x52   : > { %v1353_v11 = vcombine.high %v390_v4, %v394_v5  ;;  %v1355_v12 = vcombine.high %v391_v6, %v395_v7  ;;  %v398_v13 = vld [vmem:[%s1703_s9 + $0x200] sm:$0xff]  ;;  %v399_v15 = vld [vmem:[%s1703_s9 + $0x208] sm:$0xff]  ;;  %v1352_v17 = vcombine.low %v390_v4, %v394_v5  ;;  %v1354_v18 = vcombine.low %v391_v6, %v395_v7  ;;  %v357_v42 = vld [vmem:[%s1703_s9 + $0xb8] sm:$0xff] }
  0x53   : > { %822 = vmatpush1.bf16.msra.mxu0 %v1320_v48  ;;  %875 = vmatpush1.bf16.msra.mxu1 %v1322_v49  ;;  %v402_v14 = vld [vmem:[%s1703_s9 + $0x220] sm:$0xff]  ;;  %v403_v16 = vld [vmem:[%s1703_s9 + $0x228] sm:$0xff]  ;;  %v1319_v46 = vcombine.high %v353_v41, %v357_v42  ;;  %v360_v47 = vld [vmem:[%s1703_s9 + $0xd0] sm:$0xff]  ;;  %v1318_v53 = vcombine.low %v353_v41, %v357_v42 }
  0x54   : > { %823 = vmatprep.subr.bf16.mxu0 %v1329_v50  ;;  %876 = vmatprep.subr.bf16.mxu1 %v1331_v51  ;;  %v1361_v19 = vcombine.high %v398_v13, %v402_v14  ;;  %v1363_v20 = vcombine.high %v399_v15, %v403_v16  ;;  %v1360_v25 = vcombine.low %v398_v13, %v402_v14  ;;  %v1756_v31 = vld [vmem:[%s1911_s0] ss:$8 sps:$4 sm:$0xff]   ;;  %v364_v48 = vld [vmem:[%s1703_s9 + $0xf0] sm:$0xff]  ;;  %v361_v49 = vld [vmem:[%s1703_s9 + $0xd8] sm:$0xff] }
  0x55   : > { %v1362_v26 = vcombine.low %v399_v15, %v403_v16  ;;  %v365_v50 = vld [vmem:[%s1703_s9 + $0xf8] sm:$0xff]  ;;  %v1325_v54 = vcombine.high %v360_v47, %v364_v48  ;;  %v1324_v60 = vcombine.low %v360_v47, %v364_v48  ;;  %v392_v16 = vld [vmem:[%s1703_s9 + $0x1d0] sm:$0xff] }
  0x56   : > { %v1782_v51 = vld [vmem:[%s1911_s0 + $0x10] ss:$8 sps:$4 sm:$0xff]   ;;  %v1327_v55 = vcombine.high %v361_v49, %v365_v50  ;;  %v1326_v61 = vcombine.low %v361_v49, %v365_v50 }
  0x57   : > { %824 = vmatpush1.bf16.msra.mxu0 %v1328_v56  ;;  %877 = vmatpush1.bf16.msra.mxu1 %v1330_v57  ;;  %v368_v56 = vld [vmem:[%s1703_s9 + $0x110] sm:$0xff] }
  0x58   : > { %825 = vmatprep.subr.bf16.mxu0 %v1337_v58  ;;  %878 = vmatprep.subr.bf16.mxu1 %v1339_v59  ;;  %v372_v57 = vld [vmem:[%s1703_s9 + $0x130] sm:$0xff]  ;;  %v369_v58 = vld [vmem:[%s1703_s9 + $0x118] sm:$0xff] }
  0x59   : > { %v373_v59 = vld [vmem:[%s1703_s9 + $0x138] sm:$0xff]  ;;  %v1333_v62 = vcombine.high %v368_v56, %v372_v57  ;;  %v1332_v4 = vcombine.low %v368_v56, %v372_v57  ;;  %v400_v24 = vld [vmem:[%s1703_s9 + $0x210] sm:$0xff] }
  0x5a   : > { %v1335_v63 = vcombine.high %v369_v58, %v373_v59  ;;  %v1334_v5 = vcombine.low %v369_v58, %v373_v59 }
  0x5b   : > { %826 = vmatpush1.bf16.msra.mxu0 %v1336_v0  ;;  %879 = vmatpush1.bf16.msra.mxu1 %v1338_v1  ;;  %v376_v0 = vld [vmem:[%s1703_s9 + $0x150] sm:$0xff] }
  0x5c   : > { %827 = vmatprep.subr.bf16.mxu0 %v1345_v2  ;;  %880 = vmatprep.subr.bf16.mxu1 %v1347_v3  ;;  %v380_v1 = vld [vmem:[%s1703_s9 + $0x170] sm:$0xff]  ;;  %v377_v2 = vld [vmem:[%s1703_s9 + $0x158] sm:$0xff] }
  0x5d   : > { %v381_v3 = vld [vmem:[%s1703_s9 + $0x178] sm:$0xff]  ;;  %v1341_v6 = vcombine.high %v376_v0, %v380_v1  ;;  %v1340_v13 = vcombine.low %v376_v0, %v380_v1 }
  0x5e   : > { %v1343_v7 = vcombine.high %v377_v2, %v381_v3 }
  0x5f   : > { %828 = vmatpush1.bf16.msra.mxu0 %v1344_v9  ;;  %881 = vmatpush1.bf16.msra.mxu1 %v1346_v10  ;;  %v384_v9 = vld [vmem:[%s1703_s9 + $0x190] sm:$0xff] }
  0x60   : > { %829 = vmatprep.subr.bf16.mxu0 %v1353_v11  ;;  %882 = vmatprep.subr.bf16.mxu1 %v1355_v12  ;;  %v388_v10 = vld [vmem:[%s1703_s9 + $0x1b0] sm:$0xff]  ;;  %v385_v11 = vld [vmem:[%s1703_s9 + $0x198] sm:$0xff] }
  0x61   : > { %v389_v12 = vld [vmem:[%s1703_s9 + $0x1b8] sm:$0xff]  ;;  %v1349_v14 = vcombine.high %v384_v9, %v388_v10 }
  0x62   : > { %v1351_v15 = vcombine.high %v385_v11, %v389_v12  ;;  %v1350_v21 = vcombine.low %v385_v11, %v389_v12 }
  0x63   : > { %830 = vmatpush1.bf16.msra.mxu0 %v1352_v17  ;;  %883 = vmatpush1.bf16.msra.mxu1 %v1354_v18  ;;  %v396_v17 = vld [vmem:[%s1703_s9 + $0x1f0] sm:$0xff]  ;;  %v393_v18 = vld [vmem:[%s1703_s9 + $0x1d8] sm:$0xff] }
  0x64   : > { %831 = vmatprep.subr.bf16.mxu0 %v1361_v19  ;;  %884 = vmatprep.subr.bf16.mxu1 %v1363_v20  ;;  %v397_v19 = vld [vmem:[%s1703_s9 + $0x1f8] sm:$0xff]  ;;  %v1348_v20 = vcombine.low %v384_v9, %v388_v10  ;;  %v1357_v22 = vcombine.high %v392_v16, %v396_v17 }
  0x65   : > { %v1359_v23 = vcombine.high %v393_v18, %v397_v19  ;;  %v1358_v29 = vcombine.low %v393_v18, %v397_v19 }
  0x67   : > { %832 = vmatpush1.bf16.msra.mxu0 %v1360_v25  ;;  %885 = vmatpush1.bf16.msra.mxu1 %v1362_v26  ;;  %v404_v25 = vld [vmem:[%s1703_s9 + $0x230] sm:$0xff]  ;;  %v401_v26 = vld [vmem:[%s1703_s9 + $0x218] sm:$0xff] }
  0x68   : > { %921 = vmatprep.subr.bf16.mxu0 %v1301_v27  ;;  %974 = vmatprep.subr.bf16.mxu1 %v1303_v28  ;;  %v405_v27 = vld [vmem:[%s1703_s9 + $0x238] sm:$0xff]  ;;  %v1356_v28 = vcombine.low %v392_v16, %v396_v17  ;;  %v1365_v30 = vcombine.high %v400_v24, %v404_v25  ;;  %v1364_v33 = vcombine.low %v400_v24, %v404_v25 }
  0x69   : > { %v1367_v32 = vcombine.high %v401_v26, %v405_v27 }
  0x6a   : > { %848 = vmatmul.mubr.bf16.vlgmr.msra.gmra.mrb[0].mxu0 %v1756_v31  ;;  %901 = vmatmul.mubr.bf16.vlgmr.msra.gmra.mrb[0].mxu1 %v1756_v31 }
  0x6b   : > { %922 = vmatpush1.bf16.msra.mxu0 %v1300_v34  ;;  %975 = vmatpush1.bf16.msra.mxu1 %v1302_v35  ;;  %v1366_v34 = vcombine.low %v401_v26, %v405_v27 }
  0x6c   : > { %923 = vmatprep.subr.bf16.mxu0 %v1309_v36  ;;  %976 = vmatprep.subr.bf16.mxu1 %v1311_v37 }
  0x6d   : > { %1369 = vmatprep.mubr.msk.bf16.mxu0 %vm808_vm0, %v1765_v40  ;;  %1371 = vmatprep.mubr.msk.bf16.mxu1 %vm808_vm0, %v1765_v40 }
  0x6f   : > { %924 = vmatpush1.bf16.msra.mxu0 %v1308_v43  ;;  %977 = vmatpush1.bf16.msra.mxu1 %v1310_v44 }
  0x70   : > { %925 = vmatprep.subr.bf16.mxu0 %v1317_v45  ;;  %978 = vmatprep.subr.bf16.mxu1 %v1319_v46 }
  0x72   : > { %858 = vmatmul.mubr.bf16.gmra.mrb[4].mxu0 %v1782_v51  ;;  %911 = vmatmul.mubr.bf16.gmra.mrb[4].mxu1 %v1782_v51 }
  0x73   : > { %926 = vmatpush1.bf16.msra.mxu0 %v1316_v52  ;;  %979 = vmatpush1.bf16.msra.mxu1 %v1318_v53 }
  0x74   : > { %927 = vmatprep.subr.bf16.mxu0 %v1325_v54  ;;  %980 = vmatprep.subr.bf16.mxu1 %v1327_v55 }
  0x75   : > { %1372 = vmatprep.mubr.msk.bf16.mxu0 %vm808_vm0, %v1689_v8  ;;  %1374 = vmatprep.mubr.msk.bf16.mxu1 %vm808_vm0, %v1689_v8  ;;  %v1342_v8 = vcombine.low %v377_v2, %v381_v3 }
  0x77   : > { %928 = vmatpush1.bf16.msra.mxu0 %v1324_v60  ;;  %981 = vmatpush1.bf16.msra.mxu1 %v1326_v61 }
  0x78   : > { %929 = vmatprep.subr.bf16.mxu0 %v1333_v62  ;;  %982 = vmatprep.subr.bf16.mxu1 %v1335_v63 }
  0x7b   : > { %930 = vmatpush1.bf16.msra.mxu0 %v1332_v4  ;;  %983 = vmatpush1.bf16.msra.mxu1 %v1334_v5 }
  0x7c   : > { %931 = vmatprep.subr.bf16.mxu0 %v1341_v6  ;;  %984 = vmatprep.subr.bf16.mxu1 %v1343_v7 }
  0x7f   : > { %932 = vmatpush1.bf16.msra.mxu0 %v1340_v13  ;;  %985 = vmatpush1.bf16.msra.mxu1 %v1342_v8 }
  0x80   : > { %933 = vmatprep.subr.bf16.mxu0 %v1349_v14  ;;  %986 = vmatprep.subr.bf16.mxu1 %v1351_v15 }
  0x83   : > { %934 = vmatpush1.bf16.msra.mxu0 %v1348_v20  ;;  %987 = vmatpush1.bf16.msra.mxu1 %v1350_v21 }
  0x84   : > { %935 = vmatprep.subr.bf16.mxu0 %v1357_v22  ;;  %988 = vmatprep.subr.bf16.mxu1 %v1359_v23 }
  0x87   : > { %936 = vmatpush1.bf16.msra.mxu0 %v1356_v28  ;;  %989 = vmatpush1.bf16.msra.mxu1 %v1358_v29 }
  0x88   : > { %937 = vmatprep.subr.bf16.mxu0 %v1365_v30  ;;  %990 = vmatprep.subr.bf16.mxu1 %v1367_v32 }
  0x8b   : > { %938 = vmatpush1.bf16.msra.mxu0 %v1364_v33  ;;  %991 = vmatpush1.bf16.msra.mxu1 %v1366_v34 }
  0x8e   : > { %954 = vmatmul.mubr.bf16.vlgmr.msra.gmra.mrb[8].mxu0 %v1756_v31  ;;  %1007 = vmatmul.mubr.bf16.vlgmr.msra.gmra.mrb[8].mxu1 %v1756_v31 }
  0x8f   : > { %1373 = vmatprep.mubr.msk.bf16.mxu0 %vm808_vm0, %v1765_v40  ;;  %1375 = vmatprep.mubr.msk.bf16.mxu1 %vm808_vm0, %v1765_v40 }
  0x96   : > { %964 = vmatmul.mubr.bf16.gmra.mrb[12].mxu0 %v1782_v51  ;;  %1017 = vmatmul.mubr.bf16.gmra.mrb[12].mxu1 %v1782_v51 }
  0xbf   : > { %v1818_v35 = vpop.permute.xlu0 %412  ;;  %v1820_v36 = vpop.permute.xlu1 %422 }
  0xc3   : > { %v1822_v38 = vpop.permute.xlu0 %417 }
  0xc4   : > { %v1837_v1 = vpop.permute.xlu1 %427 }
 0x13d   : > { %v849_v37 = vpop.f32.mrb[0].mxu0  ;;  %v902_v31 = vpop.f32.mrb[0].mxu1 }
 0x13e   : > { %v850_v39 = vadd.f32 %v849_v37, %v1818_v35  ;;  %v851_v41 = vpop.f32.mrb[1].mxu0  ;;  %v903_v42 = vadd.f32 %v902_v31, %v1818_v35  ;;  %v904_v43 = vpop.f32.mrb[1].mxu1 }
 0x13f   : > { %v852_v40 = vadd.f32 %v851_v41, %v1818_v35  ;;  %v853_v44 = vpop.f32.mrb[2].mxu0  ;;  %v905_v46 = vadd.f32 %v904_v43, %v1818_v35  ;;  %v906_v48 = vpop.f32.mrb[2].mxu1 }
 0x140   : > { %v1027_v45 = vmax.f32 %v850_v39, 0.0  ;;  %v854_v47 = vadd.f32 %v853_v44, %v1822_v38  ;;  %v855_v49 = vpop.f32.mrb[3].mxu0  ;;  %v1029_v50 = vmax.f32 %v903_v42, 0.0  ;;  %v907_v52 = vadd.f32 %v906_v48, %v1822_v38  ;;  %v908_v54 = vpop.f32.mrb[3].mxu1 }
 0x141   : > { %v1028_v51 = vmax.f32 %v852_v40, 0.0  ;;  %v856_v53 = vadd.f32 %v855_v49, %v1822_v38  ;;  %v1030_v55 = vmax.f32 %v905_v46, 0.0  ;;  %v909_v57 = vadd.f32 %v908_v54, %v1822_v38 }
 0x142   : > { %v1035_v56 = vmax.f32 %v854_v47, 0.0  ;;  %v1037_v59 = vmax.f32 %v907_v52, 0.0 }
 0x143   : > { %v1398_v58 = vpack.c.bf16 %v1028_v51, %v1027_v45  ;;  %v1036_v60 = vmax.f32 %v856_v53, 0.0  ;;  %v1399_v61 = vpack.c.bf16 %v1030_v55, %v1029_v50  ;;  %v1038_v62 = vmax.f32 %v909_v57, 0.0 }
 0x145   : > { %1155 = vst [vmem:[%s1834_s12] sm:$0xff] %v1398_v58  ;;  %v1402_v63 = vpack.c.bf16 %v1036_v60, %v1035_v56  ;;  %v859_v0 = vpop.f32.mrb[4].mxu0  ;;  %1156 = vst [vmem:[%s1834_s12 + $0x8] sm:$0xff] %v1399_v61  ;;  %v1403_v2 = vpack.c.bf16 %v1038_v62, %v1037_v59  ;;  %v912_v4 = vpop.f32.mrb[4].mxu1 }
 0x146   : > { %v860_v3 = vadd.f32 %v859_v0, %v1820_v36  ;;  %v861_v5 = vpop.f32.mrb[5].mxu0  ;;  %v913_v6 = vadd.f32 %v912_v4, %v1820_v36  ;;  %v914_v9 = vpop.f32.mrb[5].mxu1 }
 0x147   : > { %1159 = vst [vmem:[%s1834_s12 + $0x20] sm:$0xff] %v1402_v63  ;;  %v862_v7 = vadd.f32 %v861_v5, %v1820_v36  ;;  %v863_v10 = vpop.f32.mrb[6].mxu0  ;;  %1160 = vst [vmem:[%s1834_s12 + $0x28] sm:$0xff] %v1403_v2  ;;  %v915_v12 = vadd.f32 %v914_v9, %v1820_v36  ;;  %v916_v13 = vpop.f32.mrb[6].mxu1 }
 0x148   : > { %v1043_v11 = vmax.f32 %v860_v3, 0.0  ;;  %v864_v8 = vadd.f32 %v863_v10, %v1837_v1  ;;  %v865_v14 = vpop.f32.mrb[7].mxu0  ;;  %v1045_v15 = vmax.f32 %v913_v6, 0.0  ;;  %v917_v18 = vadd.f32 %v916_v13, %v1837_v1  ;;  %v918_v19 = vpop.f32.mrb[7].mxu1 }
 0x149   : > { %v1044_v16 = vmax.f32 %v862_v7, 0.0  ;;  %v866_v17 = vadd.f32 %v865_v14, %v1837_v1  ;;  %v1046_v20 = vmax.f32 %v915_v12, 0.0  ;;  %v919_v22 = vadd.f32 %v918_v19, %v1837_v1 }
 0x14a   : > { %v1051_v21 = vmax.f32 %v864_v8, 0.0  ;;  %v1053_v25 = vmax.f32 %v917_v18, 0.0 }
 0x14b   : > { %v1406_v23 = vpack.c.bf16 %v1044_v16, %v1043_v11  ;;  %v1052_v24 = vmax.f32 %v866_v17, 0.0  ;;  %v1407_v26 = vpack.c.bf16 %v1046_v20, %v1045_v15  ;;  %v1054_v27 = vmax.f32 %v919_v22, 0.0 }
 0x14d   : > { %1163 = vst [vmem:[%s1834_s12 + $0x40] sm:$0xff] %v1406_v23  ;;  %v1410_v28 = vpack.c.bf16 %v1052_v24, %v1051_v21  ;;  %1164 = vst [vmem:[%s1834_s12 + $0x48] sm:$0xff] %v1407_v26  ;;  %v1411_v29 = vpack.c.bf16 %v1054_v27, %v1053_v25  ;;  %v1195_v23 = vld [vmem:[%s1834_s12 + $0x8] sm:$0xff] (%p1525_p5) }
 0x14e   : > { %v1201_v26 = vld [vmem:[%s1834_s12 + $0x20] sm:$0xff] (%p1525_p5)  ;;  %v1203_v27 = vld [vmem:[%s1834_s12 + $0x28] sm:$0xff] (%p1525_p5)  ;;  %1196 = vst [vmem:[%s1180_s20 + $0x8] sm:$0xff] (%p1525_p5), %v1195_v23 }
 0x14f   : > { %1167 = vst [vmem:[%s1834_s12 + $0x60] sm:$0xff] %v1410_v28  ;;  %1168 = vst [vmem:[%s1834_s12 + $0x68] sm:$0xff] %v1411_v29 }
 0x150   : > { %1202 = vst [vmem:[%s1180_s20 + $0x40] sm:$0xff] (%p1525_p5), %v1201_v26  ;;  %1204 = vst [vmem:[%s1180_s20 + $0x48] sm:$0xff] (%p1525_p5), %v1203_v27 }
 0x161   : > { %v955_v30 = vpop.f32.mrb[8].mxu0  ;;  %v1008_v33 = vpop.f32.mrb[8].mxu1 }
 0x162   : > { %v956_v32 = vadd.f32 %v955_v30, %v1818_v35  ;;  %v957_v34 = vpop.f32.mrb[9].mxu0  ;;  %v1009_v37 = vadd.f32 %v1008_v33, %v1818_v35  ;;  %v1010_v31 = vpop.f32.mrb[9].mxu1  ;;  %v1209_v30 = vld [vmem:[%s1834_s12 + $0x40] sm:$0xff] (%p1525_p5) }
 0x163   : > { %v958_v39 = vadd.f32 %v957_v34, %v1818_v35  ;;  %v959_v41 = vpop.f32.mrb[10].mxu0  ;;  %v1011_v40 = vadd.f32 %v1010_v31, %v1818_v35  ;;  %v1012_v44 = vpop.f32.mrb[10].mxu1  ;;  %1210 = vst [vmem:[%s1180_s20 + $0x80] sm:$0xff] (%p1525_p5), %v1209_v30 }
 0x164   : > { %v1031_v42 = vmax.f32 %v956_v32, 0.0  ;;  %v960_v43 = vadd.f32 %v959_v41, %v1822_v38  ;;  %v961_v45 = vpop.f32.mrb[11].mxu0  ;;  %v1033_v46 = vmax.f32 %v1009_v37, 0.0  ;;  %v1013_v48 = vadd.f32 %v1012_v44, %v1822_v38  ;;  %v1014_v50 = vpop.f32.mrb[11].mxu1  ;;  %v1211_v32 = vld [vmem:[%s1834_s12 + $0x48] sm:$0xff] (%p1525_p5)  ;;  %v1217_v37 = vld [vmem:[%s1834_s12 + $0x60] sm:$0xff] (%p1525_p5) }
 0x165   : > { %v1032_v47 = vmax.f32 %v958_v39, 0.0  ;;  %v962_v49 = vadd.f32 %v961_v45, %v1822_v38  ;;  %v1034_v51 = vmax.f32 %v1011_v40, 0.0  ;;  %v1015_v53 = vadd.f32 %v1014_v50, %v1822_v38  ;;  %1212 = vst [vmem:[%s1180_s20 + $0x88] sm:$0xff] (%p1525_p5), %v1211_v32  ;;  %v1219_v39 = vld [vmem:[%s1834_s12 + $0x68] sm:$0xff] (%p1525_p5)  ;;  %1218 = vst [vmem:[%s1180_s20 + $0xc0] sm:$0xff] (%p1525_p5), %v1217_v37 }
 0x166   : > { %v1039_v52 = vmax.f32 %v960_v43, 0.0  ;;  %v1041_v35 = vmax.f32 %v1013_v48, 0.0  ;;  %1220 = vst [vmem:[%s1180_s20 + $0xc8] sm:$0xff] (%p1525_p5), %v1219_v39 }
 0x167   : > { %v1400_v54 = vpack.c.bf16 %v1032_v47, %v1031_v42  ;;  %v1040_v55 = vmax.f32 %v962_v49, 0.0  ;;  %v1401_v56 = vpack.c.bf16 %v1034_v51, %v1033_v46  ;;  %v1042_v57 = vmax.f32 %v1015_v53, 0.0 }
 0x169   : > { %1157 = vst [vmem:[%s1834_s12 + $0x10] sm:$0xff] %v1400_v54  ;;  %v1404_v58 = vpack.c.bf16 %v1040_v55, %v1039_v52  ;;  %v965_v59 = vpop.f32.mrb[12].mxu0  ;;  %1158 = vst [vmem:[%s1834_s12 + $0x18] sm:$0xff] %v1401_v56  ;;  %v1405_v60 = vpack.c.bf16 %v1042_v57, %v1041_v35  ;;  %v1018_v62 = vpop.f32.mrb[12].mxu1 }
 0x16a   : > { %v966_v61 = vadd.f32 %v965_v59, %v1820_v36  ;;  %v967_v63 = vpop.f32.mrb[13].mxu0  ;;  %v1019_v0 = vadd.f32 %v1018_v62, %v1820_v36  ;;  %v1020_v2 = vpop.f32.mrb[13].mxu1 }
 0x16b   : > { %1161 = vst [vmem:[%s1834_s12 + $0x30] sm:$0xff] %v1404_v58  ;;  %v968_v38 = vadd.f32 %v967_v63, %v1820_v36  ;;  %v969_v3 = vpop.f32.mrb[14].mxu0  ;;  %1162 = vst [vmem:[%s1834_s12 + $0x38] sm:$0xff] %v1405_v60  ;;  %v1021_v5 = vadd.f32 %v1020_v2, %v1820_v36  ;;  %v1022_v7 = vpop.f32.mrb[14].mxu1 }
 0x16c   : > { %v1047_v4 = vmax.f32 %v966_v61, 0.0  ;;  %v970_v6 = vadd.f32 %v969_v3, %v1837_v1  ;;  %v971_v9 = vpop.f32.mrb[15].mxu0  ;;  %v1049_v10 = vmax.f32 %v1019_v0, 0.0  ;;  %v1023_v12 = vadd.f32 %v1022_v7, %v1837_v1  ;;  %v1024_v8 = vpop.f32.mrb[15].mxu1 }
 0x16d   : > { %v1048_v11 = vmax.f32 %v968_v38, 0.0  ;;  %v972_v13 = vadd.f32 %v971_v9, %v1837_v1  ;;  %v1050_v14 = vmax.f32 %v1021_v5, 0.0  ;;  %v1025_v16 = vadd.f32 %v1024_v8, %v1837_v1  ;;  %1177 = sbr.rel (!%p1525_p5) target bundleno = 380 (0x17c), region = 59  ;;  %v1193_v1 = vld [vmem:[%s1834_s12] sm:$0xff] (%p1525_p5) }
 0x16e   : > { %v1055_v15 = vmax.f32 %v970_v6, 0.0  ;;  %v1057_v17 = vmax.f32 %v1023_v12, 0.0  ;;  %1194 = vst [vmem:[%s1180_s20] sm:$0xff] (%p1525_p5), %v1193_v1 }
 0x16f   : > { %v1408_v36 = vpack.c.bf16 %v1048_v11, %v1047_v4  ;;  %v1056_v18 = vmax.f32 %v972_v13, 0.0  ;;  %v1409_v19 = vpack.c.bf16 %v1050_v14, %v1049_v10  ;;  %v1058_v20 = vmax.f32 %v1025_v16, 0.0 }
 0x170   : > { %v1197_v24 = vld [vmem:[%s1834_s12 + $0x10] sm:$0xff] (%p1525_p5)  ;;  %v1199_v25 = vld [vmem:[%s1834_s12 + $0x18] sm:$0xff] (%p1525_p5) }
 0x171   : > { %1165 = vst [vmem:[%s1834_s12 + $0x50] sm:$0xff] %v1408_v36  ;;  %v1412_v21 = vpack.c.bf16 %v1056_v18, %v1055_v15  ;;  %1166 = vst [vmem:[%s1834_s12 + $0x58] sm:$0xff] %v1409_v19  ;;  %v1413_v22 = vpack.c.bf16 %v1058_v20, %v1057_v17 }
 0x172   : > { %1198 = vst [vmem:[%s1180_s20 + $0x10] sm:$0xff] (%p1525_p5), %v1197_v24  ;;  %1200 = vst [vmem:[%s1180_s20 + $0x18] sm:$0xff] (%p1525_p5), %v1199_v25  ;;  %v1205_v28 = vld [vmem:[%s1834_s12 + $0x30] sm:$0xff] (%p1525_p5)  ;;  %v1207_v29 = vld [vmem:[%s1834_s12 + $0x38] sm:$0xff] (%p1525_p5) }
 0x173   : > { %1169 = vst [vmem:[%s1834_s12 + $0x70] sm:$0xff] %v1412_v21  ;;  %1170 = vst [vmem:[%s1834_s12 + $0x78] sm:$0xff] %v1413_v22 }
 0x174   : > { %1206 = vst [vmem:[%s1180_s20 + $0x50] sm:$0xff] %v1205_v28  ;;  %1208 = vst [vmem:[%s1180_s20 + $0x58] sm:$0xff] %v1207_v29 }
 0x178   : > { %v1213_v33 = vld [vmem:[%s1834_s12 + $0x50] sm:$0xff]  ;;  %v1215_v34 = vld [vmem:[%s1834_s12 + $0x58] sm:$0xff] }
 0x179   : > { %1214 = vst [vmem:[%s1180_s20 + $0x90] sm:$0xff] %v1213_v33  ;;  %1216 = vst [vmem:[%s1180_s20 + $0x98] sm:$0xff] %v1215_v34 }
 0x17a   : > { %v1221_v31 = vld [vmem:[%s1834_s12 + $0x70] sm:$0xff]  ;;  %v1223_v41 = vld [vmem:[%s1834_s12 + $0x78] sm:$0xff] }
 0x17b   : > { %1222 = vst [vmem:[%s1180_s20 + $0xd0] sm:$0xff] %v1221_v31  ;;  %1224 = vst [vmem:[%s1180_s20 + $0xd8] sm:$0xff] %v1223_v41 }
 0x17c PF: > { %p10_p10 = scmp.ge.s32.totalorder %s1512_s16, 4   ;;  %s1916_s12 = smov %s1468_s13 }
 0x17d   : > { %s1917_s13 = smov %s1523_s19  ;;  %s1918_s14 = smov %s1512_s16 }
 0x17e   :  { %12 = sbr.rel (!%p10_p10) target bundleno = 2 (0x2), region = 113 }

// kernel: vae_encoder_forward.8
= control target key start
LH: loop header
LB: loop body
LE: loop exit
PB: predicated region body
PF: predicated region fallthrough
CT: control target
= control target key end

     0   :  { %v1339_v1 = vmov 0   ;;  %vm571_vm0 = vcmask 261120   ;;  %s1702_s1 = inlined_call_operand.vmem [shape: bf16[288,512], index: 1, kind: input, shape index: {}]   ;;  %s1703_s0 = inlined_call_operand.vmem [shape: bf16[64,288], index: 0, kind: input, shape index: {}]   ;;  %s1704_s2 = inlined_call_operand.vmem [shape: f32[64,1], index: 2, kind: input, shape index: {}]   ;;  %s1705_s3 = inlined_call_operand.vmem [shape: bf16[64,512], index: 3, kind: output, shape index: {}]  }
   0x1   :  { %v1215_v0 = vld [vmem:[%s1702_s1 + $0x4] ss:$16 sps:$4 sm:$0xff]   ;;  %1213 = vset.pattern.permute.xlu0 %v1339_v1  ;;  %1214 = vset.pattern.permute.xlu1 %v1339_v1  ;;  %v1217_v2 = vld [vmem:[%s1702_s1 + $0xc] ss:$16 sps:$4 sm:$0xff]   ;;  %v1219_v3 = vld [vmem:[%s1702_s1] ss:$16 sps:$4 sm:$0xff]  }
   0x2   :  { %584 = vmatprep.subr.bf16.mxu0 %v1215_v0  ;;  %v1220_v4 = vld [vmem:[%s1702_s1 + $0x8] ss:$16 sps:$4 sm:$0xff]   ;;  %730 = vmatprep.subr.bf16.mxu1 %v1217_v2  ;;  %v1221_v5 = vld [vmem:[%s1702_s1 + $0x24] ss:$16 sps:$4 sm:$0xff]   ;;  %v1223_v6 = vld [vmem:[%s1702_s1 + $0x2c] ss:$16 sps:$4 sm:$0xff]  }
   0x3   :  { %585 = vmatpush1.bf16.msra.mxu0 %v1219_v3  ;;  %731 = vmatpush1.bf16.msra.mxu1 %v1220_v4  ;;  %v1225_v7 = vld [vmem:[%s1702_s1 + $0x20] ss:$16 sps:$4 sm:$0xff]   ;;  %v1226_v8 = vld [vmem:[%s1702_s1 + $0x28] ss:$16 sps:$4 sm:$0xff]   ;;  %v1227_v9 = vld [vmem:[%s1702_s1 + $0x44] ss:$16 sps:$4 sm:$0xff]  }
   0x4   :  { %586 = vmatprep.subr.bf16.mxu0 %v1221_v5  ;;  %732 = vmatprep.subr.bf16.mxu1 %v1223_v6  ;;  %v1229_v10 = vld [vmem:[%s1702_s1 + $0x4c] ss:$16 sps:$4 sm:$0xff]   ;;  %v1231_v11 = vld [vmem:[%s1702_s1 + $0x40] ss:$16 sps:$4 sm:$0xff]   ;;  %v1232_v12 = vld [vmem:[%s1702_s1 + $0x48] ss:$16 sps:$4 sm:$0xff]  }
   0x5   :  { %v1233_v13 = vld [vmem:[%s1702_s1 + $0x64] ss:$16 sps:$4 sm:$0xff]   ;;  %v1235_v14 = vld [vmem:[%s1702_s1 + $0x6c] ss:$16 sps:$4 sm:$0xff]   ;;  %v1237_v15 = vld [vmem:[%s1702_s1 + $0x60] ss:$16 sps:$4 sm:$0xff]  }
   0x6   :  { %v1238_v16 = vld [vmem:[%s1702_s1 + $0x68] ss:$16 sps:$4 sm:$0xff]   ;;  %v1239_v17 = vld [vmem:[%s1702_s1 + $0x84] ss:$16 sps:$4 sm:$0xff]   ;;  %v1241_v18 = vld [vmem:[%s1702_s1 + $0x8c] ss:$16 sps:$4 sm:$0xff]  }
   0x7   :  { %587 = vmatpush1.bf16.msra.mxu0 %v1225_v7  ;;  %733 = vmatpush1.bf16.msra.mxu1 %v1226_v8  ;;  %v1243_v19 = vld [vmem:[%s1702_s1 + $0x80] ss:$16 sps:$4 sm:$0xff]   ;;  %v1244_v20 = vld [vmem:[%s1702_s1 + $0x88] ss:$16 sps:$4 sm:$0xff]   ;;  %v1245_v21 = vld [vmem:[%s1702_s1 + $0xa4] ss:$16 sps:$4 sm:$0xff]  }
   0x8   :  { %588 = vmatprep.subr.bf16.mxu0 %v1227_v9  ;;  %734 = vmatprep.subr.bf16.mxu1 %v1229_v10  ;;  %v1247_v22 = vld [vmem:[%s1702_s1 + $0xac] ss:$16 sps:$4 sm:$0xff]   ;;  %v1249_v23 = vld [vmem:[%s1702_s1 + $0xa0] ss:$16 sps:$4 sm:$0xff]   ;;  %v1250_v24 = vld [vmem:[%s1702_s1 + $0xa8] ss:$16 sps:$4 sm:$0xff]  }
   0x9   :  { %v1251_v25 = vld [vmem:[%s1702_s1 + $0xc4] ss:$16 sps:$4 sm:$0xff]   ;;  %v1253_v26 = vld [vmem:[%s1702_s1 + $0xcc] ss:$16 sps:$4 sm:$0xff]   ;;  %v1255_v27 = vld [vmem:[%s1702_s1 + $0xc0] ss:$16 sps:$4 sm:$0xff]  }
   0xa   :  { %v1256_v28 = vld [vmem:[%s1702_s1 + $0xc8] ss:$16 sps:$4 sm:$0xff]   ;;  %v1257_v29 = vld [vmem:[%s1702_s1 + $0xe4] ss:$16 sps:$4 sm:$0xff]   ;;  %v1259_v30 = vld [vmem:[%s1702_s1 + $0xec] ss:$16 sps:$4 sm:$0xff]  }
   0xb   :  { %589 = vmatpush1.bf16.msra.mxu0 %v1231_v11  ;;  %735 = vmatpush1.bf16.msra.mxu1 %v1232_v12  ;;  %v1261_v31 = vld [vmem:[%s1702_s1 + $0xe0] ss:$16 sps:$4 sm:$0xff]   ;;  %v1262_v32 = vld [vmem:[%s1702_s1 + $0xe8] ss:$16 sps:$4 sm:$0xff]   ;;  %v1263_v33 = vld [vmem:[%s1702_s1 + $0x104] ss:$16 sps:$4 sm:$0xff]  }
   0xc   :  { %590 = vmatprep.subr.bf16.mxu0 %v1233_v13  ;;  %736 = vmatprep.subr.bf16.mxu1 %v1235_v14  ;;  %v1265_v34 = vld [vmem:[%s1702_s1 + $0x10c] ss:$16 sps:$4 sm:$0xff]   ;;  %v1267_v35 = vld [vmem:[%s1702_s1 + $0x100] ss:$16 sps:$4 sm:$0xff]   ;;  %v1268_v36 = vld [vmem:[%s1702_s1 + $0x108] ss:$16 sps:$4 sm:$0xff]  }
   0xd   :  { %v1269_v37 = vld [vmem:[%s1702_s1 + $0x124] ss:$16 sps:$4 sm:$0xff]   ;;  %v1271_v38 = vld [vmem:[%s1702_s1 + $0x12c] ss:$16 sps:$4 sm:$0xff]   ;;  %v1273_v39 = vld [vmem:[%s1702_s1 + $0x120] ss:$16 sps:$4 sm:$0xff]  }
   0xe   :  { %v1274_v40 = vld [vmem:[%s1702_s1 + $0x128] ss:$16 sps:$4 sm:$0xff]   ;;  %v1275_v41 = vld [vmem:[%s1702_s1 + $0x144] ss:$16 sps:$4 sm:$0xff]   ;;  %v1277_v42 = vld [vmem:[%s1702_s1 + $0x14c] ss:$16 sps:$4 sm:$0xff]  }
   0xf   :  { %591 = vmatpush1.bf16.msra.mxu0 %v1237_v15  ;;  %737 = vmatpush1.bf16.msra.mxu1 %v1238_v16  ;;  %v1279_v43 = vld [vmem:[%s1702_s1 + $0x140] ss:$16 sps:$4 sm:$0xff]   ;;  %v1280_v44 = vld [vmem:[%s1702_s1 + $0x148] ss:$16 sps:$4 sm:$0xff]   ;;  %v1281_v45 = vld [vmem:[%s1702_s1 + $0x164] ss:$16 sps:$4 sm:$0xff]  }
  0x10   :  { %592 = vmatprep.subr.bf16.mxu0 %v1239_v17  ;;  %738 = vmatprep.subr.bf16.mxu1 %v1241_v18  ;;  %v1283_v46 = vld [vmem:[%s1702_s1 + $0x16c] ss:$16 sps:$4 sm:$0xff]   ;;  %v1285_v47 = vld [vmem:[%s1702_s1 + $0x160] ss:$16 sps:$4 sm:$0xff]   ;;  %v1286_v48 = vld [vmem:[%s1702_s1 + $0x168] ss:$16 sps:$4 sm:$0xff]  }
  0x11   :  { %v1313_v49 = vld [vmem:[%s1703_s0 + $0x4] ss:$12 sps:$4 sm:$0xff]   ;;  %v1289_v51 = vld [vmem:[%s1702_s1 + $0x18c] ss:$16 sps:$4 sm:$0xff]   ;;  %v1292_v53 = vld [vmem:[%s1702_s1 + $0x188] ss:$16 sps:$4 sm:$0xff]  }
  0x12   :  { %v1287_v50 = vld [vmem:[%s1702_s1 + $0x184] ss:$16 sps:$4 sm:$0xff]   ;;  %616 = vmatprep.mubr.bf16.mxu0 %v1313_v49  ;;  %762 = vmatprep.mubr.bf16.mxu1 %v1313_v49  ;;  %v1291_v52 = vld [vmem:[%s1702_s1 + $0x180] ss:$16 sps:$4 sm:$0xff]   ;;  %v1295_v55 = vld [vmem:[%s1702_s1 + $0x1ac] ss:$16 sps:$4 sm:$0xff]  }
  0x13   :  { %593 = vmatpush1.bf16.msra.mxu0 %v1243_v19  ;;  %739 = vmatpush1.bf16.msra.mxu1 %v1244_v20  ;;  %v1293_v54 = vld [vmem:[%s1702_s1 + $0x1a4] ss:$16 sps:$4 sm:$0xff]   ;;  %v1297_v56 = vld [vmem:[%s1702_s1 + $0x1a0] ss:$16 sps:$4 sm:$0xff]   ;;  %v1298_v57 = vld [vmem:[%s1702_s1 + $0x1a8] ss:$16 sps:$4 sm:$0xff]  }
  0x14   :  { %594 = vmatprep.subr.bf16.mxu0 %v1245_v21  ;;  %740 = vmatprep.subr.bf16.mxu1 %v1247_v22  ;;  %v1299_v58 = vld [vmem:[%s1702_s1 + $0x1c4] ss:$16 sps:$4 sm:$0xff]   ;;  %v1301_v59 = vld [vmem:[%s1702_s1 + $0x1cc] ss:$16 sps:$4 sm:$0xff]   ;;  %v1303_v60 = vld [vmem:[%s1702_s1 + $0x1c0] ss:$16 sps:$4 sm:$0xff]  }
  0x15   :  { %v1304_v61 = vld [vmem:[%s1702_s1 + $0x1c8] ss:$16 sps:$4 sm:$0xff]   ;;  %v1305_v62 = vld [vmem:[%s1702_s1 + $0x1e4] ss:$16 sps:$4 sm:$0xff]   ;;  %v1307_v63 = vld [vmem:[%s1702_s1 + $0x1ec] ss:$16 sps:$4 sm:$0xff]  }
  0x16   :  { %v103_v0 = vld [vmem:[%s1704_s2] sm:$0xff]  ;;  %v105_v2 = vld [vmem:[%s1704_s2 + $0x10] sm:$0xff]  ;;  %v104_v3 = vld [vmem:[%s1704_s2 + $0x8] sm:$0xff] }
  0x17   :  { %595 = vmatpush1.bf16.msra.mxu0 %v1249_v23  ;;  %741 = vmatpush1.bf16.msra.mxu1 %v1250_v24  ;;  %v1309_v4 = vld [vmem:[%s1702_s1 + $0x1e0] ss:$16 sps:$4 sm:$0xff]   ;;  %v1310_v5 = vld [vmem:[%s1702_s1 + $0x1e8] ss:$16 sps:$4 sm:$0xff]   ;;  %v1316_v7 = vld [vmem:[%s1702_s1 + $0x204] ss:$16 sps:$4 sm:$0xff]  }
  0x18   :  { %596 = vmatprep.subr.bf16.mxu0 %v1251_v25  ;;  %742 = vmatprep.subr.bf16.mxu1 %v1253_v26  ;;  %v106_v6 = vld [vmem:[%s1704_s2 + $0x18] sm:$0xff]  ;;  %v1311_v9 = vld [vmem:[%s1703_s0] ss:$12 sps:$4 sm:$0xff]   ;;  %v1328_v14 = vld [vmem:[%s1702_s1 + $0x224] ss:$16 sps:$4 sm:$0xff]  }
  0x19   :  { %113 = vperm.xlu0 %1213, %v103_v0   ;;  %123 = vperm.xlu1 %1214, %v105_v2   ;;  %v1319_v8 = vld [vmem:[%s1702_s1 + $0x20c] ss:$16 sps:$4 sm:$0xff]   ;;  %v107_v10 = vld [vmem:[%s1704_s2 + $0x20] sm:$0xff]  ;;  %v1317_v12 = vld [vmem:[%s1702_s1 + $0x208] ss:$16 sps:$4 sm:$0xff]  }
  0x1a   :  { %v1314_v11 = vld [vmem:[%s1702_s1 + $0x200] ss:$16 sps:$4 sm:$0xff]   ;;  %v1320_v13 = vld [vmem:[%s1703_s0 + $0x1c] ss:$12 sps:$4 sm:$0xff]   ;;  %v1322_v20 = vld [vmem:[%s1703_s0 + $0x18] ss:$12 sps:$4 sm:$0xff]  }
  0x1b   :  { %597 = vmatpush1.bf16.msra.mxu0 %v1255_v27  ;;  %743 = vmatpush1.bf16.msra.mxu1 %v1256_v28  ;;  %v1331_v15 = vld [vmem:[%s1702_s1 + $0x22c] ss:$16 sps:$4 sm:$0xff]   ;;  %v1326_v16 = vld [vmem:[%s1702_s1 + $0x220] ss:$16 sps:$4 sm:$0xff]   ;;  %v1329_v17 = vld [vmem:[%s1702_s1 + $0x228] ss:$16 sps:$4 sm:$0xff]  }
  0x1c   :  { %598 = vmatprep.subr.bf16.mxu0 %v1257_v29  ;;  %744 = vmatprep.subr.bf16.mxu1 %v1259_v30  ;;  %v108_v18 = vld [vmem:[%s1704_s2 + $0x28] sm:$0xff]  ;;  %v109_v19 = vld [vmem:[%s1704_s2 + $0x30] sm:$0xff]  ;;  %v110_v22 = vld [vmem:[%s1704_s2 + $0x38] sm:$0xff] }
  0x1d   :  { %118 = vperm.xlu0 %1213, %v104_v3   ;;  %128 = vperm.xlu1 %1214, %v106_v6   ;;  %v1323_v21 = vld [vmem:[%s1703_s0 + $0x34] ss:$12 sps:$4 sm:$0xff]   ;;  %v1325_v23 = vld [vmem:[%s1703_s0 + $0x30] ss:$12 sps:$4 sm:$0xff]   ;;  %v1332_v24 = vld [vmem:[%s1703_s0 + $0x4c] ss:$12 sps:$4 sm:$0xff]  }
  0x1e   :  { %v1334_v25 = vld [vmem:[%s1703_s0 + $0x48] ss:$12 sps:$4 sm:$0xff]   ;;  %v1336_v27 = vld [vmem:[%s1703_s0 + $0x20] ss:$12 sps:$4 sm:$0xff]   ;;  %v1337_v28 = vld [vmem:[%s1703_s0 + $0x38] ss:$12 sps:$4 sm:$0xff]  }
  0x1f   :  { %599 = vmatpush1.bf16.msra.mxu0 %v1261_v31  ;;  %745 = vmatpush1.bf16.msra.mxu1 %v1262_v32  ;;  %v1335_v26 = vld [vmem:[%s1703_s0 + $0x8] ss:$12 sps:$4 sm:$0xff]   ;;  %v1338_v29 = vld [vmem:[%s1703_s0 + $0x50] ss:$12 sps:$4 sm:$0xff]  }
  0x20   :  { %600 = vmatprep.subr.bf16.mxu0 %v1263_v33  ;;  %746 = vmatprep.subr.bf16.mxu1 %v1265_v34 }
  0x21   :  { %133 = vperm.xlu0 %1213, %v107_v10   ;;  %138 = vperm.xlu1 %1214, %v108_v18  }
  0x23   :  { %601 = vmatpush1.bf16.msra.mxu0 %v1267_v35  ;;  %747 = vmatpush1.bf16.msra.mxu1 %v1268_v36 }
  0x24   :  { %602 = vmatprep.subr.bf16.mxu0 %v1269_v37  ;;  %748 = vmatprep.subr.bf16.mxu1 %v1271_v38 }
  0x25   :  { %143 = vperm.xlu0 %1213, %v109_v19   ;;  %148 = vperm.xlu1 %1214, %v110_v22  }
  0x27   :  { %603 = vmatpush1.bf16.msra.mxu0 %v1273_v39  ;;  %749 = vmatpush1.bf16.msra.mxu1 %v1274_v40 }
  0x28   :  { %604 = vmatprep.subr.bf16.mxu0 %v1275_v41  ;;  %750 = vmatprep.subr.bf16.mxu1 %v1277_v42 }
  0x2b   :  { %605 = vmatpush1.bf16.msra.mxu0 %v1279_v43  ;;  %751 = vmatpush1.bf16.msra.mxu1 %v1280_v44 }
  0x2c   :  { %606 = vmatprep.subr.bf16.mxu0 %v1281_v45  ;;  %752 = vmatprep.subr.bf16.mxu1 %v1283_v46 }
  0x2f   :  { %607 = vmatpush1.bf16.msra.mxu0 %v1285_v47  ;;  %753 = vmatpush1.bf16.msra.mxu1 %v1286_v48 }
  0x30   :  { %608 = vmatprep.subr.bf16.mxu0 %v1287_v50  ;;  %754 = vmatprep.subr.bf16.mxu1 %v1289_v51 }
  0x33   :  { %609 = vmatpush1.bf16.msra.mxu0 %v1291_v52  ;;  %755 = vmatpush1.bf16.msra.mxu1 %v1292_v53 }
  0x34   :  { %610 = vmatprep.subr.bf16.mxu0 %v1293_v54  ;;  %756 = vmatprep.subr.bf16.mxu1 %v1295_v55 }
  0x37   :  { %611 = vmatpush1.bf16.msra.mxu0 %v1297_v56  ;;  %757 = vmatpush1.bf16.msra.mxu1 %v1298_v57 }
  0x38   :  { %612 = vmatprep.subr.bf16.mxu0 %v1299_v58  ;;  %758 = vmatprep.subr.bf16.mxu1 %v1301_v59 }
  0x3b   :  { %613 = vmatpush1.bf16.msra.mxu0 %v1303_v60  ;;  %759 = vmatpush1.bf16.msra.mxu1 %v1304_v61 }
  0x3c   :  { %614 = vmatprep.subr.bf16.mxu0 %v1305_v62  ;;  %760 = vmatprep.subr.bf16.mxu1 %v1307_v63 }
  0x3f   :  { %615 = vmatpush1.bf16.msra.mxu0 %v1309_v4  ;;  %761 = vmatpush1.bf16.msra.mxu1 %v1310_v5 }
  0x40   :  { %657 = vmatprep.subr.bf16.mxu0 %v1316_v7  ;;  %803 = vmatprep.subr.bf16.mxu1 %v1319_v8 }
  0x42   :  { %617 = vmatmul.mubr.bf16.vlgmr.msra.gmra.mrb[0].mxu0 %v1311_v9  ;;  %763 = vmatmul.mubr.bf16.vlgmr.msra.gmra.mrb[0].mxu1 %v1311_v9 }
  0x43   :  { %658 = vmatpush1.bf16.msra.mxu0 %v1314_v11  ;;  %804 = vmatpush1.bf16.msra.mxu1 %v1317_v12 }
  0x44   :  { %626 = vmatprep.mubr.bf16.mxu0 %v1320_v13  ;;  %772 = vmatprep.mubr.bf16.mxu1 %v1320_v13 }
  0x45   :  { %659 = vmatprep.subr.bf16.mxu0 %v1328_v14  ;;  %805 = vmatprep.subr.bf16.mxu1 %v1331_v15 }
  0x47   :  { %660 = vmatpush1.bf16.msra.mxu0 %v1326_v16  ;;  %806 = vmatpush1.bf16.msra.mxu1 %v1329_v17 }
  0x4a   :  { %627 = vmatmul.mubr.bf16.gmra.mrb[4].mxu0 %v1322_v20  ;;  %773 = vmatmul.mubr.bf16.gmra.mrb[4].mxu1 %v1322_v20 }
  0x4b   :  { %636 = vmatprep.mubr.bf16.mxu0 %v1323_v21  ;;  %782 = vmatprep.mubr.bf16.mxu1 %v1323_v21 }
  0x52   :  { %637 = vmatmul.mubr.bf16.gmra.mrb[8].mxu0 %v1325_v23  ;;  %783 = vmatmul.mubr.bf16.gmra.mrb[8].mxu1 %v1325_v23 }
  0x53   :  { %646 = vmatprep.mubr.bf16.mxu0 %v1332_v24  ;;  %792 = vmatprep.mubr.bf16.mxu1 %v1332_v24 }
  0x5a   :  { %647 = vmatmul.mubr.bf16.gmra.mrb[12].mxu0 %v1334_v25  ;;  %793 = vmatmul.mubr.bf16.gmra.mrb[12].mxu1 %v1334_v25 }
  0x5b   :  { %689 = vmatprep.mubr.bf16.mxu0 %v1339_v1  ;;  %835 = vmatprep.mubr.bf16.mxu1 %v1339_v1 }
  0x62   :  { %1108 = vmatmul.mubr.msk.bf16.vlgmr.msra.gmra.mrb[0].mxu0 %vm571_vm0, %v1335_v26  ;;  %1112 = vmatmul.mubr.msk.bf16.vlgmr.msra.gmra.mrb[0].mxu1 %vm571_vm0, %v1335_v26 }
  0x63   :  { %699 = vmatprep.mubr.bf16.mxu0 %v1339_v1  ;;  %845 = vmatprep.mubr.bf16.mxu1 %v1339_v1 }
  0x6a   :  { %1109 = vmatmul.mubr.msk.bf16.gmra.mrb[4].mxu0 %vm571_vm0, %v1336_v27  ;;  %1113 = vmatmul.mubr.msk.bf16.gmra.mrb[4].mxu1 %vm571_vm0, %v1336_v27 }
  0x6b   :  { %709 = vmatprep.mubr.bf16.mxu0 %v1339_v1  ;;  %855 = vmatprep.mubr.bf16.mxu1 %v1339_v1 }
  0x72   :  { %1110 = vmatmul.mubr.msk.bf16.gmra.mrb[8].mxu0 %vm571_vm0, %v1337_v28  ;;  %1114 = vmatmul.mubr.msk.bf16.gmra.mrb[8].mxu1 %vm571_vm0, %v1337_v28 }
  0x73   :  { %719 = vmatprep.mubr.bf16.mxu0 %v1339_v1  ;;  %865 = vmatprep.mubr.bf16.mxu1 %v1339_v1 }
  0x7a   :  { %1111 = vmatmul.mubr.msk.bf16.gmra.mrb[12].mxu0 %vm571_vm0, %v1338_v29  ;;  %1115 = vmatmul.mubr.msk.bf16.gmra.mrb[12].mxu1 %vm571_vm0, %v1338_v29 }
  0x98   :  { %v114_v30 = vpop.permute.xlu0 %113  ;;  %v124_v32 = vpop.permute.xlu1 %123 }
  0x9c   :  { %v119_v31 = vpop.permute.xlu0 %118  ;;  %v129_v58 = vpop.permute.xlu1 %128 }
  0xa0   :  { %v139_v24 = vpop.permute.xlu1 %138  ;;  %v134_v25 = vpop.permute.xlu0 %133 }
 0x135   :  { %v691_v33 = vpop.f32.mrb[0].mxu0  ;;  %v837_v34 = vpop.f32.mrb[0].mxu1 }
 0x136   :  { %v1148_v35 = vadd.f32 %v691_v33, %v114_v30  ;;  %v1164_v36 = vadd.f32 %v837_v34, %v114_v30  ;;  %v693_v37 = vpop.f32.mrb[1].mxu0  ;;  %v839_v38 = vpop.f32.mrb[1].mxu1 }
 0x137   :  { %v1149_v39 = vadd.f32 %v693_v37, %v114_v30  ;;  %v1165_v40 = vadd.f32 %v839_v38, %v114_v30  ;;  %v695_v1 = vpop.f32.mrb[2].mxu0  ;;  %v841_v41 = vpop.f32.mrb[2].mxu1 }
 0x138   :  { %v876_v42 = vmax.f32 %v1148_v35, 0.0  ;;  %v878_v43 = vmax.f32 %v1164_v36, 0.0  ;;  %v1150_v44 = vadd.f32 %v695_v1, %v119_v31  ;;  %v1166_v45 = vadd.f32 %v841_v41, %v119_v31  ;;  %v697_v46 = vpop.f32.mrb[3].mxu0  ;;  %v843_v47 = vpop.f32.mrb[3].mxu1 }
 0x139   :  { %v877_v48 = vmax.f32 %v1149_v39, 0.0  ;;  %v879_v49 = vmax.f32 %v1165_v40, 0.0  ;;  %v1151_v50 = vadd.f32 %v697_v46, %v119_v31  ;;  %v1167_v51 = vadd.f32 %v843_v47, %v119_v31 }
 0x13a   :  { %v880_v52 = vmax.f32 %v1150_v44, 0.0  ;;  %v882_v53 = vmax.f32 %v1166_v45, 0.0 }
 0x13b   :  { %v1132_v54 = vpack.c.bf16 %v877_v48, %v876_v42  ;;  %v1133_v55 = vpack.c.bf16 %v879_v49, %v878_v43  ;;  %v881_v56 = vmax.f32 %v1151_v50, 0.0  ;;  %v883_v57 = vmax.f32 %v1167_v51, 0.0 }
 0x13d   :  { %1004 = vst [vmem:[%s1705_s3] sm:$0xff] %v1132_v54  ;;  %1005 = vst [vmem:[%s1705_s3 + $0x8] sm:$0xff] %v1133_v55  ;;  %v1134_v59 = vpack.c.bf16 %v881_v56, %v880_v52  ;;  %v1135_v60 = vpack.c.bf16 %v883_v57, %v882_v53  ;;  %v701_v61 = vpop.f32.mrb[4].mxu0  ;;  %v847_v62 = vpop.f32.mrb[4].mxu1 }
 0x13e   :  { %v1152_v63 = vadd.f32 %v701_v61, %v124_v32  ;;  %v1168_v0 = vadd.f32 %v847_v62, %v124_v32  ;;  %v703_v2 = vpop.f32.mrb[5].mxu0  ;;  %v849_v3 = vpop.f32.mrb[5].mxu1 }
 0x13f   :  { %1006 = vst [vmem:[%s1705_s3 + $0x10] sm:$0xff] %v1134_v59  ;;  %1007 = vst [vmem:[%s1705_s3 + $0x18] sm:$0xff] %v1135_v60  ;;  %v1153_v4 = vadd.f32 %v703_v2, %v124_v32  ;;  %v1169_v5 = vadd.f32 %v849_v3, %v124_v32  ;;  %v705_v6 = vpop.f32.mrb[6].mxu0  ;;  %v851_v7 = vpop.f32.mrb[6].mxu1 }
 0x140   :  { %v884_v8 = vmax.f32 %v1152_v63, 0.0  ;;  %v886_v9 = vmax.f32 %v1168_v0, 0.0  ;;  %v1154_v10 = vadd.f32 %v705_v6, %v129_v58  ;;  %v1170_v11 = vadd.f32 %v851_v7, %v129_v58  ;;  %v707_v12 = vpop.f32.mrb[7].mxu0  ;;  %v853_v13 = vpop.f32.mrb[7].mxu1 }
 0x141   :  { %v885_v14 = vmax.f32 %v1153_v4, 0.0  ;;  %v887_v15 = vmax.f32 %v1169_v5, 0.0  ;;  %v1155_v16 = vadd.f32 %v707_v12, %v129_v58  ;;  %v1171_v17 = vadd.f32 %v853_v13, %v129_v58  ;;  %v149_v53 = vpop.permute.xlu1 %148  ;;  %v144_v54 = vpop.permute.xlu0 %143 }
 0x142   :  { %v888_v18 = vmax.f32 %v1154_v10, 0.0  ;;  %v890_v19 = vmax.f32 %v1170_v11, 0.0 }
 0x143   :  { %v1136_v20 = vpack.c.bf16 %v885_v14, %v884_v8  ;;  %v1137_v21 = vpack.c.bf16 %v887_v15, %v886_v9  ;;  %v889_v22 = vmax.f32 %v1155_v16, 0.0  ;;  %v891_v23 = vmax.f32 %v1171_v17, 0.0 }
 0x145   :  { %1008 = vst [vmem:[%s1705_s3 + $0x20] sm:$0xff] %v1136_v20  ;;  %1009 = vst [vmem:[%s1705_s3 + $0x28] sm:$0xff] %v1137_v21  ;;  %v1138_v26 = vpack.c.bf16 %v889_v22, %v888_v18  ;;  %v1139_v27 = vpack.c.bf16 %v891_v23, %v890_v19  ;;  %v711_v28 = vpop.f32.mrb[8].mxu0  ;;  %v857_v29 = vpop.f32.mrb[8].mxu1 }
 0x146   :  { %v1156_v30 = vadd.f32 %v711_v28, %v134_v25  ;;  %v1172_v31 = vadd.f32 %v857_v29, %v134_v25  ;;  %v713_v32 = vpop.f32.mrb[9].mxu0  ;;  %v859_v33 = vpop.f32.mrb[9].mxu1 }
 0x147   :  { %1010 = vst [vmem:[%s1705_s3 + $0x30] sm:$0xff] %v1138_v26  ;;  %1011 = vst [vmem:[%s1705_s3 + $0x38] sm:$0xff] %v1139_v27  ;;  %v1157_v34 = vadd.f32 %v713_v32, %v134_v25  ;;  %v1173_v35 = vadd.f32 %v859_v33, %v134_v25  ;;  %v715_v36 = vpop.f32.mrb[10].mxu0  ;;  %v861_v37 = vpop.f32.mrb[10].mxu1 }
 0x148   :  { %v892_v38 = vmax.f32 %v1156_v30, 0.0  ;;  %v894_v39 = vmax.f32 %v1172_v31, 0.0  ;;  %v1158_v40 = vadd.f32 %v715_v36, %v139_v24  ;;  %v1174_v1 = vadd.f32 %v861_v37, %v139_v24  ;;  %v717_v41 = vpop.f32.mrb[11].mxu0  ;;  %v863_v42 = vpop.f32.mrb[11].mxu1 }
 0x149   :  { %v893_v43 = vmax.f32 %v1157_v34, 0.0  ;;  %v895_v44 = vmax.f32 %v1173_v35, 0.0  ;;  %v1159_v45 = vadd.f32 %v717_v41, %v139_v24  ;;  %v1175_v46 = vadd.f32 %v863_v42, %v139_v24 }
 0x14a   :  { %v896_v47 = vmax.f32 %v1158_v40, 0.0  ;;  %v898_v48 = vmax.f32 %v1174_v1, 0.0 }
 0x14b   :  { %v1140_v49 = vpack.c.bf16 %v893_v43, %v892_v38  ;;  %v1141_v50 = vpack.c.bf16 %v895_v44, %v894_v39  ;;  %v897_v51 = vmax.f32 %v1159_v45, 0.0  ;;  %v899_v52 = vmax.f32 %v1175_v46, 0.0 }
 0x14d   :  { %1012 = vst [vmem:[%s1705_s3 + $0x40] sm:$0xff] %v1140_v49  ;;  %1013 = vst [vmem:[%s1705_s3 + $0x48] sm:$0xff] %v1141_v50  ;;  %v1142_v55 = vpack.c.bf16 %v897_v51, %v896_v47  ;;  %v1143_v56 = vpack.c.bf16 %v899_v52, %v898_v48  ;;  %v721_v57 = vpop.f32.mrb[12].mxu0  ;;  %v867_v58 = vpop.f32.mrb[12].mxu1 }
 0x14e   :  { %v1160_v59 = vadd.f32 %v721_v57, %v144_v54  ;;  %v1176_v60 = vadd.f32 %v867_v58, %v144_v54  ;;  %v723_v61 = vpop.f32.mrb[13].mxu0  ;;  %v869_v62 = vpop.f32.mrb[13].mxu1 }
 0x14f   :  { %1014 = vst [vmem:[%s1705_s3 + $0x50] sm:$0xff] %v1142_v55  ;;  %1015 = vst [vmem:[%s1705_s3 + $0x58] sm:$0xff] %v1143_v56  ;;  %v1161_v63 = vadd.f32 %v723_v61, %v144_v54  ;;  %v1177_v0 = vadd.f32 %v869_v62, %v144_v54  ;;  %v725_v2 = vpop.f32.mrb[14].mxu0  ;;  %v871_v3 = vpop.f32.mrb[14].mxu1 }
 0x150   :  { %v900_v4 = vmax.f32 %v1160_v59, 0.0  ;;  %v902_v5 = vmax.f32 %v1176_v60, 0.0  ;;  %v1162_v6 = vadd.f32 %v725_v2, %v149_v53  ;;  %v1178_v7 = vadd.f32 %v871_v3, %v149_v53  ;;  %v727_v8 = vpop.f32.mrb[15].mxu0  ;;  %v873_v9 = vpop.f32.mrb[15].mxu1 }
 0x151   :  { %v901_v10 = vmax.f32 %v1161_v63, 0.0  ;;  %v903_v11 = vmax.f32 %v1177_v0, 0.0  ;;  %v1163_v12 = vadd.f32 %v727_v8, %v149_v53  ;;  %v1179_v13 = vadd.f32 %v873_v9, %v149_v53 }
 0x152   :  { %v904_v14 = vmax.f32 %v1162_v6, 0.0  ;;  %v906_v15 = vmax.f32 %v1178_v7, 0.0 }
 0x153   :  { %v1144_v16 = vpack.c.bf16 %v901_v10, %v900_v4  ;;  %v1145_v17 = vpack.c.bf16 %v903_v11, %v902_v5  ;;  %v905_v18 = vmax.f32 %v1163_v12, 0.0  ;;  %v907_v19 = vmax.f32 %v1179_v13, 0.0 }
 0x155   :  { %1016 = vst [vmem:[%s1705_s3 + $0x60] sm:$0xff] %v1144_v16  ;;  %1017 = vst [vmem:[%s1705_s3 + $0x68] sm:$0xff] %v1145_v17  ;;  %v1146_v20 = vpack.c.bf16 %v905_v18, %v904_v14  ;;  %v1147_v21 = vpack.c.bf16 %v907_v19, %v906_v15 }
 0x157   :  { %1018 = vst [vmem:[%s1705_s3 + $0x70] sm:$0xff] %v1146_v20  ;;  %1019 = vst [vmem:[%s1705_s3 + $0x78] sm:$0xff] %v1147_v21 }

// kernel: vae_encoder_forward.9
= control target key start
LH: loop header
LB: loop body
LE: loop exit
PB: predicated region body
PF: predicated region fallthrough
CT: control target
= control target key end

     0   :  { %v1493_v1 = vmov 0   ;;  %vm647_vm0 = vcmask 523264   ;;  %s1855_s1 = inlined_call_operand.vmem [shape: bf16[576,128], index: 1, kind: input, shape index: {}]   ;;  %s1856_s0 = inlined_call_operand.vmem [shape: bf16[128,576], index: 0, kind: input, shape index: {}]   ;;  %s1857_s2 = inlined_call_operand.vmem [shape: f32[128,1], index: 2, kind: input, shape index: {}]   ;;  %s1858_s3 = inlined_call_operand.vmem [shape: bf16[128,128], index: 3, kind: output, shape index: {}]  }
   0x1   :  { %v1401_v0 = vld [vmem:[%s1855_s1 + $0x40] sm:$0xff]   ;;  %1399 = vset.pattern.permute.xlu0 %v1493_v1  ;;  %1400 = vset.pattern.permute.xlu1 %v1493_v1  ;;  %v1405_v5 = vld [vmem:[%s1855_s1 + $0x48] sm:$0xff]   ;;  %v1409_v9 = vld [vmem:[%s1855_s1 + $0x50] sm:$0xff]  }
   0x2   :  { %v1402_v2 = vld [vmem:[%s1855_s1 + $0xc0] sm:$0xff]   ;;  %1226 = vmatprep.subr.bf16.mxu0 %v1401_v0  ;;  %v1406_v6 = vld [vmem:[%s1855_s1 + $0xc8] sm:$0xff]   ;;  %v1410_v10 = vld [vmem:[%s1855_s1 + $0xd0] sm:$0xff]  }
   0x3   :  { %v1403_v3 = vld [vmem:[%s1855_s1] sm:$0xff]   ;;  %1290 = vmatprep.subr.bf16.mxu1 %v1402_v2  ;;  %v1407_v7 = vld [vmem:[%s1855_s1 + $0x8] sm:$0xff]   ;;  %v1411_v11 = vld [vmem:[%s1855_s1 + $0x10] sm:$0xff]  }
   0x4   :  { %v1404_v4 = vld [vmem:[%s1855_s1 + $0x80] sm:$0xff]   ;;  %1227 = vmatpush3.bf16.msra.mxu0 %v1403_v3  ;;  %v1408_v8 = vld [vmem:[%s1855_s1 + $0x88] sm:$0xff]   ;;  %v1412_v12 = vld [vmem:[%s1855_s1 + $0x90] sm:$0xff]  }
   0x5   :  { %1291 = vmatpush3.bf16.msra.mxu1 %v1404_v4  ;;  %1228 = vmatprep.subr.bf16.mxu0 %v1405_v5  ;;  %v1413_v13 = vld [vmem:[%s1855_s1 + $0x58] sm:$0xff]   ;;  %v1417_v17 = vld [vmem:[%s1855_s1 + $0x60] sm:$0xff]   ;;  %v1421_v21 = vld [vmem:[%s1855_s1 + $0x68] sm:$0xff]  }
   0x6   :  { %1292 = vmatprep.subr.bf16.mxu1 %v1406_v6  ;;  %v1414_v14 = vld [vmem:[%s1855_s1 + $0xd8] sm:$0xff]   ;;  %v1418_v18 = vld [vmem:[%s1855_s1 + $0xe0] sm:$0xff]   ;;  %v1422_v22 = vld [vmem:[%s1855_s1 + $0xe8] sm:$0xff]  }
   0x7   :  { %v1415_v15 = vld [vmem:[%s1855_s1 + $0x18] sm:$0xff]   ;;  %v1419_v19 = vld [vmem:[%s1855_s1 + $0x20] sm:$0xff]   ;;  %v1423_v23 = vld [vmem:[%s1855_s1 + $0x28] sm:$0xff]  }
   0x8   :  { %1229 = vmatpush3.bf16.msra.mxu0 %v1407_v7  ;;  %v1416_v16 = vld [vmem:[%s1855_s1 + $0x98] sm:$0xff]   ;;  %v1420_v20 = vld [vmem:[%s1855_s1 + $0xa0] sm:$0xff]   ;;  %v1424_v24 = vld [vmem:[%s1855_s1 + $0xa8] sm:$0xff]  }
   0x9   :  { %1293 = vmatpush3.bf16.msra.mxu1 %v1408_v8  ;;  %1230 = vmatprep.subr.bf16.mxu0 %v1409_v9  ;;  %v1425_v25 = vld [vmem:[%s1855_s1 + $0x70] sm:$0xff]   ;;  %v1429_v29 = vld [vmem:[%s1855_s1 + $0x78] sm:$0xff]   ;;  %v1438_v36 = vld [vmem:[%s1856_s0 + $0xc] ss:$20 sps:$4 sm:$0xff]  }
   0xa   :  { %1294 = vmatprep.subr.bf16.mxu1 %v1410_v10  ;;  %v1426_v26 = vld [vmem:[%s1855_s1 + $0xf0] sm:$0xff]   ;;  %v1430_v30 = vld [vmem:[%s1855_s1 + $0xf8] sm:$0xff]   ;;  %v1439_v37 = vld [vmem:[%s1855_s1 + $0x100] sm:$0xff]   ;;  %801 = vmatprep.mubr.bf16.mxu1 %v1438_v36 }
   0xb   :  { %v1427_v27 = vld [vmem:[%s1855_s1 + $0x30] sm:$0xff]   ;;  %v1431_v31 = vld [vmem:[%s1855_s1 + $0x38] sm:$0xff]   ;;  %v1440_v38 = vld [vmem:[%s1856_s0 + $0x2c] ss:$20 sps:$4 sm:$0xff]  }
   0xc   :  { %1231 = vmatpush3.bf16.msra.mxu0 %v1411_v11  ;;  %v1428_v28 = vld [vmem:[%s1855_s1 + $0xb0] sm:$0xff]   ;;  %v1432_v32 = vld [vmem:[%s1855_s1 + $0xb8] sm:$0xff]   ;;  %v1452_v43 = vld [vmem:[%s1855_s1 + $0x108] sm:$0xff]  }
   0xd   :  { %1295 = vmatpush3.bf16.msra.mxu1 %v1412_v12  ;;  %1232 = vmatprep.subr.bf16.mxu0 %v1413_v13  ;;  %v1433_v33 = vld [vmem:[%s1856_s0] ss:$20 sps:$4 sm:$0xff]   ;;  %v1435_v34 = vld [vmem:[%s1856_s0 + $0x4] ss:$20 sps:$4 sm:$0xff]   ;;  %v1436_v35 = vld [vmem:[%s1856_s0 + $0x8] ss:$20 sps:$4 sm:$0xff]  }
   0xe   :  { %1296 = vmatprep.subr.bf16.mxu1 %v1414_v14  ;;  %704 = vmatprep.mubr.bf16.mxu0 %v1435_v34  ;;  %v1442_v39 = vld [vmem:[%s1856_s0 + $0x34] ss:$20 sps:$4 sm:$0xff]   ;;  %v1445_v41 = vld [vmem:[%s1856_s0 + $0x30] ss:$20 sps:$4 sm:$0xff]   ;;  %v1451_v46 = vld [vmem:[%s1856_s0 + $0x58] ss:$20 sps:$4 sm:$0xff]  }
   0xf   :  { %v1444_v40 = vld [vmem:[%s1856_s0 + $0x28] ss:$20 sps:$4 sm:$0xff]   ;;  %v1450_v45 = vld [vmem:[%s1856_s0 + $0x50] ss:$20 sps:$4 sm:$0xff]   ;;  %v1457_v51 = vld [vmem:[%s1856_s0 + $0x78] ss:$20 sps:$4 sm:$0xff]  }
  0x10   :  { %1233 = vmatpush3.bf16.msra.mxu0 %v1415_v15  ;;  %v1446_v42 = vld [vmem:[%s1856_s0 + $0x54] ss:$20 sps:$4 sm:$0xff]   ;;  %v1448_v44 = vld [vmem:[%s1856_s0 + $0x5c] ss:$20 sps:$4 sm:$0xff]   ;;  %v1455_v49 = vld [vmem:[%s1856_s0 + $0x84] ss:$20 sps:$4 sm:$0xff]  }
  0x11   :  { %1297 = vmatpush3.bf16.msra.mxu1 %v1416_v16  ;;  %1234 = vmatprep.subr.bf16.mxu0 %v1417_v17  ;;  %v1465_v47 = vld [vmem:[%s1855_s1 + $0x110] sm:$0xff]   ;;  %v1478_v50 = vld [vmem:[%s1855_s1 + $0x118] sm:$0xff]   ;;  %v1461_v54 = vld [vmem:[%s1856_s0 + $0xac] ss:$20 sps:$4 sm:$0xff]  }
  0x12   :  { %1298 = vmatprep.subr.bf16.mxu1 %v1418_v18  ;;  %v1453_v48 = vld [vmem:[%s1856_s0 + $0x7c] ss:$20 sps:$4 sm:$0xff]   ;;  %v1458_v52 = vld [vmem:[%s1856_s0 + $0x80] ss:$20 sps:$4 sm:$0xff]   ;;  %v1459_v53 = vld [vmem:[%s1856_s0 + $0xa4] ss:$20 sps:$4 sm:$0xff]  }
  0x13   :  { %v1463_v55 = vld [vmem:[%s1856_s0 + $0xa0] ss:$20 sps:$4 sm:$0xff]   ;;  %v1464_v56 = vld [vmem:[%s1856_s0 + $0xa8] ss:$20 sps:$4 sm:$0xff]   ;;  %v1471_v2 = vld [vmem:[%s1856_s0 + $0xd0] ss:$20 sps:$4 sm:$0xff]  }
  0x14   :  { %1235 = vmatpush3.bf16.msra.mxu0 %v1419_v19  ;;  %v1466_v57 = vld [vmem:[%s1856_s0 + $0xcc] ss:$20 sps:$4 sm:$0xff]   ;;  %v1468_v59 = vld [vmem:[%s1856_s0 + $0xd4] ss:$20 sps:$4 sm:$0xff]   ;;  %v138_v62 = vld [vmem:[%s1857_s2 + $0x18] sm:$0xff] }
  0x15   :  { %1299 = vmatpush3.bf16.msra.mxu1 %v1420_v20  ;;  %1236 = vmatprep.subr.bf16.mxu0 %v1421_v21  ;;  %v135_v58 = vld [vmem:[%s1857_s2] sm:$0xff]  ;;  %v137_v60 = vld [vmem:[%s1857_s2 + $0x10] sm:$0xff]  ;;  %v136_v61 = vld [vmem:[%s1857_s2 + $0x8] sm:$0xff] }
  0x16   :  { %1300 = vmatprep.subr.bf16.mxu1 %v1422_v22  ;;  %153 = vperm.xlu0 %1399, %v135_v58   ;;  %v139_v63 = vld [vmem:[%s1857_s2 + $0x20] sm:$0xff]  ;;  %v1470_v0 = vld [vmem:[%s1856_s0 + $0xc8] ss:$20 sps:$4 sm:$0xff]   ;;  %v141_v5 = vld [vmem:[%s1857_s2 + $0x30] sm:$0xff] }
  0x17   :  { %163 = vperm.xlu1 %1400, %v137_v60   ;;  %v140_v1 = vld [vmem:[%s1857_s2 + $0x28] sm:$0xff]  ;;  %v1474_v4 = vld [vmem:[%s1856_s0 + $0xfc] ss:$20 sps:$4 sm:$0xff]   ;;  %v143_v7 = vld [vmem:[%s1857_s2 + $0x40] sm:$0xff] }
  0x18   :  { %1237 = vmatpush3.bf16.msra.mxu0 %v1423_v23  ;;  %v1472_v3 = vld [vmem:[%s1856_s0 + $0xf4] ss:$20 sps:$4 sm:$0xff]   ;;  %v142_v6 = vld [vmem:[%s1857_s2 + $0x38] sm:$0xff]  ;;  %v1476_v8 = vld [vmem:[%s1856_s0 + $0xf0] ss:$20 sps:$4 sm:$0xff]  }
  0x19   :  { %1301 = vmatpush3.bf16.msra.mxu1 %v1424_v24  ;;  %1238 = vmatprep.subr.bf16.mxu0 %v1425_v25  ;;  %v144_v9 = vld [vmem:[%s1857_s2 + $0x48] sm:$0xff]  ;;  %v1479_v11 = vld [vmem:[%s1856_s0 + $0x11c] ss:$20 sps:$4 sm:$0xff]   ;;  %v1481_v12 = vld [vmem:[%s1856_s0 + $0x124] ss:$20 sps:$4 sm:$0xff]  }
  0x1a   :  { %1302 = vmatprep.subr.bf16.mxu1 %v1426_v26  ;;  %158 = vperm.xlu0 %1399, %v136_v61   ;;  %v1477_v10 = vld [vmem:[%s1856_s0 + $0xf8] ss:$20 sps:$4 sm:$0xff]   ;;  %v145_v13 = vld [vmem:[%s1857_s2 + $0x50] sm:$0xff]  ;;  %v147_v15 = vld [vmem:[%s1857_s2 + $0x60] sm:$0xff] }
  0x1b   :  { %168 = vperm.xlu1 %1400, %v138_v62   ;;  %v146_v14 = vld [vmem:[%s1857_s2 + $0x58] sm:$0xff]  ;;  %v148_v17 = vld [vmem:[%s1857_s2 + $0x68] sm:$0xff]  ;;  %v1484_v18 = vld [vmem:[%s1856_s0 + $0x120] ss:$20 sps:$4 sm:$0xff]  }
  0x1c   :  { %1239 = vmatpush3.bf16.msra.mxu0 %v1427_v27  ;;  %v1483_v16 = vld [vmem:[%s1856_s0 + $0x118] ss:$20 sps:$4 sm:$0xff]   ;;  %v1485_v19 = vld [vmem:[%s1856_s0 + $0x10] ss:$20 sps:$4 sm:$0xff]   ;;  %v1489_v25 = vld [vmem:[%s1856_s0 + $0x60] ss:$20 sps:$4 sm:$0xff]  }
  0x1d   :  { %1303 = vmatpush3.bf16.msra.mxu1 %v1428_v28  ;;  %1240 = vmatprep.subr.bf16.mxu0 %v1429_v29  ;;  %v1486_v20 = vld [vmem:[%s1856_s0 + $0xb0] ss:$20 sps:$4 sm:$0xff]   ;;  %v150_v22 = vld [vmem:[%s1857_s2 + $0x78] sm:$0xff]  ;;  %v1490_v26 = vld [vmem:[%s1856_s0 + $0x100] ss:$20 sps:$4 sm:$0xff]  }
  0x1e   :  { %1304 = vmatprep.subr.bf16.mxu1 %v1430_v30  ;;  %173 = vperm.xlu0 %1399, %v139_v63   ;;  %v149_v21 = vld [vmem:[%s1857_s2 + $0x70] sm:$0xff]  ;;  %v1487_v23 = vld [vmem:[%s1856_s0 + $0x38] ss:$20 sps:$4 sm:$0xff]   ;;  %v1491_v27 = vld [vmem:[%s1856_s0 + $0x88] ss:$20 sps:$4 sm:$0xff]  }
  0x1f   :  { %178 = vperm.xlu1 %1400, %v140_v1   ;;  %v1488_v24 = vld [vmem:[%s1856_s0 + $0xd8] ss:$20 sps:$4 sm:$0xff]   ;;  %v1492_v28 = vld [vmem:[%s1856_s0 + $0x128] ss:$20 sps:$4 sm:$0xff]  }
  0x20   :  { %1241 = vmatpush3.bf16.msra.mxu0 %v1431_v31 }
  0x21   :  { %1305 = vmatpush3.bf16.msra.mxu1 %v1432_v32  ;;  %1366 = vmatprep.subr.bf16.mxu0 %v1439_v37 }
  0x22   :  { %1390 = vmatprep.subr.bf16.mxu1 %v1439_v37  ;;  %183 = vperm.xlu0 %1399, %v141_v5  }
  0x23   :  { %705 = vmatmul.mubr.bf16.vlgmr.msra.gmra.mrb[0].mxu0 %v1433_v33  ;;  %188 = vperm.xlu1 %1400, %v142_v6  }
  0x24   :  { %802 = vmatmul.mubr.bf16.vlgmr.msra.gmra.mrb[0].mxu1 %v1436_v35  ;;  %1367 = vmatpush3.bf16.msra.mxu0 %v1439_v37 }
  0x25   :  { %1394 = vmatpush3.bf16.msra.mxu1 %v1439_v37  ;;  %712 = vmatprep.mubr.bf16.mxu0 %v1440_v38 }
  0x26   :  { %809 = vmatprep.mubr.bf16.mxu1 %v1442_v39  ;;  %1368 = vmatprep.subr.bf16.mxu0 %v1452_v43 }
  0x27   :  { %1391 = vmatprep.subr.bf16.mxu1 %v1452_v43  ;;  %193 = vperm.xlu0 %1399, %v143_v7  }
  0x28   :  { %1369 = vmatpush3.bf16.msra.mxu0 %v1452_v43  ;;  %198 = vperm.xlu1 %1400, %v144_v9  }
  0x29   :  { %1395 = vmatpush3.bf16.msra.mxu1 %v1452_v43  ;;  %1370 = vmatprep.subr.bf16.mxu0 %v1465_v47 }
  0x2a   :  { %1392 = vmatprep.subr.bf16.mxu1 %v1465_v47 }
  0x2b   :  { %713 = vmatmul.mubr.bf16.gmra.mrb[4].mxu0 %v1444_v40  ;;  %203 = vperm.xlu0 %1399, %v145_v13  }
  0x2c   :  { %810 = vmatmul.mubr.bf16.gmra.mrb[4].mxu1 %v1445_v41  ;;  %720 = vmatprep.mubr.bf16.mxu0 %v1446_v42 }
  0x2d   :  { %817 = vmatprep.mubr.bf16.mxu1 %v1448_v44  ;;  %1371 = vmatpush3.bf16.msra.mxu0 %v1465_v47 }
  0x2e   :  { %1396 = vmatpush3.bf16.msra.mxu1 %v1465_v47  ;;  %1372 = vmatprep.subr.bf16.mxu0 %v1478_v50 }
  0x2f   :  { %1393 = vmatprep.subr.bf16.mxu1 %v1478_v50  ;;  %208 = vperm.xlu1 %1400, %v146_v14  }
  0x30   :  { %213 = vperm.xlu0 %1399, %v147_v15  }
  0x31   :  { %1373 = vmatpush3.bf16.msra.mxu0 %v1478_v50 }
  0x32   :  { %1397 = vmatpush3.bf16.msra.mxu1 %v1478_v50 }
  0x33   :  { %721 = vmatmul.mubr.bf16.gmra.mrb[8].mxu0 %v1450_v45  ;;  %218 = vperm.xlu1 %1400, %v148_v17  }
  0x34   :  { %818 = vmatmul.mubr.bf16.gmra.mrb[8].mxu1 %v1451_v46  ;;  %728 = vmatprep.mubr.bf16.mxu0 %v1453_v48 }
  0x35   :  { %825 = vmatprep.mubr.bf16.mxu1 %v1455_v49  ;;  %223 = vperm.xlu0 %1399, %v149_v21  }
  0x37   :  { %228 = vperm.xlu1 %1400, %v150_v22  }
  0x3b   :  { %729 = vmatmul.mubr.bf16.gmra.mrb[12].mxu0 %v1457_v51 }
  0x3c   :  { %826 = vmatmul.mubr.bf16.gmra.mrb[12].mxu1 %v1458_v52  ;;  %736 = vmatprep.mubr.bf16.mxu0 %v1459_v53 }
  0x3d   :  { %833 = vmatprep.mubr.bf16.mxu1 %v1461_v54 }
  0x43   :  { %737 = vmatmul.mubr.bf16.gmra.mrb[16].mxu0 %v1463_v55 }
  0x44   :  { %834 = vmatmul.mubr.bf16.gmra.mrb[16].mxu1 %v1464_v56  ;;  %744 = vmatprep.mubr.bf16.mxu0 %v1466_v57 }
  0x45   :  { %841 = vmatprep.mubr.bf16.mxu1 %v1468_v59 }
  0x4b   :  { %745 = vmatmul.mubr.bf16.gmra.mrb[20].mxu0 %v1470_v0 }
  0x4c   :  { %842 = vmatmul.mubr.bf16.gmra.mrb[20].mxu1 %v1471_v2  ;;  %752 = vmatprep.mubr.bf16.mxu0 %v1472_v3 }
  0x4d   :  { %849 = vmatprep.mubr.bf16.mxu1 %v1474_v4 }
  0x53   :  { %753 = vmatmul.mubr.bf16.gmra.mrb[24].mxu0 %v1476_v8 }
  0x54   :  { %850 = vmatmul.mubr.bf16.gmra.mrb[24].mxu1 %v1477_v10  ;;  %760 = vmatprep.mubr.bf16.mxu0 %v1479_v11 }
  0x55   :  { %857 = vmatprep.mubr.bf16.mxu1 %v1481_v12 }
  0x5b   :  { %761 = vmatmul.mubr.bf16.gmra.mrb[28].mxu0 %v1483_v16 }
  0x5c   :  { %858 = vmatmul.mubr.bf16.gmra.mrb[28].mxu1 %v1484_v18  ;;  %1374 = vmatprep.mubr.msk.bf16.mxu0 %vm647_vm0, %v1485_v19 }
  0x5d   :  { %1382 = vmatprep.mubr.msk.bf16.mxu1 %vm647_vm0, %v1486_v20 }
  0x63   :  { %1375 = vmatmul.mubr.msk.bf16.vlgmr.msra.gmra.mrb[32].mxu0 %vm647_vm0, %v1487_v23 }
  0x64   :  { %1383 = vmatmul.mubr.msk.bf16.vlgmr.msra.gmra.mrb[32].mxu1 %vm647_vm0, %v1488_v24  ;;  %1378 = vmatprep.mubr.msk.bf16.mxu0 %vm647_vm0, %v1489_v25 }
  0x65   :  { %1386 = vmatprep.mubr.msk.bf16.mxu1 %vm647_vm0, %v1490_v26 }
  0x6b   :  { %1379 = vmatmul.mubr.msk.bf16.gmra.mrb[36].mxu0 %vm647_vm0, %v1491_v27 }
  0x6c   :  { %1387 = vmatmul.mubr.msk.bf16.gmra.mrb[36].mxu1 %vm647_vm0, %v1492_v28 }
  0x95   :  { %v154_v29 = vpop.permute.xlu0 %153 }
  0x96   :  { %v164_v30 = vpop.permute.xlu1 %163 }
  0x99   :  { %v159_v32 = vpop.permute.xlu0 %158 }
  0x9a   :  { %v169_v48 = vpop.permute.xlu1 %168 }
  0x9d   :  { %v174_v0 = vpop.permute.xlu0 %173 }
  0x9e   :  { %v179_v2 = vpop.permute.xlu1 %178 }
  0xa1   :  { %v184_v19 = vpop.permute.xlu0 %183 }
  0xf6   :  { %v1242_v31 = vpop.f32.mrb[0].mxu0 }
  0xf7   :  { %v1306_v33 = vpop.f32.mrb[0].mxu1  ;;  %v1243_v34 = vpop.f32.mrb[1].mxu0 }
  0xf8   :  { %v1244_v35 = vadd.f32 %v1243_v34, %v1242_v31  ;;  %v1307_v36 = vpop.f32.mrb[1].mxu1  ;;  %v1245_v37 = vpop.f32.mrb[2].mxu0 }
  0xf9   :  { %v1308_v38 = vadd.f32 %v1307_v36, %v1306_v33  ;;  %v1309_v39 = vpop.f32.mrb[2].mxu1  ;;  %v1246_v40 = vpop.f32.mrb[3].mxu0 }
  0xfa   :  { %v707_v41 = vadd.f32 %v1244_v35, %v154_v29  ;;  %v1247_v42 = vadd.f32 %v1246_v40, %v1245_v37  ;;  %v1310_v43 = vpop.f32.mrb[3].mxu1  ;;  %v189_v33 = vpop.permute.xlu1 %188 }
  0xfb   :  { %v1311_v44 = vadd.f32 %v1310_v43, %v1309_v39  ;;  %v194_v36 = vpop.permute.xlu0 %193 }
  0xfc   :  { %v710_v45 = vadd.f32 %v1247_v42, %v159_v32  ;;  %v1798_v46 = vadd.f32 %v1308_v38, %v707_v41 }
  0xfe   :  { %v1248_v47 = vpop.f32.mrb[4].mxu0  ;;  %v1800_v49 = vadd.f32 %v1311_v44, %v710_v45 }
  0xff   :  { %v1312_v50 = vpop.f32.mrb[4].mxu1  ;;  %v1249_v51 = vpop.f32.mrb[5].mxu0 }
 0x100   :  { %v1250_v52 = vadd.f32 %v1249_v51, %v1248_v47  ;;  %v1313_v53 = vpop.f32.mrb[5].mxu1  ;;  %v1251_v54 = vpop.f32.mrb[6].mxu0 }
 0x101   :  { %v1314_v55 = vadd.f32 %v1313_v53, %v1312_v50  ;;  %v1315_v56 = vpop.f32.mrb[6].mxu1  ;;  %v1252_v57 = vpop.f32.mrb[7].mxu0 }
 0x102   :  { %v715_v58 = vadd.f32 %v1250_v52, %v164_v30  ;;  %v1253_v59 = vadd.f32 %v1252_v57, %v1251_v54  ;;  %v1316_v60 = vpop.f32.mrb[7].mxu1  ;;  %v199_v52 = vpop.permute.xlu1 %198 }
 0x103   :  { %v1317_v61 = vadd.f32 %v1316_v60, %v1315_v56  ;;  %v204_v56 = vpop.permute.xlu0 %203 }
 0x104   :  { %v718_v62 = vadd.f32 %v1253_v59, %v169_v48  ;;  %v1802_v63 = vadd.f32 %v1314_v55, %v715_v58 }
 0x106   :  { %v1254_v1 = vpop.f32.mrb[8].mxu0  ;;  %v1804_v3 = vadd.f32 %v1317_v61, %v718_v62 }
 0x107   :  { %v1318_v4 = vpop.f32.mrb[8].mxu1  ;;  %v1255_v5 = vpop.f32.mrb[9].mxu0 }
 0x108   :  { %v1256_v6 = vadd.f32 %v1255_v5, %v1254_v1  ;;  %v1319_v7 = vpop.f32.mrb[9].mxu1  ;;  %v1257_v8 = vpop.f32.mrb[10].mxu0 }
 0x109   :  { %v1320_v9 = vadd.f32 %v1319_v7, %v1318_v4  ;;  %v1321_v10 = vpop.f32.mrb[10].mxu1  ;;  %v1258_v11 = vpop.f32.mrb[11].mxu0 }
 0x10a   :  { %v723_v12 = vadd.f32 %v1256_v6, %v174_v0  ;;  %v1259_v13 = vadd.f32 %v1258_v11, %v1257_v8  ;;  %v1322_v14 = vpop.f32.mrb[11].mxu1  ;;  %v209_v8 = vpop.permute.xlu1 %208 }
 0x10b   :  { %v1323_v15 = vadd.f32 %v1322_v14, %v1321_v10 }
 0x10c   :  { %v726_v16 = vadd.f32 %v1259_v13, %v179_v2  ;;  %v1806_v17 = vadd.f32 %v1320_v9, %v723_v12  ;;  %v214_v12 = vpop.permute.xlu0 %213 }
 0x10e   :  { %v1260_v18 = vpop.f32.mrb[12].mxu0  ;;  %v1808_v20 = vadd.f32 %v1323_v15, %v726_v16 }
 0x10f   :  { %v1324_v21 = vpop.f32.mrb[12].mxu1  ;;  %v1261_v22 = vpop.f32.mrb[13].mxu0 }
 0x110   :  { %v1262_v23 = vadd.f32 %v1261_v22, %v1260_v18  ;;  %v1325_v24 = vpop.f32.mrb[13].mxu1  ;;  %v1263_v25 = vpop.f32.mrb[14].mxu0 }
 0x111   :  { %v1326_v26 = vadd.f32 %v1325_v24, %v1324_v21  ;;  %v1327_v27 = vpop.f32.mrb[14].mxu1  ;;  %v1264_v28 = vpop.f32.mrb[15].mxu0 }
 0x112   :  { %v731_v29 = vadd.f32 %v1262_v23, %v184_v19  ;;  %v1265_v30 = vadd.f32 %v1264_v28, %v1263_v25  ;;  %v1328_v31 = vpop.f32.mrb[15].mxu1  ;;  %v219_v28 = vpop.permute.xlu1 %218 }
 0x113   :  { %v1329_v32 = vadd.f32 %v1328_v31, %v1327_v27 }
 0x114   :  { %v734_v34 = vadd.f32 %v1265_v30, %v189_v33  ;;  %v1810_v35 = vadd.f32 %v1326_v26, %v731_v29 }
 0x116   :  { %v1266_v37 = vpop.f32.mrb[16].mxu0  ;;  %v1812_v38 = vadd.f32 %v1329_v32, %v734_v34  ;;  %v224_v32 = vpop.permute.xlu0 %223 }
 0x117   :  { %v1330_v39 = vpop.f32.mrb[16].mxu1  ;;  %v1267_v40 = vpop.f32.mrb[17].mxu0 }
 0x118   :  { %v1268_v41 = vadd.f32 %v1267_v40, %v1266_v37  ;;  %v1331_v42 = vpop.f32.mrb[17].mxu1  ;;  %v1269_v43 = vpop.f32.mrb[18].mxu0 }
 0x119   :  { %v1332_v44 = vadd.f32 %v1331_v42, %v1330_v39  ;;  %v1333_v45 = vpop.f32.mrb[18].mxu1  ;;  %v1270_v47 = vpop.f32.mrb[19].mxu0 }
 0x11a   :  { %v739_v48 = vadd.f32 %v1268_v41, %v194_v36  ;;  %v1271_v50 = vadd.f32 %v1270_v47, %v1269_v43  ;;  %v1334_v51 = vpop.f32.mrb[19].mxu1 }
 0x11b   :  { %v1335_v53 = vadd.f32 %v1334_v51, %v1333_v45 }
 0x11c   :  { %v742_v54 = vadd.f32 %v1271_v50, %v199_v52  ;;  %v1814_v55 = vadd.f32 %v1332_v44, %v739_v48  ;;  %v229_v50 = vpop.permute.xlu1 %228 }
 0x11e   :  { %v1272_v57 = vpop.f32.mrb[20].mxu0  ;;  %v1816_v58 = vadd.f32 %v1335_v53, %v742_v54 }
 0x11f   :  { %v1336_v59 = vpop.f32.mrb[20].mxu1  ;;  %v1273_v60 = vpop.f32.mrb[21].mxu0 }
 0x120   :  { %v1274_v61 = vadd.f32 %v1273_v60, %v1272_v57  ;;  %v1337_v62 = vpop.f32.mrb[21].mxu1  ;;  %v1275_v0 = vpop.f32.mrb[22].mxu0 }
 0x121   :  { %v1338_v1 = vadd.f32 %v1337_v62, %v1336_v59  ;;  %v1339_v2 = vpop.f32.mrb[22].mxu1  ;;  %v1276_v4 = vpop.f32.mrb[23].mxu0 }
 0x122   :  { %v747_v5 = vadd.f32 %v1274_v61, %v204_v56  ;;  %v1277_v6 = vadd.f32 %v1276_v4, %v1275_v0  ;;  %v1340_v7 = vpop.f32.mrb[23].mxu1 }
 0x123   :  { %v1341_v9 = vadd.f32 %v1340_v7, %v1339_v2 }
 0x124   :  { %v750_v10 = vadd.f32 %v1277_v6, %v209_v8  ;;  %v844_v11 = vadd.f32 %v1338_v1, %v747_v5 }
 0x126   :  { %v1278_v13 = vpop.f32.mrb[24].mxu0  ;;  %v847_v14 = vadd.f32 %v1341_v9, %v750_v10 }
 0x127   :  { %v1342_v15 = vpop.f32.mrb[24].mxu1  ;;  %v1279_v16 = vpop.f32.mrb[25].mxu0 }
 0x128   :  { %v1280_v18 = vadd.f32 %v1279_v16, %v1278_v13  ;;  %v1343_v19 = vpop.f32.mrb[25].mxu1  ;;  %v1281_v21 = vpop.f32.mrb[26].mxu0 }
 0x129   :  { %v1344_v22 = vadd.f32 %v1343_v19, %v1342_v15  ;;  %v1345_v23 = vpop.f32.mrb[26].mxu1  ;;  %v1282_v24 = vpop.f32.mrb[27].mxu0 }
 0x12a   :  { %v755_v25 = vadd.f32 %v1280_v18, %v214_v12  ;;  %v1283_v26 = vadd.f32 %v1282_v24, %v1281_v21  ;;  %v1346_v27 = vpop.f32.mrb[27].mxu1 }
 0x12b   :  { %v1347_v29 = vadd.f32 %v1346_v27, %v1345_v23 }
 0x12c   :  { %v758_v30 = vadd.f32 %v1283_v26, %v219_v28  ;;  %v852_v31 = vadd.f32 %v1344_v22, %v755_v25 }
 0x12e   :  { %v1284_v33 = vpop.f32.mrb[28].mxu0  ;;  %v1818_v34 = vadd.f32 %v1347_v29, %v758_v30 }
 0x12f   :  { %v1348_v36 = vpop.f32.mrb[28].mxu1  ;;  %v1285_v37 = vpop.f32.mrb[29].mxu0 }
 0x130   :  { %v1286_v39 = vadd.f32 %v1285_v37, %v1284_v33  ;;  %v1349_v40 = vpop.f32.mrb[29].mxu1  ;;  %v1287_v41 = vpop.f32.mrb[30].mxu0 }
 0x131   :  { %v1350_v42 = vadd.f32 %v1349_v40, %v1348_v36  ;;  %v1351_v43 = vpop.f32.mrb[30].mxu1  ;;  %v1288_v44 = vpop.f32.mrb[31].mxu0 }
 0x132   :  { %v763_v45 = vadd.f32 %v1286_v39, %v224_v32  ;;  %v1289_v47 = vadd.f32 %v1288_v44, %v1287_v41  ;;  %v1352_v48 = vpop.f32.mrb[31].mxu1 }
 0x133   :  { %v1353_v51 = vadd.f32 %v1352_v48, %v1351_v43 }
 0x134   :  { %v766_v52 = vadd.f32 %v1289_v47, %v229_v50  ;;  %v860_v53 = vadd.f32 %v1350_v42, %v763_v45 }
 0x136   :  { %v1376_v54 = vpop.f32.mrb[32].mxu0  ;;  %v863_v56 = vadd.f32 %v1353_v51, %v766_v52 }
 0x137   :  { %v909_v57 = vadd.f32 %v1376_v54, %v1802_v63  ;;  %v1384_v59 = vpop.f32.mrb[32].mxu1  ;;  %v900_v60 = vpop.f32.mrb[33].mxu0 }
 0x138   :  { %v941_v61 = vadd.f32 %v1384_v59, %v844_v11  ;;  %v901_v62 = vadd.f32 %v900_v60, %v1798_v46  ;;  %v932_v0 = vpop.f32.mrb[33].mxu1  ;;  %v1377_v1 = vpop.f32.mrb[34].mxu0 }
 0x139   :  { %v933_v2 = vadd.f32 %v932_v0, %v1814_v55  ;;  %v912_v4 = vadd.f32 %v1377_v1, %v1804_v3  ;;  %v1385_v5 = vpop.f32.mrb[34].mxu1  ;;  %v903_v6 = vpop.f32.mrb[35].mxu0  ;;  %v965_v10 = vmax.f32 %v909_v57, 0.0 }
 0x13a   :  { %v944_v7 = vadd.f32 %v1385_v5, %v847_v14  ;;  %v904_v8 = vadd.f32 %v903_v6, %v1800_v49  ;;  %v935_v9 = vpop.f32.mrb[35].mxu1  ;;  %v973_v13 = vmax.f32 %v941_v61, 0.0  ;;  %v963_v11 = vmax.f32 %v901_v62, 0.0 }
 0x13b   :  { %v966_v12 = vmax.f32 %v912_v4, 0.0  ;;  %v936_v63 = vadd.f32 %v935_v9, %v1816_v58  ;;  %v971_v16 = vmax.f32 %v933_v2, 0.0 }
 0x13c   :  { %v974_v15 = vmax.f32 %v944_v7, 0.0  ;;  %v964_v46 = vmax.f32 %v904_v8, 0.0 }
 0x13d   :  { %v1187_v18 = vpack.c.bf16 %v966_v12, %v965_v10  ;;  %v972_v19 = vmax.f32 %v936_v63, 0.0 }
 0x13e   :  { %v1207_v55 = vpack.c.bf16 %v974_v15, %v973_v13  ;;  %v1182_v21 = vpack.c.bf16 %v964_v46, %v963_v11  ;;  %v1380_v3 = vpop.f32.mrb[36].mxu0 }
 0x13f   :  { %1219 = vst [vmem:[%s1858_s3 + $0x8] sm:$0xff] %v1187_v18   ;;  %v1202_v49 = vpack.c.bf16 %v972_v19, %v971_v16  ;;  %v925_v14 = vadd.f32 %v1380_v3, %v1810_v35  ;;  %v1388_v22 = vpop.f32.mrb[36].mxu1  ;;  %v916_v23 = vpop.f32.mrb[37].mxu0 }
 0x140   :  { %1223 = vst [vmem:[%s1858_s3 + $0x28] sm:$0xff] %v1207_v55   ;;  %1183 = vst [vmem:[%s1858_s3] sm:$0xff] %v1182_v21   ;;  %v957_v58 = vadd.f32 %v1388_v22, %v860_v53  ;;  %v917_v24 = vadd.f32 %v916_v23, %v1806_v17  ;;  %v948_v25 = vpop.f32.mrb[37].mxu1  ;;  %v1381_v26 = vpop.f32.mrb[38].mxu0 }
 0x141   :  { %1222 = vst [vmem:[%s1858_s3 + $0x20] sm:$0xff] %v1202_v49   ;;  %v949_v35 = vadd.f32 %v948_v25, %v852_v31  ;;  %v928_v27 = vadd.f32 %v1381_v26, %v1812_v38  ;;  %v1389_v28 = vpop.f32.mrb[38].mxu1  ;;  %v919_v29 = vpop.f32.mrb[39].mxu0  ;;  %v969_v36 = vmax.f32 %v925_v14, 0.0 }
 0x142   :  { %v960_v30 = vadd.f32 %v1389_v28, %v863_v56  ;;  %v920_v32 = vadd.f32 %v919_v29, %v1808_v20  ;;  %v951_v33 = vpop.f32.mrb[39].mxu1  ;;  %v977_v17 = vmax.f32 %v957_v58, 0.0  ;;  %v967_v40 = vmax.f32 %v917_v24, 0.0 }
 0x143   :  { %v970_v37 = vmax.f32 %v928_v27, 0.0  ;;  %v952_v39 = vadd.f32 %v951_v33, %v1818_v34  ;;  %v975_v43 = vmax.f32 %v949_v35, 0.0 }
 0x144   :  { %v978_v41 = vmax.f32 %v960_v30, 0.0  ;;  %v968_v42 = vmax.f32 %v920_v32, 0.0 }
 0x145   :  { %v1197_v44 = vpack.c.bf16 %v970_v37, %v969_v36  ;;  %v976_v45 = vmax.f32 %v952_v39, 0.0 }
 0x146   :  { %v1217_v31 = vpack.c.bf16 %v978_v41, %v977_v17  ;;  %v1192_v47 = vpack.c.bf16 %v968_v42, %v967_v40 }
 0x147   :  { %1221 = vst [vmem:[%s1858_s3 + $0x18] sm:$0xff] %v1197_v44   ;;  %v1212_v38 = vpack.c.bf16 %v976_v45, %v975_v43 }
 0x148   :  { %1225 = vst [vmem:[%s1858_s3 + $0x38] sm:$0xff] %v1217_v31   ;;  %1220 = vst [vmem:[%s1858_s3 + $0x10] sm:$0xff] %v1192_v47  }
 0x149   :  { %1224 = vst [vmem:[%s1858_s3 + $0x30] sm:$0xff] %v1212_v38  }

// kernel: vae_encoder_forward.10
= control target key start
LH: loop header
LB: loop body
LE: loop exit
PB: predicated region body
PF: predicated region fallthrough
CT: control target
= control target key end

     0   :  { %v3780_v1 = vmov 0   ;;  %vm2644_vm0 = vcmask 257024   ;;  %s5027_s1 = inlined_call_operand.vmem [shape: bf16[1152,32], index: 1, kind: input, shape index: {}]   ;;  %s5028_s0 = inlined_call_operand.vmem [shape: bf16[256,1152], index: 0, kind: input, shape index: {}]   ;;  %s5029_s2 = inlined_call_operand.vmem [shape: f32[256,1], index: 2, kind: input, shape index: {}]   ;;  %s5030_s3 = inlined_call_operand.vmem [shape: bf16[256,32], index: 3, kind: output, shape index: {}]  }
   0x1   :  { %v3500_v0 = vld [vmem:[%s5027_s1 + $0x40] sm:$0xff]   ;;  %3498 = vset.pattern.permute.xlu0 %v3780_v1  ;;  %3499 = vset.pattern.permute.xlu1 %v3780_v1  ;;  %v3502_v3 = vld [vmem:[%s5027_s1 + $0x48] sm:$0xff]   ;;  %v3504_v5 = vld [vmem:[%s5027_s1 + $0x50] sm:$0xff]  }
   0x2   :  { %v3501_v2 = vld [vmem:[%s5027_s1] sm:$0xff]   ;;  %2961 = vmatprep.subr.bf16.mxu0 %v3500_v0  ;;  %3481 = vmatprep.subr.bf16.mxu1 %v3500_v0  ;;  %v3503_v4 = vld [vmem:[%s5027_s1 + $0x8] sm:$0xff]   ;;  %v3505_v6 = vld [vmem:[%s5027_s1 + $0x10] sm:$0xff]  }
   0x3   :  { %2962 = vmatpush3.bf16.msra.mxu0 %v3501_v2  ;;  %3489 = vmatpush3.bf16.msra.mxu1 %v3501_v2  ;;  %v3506_v7 = vld [vmem:[%s5027_s1 + $0x58] sm:$0xff]   ;;  %v3508_v9 = vld [vmem:[%s5027_s1 + $0x60] sm:$0xff]   ;;  %v3510_v11 = vld [vmem:[%s5027_s1 + $0x68] sm:$0xff]  }
   0x4   :  { %2963 = vmatprep.subr.bf16.mxu0 %v3502_v3  ;;  %3482 = vmatprep.subr.bf16.mxu1 %v3502_v3  ;;  %v3507_v8 = vld [vmem:[%s5027_s1 + $0x18] sm:$0xff]   ;;  %v3509_v10 = vld [vmem:[%s5027_s1 + $0x20] sm:$0xff]   ;;  %v3511_v14 = vld [vmem:[%s5027_s1 + $0x28] sm:$0xff]  }
   0x5   :  { %v3518_v12 = vld [vmem:[%s5028_s0 + $0x4] ss:$36 sps:$4 sm:$0xff]   ;;  %v3512_v15 = vld [vmem:[%s5027_s1 + $0x70] sm:$0xff]   ;;  %v3514_v17 = vld [vmem:[%s5027_s1 + $0x78] sm:$0xff]  }
   0x6   :  { %v3521_v13 = vld [vmem:[%s5028_s0 + $0x364] ss:$36 sps:$4 sm:$0xff]   ;;  %1711 = vmatprep.mubr.bf16.mxu0 %v3518_v12  ;;  %v3513_v16 = vld [vmem:[%s5027_s1 + $0x30] sm:$0xff]   ;;  %v3515_v18 = vld [vmem:[%s5027_s1 + $0x38] sm:$0xff]  }
   0x7   :  { %2964 = vmatpush3.bf16.msra.mxu0 %v3503_v4  ;;  %3490 = vmatpush3.bf16.msra.mxu1 %v3503_v4  ;;  %v3522_v19 = vld [vmem:[%s5027_s1 + $0xc0] sm:$0xff]   ;;  %v3524_v24 = vld [vmem:[%s5027_s1 + $0xc8] sm:$0xff]   ;;  %v3534_v32 = vld [vmem:[%s5027_s1 + $0xd0] sm:$0xff]  }
   0x8   :  { %2965 = vmatprep.subr.bf16.mxu0 %v3504_v5  ;;  %3483 = vmatprep.subr.bf16.mxu1 %v3504_v5  ;;  %v3516_v20 = vld [vmem:[%s5028_s0] ss:$36 sps:$4 sm:$0xff]   ;;  %v3528_v26 = vld [vmem:[%s5028_s0 + $0x4c] ss:$36 sps:$4 sm:$0xff]   ;;  %v3536_v35 = vld [vmem:[%s5027_s1 + $0xd8] sm:$0xff]  }
   0x9   :  { %1807 = vmatprep.mubr.bf16.mxu1 %v3521_v13  ;;  %v3519_v21 = vld [vmem:[%s5028_s0 + $0x360] ss:$36 sps:$4 sm:$0xff]   ;;  %v3530_v27 = vld [vmem:[%s5028_s0 + $0x3ac] ss:$36 sps:$4 sm:$0xff]   ;;  %v3538_v36 = vld [vmem:[%s5028_s0 + $0x94] ss:$36 sps:$4 sm:$0xff]  }
   0xa   :  { %v3525_v22 = vld [vmem:[%s5027_s1 + $0x140] sm:$0xff]   ;;  %v3526_v28 = vld [vmem:[%s5027_s1 + $0x88] sm:$0xff]   ;;  %v3535_v33 = vld [vmem:[%s5027_s1 + $0x90] sm:$0xff]  }
   0xb   :  { %2966 = vmatpush3.bf16.msra.mxu0 %v3505_v6  ;;  %3491 = vmatpush3.bf16.msra.mxu1 %v3505_v6  ;;  %v3523_v23 = vld [vmem:[%s5027_s1 + $0x80] sm:$0xff]   ;;  %v3545_v29 = vld [vmem:[%s5027_s1 + $0x148] sm:$0xff]   ;;  %v3540_v37 = vld [vmem:[%s5028_s0 + $0x3f4] ss:$36 sps:$4 sm:$0xff]  }
   0xc   :  { %2967 = vmatprep.subr.bf16.mxu0 %v3506_v7  ;;  %3484 = vmatprep.subr.bf16.mxu1 %v3506_v7  ;;  %v3527_v25 = vld [vmem:[%s5027_s1 + $0x100] sm:$0xff]   ;;  %v3532_v30 = vld [vmem:[%s5028_s0 + $0x48] ss:$36 sps:$4 sm:$0xff]   ;;  %v3537_v38 = vld [vmem:[%s5027_s1 + $0x98] sm:$0xff]  }
   0xd   :  { %v3533_v31 = vld [vmem:[%s5028_s0 + $0x3a8] ss:$36 sps:$4 sm:$0xff]   ;;  %v3542_v39 = vld [vmem:[%s5028_s0 + $0x90] ss:$36 sps:$4 sm:$0xff]   ;;  %v3544_v41 = vld [vmem:[%s5027_s1 + $0xe0] sm:$0xff]  }
   0xe   :  { %v3547_v34 = vld [vmem:[%s5027_s1 + $0x108] sm:$0xff]   ;;  %v3543_v40 = vld [vmem:[%s5028_s0 + $0x3f0] ss:$36 sps:$4 sm:$0xff]   ;;  %v3546_v42 = vld [vmem:[%s5027_s1 + $0xa0] sm:$0xff]  }
   0xf   :  { %2968 = vmatpush3.bf16.msra.mxu0 %v3507_v8  ;;  %3492 = vmatpush3.bf16.msra.mxu1 %v3507_v8  ;;  %v3548_v43 = vld [vmem:[%s5027_s1 + $0xe8] sm:$0xff]   ;;  %v3559_v44 = vld [vmem:[%s5027_s1 + $0x150] sm:$0xff]   ;;  %v3550_v45 = vld [vmem:[%s5028_s0 + $0xdc] ss:$36 sps:$4 sm:$0xff]  }
  0x10   :  { %2969 = vmatprep.subr.bf16.mxu0 %v3508_v9  ;;  %3485 = vmatprep.subr.bf16.mxu1 %v3508_v9  ;;  %v3552_v46 = vld [vmem:[%s5028_s0 + $0x43c] ss:$36 sps:$4 sm:$0xff]   ;;  %v3561_v47 = vld [vmem:[%s5027_s1 + $0x110] sm:$0xff]   ;;  %v3549_v48 = vld [vmem:[%s5027_s1 + $0xa8] sm:$0xff]  }
  0x11   :  { %v3554_v49 = vld [vmem:[%s5028_s0 + $0xd8] ss:$36 sps:$4 sm:$0xff]   ;;  %v3556_v50 = vld [vmem:[%s5027_s1 + $0xf0] sm:$0xff]   ;;  %v319_v52 = vld [vmem:[%s5029_s2] sm:$0xff] }
  0x12   :  { %v3555_v51 = vld [vmem:[%s5028_s0 + $0x438] ss:$36 sps:$4 sm:$0xff]   ;;  %v3557_v53 = vld [vmem:[%s5027_s1 + $0xb0] sm:$0xff]   ;;  %353 = vperm.xlu0 %3498, %v319_v52   ;;  %v3562_v55 = vld [vmem:[%s5028_s0 + $0x124] ss:$36 sps:$4 sm:$0xff]  }
  0x13   :  { %2970 = vmatpush3.bf16.msra.mxu0 %v3509_v10  ;;  %3493 = vmatpush3.bf16.msra.mxu1 %v3509_v10  ;;  %v3558_v54 = vld [vmem:[%s5027_s1 + $0xf8] sm:$0xff]   ;;  %v3566_v56 = vld [vmem:[%s5028_s0 + $0xc] ss:$36 sps:$4 sm:$0xff]   ;;  %v3568_v63 = vld [vmem:[%s5027_s1 + $0x1c0] sm:$0xff]  }
  0x14   :  { %2971 = vmatprep.subr.bf16.mxu0 %v3510_v11  ;;  %3486 = vmatprep.subr.bf16.mxu1 %v3510_v11  ;;  %v3576_v57 = vld [vmem:[%s5027_s1 + $0x158] sm:$0xff]   ;;  %v321_v58 = vld [vmem:[%s5029_s2 + $0x10] sm:$0xff]  ;;  %v320_v61 = vld [vmem:[%s5029_s2 + $0x8] sm:$0xff] }
  0x15   :  { %v3577_v59 = vld [vmem:[%s5027_s1 + $0x118] sm:$0xff]   ;;  %v3564_v62 = vld [vmem:[%s5028_s0 + $0x8] ss:$36 sps:$4 sm:$0xff]   ;;  %v3567_v0 = vld [vmem:[%s5028_s0 + $0x120] ss:$36 sps:$4 sm:$0xff]   ;;  %363 = vperm.xlu1 %3499, %v321_v58  }
  0x16   :  { %v3560_v60 = vld [vmem:[%s5027_s1 + $0xb8] sm:$0xff]   ;;  %v3569_v1 = vld [vmem:[%s5027_s1 + $0x180] sm:$0xff]   ;;  %358 = vperm.xlu0 %3498, %v320_v61   ;;  %v3570_v3 = vld [vmem:[%s5028_s0 + $0x16c] ss:$36 sps:$4 sm:$0xff]  }
  0x17   :  { %2972 = vmatpush3.bf16.msra.mxu0 %v3511_v14  ;;  %3494 = vmatpush3.bf16.msra.mxu1 %v3511_v14  ;;  %v322_v2 = vld [vmem:[%s5029_s2 + $0x18] sm:$0xff]  ;;  %v323_v5 = vld [vmem:[%s5029_s2 + $0x20] sm:$0xff]  ;;  %v3584_v6 = vld [vmem:[%s5027_s1 + $0x1c8] sm:$0xff]  }
  0x18   :  { %2973 = vmatprep.subr.bf16.mxu0 %v3512_v15  ;;  %3487 = vmatprep.subr.bf16.mxu1 %v3512_v15  ;;  %v3572_v4 = vld [vmem:[%s5028_s0 + $0x54] ss:$36 sps:$4 sm:$0xff]   ;;  %v324_v7 = vld [vmem:[%s5029_s2 + $0x28] sm:$0xff]  ;;  %v3586_v8 = vld [vmem:[%s5027_s1 + $0x160] sm:$0xff]  }
  0x19   :  { %368 = vperm.xlu1 %3499, %v322_v2   ;;  %v3585_v9 = vld [vmem:[%s5027_s1 + $0x188] sm:$0xff]   ;;  %v3587_v10 = vld [vmem:[%s5027_s1 + $0x120] sm:$0xff]   ;;  %v325_v11 = vld [vmem:[%s5029_s2 + $0x30] sm:$0xff] }
  0x1a   :  { %373 = vperm.xlu0 %3498, %v323_v5   ;;  %v3574_v12 = vld [vmem:[%s5028_s0 + $0x168] ss:$36 sps:$4 sm:$0xff]   ;;  %v3575_v13 = vld [vmem:[%s5028_s0 + $0x50] ss:$36 sps:$4 sm:$0xff]   ;;  %v326_v14 = vld [vmem:[%s5029_s2 + $0x38] sm:$0xff] }
  0x1b   :  { %2974 = vmatpush3.bf16.msra.mxu0 %v3513_v16  ;;  %3495 = vmatpush3.bf16.msra.mxu1 %v3513_v16  ;;  %v3578_v15 = vld [vmem:[%s5028_s0 + $0x1b4] ss:$36 sps:$4 sm:$0xff]   ;;  %v3580_v16 = vld [vmem:[%s5028_s0 + $0x9c] ss:$36 sps:$4 sm:$0xff]   ;;  %v340_v52 = vld [vmem:[%s5029_s2 + $0xa8] sm:$0xff] }
  0x1c   :  { %2975 = vmatprep.subr.bf16.mxu0 %v3514_v17  ;;  %3488 = vmatprep.subr.bf16.mxu1 %v3514_v17  ;;  %v327_v17 = vld [vmem:[%s5029_s2 + $0x40] sm:$0xff]  ;;  %v3612_v58 = vld [vmem:[%s5028_s0 + $0x2d4] ss:$36 sps:$4 sm:$0xff]  }
  0x1d   :  { %378 = vperm.xlu1 %3499, %v324_v7   ;;  %v3614_v61 = vld [vmem:[%s5028_s0 + $0x1bc] ss:$36 sps:$4 sm:$0xff]   ;;  %v3650_v7 = vld [vmem:[%s5027_s1 + $0x1a8] sm:$0xff]  }
  0x1e   :  { %383 = vperm.xlu0 %3498, %v325_v11   ;;  %v3620_v2 = vld [vmem:[%s5028_s0 + $0x31c] ss:$36 sps:$4 sm:$0xff]  }
  0x1f   :  { %2976 = vmatpush3.bf16.msra.mxu0 %v3515_v18  ;;  %3496 = vmatpush3.bf16.msra.mxu1 %v3515_v18  ;;  %v328_v18 = vld [vmem:[%s5029_s2 + $0x48] sm:$0xff]  ;;  %v346_v5 = vld [vmem:[%s5029_s2 + $0xd8] sm:$0xff]  ;;  %v3625_v11 = vld [vmem:[%s5028_s0 + $0x200] ss:$36 sps:$4 sm:$0xff]  }
  0x20   :  { %3073 = vmatprep.subr.bf16.mxu1 %v3522_v19  ;;  %3185 = vmatprep.subr.bf16.mxu0 %v3525_v22  ;;  %v3600_v19 = vld [vmem:[%s5027_s1 + $0x168] sm:$0xff]   ;;  %v329_v22 = vld [vmem:[%s5029_s2 + $0x50] sm:$0xff] }
  0x21   :  { %388 = vperm.xlu1 %3499, %v326_v14   ;;  %v349_v14 = vld [vmem:[%s5029_s2 + $0xf0] sm:$0xff] }
  0x22   :  { %1712 = vmatmul.mubr.bf16.vlgmr.msra.gmra.mrb[0].mxu0 %v3516_v20  ;;  %1808 = vmatmul.mubr.bf16.vlgmr.msra.gmra.mrb[0].mxu1 %v3519_v21  ;;  %v3582_v20 = vld [vmem:[%s5028_s0 + $0x1b0] ss:$36 sps:$4 sm:$0xff]   ;;  %v3583_v21 = vld [vmem:[%s5028_s0 + $0x98] ss:$36 sps:$4 sm:$0xff]  }
  0x23   :  { %3074 = vmatpush3.bf16.msra.mxu1 %v3523_v23  ;;  %3186 = vmatpush3.bf16.msra.mxu0 %v3527_v25  ;;  %v3601_v23 = vld [vmem:[%s5027_s1 + $0x1d0] sm:$0xff]   ;;  %v330_v25 = vld [vmem:[%s5029_s2 + $0x58] sm:$0xff] }
  0x24   :  { %3075 = vmatprep.subr.bf16.mxu1 %v3524_v24  ;;  %1719 = vmatprep.mubr.bf16.mxu0 %v3528_v26  ;;  %v3602_v24 = vld [vmem:[%s5027_s1 + $0x128] sm:$0xff]   ;;  %v3603_v26 = vld [vmem:[%s5027_s1 + $0x190] sm:$0xff]  }
  0x25   :  { %1815 = vmatprep.mubr.bf16.mxu1 %v3530_v27  ;;  %3187 = vmatprep.subr.bf16.mxu0 %v3545_v29  ;;  %v3588_v27 = vld [vmem:[%s5028_s0 + $0x1fc] ss:$36 sps:$4 sm:$0xff]  }
  0x26   :  { %393 = vperm.xlu0 %3498, %v327_v17   ;;  %398 = vperm.xlu1 %3499, %v328_v18   ;;  %v331_v29 = vld [vmem:[%s5029_s2 + $0x60] sm:$0xff]  ;;  %v3665_v17 = vld [vmem:[%s5027_s1 + $0x1b0] sm:$0xff]  }
  0x27   :  { %3076 = vmatpush3.bf16.msra.mxu1 %v3526_v28  ;;  %3188 = vmatpush3.bf16.msra.mxu0 %v3547_v34  ;;  %v3590_v28 = vld [vmem:[%s5028_s0 + $0xe4] ss:$36 sps:$4 sm:$0xff]   ;;  %v333_v34 = vld [vmem:[%s5029_s2 + $0x70] sm:$0xff] }
  0x28   :  { %3077 = vmatprep.subr.bf16.mxu1 %v3534_v32  ;;  %3189 = vmatprep.subr.bf16.mxu0 %v3559_v44  ;;  %v3592_v32 = vld [vmem:[%s5028_s0 + $0x1f8] ss:$36 sps:$4 sm:$0xff]   ;;  %v3599_v44 = vld [vmem:[%s5028_s0 + $0x128] ss:$36 sps:$4 sm:$0xff]   ;;  %v3630_v18 = vld [vmem:[%s5028_s0 + $0x10] ss:$36 sps:$4 sm:$0xff]  }
  0x2a   :  { %1720 = vmatmul.mubr.bf16.gmra.mrb[4].mxu0 %v3532_v30  ;;  %1816 = vmatmul.mubr.bf16.gmra.mrb[4].mxu1 %v3533_v31  ;;  %v332_v30 = vld [vmem:[%s5029_s2 + $0x68] sm:$0xff]  ;;  %v3610_v31 = vld [vmem:[%s5027_s1 + $0x170] sm:$0xff]  }
  0x2b   :  { %3078 = vmatpush3.bf16.msra.mxu1 %v3535_v33  ;;  %1727 = vmatprep.mubr.bf16.mxu0 %v3538_v36  ;;  %v3593_v33 = vld [vmem:[%s5028_s0 + $0xe0] ss:$36 sps:$4 sm:$0xff]   ;;  %v334_v36 = vld [vmem:[%s5029_s2 + $0x78] sm:$0xff] }
  0x2c   :  { %3079 = vmatprep.subr.bf16.mxu1 %v3536_v35  ;;  %1823 = vmatprep.mubr.bf16.mxu1 %v3540_v37  ;;  %v3611_v35 = vld [vmem:[%s5027_s1 + $0x130] sm:$0xff]   ;;  %v3594_v37 = vld [vmem:[%s5028_s0 + $0x244] ss:$36 sps:$4 sm:$0xff]  }
  0x2d   :  { %3190 = vmatpush3.bf16.msra.mxu0 %v3561_v47  ;;  %403 = vperm.xlu0 %3498, %v329_v22   ;;  %v338_v47 = vld [vmem:[%s5029_s2 + $0x98] sm:$0xff] }
  0x2e   :  { %3191 = vmatprep.subr.bf16.mxu0 %v3576_v57  ;;  %408 = vperm.xlu1 %3499, %v330_v25   ;;  %v3634_v57 = vld [vmem:[%s5027_s1 + $0x1e0] sm:$0xff]   ;;  %v3679_v22 = vld [vmem:[%s5027_s1 + $0x1f8] sm:$0xff]   ;;  %v3666_v25 = vld [vmem:[%s5027_s1 + $0x210] sm:$0xff]  }
  0x2f   :  { %3080 = vmatpush3.bf16.msra.mxu1 %v3537_v38  ;;  %v3596_v38 = vld [vmem:[%s5028_s0 + $0x12c] ss:$36 sps:$4 sm:$0xff]  }
  0x30   :  { %3081 = vmatprep.subr.bf16.mxu1 %v3544_v41  ;;  %v336_v41 = vld [vmem:[%s5029_s2 + $0x88] sm:$0xff] }
  0x31   :  { %3192 = vmatpush3.bf16.msra.mxu0 %v3577_v59  ;;  %413 = vperm.xlu0 %3498, %v331_v29   ;;  %v3635_v59 = vld [vmem:[%s5027_s1 + $0x1a0] sm:$0xff]  }
  0x32   :  { %1728 = vmatmul.mubr.bf16.gmra.mrb[8].mxu0 %v3542_v39  ;;  %1824 = vmatmul.mubr.bf16.gmra.mrb[8].mxu1 %v3543_v40  ;;  %v335_v39 = vld [vmem:[%s5029_s2 + $0x80] sm:$0xff]  ;;  %v3618_v40 = vld [vmem:[%s5027_s1 + $0x1d8] sm:$0xff]  }
  0x33   :  { %3082 = vmatpush3.bf16.msra.mxu1 %v3546_v42  ;;  %1735 = vmatprep.mubr.bf16.mxu0 %v3550_v45  ;;  %v3619_v42 = vld [vmem:[%s5027_s1 + $0x198] sm:$0xff]   ;;  %v3604_v45 = vld [vmem:[%s5028_s0 + $0x28c] ss:$36 sps:$4 sm:$0xff]   ;;  %v3645_v29 = vld [vmem:[%s5028_s0 + $0xa4] ss:$36 sps:$4 sm:$0xff]  }
  0x34   :  { %3083 = vmatprep.subr.bf16.mxu1 %v3548_v43  ;;  %1831 = vmatprep.mubr.bf16.mxu1 %v3552_v46  ;;  %v3598_v43 = vld [vmem:[%s5028_s0 + $0x240] ss:$36 sps:$4 sm:$0xff]   ;;  %v337_v46 = vld [vmem:[%s5029_s2 + $0x90] sm:$0xff] }
  0x35   :  { %3193 = vmatprep.subr.bf16.mxu0 %v3586_v8  ;;  %418 = vperm.xlu1 %3499, %v332_v30   ;;  %v347_v8 = vld [vmem:[%s5029_s2 + $0xe0] sm:$0xff]  ;;  %v3681_v30 = vld [vmem:[%s5027_s1 + $0x218] sm:$0xff]  }
  0x36   :  { %3194 = vmatpush3.bf16.msra.mxu0 %v3587_v10  ;;  %423 = vperm.xlu0 %3498, %v333_v34   ;;  %v3624_v10 = vld [vmem:[%s5028_s0 + $0x318] ss:$36 sps:$4 sm:$0xff]   ;;  %v3652_v34 = vld [vmem:[%s5028_s0 + $0x324] ss:$36 sps:$4 sm:$0xff]  }
  0x37   :  { %3084 = vmatpush3.bf16.msra.mxu1 %v3549_v48  ;;  %3195 = vmatprep.subr.bf16.mxu0 %v3600_v19  ;;  %v3606_v48 = vld [vmem:[%s5028_s0 + $0x174] ss:$36 sps:$4 sm:$0xff]   ;;  %v3633_v19 = vld [vmem:[%s5028_s0 + $0x248] ss:$36 sps:$4 sm:$0xff]  }
  0x38   :  { %3085 = vmatprep.subr.bf16.mxu1 %v3556_v50  ;;  %v3627_v50 = vld [vmem:[%s5027_s1 + $0x138] sm:$0xff]  }
  0x39   :  { %428 = vperm.xlu1 %3499, %v334_v36   ;;  %v3707_v36 = vld [vmem:[%s5027_s1 + $0x228] sm:$0xff]  }
  0x3a   :  { %1736 = vmatmul.mubr.bf16.gmra.mrb[12].mxu0 %v3554_v49  ;;  %1832 = vmatmul.mubr.bf16.gmra.mrb[12].mxu1 %v3555_v51  ;;  %v3626_v49 = vld [vmem:[%s5027_s1 + $0x178] sm:$0xff]   ;;  %v339_v51 = vld [vmem:[%s5029_s2 + $0xa0] sm:$0xff] }
  0x3b   :  { %3086 = vmatpush3.bf16.msra.mxu1 %v3557_v53  ;;  %1743 = vmatprep.mubr.bf16.mxu0 %v3562_v55  ;;  %v341_v53 = vld [vmem:[%s5029_s2 + $0xb0] sm:$0xff] }
  0x3c   :  { %3087 = vmatprep.subr.bf16.mxu1 %v3558_v54  ;;  %1872 = vmatprep.mubr.bf16.mxu1 %v3566_v56  ;;  %v3608_v54 = vld [vmem:[%s5028_s0 + $0x288] ss:$36 sps:$4 sm:$0xff]   ;;  %v3609_v55 = vld [vmem:[%s5028_s0 + $0x170] ss:$36 sps:$4 sm:$0xff]   ;;  %v342_v56 = vld [vmem:[%s5029_s2 + $0xb8] sm:$0xff] }
  0x3d   :  { %3196 = vmatpush3.bf16.msra.mxu0 %v3602_v24  ;;  %433 = vperm.xlu0 %3498, %v335_v39   ;;  %v3680_v24 = vld [vmem:[%s5027_s1 + $0x1b8] sm:$0xff]   ;;  %v3657_v39 = vld [vmem:[%s5028_s0 + $0xe8] ss:$36 sps:$4 sm:$0xff]  }
  0x3e   :  { %3197 = vmatprep.subr.bf16.mxu0 %v3610_v31  ;;  %438 = vperm.xlu1 %3499, %v336_v41   ;;  %v3647_v31 = vld [vmem:[%s5028_s0 + $0x2d8] ss:$36 sps:$4 sm:$0xff]  }
  0x3f   :  { %3088 = vmatpush3.bf16.msra.mxu1 %v3560_v60  ;;  %v3636_v60 = vld [vmem:[%s5027_s1 + $0x200] sm:$0xff]   ;;  %v3660_v41 = vld [vmem:[%s5028_s0 + $0x134] ss:$36 sps:$4 sm:$0xff]  }
  0x40   :  { %3297 = vmatprep.subr.bf16.mxu1 %v3568_v63  ;;  %v344_v63 = vld [vmem:[%s5029_s2 + $0xc8] sm:$0xff] }
  0x41   :  { %3198 = vmatpush3.bf16.msra.mxu0 %v3611_v35  ;;  %443 = vperm.xlu0 %3498, %v337_v46   ;;  %v3654_v35 = vld [vmem:[%s5028_s0 + $0xec] ss:$36 sps:$4 sm:$0xff]   ;;  %v3669_v46 = vld [vmem:[%s5028_s0 + $0x17c] ss:$36 sps:$4 sm:$0xff]  }
  0x42   :  { %1744 = vmatmul.mubr.bf16.gmra.mrb[16].mxu0 %v3567_v0  ;;  %1873 = vmatmul.mubr.bf16.vlgmr.msra.gmra.mrb[16].mxu1 %v3564_v62  ;;  %v343_v62 = vld [vmem:[%s5029_s2 + $0xc0] sm:$0xff]  ;;  %v3616_v0 = vld [vmem:[%s5028_s0 + $0x2d0] ss:$36 sps:$4 sm:$0xff]  }
  0x43   :  { %3298 = vmatpush3.bf16.msra.mxu1 %v3569_v1  ;;  %1751 = vmatprep.mubr.bf16.mxu0 %v3570_v3  ;;  %v3617_v1 = vld [vmem:[%s5028_s0 + $0x1b8] ss:$36 sps:$4 sm:$0xff]   ;;  %v3622_v3 = vld [vmem:[%s5028_s0 + $0x204] ss:$36 sps:$4 sm:$0xff]  }
  0x44   :  { %1880 = vmatprep.mubr.bf16.mxu1 %v3572_v4  ;;  %3299 = vmatprep.subr.bf16.mxu1 %v3584_v6  ;;  %v345_v4 = vld [vmem:[%s5029_s2 + $0xd0] sm:$0xff]  ;;  %v3649_v6 = vld [vmem:[%s5027_s1 + $0x1e8] sm:$0xff]  }
  0x45   :  { %448 = vperm.xlu1 %3499, %v338_v47   ;;  %3199 = vmatprep.subr.bf16.mxu0 %v3626_v49  ;;  %v3671_v47 = vld [vmem:[%s5028_s0 + $0x3b0] ss:$36 sps:$4 sm:$0xff]   ;;  %v3673_v49 = vld [vmem:[%s5028_s0 + $0x3fc] ss:$36 sps:$4 sm:$0xff]  }
  0x46   :  { %453 = vperm.xlu0 %3498, %v339_v51   ;;  %3200 = vmatpush3.bf16.msra.mxu0 %v3627_v50  ;;  %v3675_v50 = vld [vmem:[%s5028_s0 + $0x1c4] ss:$36 sps:$4 sm:$0xff]   ;;  %v3677_v51 = vld [vmem:[%s5028_s0 + $0x3f8] ss:$36 sps:$4 sm:$0xff]  }
  0x47   :  { %3300 = vmatpush3.bf16.msra.mxu1 %v3585_v9  ;;  %3433 = vmatprep.subr.bf16.mxu0 %v3636_v60  ;;  %v348_v9 = vld [vmem:[%s5029_s2 + $0xe8] sm:$0xff] }
  0x48   :  { %3301 = vmatprep.subr.bf16.mxu1 %v3601_v23  ;;  %v3651_v23 = vld [vmem:[%s5027_s1 + $0x208] sm:$0xff]  }
  0x49   :  { %458 = vperm.xlu1 %3499, %v340_v52   ;;  %v3678_v52 = vld [vmem:[%s5028_s0 + $0x1c0] ss:$36 sps:$4 sm:$0xff]  }
  0x4a   :  { %1752 = vmatmul.mubr.bf16.gmra.mrb[20].mxu0 %v3574_v12  ;;  %1881 = vmatmul.mubr.bf16.gmra.mrb[20].mxu1 %v3575_v13  ;;  %v3628_v12 = vld [vmem:[%s5028_s0 + $0x24c] ss:$36 sps:$4 sm:$0xff]   ;;  %v3632_v13 = vld [vmem:[%s5028_s0 + $0x14] ss:$36 sps:$4 sm:$0xff]  }
  0x4b   :  { %1759 = vmatprep.mubr.bf16.mxu0 %v3578_v15  ;;  %1888 = vmatprep.mubr.bf16.mxu1 %v3580_v16  ;;  %v350_v15 = vld [vmem:[%s5029_s2 + $0xf8] sm:$0xff]  ;;  %v3664_v16 = vld [vmem:[%s5027_s1 + $0x1f0] sm:$0xff]  }
  0x4c   :  { %3302 = vmatpush3.bf16.msra.mxu1 %v3603_v26  ;;  %463 = vperm.xlu0 %3498, %v341_v53   ;;  %v3641_v26 = vld [vmem:[%s5028_s0 + $0x290] ss:$36 sps:$4 sm:$0xff]   ;;  %v3682_v53 = vld [vmem:[%s5028_s0 + $0x444] ss:$36 sps:$4 sm:$0xff]  }
  0x4d   :  { %3303 = vmatprep.subr.bf16.mxu1 %v3618_v40  ;;  %468 = vperm.xlu1 %3499, %v342_v56   ;;  %v3658_v40 = vld [vmem:[%s5028_s0 + $0x36c] ss:$36 sps:$4 sm:$0xff]  }
  0x4e   :  { %v3687_v56 = vld [vmem:[%s5028_s0 + $0x208] ss:$36 sps:$4 sm:$0xff]  }
  0x50   :  { %3304 = vmatpush3.bf16.msra.mxu1 %v3619_v42  ;;  %473 = vperm.xlu0 %3498, %v343_v62   ;;  %v3733_v42 = vld [vmem:[%s5027_s1 + $0x238] sm:$0xff]   ;;  %v3697_v62 = vld [vmem:[%s5028_s0 + $0x64] ss:$36 sps:$4 sm:$0xff]  }
  0x51   :  { %3305 = vmatprep.subr.bf16.mxu1 %v3634_v57  ;;  %478 = vperm.xlu1 %3499, %v344_v63   ;;  %v3688_v57 = vld [vmem:[%s5028_s0 + $0x254] ss:$36 sps:$4 sm:$0xff]  }
  0x52   :  { %1760 = vmatmul.mubr.bf16.gmra.mrb[24].mxu0 %v3582_v20  ;;  %1889 = vmatmul.mubr.bf16.gmra.mrb[24].mxu1 %v3583_v21  ;;  %v3637_v20 = vld [vmem:[%s5028_s0 + $0x294] ss:$36 sps:$4 sm:$0xff]   ;;  %v3639_v21 = vld [vmem:[%s5028_s0 + $0x5c] ss:$36 sps:$4 sm:$0xff]  }
  0x53   :  { %1767 = vmatprep.mubr.bf16.mxu0 %v3588_v27  ;;  %1896 = vmatprep.mubr.bf16.mxu1 %v3590_v28  ;;  %v3642_v27 = vld [vmem:[%s5028_s0 + $0x58] ss:$36 sps:$4 sm:$0xff]  }
  0x54   :  { %3306 = vmatpush3.bf16.msra.mxu1 %v3635_v59  ;;  %483 = vperm.xlu0 %3498, %v345_v4   ;;  %v3643_v28 = vld [vmem:[%s5028_s0 + $0x2dc] ss:$36 sps:$4 sm:$0xff]   ;;  %v3706_v4 = vld [vmem:[%s5028_s0 + $0xa8] ss:$36 sps:$4 sm:$0xff]  }
  0x55   :  { %3307 = vmatprep.subr.bf16.mxu1 %v3649_v6  ;;  %488 = vperm.xlu1 %3499, %v346_v5   ;;  %v3690_v59 = vld [vmem:[%s5028_s0 + $0x18] ss:$36 sps:$4 sm:$0xff]   ;;  %v3708_v5 = vld [vmem:[%s5028_s0 + $0x32c] ss:$36 sps:$4 sm:$0xff]  }
  0x56   :  { %v3699_v63 = vld [vmem:[%s5028_s0 + $0x298] ss:$36 sps:$4 sm:$0xff]  }
  0x57   :  { %v3710_v6 = vld [vmem:[%s5028_s0 + $0xf4] ss:$36 sps:$4 sm:$0xff]  }
  0x58   :  { %3308 = vmatpush3.bf16.msra.mxu1 %v3650_v7  ;;  %493 = vperm.xlu0 %3498, %v347_v8   ;;  %v3712_v7 = vld [vmem:[%s5028_s0 + $0x328] ss:$36 sps:$4 sm:$0xff]   ;;  %v3713_v8 = vld [vmem:[%s5028_s0 + $0xf0] ss:$36 sps:$4 sm:$0xff]  }
  0x59   :  { %498 = vperm.xlu1 %3499, %v348_v9   ;;  %3309 = vmatprep.subr.bf16.mxu1 %v3664_v16  ;;  %v3714_v9 = vld [vmem:[%s5028_s0 + $0x374] ss:$36 sps:$4 sm:$0xff]   ;;  %v3726_v16 = vld [vmem:[%s5028_s0 + $0x180] ss:$36 sps:$4 sm:$0xff]  }
  0x5a   :  { %1768 = vmatmul.mubr.bf16.gmra.mrb[28].mxu0 %v3592_v32  ;;  %1897 = vmatmul.mubr.bf16.gmra.mrb[28].mxu1 %v3593_v33  ;;  %v3648_v32 = vld [vmem:[%s5028_s0 + $0xa0] ss:$36 sps:$4 sm:$0xff]  }
  0x5b   :  { %1775 = vmatprep.mubr.bf16.mxu0 %v3594_v37  ;;  %1904 = vmatprep.mubr.bf16.mxu1 %v3596_v38  ;;  %v3694_v33 = vld [vmem:[%s5027_s1 + $0x220] sm:$0xff]   ;;  %v3720_v37 = vld [vmem:[%s5027_s1 + $0x230] sm:$0xff]  }
  0x5c   :  { %503 = vperm.xlu0 %3498, %v349_v14   ;;  %3310 = vmatpush3.bf16.msra.mxu1 %v3665_v17  ;;  %v3656_v38 = vld [vmem:[%s5028_s0 + $0x320] ss:$36 sps:$4 sm:$0xff]  }
  0x5d   :  { %508 = vperm.xlu1 %3499, %v350_v15   ;;  %3311 = vmatprep.subr.bf16.mxu1 %v3679_v22  ;;  %v3723_v14 = vld [vmem:[%s5028_s0 + $0x184] ss:$36 sps:$4 sm:$0xff]   ;;  %v3725_v15 = vld [vmem:[%s5028_s0 + $0x3b8] ss:$36 sps:$4 sm:$0xff]  }
  0x5e   :  { %v3727_v17 = vld [vmem:[%s5028_s0 + $0x404] ss:$36 sps:$4 sm:$0xff]   ;;  %v3736_v22 = vld [vmem:[%s5028_s0 + $0x214] ss:$36 sps:$4 sm:$0xff]  }
  0x60   :  { %3312 = vmatpush3.bf16.msra.mxu1 %v3680_v24 }
  0x62   :  { %1776 = vmatmul.mubr.bf16.gmra.mrb[32].mxu0 %v3598_v43  ;;  %1905 = vmatmul.mubr.bf16.gmra.mrb[32].mxu1 %v3599_v44  ;;  %v3662_v43 = vld [vmem:[%s5028_s0 + $0x368] ss:$36 sps:$4 sm:$0xff]   ;;  %v3663_v44 = vld [vmem:[%s5028_s0 + $0x130] ss:$36 sps:$4 sm:$0xff]  }
  0x63   :  { %1783 = vmatprep.mubr.bf16.mxu0 %v3604_v45  ;;  %1912 = vmatprep.mubr.bf16.mxu1 %v3606_v48  ;;  %v3667_v45 = vld [vmem:[%s5028_s0 + $0x3b4] ss:$36 sps:$4 sm:$0xff]  }
  0x64   :  { %v3672_v48 = vld [vmem:[%s5028_s0 + $0x178] ss:$36 sps:$4 sm:$0xff]  }
  0x6a   :  { %1784 = vmatmul.mubr.bf16.gmra.mrb[36].mxu0 %v3608_v54  ;;  %1913 = vmatmul.mubr.bf16.gmra.mrb[36].mxu1 %v3609_v55  ;;  %v3684_v54 = vld [vmem:[%s5028_s0 + $0x20c] ss:$36 sps:$4 sm:$0xff]   ;;  %v3686_v55 = vld [vmem:[%s5028_s0 + $0x440] ss:$36 sps:$4 sm:$0xff]  }
  0x6b   :  { %1791 = vmatprep.mubr.bf16.mxu0 %v3612_v58  ;;  %1920 = vmatprep.mubr.bf16.mxu1 %v3614_v61  ;;  %v3692_v58 = vld [vmem:[%s5028_s0 + $0x1c] ss:$36 sps:$4 sm:$0xff]  }
  0x6c   :  { %v3695_v61 = vld [vmem:[%s5028_s0 + $0x29c] ss:$36 sps:$4 sm:$0xff]  }
  0x72   :  { %1792 = vmatmul.mubr.bf16.gmra.mrb[40].mxu0 %v3616_v0  ;;  %1921 = vmatmul.mubr.bf16.gmra.mrb[40].mxu1 %v3617_v1  ;;  %v3700_v0 = vld [vmem:[%s5028_s0 + $0x60] ss:$36 sps:$4 sm:$0xff]  }
  0x73   :  { %1799 = vmatprep.mubr.bf16.mxu0 %v3620_v2  ;;  %1928 = vmatprep.mubr.bf16.mxu1 %v3622_v3  ;;  %v3701_v1 = vld [vmem:[%s5028_s0 + $0x2e4] ss:$36 sps:$4 sm:$0xff]   ;;  %v3703_v2 = vld [vmem:[%s5028_s0 + $0xac] ss:$36 sps:$4 sm:$0xff]  }
  0x74   :  { %v3705_v3 = vld [vmem:[%s5028_s0 + $0x2e0] ss:$36 sps:$4 sm:$0xff]  }
  0x7a   :  { %1800 = vmatmul.mubr.bf16.gmra.mrb[44].mxu0 %v3624_v10  ;;  %1929 = vmatmul.mubr.bf16.gmra.mrb[44].mxu1 %v3625_v11  ;;  %v3716_v10 = vld [vmem:[%s5028_s0 + $0x13c] ss:$36 sps:$4 sm:$0xff]   ;;  %v3718_v11 = vld [vmem:[%s5028_s0 + $0x370] ss:$36 sps:$4 sm:$0xff]  }
  0x7b   :  { %1936 = vmatprep.mubr.bf16.mxu1 %v3628_v12  ;;  %2033 = vmatprep.mubr.bf16.mxu0 %v3632_v13  ;;  %v3719_v12 = vld [vmem:[%s5028_s0 + $0x138] ss:$36 sps:$4 sm:$0xff]  }
  0x7c   :  { %v3721_v13 = vld [vmem:[%s5028_s0 + $0x3bc] ss:$36 sps:$4 sm:$0xff]  }
  0x82   :  { %1937 = vmatmul.mubr.bf16.gmra.mrb[48].mxu1 %v3633_v19  ;;  %2034 = vmatmul.mubr.bf16.vlgmr.msra.gmra.mrb[48].mxu0 %v3630_v18  ;;  %v3729_v18 = vld [vmem:[%s5028_s0 + $0x1cc] ss:$36 sps:$4 sm:$0xff]   ;;  %v3731_v19 = vld [vmem:[%s5028_s0 + $0x400] ss:$36 sps:$4 sm:$0xff]  }
  0x83   :  { %3434 = vmatpush3.bf16.msra.mxu0 %v3636_v60  ;;  %1944 = vmatprep.mubr.bf16.mxu1 %v3637_v20  ;;  %v3693_v60 = vld [vmem:[%s5028_s0 + $0x250] ss:$36 sps:$4 sm:$0xff]   ;;  %v3732_v20 = vld [vmem:[%s5028_s0 + $0x1c8] ss:$36 sps:$4 sm:$0xff]  }
  0x84   :  { %2041 = vmatprep.mubr.bf16.mxu0 %v3639_v21  ;;  %3435 = vmatprep.subr.bf16.mxu0 %v3651_v23  ;;  %v3734_v21 = vld [vmem:[%s5028_s0 + $0x44c] ss:$36 sps:$4 sm:$0xff]  }
  0x87   :  { %3436 = vmatpush3.bf16.msra.mxu0 %v3651_v23 }
  0x88   :  { %3437 = vmatprep.subr.bf16.mxu0 %v3666_v25 }
  0x8a   :  { %1945 = vmatmul.mubr.bf16.gmra.mrb[52].mxu1 %v3641_v26  ;;  %2042 = vmatmul.mubr.bf16.gmra.mrb[52].mxu0 %v3642_v27  ;;  %v3738_v27 = vld [vmem:[%s5028_s0 + $0x448] ss:$36 sps:$4 sm:$0xff]  }
  0x8b   :  { %1952 = vmatprep.mubr.bf16.mxu1 %v3643_v28  ;;  %2049 = vmatprep.mubr.bf16.mxu0 %v3645_v29  ;;  %v3739_v28 = vld [vmem:[%s5028_s0 + $0x210] ss:$36 sps:$4 sm:$0xff]  }
  0x8c   :  { %3438 = vmatpush3.bf16.msra.mxu0 %v3666_v25 }
  0x8d   :  { %3439 = vmatprep.subr.bf16.mxu0 %v3681_v30 }
  0x90   :  { %3440 = vmatpush3.bf16.msra.mxu0 %v3681_v30 }
  0x91   :  { %3441 = vmatprep.subr.bf16.mxu0 %v3694_v33 }
  0x92   :  { %1953 = vmatmul.mubr.bf16.gmra.mrb[56].mxu1 %v3647_v31  ;;  %2050 = vmatmul.mubr.bf16.gmra.mrb[56].mxu0 %v3648_v32 }
  0x93   :  { %1960 = vmatprep.mubr.bf16.mxu1 %v3652_v34  ;;  %2057 = vmatprep.mubr.bf16.mxu0 %v3654_v35  ;;  %v3742_v34 = vld [vmem:[%s5028_s0 + $0x20] ss:$36 sps:$4 sm:$0xff]  }
  0x94   :  { %3442 = vmatpush3.bf16.msra.mxu0 %v3694_v33  ;;  %v3740_v33 = vld [vmem:[%s5028_s0 + $0x25c] ss:$36 sps:$4 sm:$0xff]  }
  0x95   :  { %3443 = vmatprep.subr.bf16.mxu0 %v3707_v36 }
  0x98   :  { %3444 = vmatpush3.bf16.msra.mxu0 %v3707_v36 }
  0x99   :  { %3445 = vmatprep.subr.bf16.mxu0 %v3720_v37 }
  0x9a   :  { %1961 = vmatmul.mubr.bf16.gmra.mrb[60].mxu1 %v3656_v38  ;;  %2058 = vmatmul.mubr.bf16.gmra.mrb[60].mxu0 %v3657_v39 }
  0x9b   :  { %1968 = vmatprep.mubr.bf16.mxu1 %v3658_v40  ;;  %2065 = vmatprep.mubr.bf16.mxu0 %v3660_v41 }
  0x9c   :  { %3446 = vmatpush3.bf16.msra.mxu0 %v3720_v37 }
  0x9d   :  { %3447 = vmatprep.subr.bf16.mxu0 %v3733_v42 }
  0xa0   :  { %3448 = vmatpush3.bf16.msra.mxu0 %v3733_v42 }
  0xa2   :  { %1969 = vmatmul.mubr.bf16.gmra.mrb[64].mxu1 %v3662_v43  ;;  %2066 = vmatmul.mubr.bf16.gmra.mrb[64].mxu0 %v3663_v44  ;;  %v3743_v43 = vld [vmem:[%s5028_s0 + $0x258] ss:$36 sps:$4 sm:$0xff]   ;;  %v3744_v44 = vld [vmem:[%s5028_s0 + $0x68] ss:$36 sps:$4 sm:$0xff]  }
  0xa3   :  { %1976 = vmatprep.mubr.bf16.mxu1 %v3667_v45  ;;  %2073 = vmatprep.mubr.bf16.mxu0 %v3669_v46 }
  0xaa   :  { %1977 = vmatmul.mubr.bf16.gmra.mrb[68].mxu1 %v3671_v47  ;;  %2074 = vmatmul.mubr.bf16.gmra.mrb[68].mxu0 %v3672_v48 }
  0xab   :  { %1984 = vmatprep.mubr.bf16.mxu1 %v3673_v49  ;;  %2081 = vmatprep.mubr.bf16.mxu0 %v3675_v50  ;;  %v3745_v49 = vld [vmem:[%s5028_s0 + $0x2a4] ss:$36 sps:$4 sm:$0xff]   ;;  %v3747_v50 = vld [vmem:[%s5028_s0 + $0xb0] ss:$36 sps:$4 sm:$0xff]  }
  0xb2   :  { %1985 = vmatmul.mubr.bf16.gmra.mrb[72].mxu1 %v3677_v51  ;;  %2082 = vmatmul.mubr.bf16.gmra.mrb[72].mxu0 %v3678_v52 }
  0xb3   :  { %1992 = vmatprep.mubr.bf16.mxu1 %v3682_v53  ;;  %2089 = vmatprep.mubr.bf16.mxu0 %v3684_v54 }
  0xba   :  { %1993 = vmatmul.mubr.bf16.gmra.mrb[76].mxu1 %v3686_v55  ;;  %2090 = vmatmul.mubr.bf16.gmra.mrb[76].mxu0 %v3687_v56 }
  0xbb   :  { %2097 = vmatprep.mubr.bf16.mxu0 %v3688_v57  ;;  %2194 = vmatprep.mubr.bf16.mxu1 %v3692_v58 }
  0xc2   :  { %2098 = vmatmul.mubr.bf16.gmra.mrb[80].mxu0 %v3693_v60  ;;  %2195 = vmatmul.mubr.bf16.vlgmr.msra.gmra.mrb[80].mxu1 %v3690_v59  ;;  %v3748_v59 = vld [vmem:[%s5028_s0 + $0x2a0] ss:$36 sps:$4 sm:$0xff]   ;;  %v3749_v60 = vld [vmem:[%s5028_s0 + $0xf8] ss:$36 sps:$4 sm:$0xff]  }
  0xc3   :  { %2105 = vmatprep.mubr.bf16.mxu0 %v3695_v61  ;;  %2202 = vmatprep.mubr.bf16.mxu1 %v3697_v62 }
  0xca   :  { %2106 = vmatmul.mubr.bf16.gmra.mrb[84].mxu0 %v3699_v63  ;;  %2203 = vmatmul.mubr.bf16.gmra.mrb[84].mxu1 %v3700_v0 }
  0xcb   :  { %2113 = vmatprep.mubr.bf16.mxu0 %v3701_v1  ;;  %2210 = vmatprep.mubr.bf16.mxu1 %v3703_v2  ;;  %v3750_v1 = vld [vmem:[%s5028_s0 + $0x2ec] ss:$36 sps:$4 sm:$0xff]   ;;  %v3752_v2 = vld [vmem:[%s5028_s0 + $0x140] ss:$36 sps:$4 sm:$0xff]  }
  0xd2   :  { %2114 = vmatmul.mubr.bf16.gmra.mrb[88].mxu0 %v3705_v3  ;;  %2211 = vmatmul.mubr.bf16.gmra.mrb[88].mxu1 %v3706_v4 }
  0xd3   :  { %2121 = vmatprep.mubr.bf16.mxu0 %v3708_v5  ;;  %2218 = vmatprep.mubr.bf16.mxu1 %v3710_v6 }
  0xda   :  { %2122 = vmatmul.mubr.bf16.gmra.mrb[92].mxu0 %v3712_v7  ;;  %2219 = vmatmul.mubr.bf16.gmra.mrb[92].mxu1 %v3713_v8  ;;  %v354_v7 = vpop.permute.xlu0 %353 }
  0xdb   :  { %2129 = vmatprep.mubr.bf16.mxu0 %v3714_v9  ;;  %2226 = vmatprep.mubr.bf16.mxu1 %v3716_v10 }
  0xe2   :  { %2130 = vmatmul.mubr.bf16.gmra.mrb[96].mxu0 %v3718_v11  ;;  %2227 = vmatmul.mubr.bf16.gmra.mrb[96].mxu1 %v3719_v12  ;;  %v3753_v12 = vld [vmem:[%s5028_s0 + $0x2e8] ss:$36 sps:$4 sm:$0xff]  }
  0xe3   :  { %2137 = vmatprep.mubr.bf16.mxu0 %v3721_v13  ;;  %2234 = vmatprep.mubr.bf16.mxu1 %v3723_v14  ;;  %v3754_v13 = vld [vmem:[%s5028_s0 + $0x188] ss:$36 sps:$4 sm:$0xff]  }
  0xea   :  { %2138 = vmatmul.mubr.bf16.gmra.mrb[100].mxu0 %v3725_v15  ;;  %2235 = vmatmul.mubr.bf16.gmra.mrb[100].mxu1 %v3726_v16 }
  0xeb   :  { %2145 = vmatprep.mubr.bf16.mxu0 %v3727_v17  ;;  %2242 = vmatprep.mubr.bf16.mxu1 %v3729_v18  ;;  %v3755_v18 = vld [vmem:[%s5028_s0 + $0x334] ss:$36 sps:$4 sm:$0xff]  }
  0xf2   :  { %2146 = vmatmul.mubr.bf16.gmra.mrb[104].mxu0 %v3731_v19  ;;  %2243 = vmatmul.mubr.bf16.gmra.mrb[104].mxu1 %v3732_v20  ;;  %v3757_v19 = vld [vmem:[%s5028_s0 + $0x1d0] ss:$36 sps:$4 sm:$0xff]  }
  0xf3   :  { %2153 = vmatprep.mubr.bf16.mxu0 %v3734_v21  ;;  %2250 = vmatprep.mubr.bf16.mxu1 %v3736_v22 }
  0xf5   :  { %v3049_v23 = vpop.f32.mrb[0].mxu1  ;;  %v2977_v24 = vpop.f32.mrb[0].mxu0 }
  0xf6   :  { %v3050_v25 = vpop.f32.mrb[1].mxu1  ;;  %v2978_v26 = vpop.f32.mrb[1].mxu0 }
  0xf7   :  { %v4449_v29 = vadd.f32 %v3050_v25, %v3049_v23  ;;  %v3052_v30 = vpop.f32.mrb[2].mxu1  ;;  %v4451_v31 = vadd.f32 %v2978_v26, %v2977_v24  ;;  %v2980_v32 = vpop.f32.mrb[2].mxu0 }
  0xf8   :  { %v3053_v35 = vpop.f32.mrb[3].mxu1  ;;  %v2981_v36 = vpop.f32.mrb[3].mxu0 }
  0xf9   :  { %v4459_v37 = vadd.f32 %v3053_v35, %v3052_v30  ;;  %v4461_v38 = vadd.f32 %v2981_v36, %v2980_v32  ;;  %v364_v24 = vpop.permute.xlu1 %363  ;;  %v359_v25 = vpop.permute.xlu0 %358  ;;  %v3758_v32 = vld [vmem:[%s5028_s0 + $0x330] ss:$36 sps:$4 sm:$0xff]  }
  0xfa   :  { %2154 = vmatmul.mubr.bf16.gmra.mrb[108].mxu0 %v3738_v27  ;;  %2251 = vmatmul.mubr.bf16.gmra.mrb[108].mxu1 %v3739_v28 }
  0xfb   :  { %2258 = vmatprep.mubr.bf16.mxu1 %v3740_v33  ;;  %3449 = vmatprep.mubr.bf16.mxu0 %v3742_v34  ;;  %v3759_v33 = vld [vmem:[%s5028_s0 + $0x218] ss:$36 sps:$4 sm:$0xff]   ;;  %v1714_v34 = vadd.f32 %v4451_v31, %v354_v7 }
  0xfd   :  { %v3055_v39 = vpop.f32.mrb[4].mxu1  ;;  %v2983_v40 = vpop.f32.mrb[4].mxu0 }
  0xfe   :  { %v3056_v41 = vpop.f32.mrb[5].mxu1  ;;  %v2984_v42 = vpop.f32.mrb[5].mxu0 }
  0xff   :  { %v4469_v45 = vadd.f32 %v3056_v41, %v3055_v39  ;;  %v3058_v46 = vpop.f32.mrb[6].mxu1  ;;  %v4471_v47 = vadd.f32 %v2984_v42, %v2983_v40  ;;  %v2986_v48 = vpop.f32.mrb[6].mxu0  ;;  %v3760_v41 = vld [vmem:[%s5028_s0 + $0x37c] ss:$36 sps:$4 sm:$0xff]  }
 0x100   :  { %v3059_v51 = vpop.f32.mrb[7].mxu1  ;;  %v2987_v52 = vpop.f32.mrb[7].mxu0  ;;  %v3762_v42 = vld [vmem:[%s5028_s0 + $0x260] ss:$36 sps:$4 sm:$0xff]  }
 0x101   :  { %v4479_v53 = vadd.f32 %v3059_v51, %v3058_v46  ;;  %v4481_v54 = vadd.f32 %v2987_v52, %v2986_v48  ;;  %v1717_v46 = vadd.f32 %v4461_v38, %v359_v25  ;;  %v369_v51 = vpop.permute.xlu1 %368  ;;  %v3763_v38 = vld [vmem:[%s5028_s0 + $0x378] ss:$36 sps:$4 sm:$0xff]  }
 0x102   :  { %2259 = vmatmul.mubr.bf16.gmra.mrb[112].mxu1 %v3743_v43  ;;  %3450 = vmatmul.mubr.bf16.vlgmr.msra.gmra.mrb[112].mxu0 %v3744_v44 }
 0x103   :  { %2266 = vmatprep.mubr.bf16.mxu1 %v3745_v49  ;;  %3453 = vmatprep.mubr.bf16.mxu0 %v3747_v50 }
 0x105   :  { %v3061_v55 = vpop.f32.mrb[8].mxu1  ;;  %v2989_v56 = vpop.f32.mrb[8].mxu0 }
 0x106   :  { %v3062_v57 = vpop.f32.mrb[9].mxu1  ;;  %v2990_v58 = vpop.f32.mrb[9].mxu0 }
 0x107   :  { %v4489_v61 = vadd.f32 %v3062_v57, %v3061_v55  ;;  %v3064_v62 = vpop.f32.mrb[10].mxu1  ;;  %v4491_v63 = vadd.f32 %v2990_v58, %v2989_v56  ;;  %v2992_v0 = vpop.f32.mrb[10].mxu0  ;;  %v3764_v58 = vld [vmem:[%s5028_s0 + $0x2a8] ss:$36 sps:$4 sm:$0xff]  }
 0x108   :  { %v3065_v3 = vpop.f32.mrb[11].mxu1  ;;  %v2993_v4 = vpop.f32.mrb[11].mxu0 }
 0x109   :  { %v4499_v5 = vadd.f32 %v3065_v3, %v3064_v62  ;;  %v4501_v6 = vadd.f32 %v2993_v4, %v2992_v0  ;;  %v3767_v3 = vld [vmem:[%s5028_s0 + $0x2f0] ss:$36 sps:$4 sm:$0xff]  }
 0x10a   :  { %2267 = vmatmul.mubr.bf16.gmra.mrb[116].mxu1 %v3748_v59  ;;  %3454 = vmatmul.mubr.bf16.gmra.mrb[116].mxu0 %v3749_v60  ;;  %v1722_v59 = vadd.f32 %v4471_v47, %v364_v24 }
 0x10b   :  { %2274 = vmatprep.mubr.bf16.mxu1 %v3750_v1  ;;  %3457 = vmatprep.mubr.bf16.mxu0 %v3752_v2  ;;  %v3765_v2 = vld [vmem:[%s5028_s0 + $0x3c4] ss:$36 sps:$4 sm:$0xff]  }
 0x10d   :  { %v3067_v8 = vpop.f32.mrb[12].mxu1  ;;  %v2995_v9 = vpop.f32.mrb[12].mxu0 }
 0x10e   :  { %v3068_v10 = vpop.f32.mrb[13].mxu1  ;;  %v2996_v11 = vpop.f32.mrb[13].mxu0 }
 0x10f   :  { %v4509_v14 = vadd.f32 %v3068_v10, %v3067_v8  ;;  %v3070_v15 = vpop.f32.mrb[14].mxu1  ;;  %v4511_v16 = vadd.f32 %v2996_v11, %v2995_v9  ;;  %v2998_v17 = vpop.f32.mrb[14].mxu0  ;;  %v1725_v8 = vadd.f32 %v4481_v54, %v369_v51  ;;  %v3768_v54 = vld [vmem:[%s5028_s0 + $0x3c0] ss:$36 sps:$4 sm:$0xff]   ;;  %v3774_v51 = vld [vmem:[%s5028_s0 + $0x3c8] ss:$36 sps:$4 sm:$0xff]  }
 0x110   :  { %v3071_v20 = vpop.f32.mrb[15].mxu1  ;;  %v2999_v21 = vpop.f32.mrb[15].mxu0 }
 0x111   :  { %v4519_v22 = vadd.f32 %v3071_v20, %v3070_v15  ;;  %v4521_v23 = vadd.f32 %v2999_v21, %v2998_v17  ;;  %v3769_v20 = vld [vmem:[%s5028_s0 + $0x338] ss:$36 sps:$4 sm:$0xff]  }
 0x112   :  { %2275 = vmatmul.mubr.bf16.gmra.mrb[120].mxu1 %v3753_v12  ;;  %3458 = vmatmul.mubr.bf16.gmra.mrb[120].mxu0 %v3754_v13  ;;  %v374_v12 = vpop.permute.xlu0 %373  ;;  %v379_v13 = vpop.permute.xlu1 %378 }
 0x113   :  { %2282 = vmatprep.mubr.bf16.mxu1 %v3755_v18  ;;  %3461 = vmatprep.mubr.bf16.mxu0 %v3757_v19  ;;  %v1730_v21 = vadd.f32 %v4491_v63, %v374_v12 }
 0x115   :  { %v3089_v26 = vpop.f32.mrb[16].mxu1  ;;  %v3001_v27 = vpop.f32.mrb[16].mxu0 }
 0x116   :  { %v3090_v28 = vpop.f32.mrb[17].mxu1  ;;  %v3002_v30 = vpop.f32.mrb[17].mxu0 }
 0x117   :  { %v3091_v35 = vadd.f32 %v3090_v28, %v3089_v26  ;;  %v3092_v36 = vpop.f32.mrb[18].mxu1  ;;  %v4530_v39 = vadd.f32 %v3002_v30, %v3001_v27  ;;  %v3004_v40 = vpop.f32.mrb[18].mxu0  ;;  %v3770_v28 = vld [vmem:[%s5028_s0 + $0x40c] ss:$36 sps:$4 sm:$0xff]   ;;  %v3772_v30 = vld [vmem:[%s5028_s0 + $0x380] ss:$36 sps:$4 sm:$0xff]  }
 0x118   :  { %v3093_v43 = vpop.f32.mrb[19].mxu1  ;;  %v3005_v44 = vpop.f32.mrb[19].mxu0 }
 0x119   :  { %v4539_v48 = vadd.f32 %v3091_v35, %v1714_v34  ;;  %v3094_v31 = vadd.f32 %v3093_v43, %v3092_v36  ;;  %v4541_v49 = vadd.f32 %v3005_v44, %v3004_v40  ;;  %v1733_v34 = vadd.f32 %v4501_v6, %v379_v13  ;;  %v3773_v6 = vld [vmem:[%s5028_s0 + $0x408] ss:$36 sps:$4 sm:$0xff]  }
 0x11a   :  { %2283 = vmatmul.mubr.bf16.gmra.mrb[124].mxu1 %v3758_v32  ;;  %3462 = vmatmul.mubr.bf16.gmra.mrb[124].mxu0 %v3759_v33 }
 0x11b   :  { %v4543_v50 = vadd.f32 %v3094_v31, %v1717_v46  ;;  %2290 = vmatprep.mubr.bf16.mxu1 %v3760_v41  ;;  %3465 = vmatprep.mubr.bf16.mxu0 %v3762_v42  ;;  %v384_v41 = vpop.permute.xlu0 %383  ;;  %v389_v42 = vpop.permute.xlu1 %388 }
 0x11d   :  { %v3095_v52 = vpop.f32.mrb[20].mxu1  ;;  %v3007_v55 = vpop.f32.mrb[20].mxu0 }
 0x11e   :  { %v3096_v56 = vpop.f32.mrb[21].mxu1  ;;  %v3008_v57 = vpop.f32.mrb[21].mxu0 }
 0x11f   :  { %v3097_v60 = vadd.f32 %v3096_v56, %v3095_v52  ;;  %v3098_v62 = vpop.f32.mrb[22].mxu1  ;;  %v4552_v0 = vadd.f32 %v3008_v57, %v3007_v55  ;;  %v3010_v1 = vpop.f32.mrb[22].mxu0  ;;  %v1738_v52 = vadd.f32 %v4511_v16, %v384_v41 }
 0x120   :  { %v3099_v4 = vpop.f32.mrb[23].mxu1  ;;  %v3011_v7 = vpop.f32.mrb[23].mxu0 }
 0x121   :  { %v4561_v9 = vadd.f32 %v3097_v60, %v1722_v59  ;;  %v3100_v47 = vadd.f32 %v3099_v4, %v3098_v62  ;;  %v4563_v10 = vadd.f32 %v3011_v7, %v3010_v1  ;;  %v3777_v59 = vld [vmem:[%s5028_s0 + $0x410] ss:$36 sps:$4 sm:$0xff]   ;;  %v1741_v1 = vadd.f32 %v4521_v23, %v389_v42  ;;  %v394_v7 = vpop.permute.xlu0 %393 }
 0x122   :  { %2291 = vmatmul.mubr.bf16.gmra.mrb[128].mxu1 %v3763_v38  ;;  %3466 = vmatmul.mubr.bf16.gmra.mrb[128].mxu0 %v3764_v58  ;;  %v3775_v58 = vld [vmem:[%s5028_s0 + $0x454] ss:$36 sps:$4 sm:$0xff]  }
 0x123   :  { %v4565_v11 = vadd.f32 %v3100_v47, %v1725_v8  ;;  %2298 = vmatprep.mubr.bf16.mxu1 %v3765_v2  ;;  %3469 = vmatprep.mubr.bf16.mxu0 %v3767_v3  ;;  %v399_v8 = vpop.permute.xlu1 %398  ;;  %v3778_v23 = vld [vmem:[%s5028_s0 + $0x450] ss:$36 sps:$4 sm:$0xff]  }
 0x125   :  { %v3101_v15 = vpop.f32.mrb[24].mxu1  ;;  %v3013_v17 = vpop.f32.mrb[24].mxu0 }
 0x126   :  { %v3102_v18 = vpop.f32.mrb[25].mxu1  ;;  %v3014_v19 = vpop.f32.mrb[25].mxu0 }
 0x127   :  { %v3103_v24 = vadd.f32 %v3102_v18, %v3101_v15  ;;  %v3104_v25 = vpop.f32.mrb[26].mxu1  ;;  %v4574_v26 = vadd.f32 %v3014_v19, %v3013_v17  ;;  %v3016_v27 = vpop.f32.mrb[26].mxu0  ;;  %v3779_v17 = vld [vmem:[%s5028_s0 + $0x458] ss:$36 sps:$4 sm:$0xff]   ;;  %v1746_v18 = vadd.f32 %v4530_v39, %v394_v7 }
 0x128   :  { %v3105_v32 = vpop.f32.mrb[27].mxu1  ;;  %v3017_v33 = vpop.f32.mrb[27].mxu0 }
 0x129   :  { %v4583_v35 = vadd.f32 %v3103_v24, %v1730_v21  ;;  %v3106_v63 = vadd.f32 %v3105_v32, %v3104_v25  ;;  %v4585_v36 = vadd.f32 %v3017_v33, %v3016_v27  ;;  %v1749_v27 = vadd.f32 %v4541_v49, %v399_v8  ;;  %v409_v39 = vpop.permute.xlu1 %408 }
 0x12a   :  { %2299 = vmatmul.mubr.bf16.gmra.mrb[132].mxu1 %v3768_v54  ;;  %3470 = vmatmul.mubr.bf16.gmra.mrb[132].mxu0 %v3769_v20 }
 0x12b   :  { %v4587_v40 = vadd.f32 %v3106_v63, %v1733_v34  ;;  %2306 = vmatprep.mubr.bf16.mxu1 %v3770_v28  ;;  %3473 = vmatprep.mubr.bf16.mxu0 %v3772_v30  ;;  %v404_v34 = vpop.permute.xlu0 %403 }
 0x12d   :  { %v3107_v43 = vpop.f32.mrb[28].mxu1  ;;  %v3019_v44 = vpop.f32.mrb[28].mxu0 }
 0x12e   :  { %v3108_v46 = vpop.f32.mrb[29].mxu1  ;;  %v3020_v31 = vpop.f32.mrb[29].mxu0 }
 0x12f   :  { %v3109_v55 = vadd.f32 %v3108_v46, %v3107_v43  ;;  %v3110_v56 = vpop.f32.mrb[30].mxu1  ;;  %v4596_v57 = vadd.f32 %v3020_v31, %v3019_v44  ;;  %v3022_v38 = vpop.f32.mrb[30].mxu0  ;;  %v1754_v44 = vadd.f32 %v4552_v0, %v404_v34 }
 0x130   :  { %v3111_v60 = vpop.f32.mrb[31].mxu1  ;;  %v3023_v62 = vpop.f32.mrb[31].mxu0 }
 0x131   :  { %v4605_v2 = vadd.f32 %v3109_v55, %v1738_v52  ;;  %v3112_v16 = vadd.f32 %v3111_v60, %v3110_v56  ;;  %v4607_v3 = vadd.f32 %v3023_v62, %v3022_v38  ;;  %v1757_v55 = vadd.f32 %v4563_v10, %v409_v39  ;;  %v414_v60 = vpop.permute.xlu0 %413  ;;  %v419_v62 = vpop.permute.xlu1 %418 }
 0x132   :  { %2307 = vmatmul.mubr.bf16.gmra.mrb[136].mxu1 %v3773_v6  ;;  %3474 = vmatmul.mubr.bf16.gmra.mrb[136].mxu0 %v3774_v51  ;;  %v1762_v8 = vadd.f32 %v4574_v26, %v414_v60 }
 0x133   :  { %v4609_v4 = vadd.f32 %v3112_v16, %v1741_v1  ;;  %2314 = vmatprep.mubr.bf16.mxu1 %v3775_v58  ;;  %3477 = vmatprep.mubr.bf16.mxu0 %v3777_v59 }
 0x135   :  { %v3113_v47 = vpop.f32.mrb[32].mxu1  ;;  %v3025_v12 = vpop.f32.mrb[32].mxu0 }
 0x136   :  { %v3114_v13 = vpop.f32.mrb[33].mxu1  ;;  %v3026_v15 = vpop.f32.mrb[33].mxu0 }
 0x137   :  { %v3115_v19 = vadd.f32 %v3114_v13, %v3113_v47  ;;  %v3116_v54 = vpop.f32.mrb[34].mxu1  ;;  %v4618_v20 = vadd.f32 %v3026_v15, %v3025_v12  ;;  %v3028_v21 = vpop.f32.mrb[34].mxu0 }
 0x138   :  { %v3117_v24 = vpop.f32.mrb[35].mxu1  ;;  %v3029_v25 = vpop.f32.mrb[35].mxu0 }
 0x139   :  { %v4621_v28 = vadd.f32 %v3115_v19, %v1746_v18  ;;  %v3118_v30 = vadd.f32 %v3117_v24, %v3116_v54  ;;  %v4623_v32 = vadd.f32 %v3029_v25, %v3028_v21  ;;  %v424_v24 = vpop.permute.xlu0 %423  ;;  %v429_v25 = vpop.permute.xlu1 %428 }
 0x13a   :  { %2315 = vmatmul.mubr.bf16.gmra.mrb[140].mxu1 %v3778_v23  ;;  %3478 = vmatmul.mubr.bf16.gmra.mrb[140].mxu0 %v3779_v17  ;;  %v1765_v17 = vadd.f32 %v4585_v36, %v419_v62  ;;  %v1770_v39 = vadd.f32 %v4596_v57, %v424_v24 }
 0x13b   :  { %v4625_v33 = vadd.f32 %v3118_v30, %v1749_v27 }
 0x13d   :  { %v3119_v63 = vpop.f32.mrb[36].mxu1  ;;  %v3031_v41 = vpop.f32.mrb[36].mxu0 }
 0x13e   :  { %v3120_v42 = vpop.f32.mrb[37].mxu1  ;;  %v3032_v43 = vpop.f32.mrb[37].mxu0 }
 0x13f   :  { %v3121_v46 = vadd.f32 %v3120_v42, %v3119_v63  ;;  %v3122_v31 = vpop.f32.mrb[38].mxu1  ;;  %v4628_v49 = vadd.f32 %v3032_v43, %v3031_v41  ;;  %v3034_v6 = vpop.f32.mrb[38].mxu0 }
 0x140   :  { %v3123_v51 = vpop.f32.mrb[39].mxu1  ;;  %v3035_v52 = vpop.f32.mrb[39].mxu0 }
 0x141   :  { %v4631_v56 = vadd.f32 %v3121_v46, %v1754_v44  ;;  %v3124_v38 = vadd.f32 %v3123_v51, %v3122_v31  ;;  %v4633_v58 = vadd.f32 %v3035_v52, %v3034_v6  ;;  %v1773_v46 = vadd.f32 %v4607_v3, %v429_v25 }
 0x143   :  { %v4635_v59 = vadd.f32 %v3124_v38, %v1757_v55  ;;  %v434_v55 = vpop.permute.xlu0 %433  ;;  %v439_v38 = vpop.permute.xlu1 %438 }
 0x144   :  { %v1781_v3 = vadd.f32 %v4623_v32, %v439_v38 }
 0x145   :  { %v3125_v1 = vpop.f32.mrb[40].mxu1  ;;  %v3037_v0 = vpop.f32.mrb[40].mxu0 }
 0x146   :  { %v3126_v16 = vpop.f32.mrb[41].mxu1  ;;  %v3038_v7 = vpop.f32.mrb[41].mxu0 }
 0x147   :  { %v3127_v47 = vadd.f32 %v3126_v16, %v3125_v1  ;;  %v3128_v12 = vpop.f32.mrb[42].mxu1  ;;  %v4638_v13 = vadd.f32 %v3038_v7, %v3037_v0  ;;  %v3040_v10 = vpop.f32.mrb[42].mxu0  ;;  %v1778_v0 = vadd.f32 %v4618_v20, %v434_v55 }
 0x148   :  { %v3129_v15 = vpop.f32.mrb[43].mxu1  ;;  %v3041_v23 = vpop.f32.mrb[43].mxu0 }
 0x149   :  { %v4641_v18 = vadd.f32 %v3127_v47, %v1762_v8  ;;  %v3130_v19 = vadd.f32 %v3129_v15, %v3128_v12  ;;  %v4643_v54 = vadd.f32 %v3041_v23, %v3040_v10  ;;  %v444_v20 = vpop.permute.xlu0 %443 }
 0x14b   :  { %v4645_v21 = vadd.f32 %v3130_v19, %v1765_v17 }
 0x14d   :  { %v3131_v27 = vpop.f32.mrb[44].mxu1  ;;  %v3043_v26 = vpop.f32.mrb[44].mxu0 }
 0x14e   :  { %v3132_v30 = vpop.f32.mrb[45].mxu1  ;;  %v3044_v34 = vpop.f32.mrb[45].mxu0 }
 0x14f   :  { %v3133_v63 = vadd.f32 %v3132_v30, %v3131_v27  ;;  %v3134_v41 = vpop.f32.mrb[46].mxu1  ;;  %v4648_v42 = vadd.f32 %v3044_v34, %v3043_v26  ;;  %v3046_v36 = vpop.f32.mrb[46].mxu0 }
 0x150   :  { %v3135_v43 = vpop.f32.mrb[47].mxu1  ;;  %v3047_v44 = vpop.f32.mrb[47].mxu0 }
 0x151   :  { %v4651_v31 = vadd.f32 %v3133_v63, %v1770_v39  ;;  %v3136_v6 = vadd.f32 %v3135_v43, %v3134_v41  ;;  %v4653_v51 = vadd.f32 %v3047_v44, %v3046_v36  ;;  %v449_v27 = vpop.permute.xlu1 %448  ;;  %v1786_v39 = vadd.f32 %v4628_v49, %v444_v20  ;;  %v454_v49 = vpop.permute.xlu0 %453 }
 0x152   :  { %v1789_v43 = vadd.f32 %v4633_v58, %v449_v27 }
 0x153   :  { %v4655_v52 = vadd.f32 %v3136_v6, %v1773_v46 }
 0x155   :  { %v3137_v60 = vpop.f32.mrb[48].mxu1  ;;  %v3201_v57 = vpop.f32.mrb[48].mxu0 }
 0x156   :  { %v3138_v62 = vpop.f32.mrb[49].mxu1  ;;  %v3202_v1 = vpop.f32.mrb[49].mxu0 }
 0x157   :  { %v3139_v16 = vadd.f32 %v3138_v62, %v3137_v60  ;;  %v3203_v7 = vadd.f32 %v3202_v1, %v3201_v57  ;;  %v3140_v8 = vpop.f32.mrb[50].mxu1  ;;  %v3204_v47 = vpop.f32.mrb[50].mxu0 }
 0x158   :  { %v3141_v12 = vpop.f32.mrb[51].mxu1  ;;  %v3205_v10 = vpop.f32.mrb[51].mxu0 }
 0x159   :  { %v4659_v15 = vadd.f32 %v3139_v16, %v1778_v0  ;;  %v4662_v23 = vadd.f32 %v3203_v7, %v4539_v48  ;;  %v3142_v17 = vadd.f32 %v3141_v12, %v3140_v8  ;;  %v3206_v19 = vadd.f32 %v3205_v10, %v3204_v47  ;;  %v459_v62 = vpop.permute.xlu1 %458 }
 0x15a   :  { %v1794_v7 = vadd.f32 %v4638_v13, %v454_v49  ;;  %v1797_v12 = vadd.f32 %v4643_v54, %v459_v62  ;;  %v464_v13 = vpop.permute.xlu0 %463 }
 0x15b   :  { %v4664_v24 = vadd.f32 %v3142_v17, %v1781_v3  ;;  %v4667_v25 = vadd.f32 %v3206_v19, %v4543_v50 }
 0x15d   :  { %v3143_v26 = vpop.f32.mrb[52].mxu1  ;;  %v3207_v30 = vpop.f32.mrb[52].mxu0 }
 0x15e   :  { %v3144_v34 = vpop.f32.mrb[53].mxu1  ;;  %v3208_v32 = vpop.f32.mrb[53].mxu0 }
 0x15f   :  { %v3145_v63 = vadd.f32 %v3144_v34, %v3143_v26  ;;  %v3209_v41 = vadd.f32 %v3208_v32, %v3207_v30  ;;  %v3146_v36 = vpop.f32.mrb[54].mxu1  ;;  %v3210_v48 = vpop.f32.mrb[54].mxu0 }
 0x160   :  { %v3147_v44 = vpop.f32.mrb[55].mxu1  ;;  %v3211_v46 = vpop.f32.mrb[55].mxu0 }
 0x161   :  { %v4671_v6 = vadd.f32 %v3145_v63, %v1786_v39  ;;  %v4674_v50 = vadd.f32 %v3209_v41, %v4561_v9  ;;  %v3148_v55 = vadd.f32 %v3147_v44, %v3146_v36  ;;  %v3212_v38 = vadd.f32 %v3211_v46, %v3210_v48  ;;  %v469_v34 = vpop.permute.xlu1 %468 }
 0x162   :  { %v1802_v41 = vadd.f32 %v4648_v42, %v464_v13  ;;  %v1805_v44 = vadd.f32 %v4653_v51, %v469_v34  ;;  %v474_v42 = vpop.permute.xlu0 %473 }
 0x163   :  { %v4676_v60 = vadd.f32 %v3148_v55, %v1789_v43  ;;  %v4679_v57 = vadd.f32 %v3212_v38, %v4565_v11 }
 0x165   :  { %v3149_v1 = vpop.f32.mrb[56].mxu1  ;;  %v3213_v0 = vpop.f32.mrb[56].mxu0 }
 0x166   :  { %v3150_v16 = vpop.f32.mrb[57].mxu1  ;;  %v3214_v58 = vpop.f32.mrb[57].mxu0 }
 0x167   :  { %v3151_v8 = vadd.f32 %v3150_v16, %v3149_v1  ;;  %v3215_v47 = vadd.f32 %v3214_v58, %v3213_v0  ;;  %v3152_v3 = vpop.f32.mrb[58].mxu1  ;;  %v3216_v9 = vpop.f32.mrb[58].mxu0 }
 0x168   :  { %v3153_v10 = vpop.f32.mrb[59].mxu1  ;;  %v3217_v17 = vpop.f32.mrb[59].mxu0 }
 0x169   :  { %v4683_v19 = vadd.f32 %v3151_v8, %v1794_v7  ;;  %v4686_v11 = vadd.f32 %v3215_v47, %v4583_v35  ;;  %v3154_v20 = vadd.f32 %v3153_v10, %v3152_v3  ;;  %v3218_v27 = vadd.f32 %v3217_v17, %v3216_v9  ;;  %v479_v16 = vpop.permute.xlu1 %478 }
 0x16a   :  { %v1810_v47 = vadd.f32 %v4449_v29, %v474_v42  ;;  %v1813_v10 = vadd.f32 %v4459_v37, %v479_v16  ;;  %v484_v29 = vpop.permute.xlu0 %483 }
 0x16b   :  { %v4688_v26 = vadd.f32 %v3154_v20, %v1797_v12  ;;  %v4691_v30 = vadd.f32 %v3218_v27, %v4587_v40 }
 0x16d   :  { %v3155_v32 = vpop.f32.mrb[60].mxu1  ;;  %v3219_v39 = vpop.f32.mrb[60].mxu0 }
 0x16e   :  { %v3156_v63 = vpop.f32.mrb[61].mxu1  ;;  %v3220_v54 = vpop.f32.mrb[61].mxu0 }
 0x16f   :  { %v3157_v36 = vadd.f32 %v3156_v63, %v3155_v32  ;;  %v3221_v48 = vadd.f32 %v3220_v54, %v3219_v39  ;;  %v3158_v43 = vpop.f32.mrb[62].mxu1  ;;  %v3222_v35 = vpop.f32.mrb[62].mxu0 }
 0x170   :  { %v3159_v46 = vpop.f32.mrb[63].mxu1  ;;  %v3223_v55 = vpop.f32.mrb[63].mxu0 }
 0x171   :  { %v4695_v38 = vadd.f32 %v3157_v36, %v1802_v41  ;;  %v4698_v40 = vadd.f32 %v3221_v48, %v4605_v2  ;;  %v3160_v49 = vadd.f32 %v3159_v46, %v3158_v43  ;;  %v3224_v62 = vadd.f32 %v3223_v55, %v3222_v35  ;;  %v489_v63 = vpop.permute.xlu1 %488 }
 0x172   :  { %v1818_v48 = vadd.f32 %v4469_v45, %v484_v29  ;;  %v1821_v46 = vadd.f32 %v4479_v53, %v489_v63  ;;  %v494_v45 = vpop.permute.xlu0 %493 }
 0x173   :  { %v4700_v1 = vadd.f32 %v3160_v49, %v1805_v44  ;;  %v4703_v0 = vadd.f32 %v3224_v62, %v4609_v4 }
 0x175   :  { %v3161_v58 = vpop.f32.mrb[64].mxu1  ;;  %v3225_v7 = vpop.f32.mrb[64].mxu0 }
 0x176   :  { %v3162_v8 = vpop.f32.mrb[65].mxu1  ;;  %v3226_v51 = vpop.f32.mrb[65].mxu0 }
 0x177   :  { %v3163_v3 = vadd.f32 %v3162_v8, %v3161_v58  ;;  %v3227_v9 = vadd.f32 %v3226_v51, %v3225_v7  ;;  %v3164_v12 = vpop.f32.mrb[66].mxu1  ;;  %v3228_v2 = vpop.f32.mrb[66].mxu0 }
 0x178   :  { %v3165_v17 = vpop.f32.mrb[67].mxu1  ;;  %v3229_v20 = vpop.f32.mrb[67].mxu0 }
 0x179   :  { %v4707_v27 = vadd.f32 %v3163_v3, %v1810_v47  ;;  %v4710_v4 = vadd.f32 %v3227_v9, %v4621_v28  ;;  %v3166_v13 = vadd.f32 %v3165_v17, %v3164_v12  ;;  %v3230_v34 = vadd.f32 %v3229_v20, %v3228_v2  ;;  %v499_v8 = vpop.permute.xlu1 %498 }
 0x17a   :  { %v1826_v9 = vadd.f32 %v4489_v61, %v494_v45  ;;  %v1829_v17 = vadd.f32 %v4499_v5, %v499_v8  ;;  %v504_v61 = vpop.permute.xlu0 %503 }
 0x17b   :  { %v4712_v32 = vadd.f32 %v3166_v13, %v1813_v10  ;;  %v4715_v39 = vadd.f32 %v3230_v34, %v4625_v33 }
 0x17d   :  { %v3167_v54 = vpop.f32.mrb[68].mxu1  ;;  %v3231_v41 = vpop.f32.mrb[68].mxu0 }
 0x17e   :  { %v3168_v36 = vpop.f32.mrb[69].mxu1  ;;  %v3232_v37 = vpop.f32.mrb[69].mxu0 }
 0x17f   :  { %v3169_v43 = vadd.f32 %v3168_v36, %v3167_v54  ;;  %v3233_v35 = vadd.f32 %v3232_v37, %v3231_v41  ;;  %v3170_v44 = vpop.f32.mrb[70].mxu1  ;;  %v3234_v28 = vpop.f32.mrb[70].mxu0 }
 0x180   :  { %v3171_v55 = vpop.f32.mrb[71].mxu1  ;;  %v3235_v49 = vpop.f32.mrb[71].mxu0 }
 0x181   :  { %v4719_v62 = vadd.f32 %v3169_v43, %v1818_v48  ;;  %v4722_v33 = vadd.f32 %v3233_v35, %v4631_v56  ;;  %v3172_v42 = vadd.f32 %v3171_v55, %v3170_v44  ;;  %v3236_v16 = vadd.f32 %v3235_v49, %v3234_v28  ;;  %v509_v36 = vpop.permute.xlu1 %508 }
 0x182   :  { %v1834_v35 = vadd.f32 %v4509_v14, %v504_v61  ;;  %v1837_v55 = vadd.f32 %v4519_v22, %v509_v36 }
 0x183   :  { %v4724_v58 = vadd.f32 %v3172_v42, %v1821_v46  ;;  %v4727_v7 = vadd.f32 %v3236_v16, %v4635_v59 }
 0x185   :  { %v3173_v51 = vpop.f32.mrb[72].mxu1  ;;  %v3237_v47 = vpop.f32.mrb[72].mxu0 }
 0x186   :  { %v3174_v3 = vpop.f32.mrb[73].mxu1  ;;  %v3238_v53 = vpop.f32.mrb[73].mxu0 }
 0x187   :  { %v3175_v12 = vadd.f32 %v3174_v3, %v3173_v51  ;;  %v3239_v2 = vadd.f32 %v3238_v53, %v3237_v47  ;;  %v3176_v10 = vpop.f32.mrb[74].mxu1  ;;  %v3240_v56 = vpop.f32.mrb[74].mxu0 }
 0x188   :  { %v3177_v20 = vpop.f32.mrb[75].mxu1  ;;  %v3241_v13 = vpop.f32.mrb[75].mxu0 }
 0x189   :  { %v4731_v34 = vadd.f32 %v3175_v12, %v1826_v9  ;;  %v4734_v59 = vadd.f32 %v3239_v2, %v4641_v18  ;;  %v3178_v29 = vadd.f32 %v3177_v20, %v3176_v10  ;;  %v3242_v63 = vadd.f32 %v3241_v13, %v3240_v56 }
 0x18b   :  { %v4736_v54 = vadd.f32 %v3178_v29, %v1829_v17  ;;  %v4739_v41 = vadd.f32 %v3242_v63, %v4645_v21 }
 0x18d   :  { %v3179_v37 = vpop.f32.mrb[76].mxu1  ;;  %v3243_v48 = vpop.f32.mrb[76].mxu0 }
 0x18e   :  { %v3180_v43 = vpop.f32.mrb[77].mxu1  ;;  %v3244_v5 = vpop.f32.mrb[77].mxu0 }
 0x18f   :  { %v3181_v44 = vadd.f32 %v3180_v43, %v3179_v37  ;;  %v3245_v28 = vadd.f32 %v3244_v5, %v3243_v48  ;;  %v3182_v46 = vpop.f32.mrb[78].mxu1  ;;  %v3246_v18 = vpop.f32.mrb[78].mxu0 }
 0x190   :  { %v3183_v49 = vpop.f32.mrb[79].mxu1  ;;  %v3247_v42 = vpop.f32.mrb[79].mxu0 }
 0x191   :  { %v4743_v16 = vadd.f32 %v3181_v44, %v1834_v35  ;;  %v4746_v21 = vadd.f32 %v3245_v28, %v4651_v31  ;;  %v3184_v45 = vadd.f32 %v3183_v49, %v3182_v46  ;;  %v3248_v8 = vadd.f32 %v3247_v42, %v3246_v18 }
 0x193   :  { %v4748_v51 = vadd.f32 %v3184_v45, %v1837_v55  ;;  %v4751_v47 = vadd.f32 %v3248_v8, %v4655_v52 }
 0x195   :  { %v3249_v14 = vpop.f32.mrb[80].mxu0  ;;  %v3313_v3 = vpop.f32.mrb[80].mxu1 }
 0x196   :  { %v3250_v53 = vpop.f32.mrb[81].mxu0  ;;  %v3314_v9 = vpop.f32.mrb[81].mxu1 }
 0x197   :  { %v3251_v12 = vadd.f32 %v3250_v53, %v3249_v14  ;;  %v3315_v22 = vadd.f32 %v3314_v9, %v3313_v3  ;;  %v3252_v2 = vpop.f32.mrb[82].mxu0  ;;  %v3316_v10 = vpop.f32.mrb[82].mxu1 }
 0x198   :  { %v3253_v56 = vpop.f32.mrb[83].mxu0  ;;  %v3317_v17 = vpop.f32.mrb[83].mxu1 }
 0x199   :  { %v4754_v31 = vadd.f32 %v3251_v12, %v4659_v15  ;;  %v3254_v20 = vadd.f32 %v3253_v56, %v3252_v2  ;;  %v3318_v13 = vadd.f32 %v3317_v17, %v3316_v10  ;;  %v4757_v29 = vadd.f32 %v3315_v22, %v4662_v23 }
 0x19b   :  { %v4760_v52 = vadd.f32 %v3254_v20, %v4664_v24  ;;  %v4763_v63 = vadd.f32 %v3318_v13, %v4667_v25 }
 0x19d   :  { %v3255_v61 = vpop.f32.mrb[84].mxu0  ;;  %v3319_v36 = vpop.f32.mrb[84].mxu1 }
 0x19e   :  { %v3256_v37 = vpop.f32.mrb[85].mxu0  ;;  %v3320_v48 = vpop.f32.mrb[85].mxu1 }
 0x19f   :  { %v3257_v43 = vadd.f32 %v3256_v37, %v3255_v61  ;;  %v3321_v5 = vadd.f32 %v3320_v48, %v3319_v36  ;;  %v3258_v35 = vpop.f32.mrb[86].mxu0  ;;  %v3322_v15 = vpop.f32.mrb[86].mxu1 }
 0x1a0   :  { %v3259_v44 = vpop.f32.mrb[87].mxu0  ;;  %v3323_v28 = vpop.f32.mrb[87].mxu1 }
 0x1a1   :  { %v4766_v46 = vadd.f32 %v3257_v43, %v4671_v6  ;;  %v3260_v23 = vadd.f32 %v3259_v44, %v3258_v35  ;;  %v3324_v18 = vadd.f32 %v3323_v28, %v3322_v15  ;;  %v4769_v24 = vadd.f32 %v3321_v5, %v4674_v50 }
 0x1a3   :  { %v4772_v25 = vadd.f32 %v3260_v23, %v4676_v60  ;;  %v4775_v55 = vadd.f32 %v3324_v18, %v4679_v57 }
 0x1a5   :  { %v3261_v49 = vpop.f32.mrb[88].mxu0  ;;  %v3325_v42 = vpop.f32.mrb[88].mxu1 }
 0x1a6   :  { %v3262_v45 = vpop.f32.mrb[89].mxu0  ;;  %v3326_v8 = vpop.f32.mrb[89].mxu1 }
 0x1a7   :  { %v3263_v14 = vadd.f32 %v3262_v45, %v3261_v49  ;;  %v3327_v3 = vadd.f32 %v3326_v8, %v3325_v42  ;;  %v3264_v53 = vpop.f32.mrb[90].mxu0  ;;  %v3328_v6 = vpop.f32.mrb[90].mxu1 }
 0x1a8   :  { %v3265_v9 = vpop.f32.mrb[91].mxu0  ;;  %v3329_v12 = vpop.f32.mrb[91].mxu1 }
 0x1a9   :  { %v4778_v22 = vadd.f32 %v3263_v14, %v4683_v19  ;;  %v3266_v50 = vadd.f32 %v3265_v9, %v3264_v53  ;;  %v3330_v2 = vadd.f32 %v3329_v12, %v3328_v6  ;;  %v4781_v60 = vadd.f32 %v3327_v3, %v4686_v11 }
 0x1ab   :  { %v4784_v57 = vadd.f32 %v3266_v50, %v4688_v26  ;;  %v4787_v10 = vadd.f32 %v3330_v2, %v4691_v30 }
 0x1ad   :  { %v3267_v56 = vpop.f32.mrb[92].mxu0  ;;  %v3331_v17 = vpop.f32.mrb[92].mxu1 }
 0x1ae   :  { %v3268_v20 = vpop.f32.mrb[93].mxu0  ;;  %v3332_v13 = vpop.f32.mrb[93].mxu1 }
 0x1af   :  { %v3269_v61 = vadd.f32 %v3268_v20, %v3267_v56  ;;  %v3333_v36 = vadd.f32 %v3332_v13, %v3331_v17  ;;  %v3270_v37 = vpop.f32.mrb[94].mxu0  ;;  %v3334_v19 = vpop.f32.mrb[94].mxu1 }
 0x1b0   :  { %v3271_v48 = vpop.f32.mrb[95].mxu0  ;;  %v3335_v43 = vpop.f32.mrb[95].mxu1 }
 0x1b1   :  { %v4790_v5 = vadd.f32 %v3269_v61, %v4695_v38  ;;  %v3272_v11 = vadd.f32 %v3271_v48, %v3270_v37  ;;  %v3336_v35 = vadd.f32 %v3335_v43, %v3334_v19  ;;  %v4793_v26 = vadd.f32 %v3333_v36, %v4698_v40 }
 0x1b3   :  { %v4796_v30 = vadd.f32 %v3272_v11, %v4700_v1  ;;  %v4799_v15 = vadd.f32 %v3336_v35, %v4703_v0 }
 0x1b5   :  { %v3273_v44 = vpop.f32.mrb[96].mxu0  ;;  %v3337_v28 = vpop.f32.mrb[96].mxu1 }
 0x1b6   :  { %v3274_v23 = vpop.f32.mrb[97].mxu0  ;;  %v3338_v18 = vpop.f32.mrb[97].mxu1 }
 0x1b7   :  { %v3275_v49 = vadd.f32 %v3274_v23, %v3273_v44  ;;  %v3339_v42 = vadd.f32 %v3338_v18, %v3337_v28  ;;  %v3276_v45 = vpop.f32.mrb[98].mxu0  ;;  %v3340_v38 = vpop.f32.mrb[98].mxu1 }
 0x1b8   :  { %v3277_v8 = vpop.f32.mrb[99].mxu0  ;;  %v3341_v14 = vpop.f32.mrb[99].mxu1 }
 0x1b9   :  { %v4802_v3 = vadd.f32 %v3275_v49, %v4707_v27  ;;  %v3278_v40 = vadd.f32 %v3277_v8, %v3276_v45  ;;  %v3342_v53 = vadd.f32 %v3341_v14, %v3340_v38  ;;  %v4805_v1 = vadd.f32 %v3339_v42, %v4710_v4 }
 0x1bb   :  { %v4808_v0 = vadd.f32 %v3278_v40, %v4712_v32  ;;  %v4811_v6 = vadd.f32 %v3342_v53, %v4715_v39 }
 0x1bd   :  { %v3279_v9 = vpop.f32.mrb[100].mxu0  ;;  %v3343_v12 = vpop.f32.mrb[100].mxu1 }
 0x1be   :  { %v3280_v50 = vpop.f32.mrb[101].mxu0  ;;  %v3344_v2 = vpop.f32.mrb[101].mxu1 }
 0x1bf   :  { %v3281_v56 = vadd.f32 %v3280_v50, %v3279_v9  ;;  %v3345_v17 = vadd.f32 %v3344_v2, %v3343_v12  ;;  %v3282_v20 = vpop.f32.mrb[102].mxu0  ;;  %v3346_v27 = vpop.f32.mrb[102].mxu1 }
 0x1c0   :  { %v3283_v13 = vpop.f32.mrb[103].mxu0  ;;  %v3347_v61 = vpop.f32.mrb[103].mxu1 }
 0x1c1   :  { %v4814_v36 = vadd.f32 %v3281_v56, %v4719_v62  ;;  %v3284_v4 = vadd.f32 %v3283_v13, %v3282_v20  ;;  %v3348_v37 = vadd.f32 %v3347_v61, %v3346_v27  ;;  %v4817_v32 = vadd.f32 %v3345_v17, %v4722_v33 }
 0x1c3   :  { %v4820_v39 = vadd.f32 %v3284_v4, %v4724_v58  ;;  %v4823_v19 = vadd.f32 %v3348_v37, %v4727_v7 }
 0x1c5   :  { %v3285_v48 = vpop.f32.mrb[104].mxu0  ;;  %v3349_v43 = vpop.f32.mrb[104].mxu1 }
 0x1c6   :  { %v3286_v11 = vpop.f32.mrb[105].mxu0  ;;  %v3350_v35 = vpop.f32.mrb[105].mxu1 }
 0x1c7   :  { %v3287_v44 = vadd.f32 %v3286_v11, %v3285_v48  ;;  %v3351_v28 = vadd.f32 %v3350_v35, %v3349_v43  ;;  %v3288_v23 = vpop.f32.mrb[106].mxu0  ;;  %v3352_v62 = vpop.f32.mrb[106].mxu1 }
 0x1c8   :  { %v3289_v18 = vpop.f32.mrb[107].mxu0  ;;  %v3353_v49 = vpop.f32.mrb[107].mxu1 }
 0x1c9   :  { %v4826_v42 = vadd.f32 %v3287_v44, %v4731_v34  ;;  %v3290_v33 = vadd.f32 %v3289_v18, %v3288_v23  ;;  %v3354_v45 = vadd.f32 %v3353_v49, %v3352_v62  ;;  %v4829_v58 = vadd.f32 %v3351_v28, %v4734_v59 }
 0x1cb   :  { %v4832_v7 = vadd.f32 %v3290_v33, %v4736_v54  ;;  %v4835_v38 = vadd.f32 %v3354_v45, %v4739_v41 }
 0x1cd   :  { %v3291_v8 = vpop.f32.mrb[108].mxu0  ;;  %v3355_v14 = vpop.f32.mrb[108].mxu1 }
 0x1ce   :  { %v3292_v40 = vpop.f32.mrb[109].mxu0  ;;  %v3356_v53 = vpop.f32.mrb[109].mxu1 }
 0x1cf   :  { %v3293_v9 = vadd.f32 %v3292_v40, %v3291_v8  ;;  %v3357_v12 = vadd.f32 %v3356_v53, %v3355_v14  ;;  %v3294_v50 = vpop.f32.mrb[110].mxu0  ;;  %v3358_v34 = vpop.f32.mrb[110].mxu1 }
 0x1d0   :  { %v3295_v2 = vpop.f32.mrb[111].mxu0  ;;  %v3359_v56 = vpop.f32.mrb[111].mxu1 }
 0x1d1   :  { %v4838_v17 = vadd.f32 %v3293_v9, %v4743_v16  ;;  %v3296_v59 = vadd.f32 %v3295_v2, %v3294_v50  ;;  %v3360_v20 = vadd.f32 %v3359_v56, %v3358_v34  ;;  %v4841_v54 = vadd.f32 %v3357_v12, %v4746_v21 }
 0x1d3   :  { %v4844_v41 = vadd.f32 %v3296_v59, %v4748_v51  ;;  %v4847_v27 = vadd.f32 %v3360_v20, %v4751_v47 }
 0x1d5   :  { %v3361_v13 = vpop.f32.mrb[112].mxu1  ;;  %v3451_v61 = vpop.f32.mrb[112].mxu0 }
 0x1d6   :  { %v2366_v4 = vadd.f32 %v3451_v61, %v4769_v24  ;;  %v3362_v37 = vpop.f32.mrb[113].mxu1  ;;  %v2357_v48 = vpop.f32.mrb[113].mxu0 }
 0x1d7   :  { %v3363_v43 = vadd.f32 %v3362_v37, %v3361_v13  ;;  %v2358_v16 = vadd.f32 %v2357_v48, %v4757_v29  ;;  %v3364_v11 = vpop.f32.mrb[114].mxu1  ;;  %v3452_v35 = vpop.f32.mrb[114].mxu0 }
 0x1d8   :  { %v2486_v44 = vmax.f32 %v2366_v4, 0.0  ;;  %v2369_v21 = vadd.f32 %v3452_v35, %v4775_v55  ;;  %v3365_v51 = vpop.f32.mrb[115].mxu1  ;;  %v2360_v28 = vpop.f32.mrb[115].mxu0 }
 0x1d9   :  { %v2484_v23 = vmax.f32 %v2358_v16, 0.0  ;;  %v3366_v47 = vadd.f32 %v3365_v51, %v3364_v11  ;;  %v2361_v62 = vadd.f32 %v2360_v28, %v4763_v63  ;;  %v4854_v18 = vadd.f32 %v3363_v43, %v4754_v31 }
 0x1da   :  { %v2931_v24 = vpack.c.bf16 %v2486_v44, %v2486_v44  ;;  %v2487_v49 = vmax.f32 %v2369_v21, 0.0 }
 0x1db   :  { %v2929_v33 = vpack.c.bf16 %v2484_v23, %v2484_v23  ;;  %v2485_v45 = vmax.f32 %v2361_v62, 0.0  ;;  %v4857_v29 = vadd.f32 %v3366_v47, %v4760_v52 }
 0x1dc   :  { %2647 = vst.msk [vmem:[%s5030_s3 + $0x8] sm:$0xf] %vm2644_vm0, %v2931_v24  ;;  %v2932_v55 = vpack.c.bf16 %v2487_v49, %v2487_v49 }
 0x1dd   :  { %2645 = vst.msk [vmem:[%s5030_s3] sm:$0xf] %vm2644_vm0, %v2929_v33  ;;  %v2930_v31 = vpack.c.bf16 %v2485_v45, %v2485_v45  ;;  %v3367_v63 = vpop.f32.mrb[116].mxu1  ;;  %v3455_v8 = vpop.f32.mrb[116].mxu0 }
 0x1de   :  { %2648 = vst.msk [vmem:[%s5030_s3 + $0xc] sm:$0xf] %vm2644_vm0, %v2932_v55  ;;  %v2382_v52 = vadd.f32 %v3455_v8, %v4793_v26  ;;  %v3368_v14 = vpop.f32.mrb[117].mxu1  ;;  %v2373_v40 = vpop.f32.mrb[117].mxu0 }
 0x1df   :  { %2646 = vst.msk [vmem:[%s5030_s3 + $0x4] sm:$0xf] %vm2644_vm0, %v2930_v31  ;;  %v3369_v53 = vadd.f32 %v3368_v14, %v3367_v63  ;;  %v2374_v9 = vadd.f32 %v2373_v40, %v4781_v60  ;;  %v3370_v12 = vpop.f32.mrb[118].mxu1  ;;  %v3456_v50 = vpop.f32.mrb[118].mxu0 }
 0x1e0   :  { %v2490_v34 = vmax.f32 %v2382_v52, 0.0  ;;  %v2385_v2 = vadd.f32 %v3456_v50, %v4799_v15  ;;  %v3371_v56 = vpop.f32.mrb[119].mxu1  ;;  %v2376_v59 = vpop.f32.mrb[119].mxu0 }
 0x1e1   :  { %v2488_v20 = vmax.f32 %v2374_v9, 0.0  ;;  %v3372_v13 = vadd.f32 %v3371_v56, %v3370_v12  ;;  %v2377_v26 = vadd.f32 %v2376_v59, %v4787_v10  ;;  %v4880_v61 = vadd.f32 %v3369_v53, %v4766_v46 }
 0x1e2   :  { %v2935_v4 = vpack.c.bf16 %v2490_v34, %v2490_v34  ;;  %v2491_v37 = vmax.f32 %v2385_v2, 0.0 }
 0x1e3   :  { %v2933_v48 = vpack.c.bf16 %v2488_v20, %v2488_v20  ;;  %v2489_v43 = vmax.f32 %v2377_v26, 0.0  ;;  %v4883_v60 = vadd.f32 %v3372_v13, %v4772_v25 }
 0x1e4   :  { %2651 = vst.msk [vmem:[%s5030_s3 + $0x18] sm:$0xf] %vm2644_vm0, %v2935_v4  ;;  %v2936_v15 = vpack.c.bf16 %v2491_v37, %v2491_v37 }
 0x1e5   :  { %2649 = vst.msk [vmem:[%s5030_s3 + $0x10] sm:$0xf] %vm2644_vm0, %v2933_v48  ;;  %v2934_v46 = vpack.c.bf16 %v2489_v43, %v2489_v43  ;;  %v3373_v10 = vpop.f32.mrb[120].mxu1  ;;  %v3459_v16 = vpop.f32.mrb[120].mxu0 }
 0x1e6   :  { %2652 = vst.msk [vmem:[%s5030_s3 + $0x1c] sm:$0xf] %vm2644_vm0, %v2936_v15  ;;  %v2398_v25 = vadd.f32 %v3459_v16, %v4817_v32  ;;  %v3374_v11 = vpop.f32.mrb[121].mxu1  ;;  %v2389_v35 = vpop.f32.mrb[121].mxu0 }
 0x1e7   :  { %2650 = vst.msk [vmem:[%s5030_s3 + $0x14] sm:$0xf] %vm2644_vm0, %v2934_v46  ;;  %v3375_v44 = vadd.f32 %v3374_v11, %v3373_v10  ;;  %v2390_v21 = vadd.f32 %v2389_v35, %v4805_v1  ;;  %v3376_v51 = vpop.f32.mrb[122].mxu1  ;;  %v3460_v28 = vpop.f32.mrb[122].mxu0 }
 0x1e8   :  { %v2494_v23 = vmax.f32 %v2398_v25, 0.0  ;;  %v2401_v47 = vadd.f32 %v3460_v28, %v4823_v19  ;;  %v3377_v62 = vpop.f32.mrb[123].mxu1  ;;  %v2392_v24 = vpop.f32.mrb[123].mxu0 }
 0x1e9   :  { %v2492_v49 = vmax.f32 %v2390_v21, 0.0  ;;  %v3378_v33 = vadd.f32 %v3377_v62, %v3376_v51  ;;  %v2393_v32 = vadd.f32 %v2392_v24, %v4811_v6  ;;  %v4906_v45 = vadd.f32 %v3375_v44, %v4778_v22 }
 0x1ea   :  { %v2939_v55 = vpack.c.bf16 %v2494_v23, %v2494_v23  ;;  %v2495_v31 = vmax.f32 %v2401_v47, 0.0 }
 0x1eb   :  { %v2937_v63 = vpack.c.bf16 %v2492_v49, %v2492_v49  ;;  %v2493_v8 = vmax.f32 %v2393_v32, 0.0  ;;  %v4909_v1 = vadd.f32 %v3378_v33, %v4784_v57 }
 0x1ec   :  { %2655 = vst.msk [vmem:[%s5030_s3 + $0x28] sm:$0xf] %vm2644_vm0, %v2939_v55  ;;  %v2940_v19 = vpack.c.bf16 %v2495_v31, %v2495_v31 }
 0x1ed   :  { %2653 = vst.msk [vmem:[%s5030_s3 + $0x20] sm:$0xf] %vm2644_vm0, %v2937_v63  ;;  %v2938_v22 = vpack.c.bf16 %v2493_v8, %v2493_v8  ;;  %v3379_v6 = vpop.f32.mrb[124].mxu1  ;;  %v3463_v52 = vpop.f32.mrb[124].mxu0 }
 0x1ee   :  { %2656 = vst.msk [vmem:[%s5030_s3 + $0x2c] sm:$0xf] %vm2644_vm0, %v2940_v19  ;;  %v2414_v57 = vadd.f32 %v3463_v52, %v4841_v54  ;;  %v3380_v14 = vpop.f32.mrb[125].mxu1  ;;  %v2405_v40 = vpop.f32.mrb[125].mxu0 }
 0x1ef   :  { %2654 = vst.msk [vmem:[%s5030_s3 + $0x24] sm:$0xf] %vm2644_vm0, %v2938_v22  ;;  %v3381_v53 = vadd.f32 %v3380_v14, %v3379_v6  ;;  %v2406_v9 = vadd.f32 %v2405_v40, %v4829_v58  ;;  %v3382_v12 = vpop.f32.mrb[126].mxu1  ;;  %v3464_v50 = vpop.f32.mrb[126].mxu0 }
 0x1f0   :  { %v2498_v34 = vmax.f32 %v2414_v57, 0.0  ;;  %v2417_v2 = vadd.f32 %v3464_v50, %v4847_v27  ;;  %v3383_v56 = vpop.f32.mrb[127].mxu1  ;;  %v2408_v59 = vpop.f32.mrb[127].mxu0 }
 0x1f1   :  { %v2496_v20 = vmax.f32 %v2406_v9, 0.0  ;;  %v3384_v13 = vadd.f32 %v3383_v56, %v3382_v12  ;;  %v2409_v54 = vadd.f32 %v2408_v59, %v4835_v38  ;;  %v2285_v26 = vadd.f32 %v3381_v53, %v4790_v5 }
 0x1f2   :  { %v2943_v4 = vpack.c.bf16 %v2498_v34, %v2498_v34  ;;  %v2499_v37 = vmax.f32 %v2417_v2, 0.0 }
 0x1f3   :  { %v2941_v48 = vpack.c.bf16 %v2496_v20, %v2496_v20  ;;  %v2497_v43 = vmax.f32 %v2409_v54, 0.0  ;;  %v2288_v15 = vadd.f32 %v3384_v13, %v4796_v30 }
 0x1f4   :  { %2659 = vst.msk [vmem:[%s5030_s3 + $0x38] sm:$0xf] %vm2644_vm0, %v2943_v4  ;;  %v2944_v58 = vpack.c.bf16 %v2499_v37, %v2499_v37 }
 0x1f5   :  { %2657 = vst.msk [vmem:[%s5030_s3 + $0x30] sm:$0xf] %vm2644_vm0, %v2941_v48  ;;  %v2942_v38 = vpack.c.bf16 %v2497_v43, %v2497_v43  ;;  %v3385_v27 = vpop.f32.mrb[128].mxu1  ;;  %v3467_v5 = vpop.f32.mrb[128].mxu0 }
 0x1f6   :  { %2660 = vst.msk [vmem:[%s5030_s3 + $0x3c] sm:$0xf] %vm2644_vm0, %v2944_v58  ;;  %v2430_v30 = vadd.f32 %v3467_v5, %v4880_v61  ;;  %v3386_v46 = vpop.f32.mrb[129].mxu1  ;;  %v2421_v10 = vpop.f32.mrb[129].mxu0 }
 0x1f7   :  { %2658 = vst.msk [vmem:[%s5030_s3 + $0x34] sm:$0xf] %vm2644_vm0, %v2942_v38  ;;  %v3387_v16 = vadd.f32 %v3386_v46, %v3385_v27  ;;  %v2422_v25 = vadd.f32 %v2421_v10, %v4854_v18  ;;  %v3388_v11 = vpop.f32.mrb[130].mxu1  ;;  %v3468_v35 = vpop.f32.mrb[130].mxu0 }
 0x1f8   :  { %v2502_v44 = vmax.f32 %v2430_v30, 0.0  ;;  %v2433_v21 = vadd.f32 %v3468_v35, %v4883_v60  ;;  %v3389_v51 = vpop.f32.mrb[131].mxu1  ;;  %v2424_v28 = vpop.f32.mrb[131].mxu0 }
 0x1f9   :  { %v2500_v23 = vmax.f32 %v2422_v25, 0.0  ;;  %v3390_v47 = vadd.f32 %v3389_v51, %v3388_v11  ;;  %v2425_v61 = vadd.f32 %v2424_v28, %v4857_v29  ;;  %v2293_v62 = vadd.f32 %v3387_v16, %v4802_v3 }
 0x1fa   :  { %v2947_v24 = vpack.c.bf16 %v2502_v44, %v2502_v44  ;;  %v2503_v49 = vmax.f32 %v2433_v21, 0.0 }
 0x1fb   :  { %v2945_v33 = vpack.c.bf16 %v2500_v23, %v2500_v23  ;;  %v2501_v32 = vmax.f32 %v2425_v61, 0.0  ;;  %v2296_v55 = vadd.f32 %v3390_v47, %v4808_v0 }
 0x1fc   :  { %2663 = vst.msk [vmem:[%s5030_s3 + $0x48] sm:$0xf] %vm2644_vm0, %v2947_v24  ;;  %v2948_v18 = vpack.c.bf16 %v2503_v49, %v2503_v49 }
 0x1fd   :  { %2661 = vst.msk [vmem:[%s5030_s3 + $0x40] sm:$0xf] %vm2644_vm0, %v2945_v33  ;;  %v2946_v29 = vpack.c.bf16 %v2501_v32, %v2501_v32  ;;  %v3391_v60 = vpop.f32.mrb[132].mxu1  ;;  %v3471_v3 = vpop.f32.mrb[132].mxu0 }
 0x1fe   :  { %2664 = vst.msk [vmem:[%s5030_s3 + $0x4c] sm:$0xf] %vm2644_vm0, %v2948_v18  ;;  %v2446_v0 = vadd.f32 %v3471_v3, %v2285_v26  ;;  %v3392_v31 = vpop.f32.mrb[133].mxu1  ;;  %v2437_v63 = vpop.f32.mrb[133].mxu0 }
 0x1ff   :  { %2662 = vst.msk [vmem:[%s5030_s3 + $0x44] sm:$0xf] %vm2644_vm0, %v2946_v29  ;;  %v3393_v8 = vadd.f32 %v3392_v31, %v3391_v60  ;;  %v2438_v19 = vadd.f32 %v2437_v63, %v4906_v45  ;;  %v3394_v22 = vpop.f32.mrb[134].mxu1  ;;  %v3472_v6 = vpop.f32.mrb[134].mxu0 }
 0x200   :  { %v2506_v52 = vmax.f32 %v2446_v0, 0.0  ;;  %v2449_v57 = vadd.f32 %v3472_v6, %v2288_v15  ;;  %v3395_v14 = vpop.f32.mrb[135].mxu1  ;;  %v2440_v40 = vpop.f32.mrb[135].mxu0 }
 0x201   :  { %v2504_v53 = vmax.f32 %v2438_v19, 0.0  ;;  %v3396_v9 = vadd.f32 %v3395_v14, %v3394_v22  ;;  %v2441_v12 = vadd.f32 %v2440_v40, %v4909_v1  ;;  %v2301_v50 = vadd.f32 %v3393_v8, %v4814_v36 }
 0x202   :  { %v2951_v34 = vpack.c.bf16 %v2506_v52, %v2506_v52  ;;  %v2507_v2 = vmax.f32 %v2449_v57, 0.0 }
 0x203   :  { %v2949_v56 = vpack.c.bf16 %v2504_v53, %v2504_v53  ;;  %v2505_v59 = vmax.f32 %v2441_v12, 0.0  ;;  %v2304_v20 = vadd.f32 %v3396_v9, %v4820_v39 }
 0x204   :  { %2667 = vst.msk [vmem:[%s5030_s3 + $0x58] sm:$0xf] %vm2644_vm0, %v2951_v34  ;;  %v2952_v45 = vpack.c.bf16 %v2507_v2, %v2507_v2 }
 0x205   :  { %2665 = vst.msk [vmem:[%s5030_s3 + $0x50] sm:$0xf] %vm2644_vm0, %v2949_v56  ;;  %v2950_v1 = vpack.c.bf16 %v2505_v59, %v2505_v59  ;;  %v3397_v13 = vpop.f32.mrb[136].mxu1  ;;  %v3475_v36 = vpop.f32.mrb[136].mxu0 }
 0x206   :  { %2668 = vst.msk [vmem:[%s5030_s3 + $0x5c] sm:$0xf] %vm2644_vm0, %v2952_v45  ;;  %v2462_v39 = vadd.f32 %v3475_v36, %v2301_v50  ;;  %v3398_v54 = vpop.f32.mrb[137].mxu1  ;;  %v2453_v26 = vpop.f32.mrb[137].mxu0 }
 0x207   :  { %2666 = vst.msk [vmem:[%s5030_s3 + $0x54] sm:$0xf] %vm2644_vm0, %v2950_v1  ;;  %v3399_v4 = vadd.f32 %v3398_v54, %v3397_v13  ;;  %v2454_v37 = vadd.f32 %v2453_v26, %v2293_v62  ;;  %v3400_v48 = vpop.f32.mrb[138].mxu1  ;;  %v3476_v43 = vpop.f32.mrb[138].mxu0 }
 0x208   :  { %v2510_v15 = vmax.f32 %v2462_v39, 0.0  ;;  %v2465_v58 = vadd.f32 %v3476_v43, %v2304_v20  ;;  %v3401_v38 = vpop.f32.mrb[139].mxu1  ;;  %v2456_v27 = vpop.f32.mrb[139].mxu0 }
 0x209   :  { %v2508_v5 = vmax.f32 %v2454_v37, 0.0  ;;  %v3402_v30 = vadd.f32 %v3401_v38, %v3400_v48  ;;  %v2457_v46 = vadd.f32 %v2456_v27, %v2296_v55  ;;  %v2309_v10 = vadd.f32 %v3399_v4, %v4826_v42 }
 0x20a   :  { %v2955_v16 = vpack.c.bf16 %v2510_v15, %v2510_v15  ;;  %v2511_v25 = vmax.f32 %v2465_v58, 0.0 }
 0x20b   :  { %v2953_v11 = vpack.c.bf16 %v2508_v5, %v2508_v5  ;;  %v2509_v35 = vmax.f32 %v2457_v46, 0.0  ;;  %v2312_v44 = vadd.f32 %v3402_v30, %v4832_v7 }
 0x20c   :  { %2671 = vst.msk [vmem:[%s5030_s3 + $0x68] sm:$0xf] %vm2644_vm0, %v2955_v16  ;;  %v2956_v21 = vpack.c.bf16 %v2511_v25, %v2511_v25 }
 0x20d   :  { %2669 = vst.msk [vmem:[%s5030_s3 + $0x60] sm:$0xf] %vm2644_vm0, %v2953_v11  ;;  %v2954_v51 = vpack.c.bf16 %v2509_v35, %v2509_v35  ;;  %v3403_v28 = vpop.f32.mrb[140].mxu1  ;;  %v3479_v42 = vpop.f32.mrb[140].mxu0 }
 0x20e   :  { %2672 = vst.msk [vmem:[%s5030_s3 + $0x6c] sm:$0xf] %vm2644_vm0, %v2956_v21  ;;  %v3404_v7 = vpop.f32.mrb[141].mxu1  ;;  %v2469_v23 = vpop.f32.mrb[141].mxu0 }
 0x20f   :  { %2670 = vst.msk [vmem:[%s5030_s3 + $0x64] sm:$0xf] %vm2644_vm0, %v2954_v51  ;;  %v3405_v47 = vadd.f32 %v3404_v7, %v3403_v28  ;;  %v2470_v61 = vadd.f32 %v2469_v23, %v2309_v10  ;;  %v3406_v62 = vpop.f32.mrb[142].mxu1  ;;  %v3480_v24 = vpop.f32.mrb[142].mxu0 }
 0x210   :  { %v3407_v49 = vpop.f32.mrb[143].mxu1  ;;  %v2472_v33 = vpop.f32.mrb[143].mxu0 }
 0x211   :  { %v2317_v32 = vadd.f32 %v3405_v47, %v4838_v17  ;;  %v2512_v55 = vmax.f32 %v2470_v61, 0.0  ;;  %v3408_v18 = vadd.f32 %v3407_v49, %v3406_v62  ;;  %v2473_v29 = vadd.f32 %v2472_v33, %v2312_v44 }
 0x213   :  { %v2478_v60 = vadd.f32 %v3479_v42, %v2317_v32  ;;  %v2957_v3 = vpack.c.bf16 %v2512_v55, %v2512_v55  ;;  %v2320_v0 = vadd.f32 %v3408_v18, %v4844_v41  ;;  %v2513_v31 = vmax.f32 %v2473_v29, 0.0 }
 0x215   :  { %v2514_v63 = vmax.f32 %v2478_v60, 0.0  ;;  %2673 = vst.msk [vmem:[%s5030_s3 + $0x70] sm:$0xf] %vm2644_vm0, %v2957_v3  ;;  %v2481_v8 = vadd.f32 %v3480_v24, %v2320_v0  ;;  %v2958_v19 = vpack.c.bf16 %v2513_v31, %v2513_v31 }
 0x217   :  { %v2959_v22 = vpack.c.bf16 %v2514_v63, %v2514_v63  ;;  %v2515_v6 = vmax.f32 %v2481_v8, 0.0  ;;  %2674 = vst.msk [vmem:[%s5030_s3 + $0x74] sm:$0xf] %vm2644_vm0, %v2958_v19 }
 0x219   :  { %2675 = vst.msk [vmem:[%s5030_s3 + $0x78] sm:$0xf] %vm2644_vm0, %v2959_v22  ;;  %v2960_v17 = vpack.c.bf16 %v2515_v6, %v2515_v6 }
 0x21b   :  { %2676 = vst.msk [vmem:[%s5030_s3 + $0x7c] sm:$0xf] %vm2644_vm0, %v2960_v17 }

// kernel: vae_encoder_forward.11
= control target key start
LH: loop header
LB: loop body
LE: loop exit
PB: predicated region body
PF: predicated region fallthrough
CT: control target
= control target key end

     0   :  { %v3821_v22 = vmov 1966171168   ;;  %v546_v24 = vlaneseq  ;;  %s4674_s1 = inlined_call_operand.vmem [shape: bf16[4096,128], index: 1, kind: input, shape index: {}]   ;;  %s4675_s0 = inlined_call_operand.vmem [shape: bf16[2,4096], index: 0, kind: input, shape index: {}]   ;;  %s4676_s2 = inlined_call_operand.vmem [shape: f32[1,128], index: 2, kind: input, shape index: {}]   ;;  %s4677_s3 = inlined_call_operand.vmem [shape: f32[2,128], index: 3, kind: output, shape index: {}]  }
   0x1   :  { %v3561_v0 = vld [vmem:[%s4674_s1 + $0x40] sm:$0xff]   ;;  %v3565_v4 = vld [vmem:[%s4674_s1 + $0x48] sm:$0xff]   ;;  %v3569_v8 = vld [vmem:[%s4674_s1 + $0x50] sm:$0xff]   ;;  %v544_v23 = vunpack.c.l.s4 %v3821_v22 }
   0x2   :  { %v3562_v1 = vld [vmem:[%s4674_s1 + $0xc0] sm:$0xff]   ;;  %3208 = vmatprep.subr.bf16.mxu0 %v3561_v0  ;;  %v3566_v5 = vld [vmem:[%s4674_s1 + $0xc8] sm:$0xff]   ;;  %v3570_v9 = vld [vmem:[%s4674_s1 + $0xd0] sm:$0xff]   ;;  %v547_v30 = vshrl.u32 %v546_v24, 7 }
   0x3   :  { %v3563_v2 = vld [vmem:[%s4674_s1] sm:$0xff]   ;;  %3230 = vmatprep.subr.bf16.mxu1 %v3562_v1  ;;  %v3567_v6 = vld [vmem:[%s4674_s1 + $0x8] sm:$0xff]   ;;  %v3571_v10 = vld [vmem:[%s4674_s1 + $0x10] sm:$0xff]   ;;  %v545_v29 = vunpack.c.0.s8 %v544_v23 }
   0x4   :  { %v3564_v3 = vld [vmem:[%s4674_s1 + $0x80] sm:$0xff]   ;;  %3209 = vmatpush3.bf16.msra.mxu0 %v3563_v2  ;;  %v3568_v7 = vld [vmem:[%s4674_s1 + $0x88] sm:$0xff]   ;;  %v3572_v11 = vld [vmem:[%s4674_s1 + $0x90] sm:$0xff]  }
   0x5   :  { %3231 = vmatpush3.bf16.msra.mxu1 %v3564_v3  ;;  %3210 = vmatprep.subr.bf16.mxu0 %v3565_v4  ;;  %v3573_v12 = vld [vmem:[%s4674_s1 + $0x58] sm:$0xff]   ;;  %v3577_v16 = vld [vmem:[%s4674_s1 + $0x60] sm:$0xff]   ;;  %v3581_v20 = vld [vmem:[%s4674_s1 + $0x68] sm:$0xff]   ;;  %v3932_v35 = vsub.s32 %v545_v29, %v547_v30 }
   0x6   :  { %3232 = vmatprep.subr.bf16.mxu1 %v3566_v5  ;;  %v3574_v13 = vld [vmem:[%s4674_s1 + $0xd8] sm:$0xff]   ;;  %v3578_v17 = vld [vmem:[%s4674_s1 + $0xe0] sm:$0xff]   ;;  %v3582_v21 = vld [vmem:[%s4674_s1 + $0xe8] sm:$0xff]  }
   0x7   :  { %v3575_v14 = vld [vmem:[%s4674_s1 + $0x18] sm:$0xff]   ;;  %v3579_v18 = vld [vmem:[%s4674_s1 + $0x20] sm:$0xff]   ;;  %v3583_v25 = vld [vmem:[%s4674_s1 + $0x28] sm:$0xff]  }
   0x8   :  { %3211 = vmatpush3.bf16.msra.mxu0 %v3567_v6  ;;  %v3576_v15 = vld [vmem:[%s4674_s1 + $0x98] sm:$0xff]   ;;  %v3580_v19 = vld [vmem:[%s4674_s1 + $0xa0] sm:$0xff]   ;;  %v3584_v26 = vld [vmem:[%s4674_s1 + $0xa8] sm:$0xff]  }
   0x9   :  { %3233 = vmatpush3.bf16.msra.mxu1 %v3568_v7  ;;  %3212 = vmatprep.subr.bf16.mxu0 %v3569_v8  ;;  %v3585_v27 = vld [vmem:[%s4674_s1 + $0x70] sm:$0xff]   ;;  %v3589_v33 = vld [vmem:[%s4674_s1 + $0x78] sm:$0xff]   ;;  %v15_v38 = vld [vmem:[%s4675_s0] sm:$0xff] }
   0xa   :  { %3234 = vmatprep.subr.bf16.mxu1 %v3570_v9  ;;  %v3586_v28 = vld [vmem:[%s4674_s1 + $0xf0] sm:$0xff]   ;;  %v3590_v34 = vld [vmem:[%s4674_s1 + $0xf8] sm:$0xff]   ;;  %v542_v39 = vcombine.high %v15_v38, %v15_v38  ;;  %v549_v40 = vrot.slane %v15_v38, %v3932_v35  ;;  %v3594_v41 = vld [vmem:[%s4674_s1 + $0x140] sm:$0xff]  }
   0xb   :  { %v3587_v31 = vld [vmem:[%s4674_s1 + $0x30] sm:$0xff]   ;;  %v3591_v36 = vld [vmem:[%s4674_s1 + $0x38] sm:$0xff]   ;;  %v3595_v42 = vld [vmem:[%s4674_s1 + $0x1c0] sm:$0xff]  }
   0xc   :  { %3213 = vmatpush3.bf16.msra.mxu0 %v3571_v10  ;;  %v3588_v32 = vld [vmem:[%s4674_s1 + $0xb0] sm:$0xff]   ;;  %v3592_v37 = vld [vmem:[%s4674_s1 + $0xb8] sm:$0xff]   ;;  %v557_v43 = vcombine.high %v549_v40, %v549_v40  ;;  %v565_v44 = vrot.slane %v549_v40, %v3932_v35  ;;  %v3952_v45 = vrot.slane %v542_v39, %v3932_v35  ;;  %v3596_v46 = vld [vmem:[%s4674_s1 + $0x100] sm:$0xff]  }
   0xd   :  { %3235 = vmatpush3.bf16.msra.mxu1 %v3572_v11  ;;  %3214 = vmatprep.subr.bf16.mxu0 %v3573_v12  ;;  %v3597_v48 = vld [vmem:[%s4674_s1 + $0x180] sm:$0xff]   ;;  %v3598_v51 = vld [vmem:[%s4674_s1 + $0x148] sm:$0xff]   ;;  %v3602_v58 = vld [vmem:[%s4674_s1 + $0x150] sm:$0xff]  }
   0xe   :  { %3236 = vmatprep.subr.bf16.mxu1 %v3574_v13  ;;  %v579_v47 = vrot.slane %v557_v43, %v3932_v35  ;;  %v558_v49 = vcombine.high %v3952_v45, %v3952_v45  ;;  %v587_v50 = vcombine.high %v565_v44, %v565_v44  ;;  %v3599_v53 = vld [vmem:[%s4674_s1 + $0x1c8] sm:$0xff]   ;;  %v3603_v59 = vld [vmem:[%s4674_s1 + $0x1d0] sm:$0xff]   ;;  %v3606_v62 = vld [vmem:[%s4674_s1 + $0x158] sm:$0xff]  }
   0xf   :  { %v3600_v55 = vld [vmem:[%s4674_s1 + $0x108] sm:$0xff]   ;;  %v3604_v60 = vld [vmem:[%s4674_s1 + $0x110] sm:$0xff]   ;;  %v3607_v63 = vld [vmem:[%s4674_s1 + $0x1d8] sm:$0xff]  }
  0x10   :  { %3215 = vmatpush3.bf16.msra.mxu0 %v3575_v14  ;;  %2338 = vmatprep.mubr.bf16.mxu0 %v579_v47  ;;  %v589_v52 = vcombine.high %v579_v47, %v579_v47  ;;  %v586_v54 = vrot.slane %v558_v49, %v3932_v35  ;;  %v3601_v56 = vld [vmem:[%s4674_s1 + $0x188] sm:$0xff]   ;;  %v3605_v61 = vld [vmem:[%s4674_s1 + $0x190] sm:$0xff]   ;;  %v3608_v0 = vld [vmem:[%s4674_s1 + $0x118] sm:$0xff]  }
  0x11   :  { %3237 = vmatpush3.bf16.msra.mxu1 %v3576_v15  ;;  %3216 = vmatprep.subr.bf16.mxu0 %v3577_v16  ;;  %v3609_v1 = vld [vmem:[%s4674_s1 + $0x198] sm:$0xff]   ;;  %v3610_v2 = vld [vmem:[%s4674_s1 + $0x160] sm:$0xff]   ;;  %v3614_v6 = vld [vmem:[%s4674_s1 + $0x168] sm:$0xff]  }
  0x12   :  { %3238 = vmatprep.subr.bf16.mxu1 %v3578_v17  ;;  %2378 = vmatprep.mubr.bf16.mxu1 %v589_v52  ;;  %v590_v57 = vcombine.high %v586_v54, %v586_v54  ;;  %v3611_v3 = vld [vmem:[%s4674_s1 + $0x1e0] sm:$0xff]   ;;  %v3615_v7 = vld [vmem:[%s4674_s1 + $0x1e8] sm:$0xff]   ;;  %v3618_v10 = vld [vmem:[%s4674_s1 + $0x170] sm:$0xff]  }
  0x13   :  { %v3612_v4 = vld [vmem:[%s4674_s1 + $0x120] sm:$0xff]   ;;  %v3616_v8 = vld [vmem:[%s4674_s1 + $0x128] sm:$0xff]   ;;  %v3619_v11 = vld [vmem:[%s4674_s1 + $0x1f0] sm:$0xff]  }
  0x14   :  { %3217 = vmatpush3.bf16.msra.mxu0 %v3579_v18  ;;  %v3613_v5 = vld [vmem:[%s4674_s1 + $0x1a0] sm:$0xff]   ;;  %v3617_v9 = vld [vmem:[%s4674_s1 + $0x1a8] sm:$0xff]   ;;  %v3620_v12 = vld [vmem:[%s4674_s1 + $0x130] sm:$0xff]   ;;  %v572_v18 = vrot.slane %v3952_v45, %v3932_v35 }
  0x15   :  { %3239 = vmatpush3.bf16.msra.mxu1 %v3580_v19  ;;  %3218 = vmatprep.subr.bf16.mxu0 %v3581_v20  ;;  %v3621_v13 = vld [vmem:[%s4674_s1 + $0x1b0] sm:$0xff]   ;;  %v3622_v14 = vld [vmem:[%s4674_s1 + $0x178] sm:$0xff]   ;;  %v3626_v19 = vld [vmem:[%s4674_s1 + $0x240] sm:$0xff]  }
  0x16   :  { %3240 = vmatprep.subr.bf16.mxu1 %v3582_v21  ;;  %v3623_v15 = vld [vmem:[%s4674_s1 + $0x1f8] sm:$0xff]   ;;  %v3627_v20 = vld [vmem:[%s4674_s1 + $0x2c0] sm:$0xff]   ;;  %v588_v23 = vcombine.high %v572_v18, %v572_v18  ;;  %v3630_v24 = vld [vmem:[%s4674_s1 + $0x248] sm:$0xff]  }
  0x17   :  { %v3624_v16 = vld [vmem:[%s4674_s1 + $0x138] sm:$0xff]   ;;  %v3628_v21 = vld [vmem:[%s4674_s1 + $0x200] sm:$0xff]   ;;  %v3635_v29 = vld [vmem:[%s4674_s1 + $0x2d0] sm:$0xff]  }
  0x18   :  { %3219 = vmatpush3.bf16.msra.mxu0 %v3583_v25  ;;  %v3625_v17 = vld [vmem:[%s4674_s1 + $0x1b8] sm:$0xff]   ;;  %v3629_v22 = vld [vmem:[%s4674_s1 + $0x280] sm:$0xff]   ;;  %v3631_v25 = vld [vmem:[%s4674_s1 + $0x2c8] sm:$0xff]  }
  0x19   :  { %3241 = vmatpush3.bf16.msra.mxu1 %v3584_v26  ;;  %3220 = vmatprep.subr.bf16.mxu0 %v3585_v27  ;;  %v3632_v26 = vld [vmem:[%s4674_s1 + $0x208] sm:$0xff]   ;;  %v3636_v30 = vld [vmem:[%s4674_s1 + $0x210] sm:$0xff]   ;;  %v3643_v38 = vld [vmem:[%s4674_s1 + $0x2e0] sm:$0xff]  }
  0x1a   :  { %3242 = vmatprep.subr.bf16.mxu1 %v3586_v28  ;;  %v3633_v27 = vld [vmem:[%s4674_s1 + $0x288] sm:$0xff]   ;;  %v3634_v28 = vld [vmem:[%s4674_s1 + $0x250] sm:$0xff]   ;;  %v3644_v39 = vld [vmem:[%s4674_s1 + $0x220] sm:$0xff]  }
  0x1b   :  { %v3645_v40 = vld [vmem:[%s4674_s1 + $0x2a0] sm:$0xff]   ;;  %v3648_v43 = vld [vmem:[%s4674_s1 + $0x228] sm:$0xff]   ;;  %v3650_v45 = vld [vmem:[%s4674_s1 + $0x270] sm:$0xff]  }
  0x1c   :  { %3221 = vmatpush3.bf16.msra.mxu0 %v3587_v31  ;;  %v3637_v31 = vld [vmem:[%s4674_s1 + $0x290] sm:$0xff]   ;;  %v3654_v49 = vld [vmem:[%s4674_s1 + $0x278] sm:$0xff]   ;;  %v16_v52 = vld [vmem:[%s4675_s0 + $0x8] sm:$0xff] }
  0x1d   :  { %3243 = vmatpush3.bf16.msra.mxu1 %v3588_v32  ;;  %3222 = vmatprep.subr.bf16.mxu0 %v3589_v33  ;;  %v3638_v32 = vld [vmem:[%s4674_s1 + $0x258] sm:$0xff]   ;;  %v3652_v47 = vld [vmem:[%s4674_s1 + $0x230] sm:$0xff]  }
  0x1e   :  { %3244 = vmatprep.subr.bf16.mxu1 %v3590_v34  ;;  %v3639_v33 = vld [vmem:[%s4674_s1 + $0x2d8] sm:$0xff]  }
  0x1f   :  { %v3640_v34 = vld [vmem:[%s4674_s1 + $0x218] sm:$0xff]  }
  0x20   :  { %3223 = vmatpush3.bf16.msra.mxu0 %v3591_v36  ;;  %v3641_v36 = vld [vmem:[%s4674_s1 + $0x298] sm:$0xff]  }
  0x21   :  { %3245 = vmatpush3.bf16.msra.mxu1 %v3592_v37  ;;  %3252 = vmatprep.subr.bf16.mxu0 %v3594_v41  ;;  %v3642_v37 = vld [vmem:[%s4674_s1 + $0x260] sm:$0xff]   ;;  %v3646_v41 = vld [vmem:[%s4674_s1 + $0x268] sm:$0xff]  }
  0x22   :  { %3274 = vmatprep.subr.bf16.mxu1 %v3595_v42  ;;  %v3647_v42 = vld [vmem:[%s4674_s1 + $0x2e8] sm:$0xff]  }
  0x23   :  { %2339 = vmatmul.mubr.bf16.vlgmr.msra.gmra.mrb[0].mxu0 %v565_v44  ;;  %v3649_v44 = vld [vmem:[%s4674_s1 + $0x2a8] sm:$0xff]  }
  0x24   :  { %3253 = vmatpush3.bf16.msra.mxu0 %v3596_v46  ;;  %2379 = vmatmul.mubr.bf16.vlgmr.msra.gmra.mrb[0].mxu1 %v587_v50  ;;  %v3651_v46 = vld [vmem:[%s4674_s1 + $0x2f0] sm:$0xff]   ;;  %v3655_v50 = vld [vmem:[%s4674_s1 + $0x2f8] sm:$0xff]  }
  0x25   :  { %3254 = vmatprep.subr.bf16.mxu0 %v3598_v51  ;;  %3275 = vmatpush3.bf16.msra.mxu1 %v3597_v48  ;;  %v3653_v48 = vld [vmem:[%s4674_s1 + $0x2b0] sm:$0xff]   ;;  %v3656_v51 = vld [vmem:[%s4674_s1 + $0x238] sm:$0xff]  }
  0x26   :  { %2418 = vmatprep.mubr.bf16.mxu0 %v586_v54  ;;  %3276 = vmatprep.subr.bf16.mxu1 %v3599_v53  ;;  %v3657_v53 = vld [vmem:[%s4674_s1 + $0x2b8] sm:$0xff]   ;;  %v598_v54 = vrot.slane %v16_v52, %v3932_v35 }
  0x27   :  { %2458 = vmatprep.mubr.bf16.mxu1 %v590_v57 }
  0x28   :  { %3255 = vmatpush3.bf16.msra.mxu0 %v3600_v55  ;;  %v591_v55 = vcombine.high %v16_v52, %v16_v52  ;;  %v606_v57 = vcombine.high %v598_v54, %v598_v54  ;;  %v3707_v52 = vld [vmem:[%s4674_s1 + $0x460] sm:$0xff]  }
  0x29   :  { %3256 = vmatprep.subr.bf16.mxu0 %v3602_v58  ;;  %3277 = vmatpush3.bf16.msra.mxu1 %v3601_v56  ;;  %v3658_v56 = vld [vmem:[%s4674_s1 + $0x340] sm:$0xff]   ;;  %v614_v58 = vrot.slane %v598_v54, %v3932_v35 }
  0x2a   :  { %3278 = vmatprep.subr.bf16.mxu1 %v3603_v59  ;;  %v3659_v59 = vld [vmem:[%s4674_s1 + $0x3c0] sm:$0xff]  }
  0x2b   :  { %v3709_v54 = vld [vmem:[%s4674_s1 + $0x420] sm:$0xff]  }
  0x2c   :  { %3257 = vmatpush3.bf16.msra.mxu0 %v3604_v60  ;;  %v4158_v60 = vrot.slane %v591_v55, %v3932_v35  ;;  %v3710_v55 = vld [vmem:[%s4674_s1 + $0x4a0] sm:$0xff]  }
  0x2d   :  { %3258 = vmatprep.subr.bf16.mxu0 %v3606_v62  ;;  %3279 = vmatpush3.bf16.msra.mxu1 %v3605_v61  ;;  %v3660_v61 = vld [vmem:[%s4674_s1 + $0x300] sm:$0xff]   ;;  %v628_v62 = vrot.slane %v606_v57, %v3932_v35  ;;  %v3712_v57 = vld [vmem:[%s4674_s1 + $0x4e8] sm:$0xff]  }
  0x2e   :  { %3280 = vmatprep.subr.bf16.mxu1 %v3607_v63  ;;  %v3661_v63 = vld [vmem:[%s4674_s1 + $0x380] sm:$0xff]  }
  0x30   :  { %3259 = vmatpush3.bf16.msra.mxu0 %v3608_v0  ;;  %v607_v0 = vcombine.high %v4158_v60, %v4158_v60 }
  0x31   :  { %3260 = vmatprep.subr.bf16.mxu0 %v3610_v2  ;;  %3281 = vmatpush3.bf16.msra.mxu1 %v3609_v1  ;;  %v636_v1 = vcombine.high %v614_v58, %v614_v58  ;;  %v3662_v2 = vld [vmem:[%s4674_s1 + $0x348] sm:$0xff]  }
  0x32   :  { %3282 = vmatprep.subr.bf16.mxu1 %v3611_v3  ;;  %v638_v3 = vcombine.high %v628_v62, %v628_v62 }
  0x34   :  { %3261 = vmatpush3.bf16.msra.mxu0 %v3612_v4  ;;  %v3663_v4 = vld [vmem:[%s4674_s1 + $0x3c8] sm:$0xff]  }
  0x35   :  { %3262 = vmatprep.subr.bf16.mxu0 %v3614_v6  ;;  %3283 = vmatpush3.bf16.msra.mxu1 %v3613_v5  ;;  %v635_v5 = vrot.slane %v607_v0, %v3932_v35  ;;  %v3664_v6 = vld [vmem:[%s4674_s1 + $0x308] sm:$0xff]   ;;  %v3719_v0 = vld [vmem:[%s4674_s1 + $0x478] sm:$0xff]  }
  0x36   :  { %3284 = vmatprep.subr.bf16.mxu1 %v3615_v7  ;;  %v3665_v7 = vld [vmem:[%s4674_s1 + $0x388] sm:$0xff]  }
  0x38   :  { %3263 = vmatpush3.bf16.msra.mxu0 %v3616_v8  ;;  %v639_v8 = vcombine.high %v635_v5, %v635_v5 }
  0x39   :  { %3264 = vmatprep.subr.bf16.mxu0 %v3618_v10  ;;  %3285 = vmatpush3.bf16.msra.mxu1 %v3617_v9  ;;  %v3666_v9 = vld [vmem:[%s4674_s1 + $0x350] sm:$0xff]  }
  0x3a   :  { %3286 = vmatprep.subr.bf16.mxu1 %v3619_v11  ;;  %v3667_v10 = vld [vmem:[%s4674_s1 + $0x3d0] sm:$0xff]  }
  0x3b   :  { %v3668_v11 = vld [vmem:[%s4674_s1 + $0x310] sm:$0xff]  }
  0x3c   :  { %3265 = vmatpush3.bf16.msra.mxu0 %v3620_v12  ;;  %v3669_v12 = vld [vmem:[%s4674_s1 + $0x390] sm:$0xff]  }
  0x3d   :  { %3266 = vmatprep.subr.bf16.mxu0 %v3622_v14  ;;  %3287 = vmatpush3.bf16.msra.mxu1 %v3621_v13  ;;  %v3670_v13 = vld [vmem:[%s4674_s1 + $0x358] sm:$0xff]  }
  0x3e   :  { %3288 = vmatprep.subr.bf16.mxu1 %v3623_v15  ;;  %v3671_v14 = vld [vmem:[%s4674_s1 + $0x3d8] sm:$0xff]  }
  0x3f   :  { %v3672_v15 = vld [vmem:[%s4674_s1 + $0x318] sm:$0xff]  }
  0x40   :  { %3267 = vmatpush3.bf16.msra.mxu0 %v3624_v16  ;;  %v3673_v16 = vld [vmem:[%s4674_s1 + $0x398] sm:$0xff]  }
  0x41   :  { %3296 = vmatprep.subr.bf16.mxu0 %v3626_v19  ;;  %3289 = vmatpush3.bf16.msra.mxu1 %v3625_v17  ;;  %v3674_v17 = vld [vmem:[%s4674_s1 + $0x360] sm:$0xff]  }
  0x42   :  { %3318 = vmatprep.subr.bf16.mxu1 %v3627_v20  ;;  %v3676_v19 = vld [vmem:[%s4674_s1 + $0x320] sm:$0xff]  }
  0x43   :  { %2419 = vmatmul.mubr.bf16.vlgmr.msra.gmra.mrb[4].mxu0 %v572_v18  ;;  %v3675_v18 = vld [vmem:[%s4674_s1 + $0x3e0] sm:$0xff]  }
  0x44   :  { %3297 = vmatpush3.bf16.msra.mxu0 %v3628_v21  ;;  %2459 = vmatmul.mubr.bf16.vlgmr.msra.gmra.mrb[4].mxu1 %v588_v23  ;;  %v3677_v20 = vld [vmem:[%s4674_s1 + $0x3a0] sm:$0xff]   ;;  %v3678_v21 = vld [vmem:[%s4674_s1 + $0x368] sm:$0xff]  }
  0x45   :  { %3298 = vmatprep.subr.bf16.mxu0 %v3630_v24  ;;  %3319 = vmatpush3.bf16.msra.mxu1 %v3629_v22  ;;  %v3679_v22 = vld [vmem:[%s4674_s1 + $0x3e8] sm:$0xff]  }
  0x46   :  { %3320 = vmatprep.subr.bf16.mxu1 %v3631_v25  ;;  %2498 = vmatprep.mubr.bf16.mxu0 %v628_v62  ;;  %v3680_v23 = vld [vmem:[%s4674_s1 + $0x328] sm:$0xff]   ;;  %v3682_v25 = vld [vmem:[%s4674_s1 + $0x370] sm:$0xff]  }
  0x47   :  { %2538 = vmatprep.mubr.bf16.mxu1 %v638_v3  ;;  %v3681_v24 = vld [vmem:[%s4674_s1 + $0x3a8] sm:$0xff]   ;;  %v3717_v62 = vld [vmem:[%s4674_s1 + $0x430] sm:$0xff]  }
  0x48   :  { %3299 = vmatpush3.bf16.msra.mxu0 %v3632_v26  ;;  %v3683_v26 = vld [vmem:[%s4674_s1 + $0x3f0] sm:$0xff]  }
  0x49   :  { %3300 = vmatprep.subr.bf16.mxu0 %v3634_v28  ;;  %3321 = vmatpush3.bf16.msra.mxu1 %v3633_v27  ;;  %v3684_v27 = vld [vmem:[%s4674_s1 + $0x330] sm:$0xff]  }
  0x4a   :  { %3322 = vmatprep.subr.bf16.mxu1 %v3635_v29  ;;  %v3685_v28 = vld [vmem:[%s4674_s1 + $0x3b0] sm:$0xff]   ;;  %v3686_v29 = vld [vmem:[%s4674_s1 + $0x378] sm:$0xff]  }
  0x4b   :  { %v17_v3 = vld [vmem:[%s4675_s0 + $0x10] sm:$0xff] }
  0x4c   :  { %3301 = vmatpush3.bf16.msra.mxu0 %v3636_v30  ;;  %v3687_v30 = vld [vmem:[%s4674_s1 + $0x3f8] sm:$0xff]  }
  0x4d   :  { %3302 = vmatprep.subr.bf16.mxu0 %v3638_v32  ;;  %3323 = vmatpush3.bf16.msra.mxu1 %v3637_v31  ;;  %v3688_v31 = vld [vmem:[%s4674_s1 + $0x338] sm:$0xff]  }
  0x4e   :  { %3324 = vmatprep.subr.bf16.mxu1 %v3639_v33  ;;  %v3689_v32 = vld [vmem:[%s4674_s1 + $0x3b8] sm:$0xff]   ;;  %v621_v33 = vrot.slane %v4158_v60, %v3932_v35  ;;  %v3715_v60 = vld [vmem:[%s4674_s1 + $0x470] sm:$0xff]  }
  0x50   :  { %3303 = vmatpush3.bf16.msra.mxu0 %v3640_v34  ;;  %v3691_v34 = vld [vmem:[%s4674_s1 + $0x440] sm:$0xff]  }
  0x51   :  { %3304 = vmatprep.subr.bf16.mxu0 %v3642_v37  ;;  %3325 = vmatpush3.bf16.msra.mxu1 %v3641_v36  ;;  %v3692_v36 = vld [vmem:[%s4674_s1 + $0x4c0] sm:$0xff]  }
  0x52   :  { %3326 = vmatprep.subr.bf16.mxu1 %v3643_v38  ;;  %v3693_v37 = vld [vmem:[%s4674_s1 + $0x400] sm:$0xff]  }
  0x53   :  { %v3694_v38 = vld [vmem:[%s4674_s1 + $0x480] sm:$0xff]  }
  0x54   :  { %3305 = vmatpush3.bf16.msra.mxu0 %v3644_v39  ;;  %v637_v39 = vcombine.high %v621_v33, %v621_v33 }
  0x55   :  { %3306 = vmatprep.subr.bf16.mxu0 %v3646_v41  ;;  %3327 = vmatpush3.bf16.msra.mxu1 %v3645_v40  ;;  %v3695_v40 = vld [vmem:[%s4674_s1 + $0x448] sm:$0xff]  }
  0x56   :  { %3328 = vmatprep.subr.bf16.mxu1 %v3647_v42  ;;  %v3696_v41 = vld [vmem:[%s4674_s1 + $0x4c8] sm:$0xff]  }
  0x57   :  { %v3697_v42 = vld [vmem:[%s4674_s1 + $0x408] sm:$0xff]  }
  0x58   :  { %3307 = vmatpush3.bf16.msra.mxu0 %v3648_v43  ;;  %v3698_v43 = vld [vmem:[%s4674_s1 + $0x488] sm:$0xff]  }
  0x59   :  { %3308 = vmatprep.subr.bf16.mxu0 %v3650_v45  ;;  %3329 = vmatpush3.bf16.msra.mxu1 %v3649_v44  ;;  %v3699_v44 = vld [vmem:[%s4674_s1 + $0x450] sm:$0xff]  }
  0x5a   :  { %3330 = vmatprep.subr.bf16.mxu1 %v3651_v46  ;;  %v3700_v45 = vld [vmem:[%s4674_s1 + $0x4d0] sm:$0xff]  }
  0x5b   :  { %v3701_v46 = vld [vmem:[%s4674_s1 + $0x410] sm:$0xff]  }
  0x5c   :  { %3309 = vmatpush3.bf16.msra.mxu0 %v3652_v47  ;;  %v3702_v47 = vld [vmem:[%s4674_s1 + $0x490] sm:$0xff]  }
  0x5d   :  { %3310 = vmatprep.subr.bf16.mxu0 %v3654_v49  ;;  %3331 = vmatpush3.bf16.msra.mxu1 %v3653_v48  ;;  %v3703_v48 = vld [vmem:[%s4674_s1 + $0x458] sm:$0xff]  }
  0x5e   :  { %3332 = vmatprep.subr.bf16.mxu1 %v3655_v50  ;;  %v3704_v49 = vld [vmem:[%s4674_s1 + $0x4d8] sm:$0xff]  }
  0x5f   :  { %v3705_v50 = vld [vmem:[%s4674_s1 + $0x418] sm:$0xff]  }
  0x60   :  { %3311 = vmatpush3.bf16.msra.mxu0 %v3656_v51  ;;  %v3706_v51 = vld [vmem:[%s4674_s1 + $0x498] sm:$0xff]  }
  0x61   :  { %3340 = vmatprep.subr.bf16.mxu0 %v3658_v56  ;;  %3333 = vmatpush3.bf16.msra.mxu1 %v3657_v53  ;;  %v3708_v53 = vld [vmem:[%s4674_s1 + $0x4e0] sm:$0xff]   ;;  %v3711_v56 = vld [vmem:[%s4674_s1 + $0x468] sm:$0xff]  }
  0x62   :  { %3362 = vmatprep.subr.bf16.mxu1 %v3659_v59  ;;  %v3714_v59 = vld [vmem:[%s4674_s1 + $0x4a8] sm:$0xff]  }
  0x63   :  { %2499 = vmatmul.mubr.bf16.vlgmr.msra.gmra.mrb[8].mxu0 %v614_v58  ;;  %v3713_v58 = vld [vmem:[%s4674_s1 + $0x428] sm:$0xff]  }
  0x64   :  { %3341 = vmatpush3.bf16.msra.mxu0 %v3660_v61  ;;  %2539 = vmatmul.mubr.bf16.vlgmr.msra.gmra.mrb[8].mxu1 %v636_v1  ;;  %v3716_v61 = vld [vmem:[%s4674_s1 + $0x4f0] sm:$0xff]   ;;  %v3720_v1 = vld [vmem:[%s4674_s1 + $0x4f8] sm:$0xff]  }
  0x65   :  { %3342 = vmatprep.subr.bf16.mxu0 %v3662_v2  ;;  %3363 = vmatpush3.bf16.msra.mxu1 %v3661_v63  ;;  %v3718_v63 = vld [vmem:[%s4674_s1 + $0x4b0] sm:$0xff]   ;;  %v3721_v2 = vld [vmem:[%s4674_s1 + $0x438] sm:$0xff]  }
  0x66   :  { %2578 = vmatprep.mubr.bf16.mxu0 %v635_v5  ;;  %3364 = vmatprep.subr.bf16.mxu1 %v3663_v4  ;;  %v3722_v4 = vld [vmem:[%s4674_s1 + $0x4b8] sm:$0xff]   ;;  %v647_v5 = vrot.slane %v17_v3, %v3932_v35 }
  0x67   :  { %2618 = vmatprep.mubr.bf16.mxu1 %v639_v8 }
  0x68   :  { %3343 = vmatpush3.bf16.msra.mxu0 %v3664_v6  ;;  %v640_v6 = vcombine.high %v17_v3, %v17_v3  ;;  %v655_v8 = vcombine.high %v647_v5, %v647_v5  ;;  %v3772_v3 = vld [vmem:[%s4674_s1 + $0x660] sm:$0xff]  }
  0x69   :  { %3344 = vmatprep.subr.bf16.mxu0 %v3666_v9  ;;  %3365 = vmatpush3.bf16.msra.mxu1 %v3665_v7  ;;  %v3723_v7 = vld [vmem:[%s4674_s1 + $0x540] sm:$0xff]   ;;  %v663_v9 = vrot.slane %v647_v5, %v3932_v35 }
  0x6a   :  { %3366 = vmatprep.subr.bf16.mxu1 %v3667_v10  ;;  %v3724_v10 = vld [vmem:[%s4674_s1 + $0x5c0] sm:$0xff]  }
  0x6b   :  { %v3774_v5 = vld [vmem:[%s4674_s1 + $0x620] sm:$0xff]  }
  0x6c   :  { %3345 = vmatpush3.bf16.msra.mxu0 %v3668_v11  ;;  %v4364_v11 = vrot.slane %v640_v6, %v3932_v35  ;;  %v3775_v6 = vld [vmem:[%s4674_s1 + $0x6a0] sm:$0xff]  }
  0x6d   :  { %3346 = vmatprep.subr.bf16.mxu0 %v3670_v13  ;;  %3367 = vmatpush3.bf16.msra.mxu1 %v3669_v12  ;;  %v3725_v12 = vld [vmem:[%s4674_s1 + $0x500] sm:$0xff]   ;;  %v677_v13 = vrot.slane %v655_v8, %v3932_v35  ;;  %v3777_v8 = vld [vmem:[%s4674_s1 + $0x6e8] sm:$0xff]  }
  0x6e   :  { %3368 = vmatprep.subr.bf16.mxu1 %v3671_v14  ;;  %v3726_v14 = vld [vmem:[%s4674_s1 + $0x580] sm:$0xff]  }
  0x70   :  { %3347 = vmatpush3.bf16.msra.mxu0 %v3672_v15  ;;  %v656_v15 = vcombine.high %v4364_v11, %v4364_v11 }
  0x71   :  { %3348 = vmatprep.subr.bf16.mxu0 %v3674_v17  ;;  %3369 = vmatpush3.bf16.msra.mxu1 %v3673_v16  ;;  %v685_v16 = vcombine.high %v663_v9, %v663_v9  ;;  %v3727_v17 = vld [vmem:[%s4674_s1 + $0x548] sm:$0xff]  }
  0x72   :  { %3370 = vmatprep.subr.bf16.mxu1 %v3675_v18  ;;  %v687_v18 = vcombine.high %v677_v13, %v677_v13 }
  0x74   :  { %3349 = vmatpush3.bf16.msra.mxu0 %v3676_v19  ;;  %v3728_v19 = vld [vmem:[%s4674_s1 + $0x5c8] sm:$0xff]  }
  0x75   :  { %3350 = vmatprep.subr.bf16.mxu0 %v3678_v21  ;;  %3371 = vmatpush3.bf16.msra.mxu1 %v3677_v20  ;;  %v684_v20 = vrot.slane %v656_v15, %v3932_v35  ;;  %v3729_v21 = vld [vmem:[%s4674_s1 + $0x508] sm:$0xff]   ;;  %v3784_v15 = vld [vmem:[%s4674_s1 + $0x678] sm:$0xff]  }
  0x76   :  { %3372 = vmatprep.subr.bf16.mxu1 %v3679_v22  ;;  %v3730_v22 = vld [vmem:[%s4674_s1 + $0x588] sm:$0xff]  }
  0x78   :  { %3351 = vmatpush3.bf16.msra.mxu0 %v3680_v23  ;;  %v688_v23 = vcombine.high %v684_v20, %v684_v20 }
  0x79   :  { %3352 = vmatprep.subr.bf16.mxu0 %v3682_v25  ;;  %3373 = vmatpush3.bf16.msra.mxu1 %v3681_v24  ;;  %v3731_v24 = vld [vmem:[%s4674_s1 + $0x550] sm:$0xff]  }
  0x7a   :  { %3374 = vmatprep.subr.bf16.mxu1 %v3683_v26  ;;  %v3732_v25 = vld [vmem:[%s4674_s1 + $0x5d0] sm:$0xff]  }
  0x7b   :  { %v3733_v26 = vld [vmem:[%s4674_s1 + $0x510] sm:$0xff]  }
  0x7c   :  { %3353 = vmatpush3.bf16.msra.mxu0 %v3684_v27  ;;  %v3734_v27 = vld [vmem:[%s4674_s1 + $0x590] sm:$0xff]  }
  0x7d   :  { %3354 = vmatprep.subr.bf16.mxu0 %v3686_v29  ;;  %3375 = vmatpush3.bf16.msra.mxu1 %v3685_v28  ;;  %v3735_v28 = vld [vmem:[%s4674_s1 + $0x558] sm:$0xff]  }
  0x7e   :  { %3376 = vmatprep.subr.bf16.mxu1 %v3687_v30  ;;  %v3736_v29 = vld [vmem:[%s4674_s1 + $0x5d8] sm:$0xff]  }
  0x7f   :  { %v3737_v30 = vld [vmem:[%s4674_s1 + $0x518] sm:$0xff]  }
  0x80   :  { %3355 = vmatpush3.bf16.msra.mxu0 %v3688_v31  ;;  %v3738_v31 = vld [vmem:[%s4674_s1 + $0x598] sm:$0xff]  }
  0x81   :  { %3384 = vmatprep.subr.bf16.mxu0 %v3691_v34  ;;  %3377 = vmatpush3.bf16.msra.mxu1 %v3689_v32  ;;  %v3739_v32 = vld [vmem:[%s4674_s1 + $0x560] sm:$0xff]  }
  0x82   :  { %3406 = vmatprep.subr.bf16.mxu1 %v3692_v36  ;;  %v3741_v34 = vld [vmem:[%s4674_s1 + $0x520] sm:$0xff]  }
  0x83   :  { %2579 = vmatmul.mubr.bf16.vlgmr.msra.gmra.mrb[12].mxu0 %v621_v33  ;;  %v3740_v33 = vld [vmem:[%s4674_s1 + $0x5e0] sm:$0xff]  }
  0x84   :  { %3385 = vmatpush3.bf16.msra.mxu0 %v3693_v37  ;;  %2619 = vmatmul.mubr.bf16.vlgmr.msra.gmra.mrb[12].mxu1 %v637_v39  ;;  %v3742_v36 = vld [vmem:[%s4674_s1 + $0x5a0] sm:$0xff]   ;;  %v3743_v37 = vld [vmem:[%s4674_s1 + $0x568] sm:$0xff]  }
  0x85   :  { %3386 = vmatprep.subr.bf16.mxu0 %v3695_v40  ;;  %3407 = vmatpush3.bf16.msra.mxu1 %v3694_v38  ;;  %v3744_v38 = vld [vmem:[%s4674_s1 + $0x5e8] sm:$0xff]  }
  0x86   :  { %3408 = vmatprep.subr.bf16.mxu1 %v3696_v41  ;;  %2658 = vmatprep.mubr.bf16.mxu0 %v677_v13  ;;  %v3745_v39 = vld [vmem:[%s4674_s1 + $0x528] sm:$0xff]   ;;  %v3747_v41 = vld [vmem:[%s4674_s1 + $0x570] sm:$0xff]  }
  0x87   :  { %2698 = vmatprep.mubr.bf16.mxu1 %v687_v18  ;;  %v3746_v40 = vld [vmem:[%s4674_s1 + $0x5a8] sm:$0xff]   ;;  %v3782_v13 = vld [vmem:[%s4674_s1 + $0x630] sm:$0xff]   ;;  %v18_v18 = vld [vmem:[%s4675_s0 + $0x18] sm:$0xff] }
  0x88   :  { %3387 = vmatpush3.bf16.msra.mxu0 %v3697_v42  ;;  %v3748_v42 = vld [vmem:[%s4674_s1 + $0x5f0] sm:$0xff]  }
  0x89   :  { %3388 = vmatprep.subr.bf16.mxu0 %v3699_v44  ;;  %3409 = vmatpush3.bf16.msra.mxu1 %v3698_v43  ;;  %v3749_v43 = vld [vmem:[%s4674_s1 + $0x530] sm:$0xff]  }
  0x8a   :  { %3410 = vmatprep.subr.bf16.mxu1 %v3700_v45  ;;  %v3750_v44 = vld [vmem:[%s4674_s1 + $0x5b0] sm:$0xff]   ;;  %v3751_v45 = vld [vmem:[%s4674_s1 + $0x578] sm:$0xff]  }
  0x8c   :  { %3389 = vmatpush3.bf16.msra.mxu0 %v3701_v46  ;;  %v3752_v46 = vld [vmem:[%s4674_s1 + $0x5f8] sm:$0xff]  }
  0x8d   :  { %3390 = vmatprep.subr.bf16.mxu0 %v3703_v48  ;;  %3411 = vmatpush3.bf16.msra.mxu1 %v3702_v47  ;;  %v3753_v47 = vld [vmem:[%s4674_s1 + $0x538] sm:$0xff]  }
  0x8e   :  { %3412 = vmatprep.subr.bf16.mxu1 %v3704_v49  ;;  %v3754_v48 = vld [vmem:[%s4674_s1 + $0x5b8] sm:$0xff]   ;;  %v670_v49 = vrot.slane %v4364_v11, %v3932_v35  ;;  %v3780_v11 = vld [vmem:[%s4674_s1 + $0x670] sm:$0xff]  }
  0x90   :  { %3391 = vmatpush3.bf16.msra.mxu0 %v3705_v50  ;;  %v3756_v50 = vld [vmem:[%s4674_s1 + $0x640] sm:$0xff]  }
  0x91   :  { %3392 = vmatprep.subr.bf16.mxu0 %v3707_v52  ;;  %3413 = vmatpush3.bf16.msra.mxu1 %v3706_v51  ;;  %v3757_v51 = vld [vmem:[%s4674_s1 + $0x6c0] sm:$0xff]  }
  0x92   :  { %3414 = vmatprep.subr.bf16.mxu1 %v3708_v53  ;;  %v3758_v52 = vld [vmem:[%s4674_s1 + $0x600] sm:$0xff]  }
  0x93   :  { %v3759_v53 = vld [vmem:[%s4674_s1 + $0x680] sm:$0xff]  }
  0x94   :  { %3393 = vmatpush3.bf16.msra.mxu0 %v3709_v54  ;;  %v686_v54 = vcombine.high %v670_v49, %v670_v49 }
  0x95   :  { %3394 = vmatprep.subr.bf16.mxu0 %v3711_v56  ;;  %3415 = vmatpush3.bf16.msra.mxu1 %v3710_v55  ;;  %v3760_v55 = vld [vmem:[%s4674_s1 + $0x648] sm:$0xff]  }
  0x96   :  { %3416 = vmatprep.subr.bf16.mxu1 %v3712_v57  ;;  %v3761_v56 = vld [vmem:[%s4674_s1 + $0x6c8] sm:$0xff]  }
  0x97   :  { %v3762_v57 = vld [vmem:[%s4674_s1 + $0x608] sm:$0xff]  }
  0x98   :  { %3395 = vmatpush3.bf16.msra.mxu0 %v3713_v58  ;;  %v3763_v58 = vld [vmem:[%s4674_s1 + $0x688] sm:$0xff]  }
  0x99   :  { %3396 = vmatprep.subr.bf16.mxu0 %v3715_v60  ;;  %3417 = vmatpush3.bf16.msra.mxu1 %v3714_v59  ;;  %v3764_v59 = vld [vmem:[%s4674_s1 + $0x650] sm:$0xff]  }
  0x9a   :  { %3418 = vmatprep.subr.bf16.mxu1 %v3716_v61  ;;  %v3765_v60 = vld [vmem:[%s4674_s1 + $0x6d0] sm:$0xff]  }
  0x9b   :  { %v3766_v61 = vld [vmem:[%s4674_s1 + $0x610] sm:$0xff]  }
  0x9c   :  { %3397 = vmatpush3.bf16.msra.mxu0 %v3717_v62  ;;  %v3767_v62 = vld [vmem:[%s4674_s1 + $0x690] sm:$0xff]  }
  0x9d   :  { %3398 = vmatprep.subr.bf16.mxu0 %v3719_v0  ;;  %3419 = vmatpush3.bf16.msra.mxu1 %v3718_v63  ;;  %v3768_v63 = vld [vmem:[%s4674_s1 + $0x658] sm:$0xff]  }
  0x9e   :  { %3420 = vmatprep.subr.bf16.mxu1 %v3720_v1  ;;  %v3769_v0 = vld [vmem:[%s4674_s1 + $0x6d8] sm:$0xff]  }
  0x9f   :  { %v3770_v1 = vld [vmem:[%s4674_s1 + $0x618] sm:$0xff]  }
  0xa0   :  { %3399 = vmatpush3.bf16.msra.mxu0 %v3721_v2  ;;  %v3771_v2 = vld [vmem:[%s4674_s1 + $0x698] sm:$0xff]  }
  0xa1   :  { %3428 = vmatprep.subr.bf16.mxu0 %v3723_v7  ;;  %3421 = vmatpush3.bf16.msra.mxu1 %v3722_v4  ;;  %v3773_v4 = vld [vmem:[%s4674_s1 + $0x6e0] sm:$0xff]   ;;  %v3776_v7 = vld [vmem:[%s4674_s1 + $0x668] sm:$0xff]  }
  0xa2   :  { %3450 = vmatprep.subr.bf16.mxu1 %v3724_v10  ;;  %v3779_v10 = vld [vmem:[%s4674_s1 + $0x6a8] sm:$0xff]  }
  0xa3   :  { %2659 = vmatmul.mubr.bf16.vlgmr.msra.gmra.mrb[16].mxu0 %v663_v9  ;;  %v3778_v9 = vld [vmem:[%s4674_s1 + $0x628] sm:$0xff]  }
  0xa4   :  { %3429 = vmatpush3.bf16.msra.mxu0 %v3725_v12  ;;  %2699 = vmatmul.mubr.bf16.vlgmr.msra.gmra.mrb[16].mxu1 %v685_v16  ;;  %v3781_v12 = vld [vmem:[%s4674_s1 + $0x6f0] sm:$0xff]   ;;  %v3785_v16 = vld [vmem:[%s4674_s1 + $0x6f8] sm:$0xff]  }
  0xa5   :  { %3430 = vmatprep.subr.bf16.mxu0 %v3727_v17  ;;  %3451 = vmatpush3.bf16.msra.mxu1 %v3726_v14  ;;  %v3783_v14 = vld [vmem:[%s4674_s1 + $0x6b0] sm:$0xff]   ;;  %v3786_v17 = vld [vmem:[%s4674_s1 + $0x638] sm:$0xff]  }
  0xa6   :  { %2738 = vmatprep.mubr.bf16.mxu0 %v684_v20  ;;  %3452 = vmatprep.subr.bf16.mxu1 %v3728_v19  ;;  %v696_v19 = vrot.slane %v18_v18, %v3932_v35  ;;  %v3788_v20 = vld [vmem:[%s4674_s1 + $0x740] sm:$0xff]  }
  0xa7   :  { %2778 = vmatprep.mubr.bf16.mxu1 %v688_v23 }
  0xa8   :  { %3431 = vmatpush3.bf16.msra.mxu0 %v3729_v21  ;;  %v689_v21 = vcombine.high %v18_v18, %v18_v18  ;;  %v704_v23 = vcombine.high %v696_v19, %v696_v19 }
  0xa9   :  { %3432 = vmatprep.subr.bf16.mxu0 %v3731_v24  ;;  %3453 = vmatpush3.bf16.msra.mxu1 %v3730_v22  ;;  %v3787_v22 = vld [vmem:[%s4674_s1 + $0x6b8] sm:$0xff]   ;;  %v712_v24 = vrot.slane %v696_v19, %v3932_v35 }
  0xaa   :  { %3454 = vmatprep.subr.bf16.mxu1 %v3732_v25  ;;  %v3789_v25 = vld [vmem:[%s4674_s1 + $0x7c0] sm:$0xff]  }
  0xac   :  { %3433 = vmatpush3.bf16.msra.mxu0 %v3733_v26  ;;  %v4570_v26 = vrot.slane %v689_v21, %v3932_v35 }
  0xad   :  { %3434 = vmatprep.subr.bf16.mxu0 %v3735_v28  ;;  %3455 = vmatpush3.bf16.msra.mxu1 %v3734_v27  ;;  %v726_v27 = vrot.slane %v704_v23, %v3932_v35  ;;  %v3790_v28 = vld [vmem:[%s4674_s1 + $0x700] sm:$0xff]  }
  0xae   :  { %3456 = vmatprep.subr.bf16.mxu1 %v3736_v29  ;;  %v705_v29 = vcombine.high %v4570_v26, %v4570_v26 }
  0xb0   :  { %3435 = vmatpush3.bf16.msra.mxu0 %v3737_v30  ;;  %v734_v30 = vcombine.high %v712_v24, %v712_v24 }
  0xb1   :  { %3436 = vmatprep.subr.bf16.mxu0 %v3739_v32  ;;  %3457 = vmatpush3.bf16.msra.mxu1 %v3738_v31  ;;  %v3792_v31 = vld [vmem:[%s4674_s1 + $0x748] sm:$0xff]   ;;  %v736_v32 = vcombine.high %v726_v27, %v726_v27 }
  0xb2   :  { %3458 = vmatprep.subr.bf16.mxu1 %v3740_v33  ;;  %v3791_v33 = vld [vmem:[%s4674_s1 + $0x780] sm:$0xff]  }
  0xb4   :  { %3437 = vmatpush3.bf16.msra.mxu0 %v3741_v34  ;;  %v733_v34 = vrot.slane %v705_v29, %v3932_v35 }
  0xb5   :  { %3438 = vmatprep.subr.bf16.mxu0 %v3743_v37  ;;  %3459 = vmatpush3.bf16.msra.mxu1 %v3742_v36  ;;  %v3793_v36 = vld [vmem:[%s4674_s1 + $0x7c8] sm:$0xff]  }
  0xb6   :  { %3460 = vmatprep.subr.bf16.mxu1 %v3744_v38  ;;  %v3794_v37 = vld [vmem:[%s4674_s1 + $0x708] sm:$0xff]   ;;  %v737_v38 = vcombine.high %v733_v34, %v733_v34 }
  0xb8   :  { %3439 = vmatpush3.bf16.msra.mxu0 %v3745_v39  ;;  %v3796_v39 = vld [vmem:[%s4674_s1 + $0x750] sm:$0xff]  }
  0xb9   :  { %3440 = vmatprep.subr.bf16.mxu0 %v3747_v41  ;;  %3461 = vmatpush3.bf16.msra.mxu1 %v3746_v40  ;;  %v3795_v40 = vld [vmem:[%s4674_s1 + $0x788] sm:$0xff]   ;;  %v3797_v41 = vld [vmem:[%s4674_s1 + $0x7d0] sm:$0xff]  }
  0xba   :  { %3462 = vmatprep.subr.bf16.mxu1 %v3748_v42  ;;  %v3798_v42 = vld [vmem:[%s4674_s1 + $0x710] sm:$0xff]  }
  0xbc   :  { %3441 = vmatpush3.bf16.msra.mxu0 %v3749_v43  ;;  %v3800_v43 = vld [vmem:[%s4674_s1 + $0x758] sm:$0xff]  }
  0xbd   :  { %3442 = vmatprep.subr.bf16.mxu0 %v3751_v45  ;;  %3463 = vmatpush3.bf16.msra.mxu1 %v3750_v44  ;;  %v3799_v44 = vld [vmem:[%s4674_s1 + $0x790] sm:$0xff]   ;;  %v3801_v45 = vld [vmem:[%s4674_s1 + $0x7d8] sm:$0xff]  }
  0xbe   :  { %3464 = vmatprep.subr.bf16.mxu1 %v3752_v46  ;;  %v3802_v46 = vld [vmem:[%s4674_s1 + $0x718] sm:$0xff]  }
  0xc0   :  { %3443 = vmatpush3.bf16.msra.mxu0 %v3753_v47  ;;  %v3804_v47 = vld [vmem:[%s4674_s1 + $0x760] sm:$0xff]  }
  0xc1   :  { %3472 = vmatprep.subr.bf16.mxu0 %v3756_v50  ;;  %3465 = vmatpush3.bf16.msra.mxu1 %v3754_v48  ;;  %v3803_v48 = vld [vmem:[%s4674_s1 + $0x798] sm:$0xff]   ;;  %v3806_v50 = vld [vmem:[%s4674_s1 + $0x720] sm:$0xff]  }
  0xc2   :  { %3494 = vmatprep.subr.bf16.mxu1 %v3757_v51  ;;  %v3808_v51 = vld [vmem:[%s4674_s1 + $0x768] sm:$0xff]  }
  0xc3   :  { %2739 = vmatmul.mubr.bf16.vlgmr.msra.gmra.mrb[20].mxu0 %v670_v49  ;;  %v3805_v49 = vld [vmem:[%s4674_s1 + $0x7e0] sm:$0xff]  }
  0xc4   :  { %3473 = vmatpush3.bf16.msra.mxu0 %v3758_v52  ;;  %2779 = vmatmul.mubr.bf16.vlgmr.msra.gmra.mrb[20].mxu1 %v686_v54  ;;  %v3807_v52 = vld [vmem:[%s4674_s1 + $0x7a0] sm:$0xff]  }
  0xc5   :  { %3474 = vmatprep.subr.bf16.mxu0 %v3760_v55  ;;  %3495 = vmatpush3.bf16.msra.mxu1 %v3759_v53  ;;  %v3809_v53 = vld [vmem:[%s4674_s1 + $0x7e8] sm:$0xff]   ;;  %v2951_v54 = vld [vmem:[%s4676_s2] ss:$0 sm:$0xff] }
  0xc6   :  { %3496 = vmatprep.subr.bf16.mxu1 %v3761_v56  ;;  %2818 = vmatprep.mubr.bf16.mxu0 %v726_v27  ;;  %v3810_v55 = vld [vmem:[%s4674_s1 + $0x728] sm:$0xff]  }
  0xc7   :  { %2858 = vmatprep.mubr.bf16.mxu1 %v736_v32 }
  0xc8   :  { %3475 = vmatpush3.bf16.msra.mxu0 %v3762_v57  ;;  %v3812_v57 = vld [vmem:[%s4674_s1 + $0x770] sm:$0xff]  }
  0xc9   :  { %3476 = vmatprep.subr.bf16.mxu0 %v3764_v59  ;;  %3497 = vmatpush3.bf16.msra.mxu1 %v3763_v58  ;;  %v3811_v59 = vld [vmem:[%s4674_s1 + $0x7a8] sm:$0xff]  }
  0xca   :  { %3498 = vmatprep.subr.bf16.mxu1 %v3765_v60 }
  0xcc   :  { %3477 = vmatpush3.bf16.msra.mxu0 %v3766_v61 }
  0xcd   :  { %3478 = vmatprep.subr.bf16.mxu0 %v3768_v63  ;;  %3499 = vmatpush3.bf16.msra.mxu1 %v3767_v62  ;;  %v3813_v63 = vld [vmem:[%s4674_s1 + $0x7f0] sm:$0xff]  }
  0xce   :  { %3500 = vmatprep.subr.bf16.mxu1 %v3769_v0  ;;  %v3814_v0 = vld [vmem:[%s4674_s1 + $0x730] sm:$0xff]  }
  0xd0   :  { %3479 = vmatpush3.bf16.msra.mxu0 %v3770_v1 }
  0xd1   :  { %3480 = vmatprep.subr.bf16.mxu0 %v3772_v3  ;;  %3501 = vmatpush3.bf16.msra.mxu1 %v3771_v2 }
  0xd2   :  { %3502 = vmatprep.subr.bf16.mxu1 %v3773_v4 }
  0xd4   :  { %3481 = vmatpush3.bf16.msra.mxu0 %v3774_v5 }
  0xd5   :  { %3482 = vmatprep.subr.bf16.mxu0 %v3776_v7  ;;  %3503 = vmatpush3.bf16.msra.mxu1 %v3775_v6  ;;  %v3816_v6 = vld [vmem:[%s4674_s1 + $0x778] sm:$0xff]  }
  0xd6   :  { %3504 = vmatprep.subr.bf16.mxu1 %v3777_v8  ;;  %v3815_v8 = vld [vmem:[%s4674_s1 + $0x7b0] sm:$0xff]  }
  0xd8   :  { %3483 = vmatpush3.bf16.msra.mxu0 %v3778_v9 }
  0xd9   :  { %3484 = vmatprep.subr.bf16.mxu0 %v3780_v11  ;;  %3505 = vmatpush3.bf16.msra.mxu1 %v3779_v10  ;;  %v3817_v10 = vld [vmem:[%s4674_s1 + $0x7f8] sm:$0xff]  }
  0xda   :  { %3506 = vmatprep.subr.bf16.mxu1 %v3781_v12  ;;  %v3818_v11 = vld [vmem:[%s4674_s1 + $0x738] sm:$0xff]   ;;  %v719_v12 = vrot.slane %v4570_v26, %v3932_v35 }
  0xdc   :  { %3485 = vmatpush3.bf16.msra.mxu0 %v3782_v13  ;;  %v3819_v13 = vld [vmem:[%s4674_s1 + $0x7b8] sm:$0xff]  }
  0xdd   :  { %3486 = vmatprep.subr.bf16.mxu0 %v3784_v15  ;;  %3507 = vmatpush3.bf16.msra.mxu1 %v3783_v14  ;;  %v735_v14 = vcombine.high %v719_v12, %v719_v12 }
  0xde   :  { %3508 = vmatprep.subr.bf16.mxu1 %v3785_v16 }
  0xe0   :  { %3487 = vmatpush3.bf16.msra.mxu0 %v3786_v17 }
  0xe1   :  { %3516 = vmatprep.subr.bf16.mxu0 %v3788_v20  ;;  %3509 = vmatpush3.bf16.msra.mxu1 %v3787_v22 }
  0xe2   :  { %3538 = vmatprep.subr.bf16.mxu1 %v3789_v25 }
  0xe3   :  { %2819 = vmatmul.mubr.bf16.vlgmr.msra.gmra.mrb[24].mxu0 %v712_v24 }
  0xe4   :  { %3517 = vmatpush3.bf16.msra.mxu0 %v3790_v28  ;;  %2859 = vmatmul.mubr.bf16.vlgmr.msra.gmra.mrb[24].mxu1 %v734_v30 }
  0xe5   :  { %3518 = vmatprep.subr.bf16.mxu0 %v3792_v31  ;;  %3539 = vmatpush3.bf16.msra.mxu1 %v3791_v33 }
  0xe6   :  { %2898 = vmatprep.mubr.bf16.mxu0 %v733_v34  ;;  %3540 = vmatprep.subr.bf16.mxu1 %v3793_v36 }
  0xe7   :  { %2938 = vmatprep.mubr.bf16.mxu1 %v737_v38 }
  0xe8   :  { %3519 = vmatpush3.bf16.msra.mxu0 %v3794_v37 }
  0xe9   :  { %3520 = vmatprep.subr.bf16.mxu0 %v3796_v39  ;;  %3541 = vmatpush3.bf16.msra.mxu1 %v3795_v40 }
  0xea   :  { %3542 = vmatprep.subr.bf16.mxu1 %v3797_v41 }
  0xec   :  { %3521 = vmatpush3.bf16.msra.mxu0 %v3798_v42 }
  0xed   :  { %3522 = vmatprep.subr.bf16.mxu0 %v3800_v43  ;;  %3543 = vmatpush3.bf16.msra.mxu1 %v3799_v44 }
  0xee   :  { %3544 = vmatprep.subr.bf16.mxu1 %v3801_v45 }
  0xf0   :  { %3523 = vmatpush3.bf16.msra.mxu0 %v3802_v46 }
  0xf1   :  { %3524 = vmatprep.subr.bf16.mxu0 %v3804_v47  ;;  %3545 = vmatpush3.bf16.msra.mxu1 %v3803_v48 }
  0xf2   :  { %3546 = vmatprep.subr.bf16.mxu1 %v3805_v49 }
  0xf4   :  { %3525 = vmatpush3.bf16.msra.mxu0 %v3806_v50 }
  0xf5   :  { %3526 = vmatprep.subr.bf16.mxu0 %v3808_v51  ;;  %3547 = vmatpush3.bf16.msra.mxu1 %v3807_v52 }
  0xf6   :  { %v3224_v56 = vpop.f32.mrb[0].mxu0  ;;  %3548 = vmatprep.subr.bf16.mxu1 %v3809_v53 }
  0xf7   :  { %v3225_v58 = vpop.f32.mrb[1].mxu0  ;;  %v3246_v60 = vpop.f32.mrb[0].mxu1 }
  0xf8   :  { %v3226_v61 = vadd.f32 %v3225_v58, %v3224_v56  ;;  %v3227_v62 = vpop.f32.mrb[2].mxu0  ;;  %v3247_v1 = vpop.f32.mrb[1].mxu1  ;;  %3527 = vmatpush3.bf16.msra.mxu0 %v3810_v55 }
  0xf9   :  { %v3228_v2 = vpop.f32.mrb[3].mxu0  ;;  %v3248_v4 = vadd.f32 %v3247_v1, %v3246_v60  ;;  %v3249_v5 = vpop.f32.mrb[2].mxu1  ;;  %3528 = vmatprep.subr.bf16.mxu0 %v3812_v57  ;;  %3549 = vmatpush3.bf16.msra.mxu1 %v3811_v59 }
  0xfa   :  { %v2341_v3 = vadd.f32 %v3226_v61, %v2951_v54  ;;  %v3250_v7 = vpop.f32.mrb[3].mxu1  ;;  %3550 = vmatprep.subr.bf16.mxu1 %v3813_v63 }
  0xfc   :  { %v2381_v9 = vadd.f32 %v3248_v4, %v2341_v3  ;;  %3529 = vmatpush3.bf16.msra.mxu0 %v3814_v0 }
  0xfd   :  { %3530 = vmatprep.subr.bf16.mxu0 %v3816_v6  ;;  %3551 = vmatpush3.bf16.msra.mxu1 %v3815_v8 }
  0xfe   :  { %3552 = vmatprep.subr.bf16.mxu1 %v3817_v10 }
 0x100   :  { %3531 = vmatpush3.bf16.msra.mxu0 %v3818_v11 }
 0x101   :  { %3553 = vmatpush3.bf16.msra.mxu1 %v3819_v13 }
 0x103   :  { %2899 = vmatmul.mubr.bf16.vlgmr.msra.gmra.mrb[28].mxu0 %v719_v12 }
 0x104   :  { %2939 = vmatmul.mubr.bf16.vlgmr.msra.gmra.mrb[28].mxu1 %v735_v14 }
 0x116   :  { %v3268_v15 = vpop.f32.mrb[4].mxu0 }
 0x117   :  { %v3269_v16 = vpop.f32.mrb[5].mxu0  ;;  %v3290_v17 = vpop.f32.mrb[4].mxu1 }
 0x118   :  { %v3270_v18 = vadd.f32 %v3269_v16, %v3268_v15  ;;  %v3271_v19 = vpop.f32.mrb[6].mxu0  ;;  %v3291_v20 = vpop.f32.mrb[5].mxu1 }
 0x119   :  { %v3272_v21 = vpop.f32.mrb[7].mxu0  ;;  %v3292_v35 = vadd.f32 %v3291_v20, %v3290_v17  ;;  %v3293_v23 = vpop.f32.mrb[6].mxu1 }
 0x11a   :  { %v2421_v22 = vadd.f32 %v3270_v18, %v2381_v9  ;;  %v3294_v24 = vpop.f32.mrb[7].mxu1 }
 0x11c   :  { %v2461_v25 = vadd.f32 %v3292_v35, %v2421_v22 }
 0x136   :  { %v3312_v26 = vpop.f32.mrb[8].mxu0 }
 0x137   :  { %v3313_v27 = vpop.f32.mrb[9].mxu0  ;;  %v3334_v28 = vpop.f32.mrb[8].mxu1 }
 0x138   :  { %v3314_v29 = vadd.f32 %v3313_v27, %v3312_v26  ;;  %v3315_v30 = vpop.f32.mrb[10].mxu0  ;;  %v3335_v31 = vpop.f32.mrb[9].mxu1 }
 0x139   :  { %v3316_v32 = vpop.f32.mrb[11].mxu0  ;;  %v3336_v34 = vadd.f32 %v3335_v31, %v3334_v28  ;;  %v3337_v36 = vpop.f32.mrb[10].mxu1 }
 0x13a   :  { %v2501_v33 = vadd.f32 %v3314_v29, %v2461_v25  ;;  %v3338_v37 = vpop.f32.mrb[11].mxu1 }
 0x13c   :  { %v2541_v38 = vadd.f32 %v3336_v34, %v2501_v33 }
 0x156   :  { %v3356_v39 = vpop.f32.mrb[12].mxu0 }
 0x157   :  { %v3357_v40 = vpop.f32.mrb[13].mxu0  ;;  %v3378_v41 = vpop.f32.mrb[12].mxu1 }
 0x158   :  { %v3358_v42 = vadd.f32 %v3357_v40, %v3356_v39  ;;  %v3359_v43 = vpop.f32.mrb[14].mxu0  ;;  %v3379_v44 = vpop.f32.mrb[13].mxu1 }
 0x159   :  { %v3360_v45 = vpop.f32.mrb[15].mxu0  ;;  %v3380_v47 = vadd.f32 %v3379_v44, %v3378_v41  ;;  %v3381_v48 = vpop.f32.mrb[14].mxu1 }
 0x15a   :  { %v2581_v46 = vadd.f32 %v3358_v42, %v2541_v38  ;;  %v3382_v49 = vpop.f32.mrb[15].mxu1 }
 0x15c   :  { %v2621_v50 = vadd.f32 %v3380_v47, %v2581_v46 }
 0x176   :  { %v3400_v51 = vpop.f32.mrb[16].mxu0 }
 0x177   :  { %v3401_v52 = vpop.f32.mrb[17].mxu0  ;;  %v3422_v53 = vpop.f32.mrb[16].mxu1 }
 0x178   :  { %v3402_v54 = vadd.f32 %v3401_v52, %v3400_v51  ;;  %v3403_v55 = vpop.f32.mrb[18].mxu0  ;;  %v3423_v56 = vpop.f32.mrb[17].mxu1 }
 0x179   :  { %v3404_v57 = vpop.f32.mrb[19].mxu0  ;;  %v3424_v59 = vadd.f32 %v3423_v56, %v3422_v53  ;;  %v3425_v60 = vpop.f32.mrb[18].mxu1 }
 0x17a   :  { %v2661_v58 = vadd.f32 %v3402_v54, %v2621_v50  ;;  %v3426_v61 = vpop.f32.mrb[19].mxu1 }
 0x17c   :  { %v2701_v62 = vadd.f32 %v3424_v59, %v2661_v58 }
 0x196   :  { %v3444_v63 = vpop.f32.mrb[20].mxu0 }
 0x197   :  { %v3445_v0 = vpop.f32.mrb[21].mxu0  ;;  %v3466_v1 = vpop.f32.mrb[20].mxu1 }
 0x198   :  { %v3446_v2 = vadd.f32 %v3445_v0, %v3444_v63  ;;  %v3447_v3 = vpop.f32.mrb[22].mxu0  ;;  %v3467_v4 = vpop.f32.mrb[21].mxu1 }
 0x199   :  { %v3448_v5 = vpop.f32.mrb[23].mxu0  ;;  %v3468_v7 = vadd.f32 %v3467_v4, %v3466_v1  ;;  %v3469_v8 = vpop.f32.mrb[22].mxu1 }
 0x19a   :  { %v2741_v6 = vadd.f32 %v3446_v2, %v2701_v62  ;;  %v3470_v9 = vpop.f32.mrb[23].mxu1 }
 0x19c   :  { %v2781_v10 = vadd.f32 %v3468_v7, %v2741_v6 }
 0x1b6   :  { %v3488_v11 = vpop.f32.mrb[24].mxu0 }
 0x1b7   :  { %v3489_v12 = vpop.f32.mrb[25].mxu0  ;;  %v3510_v13 = vpop.f32.mrb[24].mxu1 }
 0x1b8   :  { %v3490_v14 = vadd.f32 %v3489_v12, %v3488_v11  ;;  %v3491_v15 = vpop.f32.mrb[26].mxu0  ;;  %v3511_v16 = vpop.f32.mrb[25].mxu1 }
 0x1b9   :  { %v3492_v17 = vpop.f32.mrb[27].mxu0  ;;  %v3512_v19 = vadd.f32 %v3511_v16, %v3510_v13  ;;  %v3513_v20 = vpop.f32.mrb[26].mxu1 }
 0x1ba   :  { %v2821_v18 = vadd.f32 %v3490_v14, %v2781_v10  ;;  %v3514_v21 = vpop.f32.mrb[27].mxu1 }
 0x1bc   :  { %v2861_v22 = vadd.f32 %v3512_v19, %v2821_v18 }
 0x1d6   :  { %v3532_v35 = vpop.f32.mrb[28].mxu0 }
 0x1d7   :  { %v3533_v23 = vpop.f32.mrb[29].mxu0  ;;  %v3554_v24 = vpop.f32.mrb[28].mxu1 }
 0x1d8   :  { %v3534_v25 = vadd.f32 %v3533_v23, %v3532_v35  ;;  %v3535_v26 = vpop.f32.mrb[30].mxu0  ;;  %v3555_v27 = vpop.f32.mrb[29].mxu1 }
 0x1d9   :  { %v3536_v28 = vpop.f32.mrb[31].mxu0  ;;  %v3556_v30 = vadd.f32 %v3555_v27, %v3554_v24  ;;  %v3557_v31 = vpop.f32.mrb[30].mxu1 }
 0x1da   :  { %v2901_v29 = vadd.f32 %v3534_v25, %v2861_v22  ;;  %v3558_v32 = vpop.f32.mrb[31].mxu1 }
 0x1dc   :  { %v2941_v33 = vadd.f32 %v3556_v30, %v2901_v29 }
 0x1de   :  { %2946 = vst [vmem:[%s4677_s3] sm:$0x3] %v2941_v33 }

</bundles_post_ra>
